<compile_context>
chip_gen: v5e
topology: v5e:2x2
jax: 0.10.0
libtpu: 0.0.40
codegen_flags: <defaults>
</compile_context>

<pallas_src>
import functools

import numpy as np
import jax
import jax.numpy as jnp
from jax import lax
from jax.experimental import pallas as pl
from jax.experimental.pallas import tpu as pltpu


# ----------------------------------------------------------------------------
# Helpers
# ----------------------------------------------------------------------------
def _pick_tile(m, cap=256):
    """Largest row tile <= cap that divides m exactly (whole array if m <= cap)."""
    if m <= cap:
        return m
    t = cap - cap % 8
    while t >= 8:
        if m % t == 0:
            return t
        t -= 8
    return m  # fallback: single full block (fine at these sizes)


def _bn_scale_shift(bn, eps=1e-5):
    scale = bn["gamma"] / jnp.sqrt(bn["var"] + eps)
    shift = bn["beta"] - bn["mean"] * scale
    return scale, shift


# ----------------------------------------------------------------------------
# Kernel 1: conv0 (7x7 / stride 2) as a fused matmul with folded norm0 + ReLU
# ----------------------------------------------------------------------------
def _conv0_kernel(p_ref, w_ref, b_ref, o_ref):
    acc = jnp.dot(p_ref[...], w_ref[...], preferred_element_type=jnp.float32)
    o_ref[...] = jnp.maximum(acc + b_ref[...], 0.0).astype(o_ref.dtype)


def conv0_matmul(patches_bf16, w_bf16, shift_f32):
    M, K = patches_bf16.shape
    N = w_bf16.shape[1]
    TM = _pick_tile(M)  # M=512 -> TM=256 -> grid=(2,) "parallel" (uses both v7x TCs)
    flops = 2 * M * K * N
    bytes_accessed = (M * K + K * N + M * N) * 2 + N * 4
    return pl.pallas_call(
        _conv0_kernel,
        out_shape=jax.ShapeDtypeStruct((M, N), jnp.bfloat16),  # bf16 HBM intermediate
        grid=(M // TM,),
        in_specs=[pl.BlockSpec((TM, K), lambda i: (i, 0)),
                  pl.BlockSpec((K, N), lambda i: (0, 0)),
                  pl.BlockSpec((1, N), lambda i: (0, 0))],
        out_specs=pl.BlockSpec((TM, N), lambda i: (i, 0)),
        compiler_params=pltpu.CompilerParams(dimension_semantics=("parallel",)),
        cost_estimate=pl.CostEstimate(flops=flops, transcendentals=0,
                                      bytes_accessed=bytes_accessed),
    )(patches_bf16, w_bf16, shift_f32)


# ----------------------------------------------------------------------------
# Kernel 2: everything after conv0 in a single pallas_call (per-image grid)
# ----------------------------------------------------------------------------
def _make_encoder_kernel(cfg):
    stages = cfg["stages"]          # tuple of (H, W, Cin, num_layers, has_transition)
    growth = cfg["growth"]
    cb = cfg["cb"]                  # bottleneck width = bn_size * growth
    PAD = cfg["pad_rows"]           # zero-pad rows around z in the 3x3-conv scratch

    def kernel(*refs):
        o_ref, slab_ref, zpad_ref = refs[-3], refs[-2], refs[-1]
        it = iter(refs[:-3])
        act_ref = next(it)          # (Hc*Wc, C0) bf16 : conv0 output of this image
        sel_ref = next(it)          # (9*Hp*Wp, Hc*Wc) bf16 : pool0 one-hot selection rows

        # ---- pool0: MaxPool2d(3, 2, pad=1) as 9 selection matmuls.
        # conv0 applied ReLU, so activations >= 0 and a zero (out-of-bounds) tap can
        # never exceed the max over the valid taps -> exact, no -inf padding needed.
        H0, W0, C0 = stages[0][0], stages[0][1], stages[0][2]
        M0 = H0 * W0
        x = None
        for t in range(9):
            tap = jnp.dot(sel_ref[t * M0:(t + 1) * M0, :], act_ref[...],
                          preferred_element_type=jnp.float32)
            x = tap if x is None else jnp.maximum(x, tap)
        slab_ref[:M0, :C0] = x      # dense-connectivity slab lives in VMEM scratch

        # ---- dense blocks + transitions, entirely on the VMEM slab.
        for (H, W, Cin, nlayers, has_trans) in stages:
            M = H * W
            wcol = lax.broadcasted_iota(jnp.int32, (M, 1), 0) % W
            c = Cin
            for _ in range(nlayers):
                bn1_ref = next(it)  # (2, c)  f32 : norm1 scale / shift
                w1_ref = next(it)   # (c, cb) bf16: conv1 with norm2 scale folded in
                b2_ref = next(it)   # (1, cb) f32 : norm2 shift
                w2_ref = next(it)   # (9*cb, growth) bf16: 3x3 conv taps stacked on rows

                # norm1 + relu -> 1x1 conv -> (+norm2 shift) + relu   (all in registers)
                xin = slab_ref[:M, :c]
                a = jnp.maximum(xin * bn1_ref[0:1, :] + bn1_ref[1:2, :], 0.0)
                z = jnp.dot(a.astype(jnp.bfloat16), w1_ref[...],
                            preferred_element_type=jnp.float32)
                z = jnp.maximum(z + b2_ref[...], 0.0)

                # 3x3 conv (pad=1, stride=1) as 9 shifted-row matmuls on a zero-padded
                # VMEM scratch.  Rows that fall outside the image along H read the zero
                # padding; wrap-around along W is masked with an iota column mask.
                zpad_ref[...] = jnp.zeros(zpad_ref.shape, zpad_ref.dtype)
                zpad_ref[PAD:PAD + M, :] = z.astype(jnp.bfloat16)
                y = jnp.zeros((M, growth), jnp.float32)
                for di in range(3):
                    for dj in range(3):
                        k = (di - 1) * W + (dj - 1)
                        tidx = di * 3 + dj
                        win = zpad_ref[PAD + k:PAD + k + M, :]
                        contrib = jnp.dot(win, w2_ref[tidx * cb:(tidx + 1) * cb, :],
                                          preferred_element_type=jnp.float32)
                        if dj == 0:
                            contrib = jnp.where(wcol >= 1, contrib, 0.0)
                        elif dj == 2:
                            contrib = jnp.where(wcol < W - 1, contrib, 0.0)
                        y = y + contrib
                # dropout: identity in eval mode
                slab_ref[:M, c:c + growth] = y      # "concatenate" = channel-offset write
                c += growth

            if has_trans:
                bnt_ref = next(it)  # (2, c)      f32
                wt_ref = next(it)   # (c, c//2)   bf16
                pt_ref = next(it)   # (M//4, M)   bf16: 0.25-entry avg-pool matrix
                a = jnp.maximum(slab_ref[:M, :c] * bnt_ref[0:1, :] + bnt_ref[1:2, :], 0.0)
                # avgpool commutes with the (linear) 1x1 conv: pool first -> 4x fewer rows
                pooled = jnp.dot(pt_ref[...], a.astype(jnp.bfloat16),
                                 preferred_element_type=jnp.float32)
                out_t = jnp.dot(pooled.astype(jnp.bfloat16), wt_ref[...],
                                preferred_element_type=jnp.float32)
                slab_ref[:M // 4, :c // 2] = out_t

        # ---- norm5 + final F.relu
        bn5_ref = next(it)
        Hf, Wf, Cf0, nlf, _ = stages[-1]
        Mf, Cf = Hf * Wf, Cf0 + nlf * growth
        o_ref[...] = jnp.maximum(slab_ref[:Mf, :Cf] * bn5_ref[0:1, :] + bn5_ref[1:2, :], 0.0)

    return kernel


def _full2d_spec(arr):
    return pl.BlockSpec(arr.shape, lambda i: (0, 0))


def encoder_pallas_call(act0, prep, cfg):
    N, Mc, C0 = act0.shape
    stages = cfg["stages"]
    growth, cb, PAD = cfg["growth"], cfg["cb"], cfg["pad_rows"]
    Hf, Wf, Cf0, nlf, _ = stages[-1]
    Mf, Cf = Hf * Wf, Cf0 + nlf * growth

    inputs = [act0, prep["pool_sel"]]
    in_specs = [pl.BlockSpec((None, Mc, C0), lambda i: (i, 0, 0)),
                _full2d_spec(prep["pool_sel"])]
    for si, st in enumerate(stages):
        for li in range(st[3]):
            lp = prep["layers"][si][li]
            for name in ("bn1", "w1", "b2", "w2"):
                inputs.append(lp[name])
                in_specs.append(_full2d_spec(lp[name]))
        if st[4]:
            tp = prep["transitions"][si]
            for name in ("bn", "w", "pool"):
                inputs.append(tp[name])
                in_specs.append(_full2d_spec(tp[name]))
    inputs.append(prep["bn5"])
    in_specs.append(_full2d_spec(prep["bn5"]))

    M_max = stages[0][0] * stages[0][1]
    C_slab = max(st[2] + st[3] * growth for st in stages)
    slab_rows = -(-M_max // 8) * 8
    zpad_rows = PAD + slab_rows + PAD

    # advisory cost estimate (whole call, all grid steps)
    flops = 0
    for si, (H, W, Cin, nl, has_t) in enumerate(stages):
        M, c = H * W, Cin
        if si == 0:
            flops += 9 * 2 * M * Mc * C0
        for _ in range(nl):
            flops += 2 * M * c * cb + 9 * 2 * M * cb * growth
            c += growth
        if has_t:
            flops += 2 * (M // 4) * M * c + 2 * (M // 4) * c * (c // 2)
    flops *= N
    bytes_accessed = sum(int(np.prod(a.shape)) * a.dtype.itemsize for a in inputs)
    bytes_accessed += N * Mf * Cf * 4

    return pl.pallas_call(
        _make_encoder_kernel(cfg),
        out_shape=jax.ShapeDtypeStruct((N, Mf, Cf), jnp.float32),
        grid=(N,),
        in_specs=in_specs,
        out_specs=pl.BlockSpec((None, Mf, Cf), lambda i: (i, 0, 0)),
        scratch_shapes=[pltpu.VMEM((slab_rows, C_slab), jnp.float32),   # feature slab
                        pltpu.VMEM((zpad_rows, cb), jnp.bfloat16)],     # padded bottleneck
        compiler_params=pltpu.CompilerParams(dimension_semantics=("parallel",)),
        cost_estimate=pl.CostEstimate(flops=int(flops), transcendentals=0,
                                      bytes_accessed=int(bytes_accessed)),
    )(*inputs)


# ----------------------------------------------------------------------------
# Parameter init (mirrors the PyTorch module's __init__) and one-time prep
# ----------------------------------------------------------------------------
def _kaiming(key, kh, kw, cin, cout):
    std = (2.0 / (cin * kh * kw)) ** 0.5
    return std * jax.random.normal(key, (kh, kw, cin, cout), jnp.float32)


def _bn_params(c):
    return {"gamma": jnp.ones((c,), jnp.float32), "beta": jnp.zeros((c,), jnp.float32),
            "mean": jnp.zeros((c,), jnp.float32), "var": jnp.ones((c,), jnp.float32)}


def init_params(key, growth_rate, block_config, num_init_features, bn_size, input_channel):
    keys = iter(jax.random.split(key, 4 + 4 * sum(block_config) + 2 * len(block_config)))
    params = {"conv0": _kaiming(next(keys), 7, 7, input_channel, num_init_features),
              "norm0": _bn_params(num_init_features), "blocks": [], "transitions": []}
    num_features = num_init_features
    for i, num_layers in enumerate(block_config):
        layers = []
        for l in range(num_layers):
            cin = num_features + l * growth_rate
            layers.append({"norm1": _bn_params(cin),
                           "conv1": _kaiming(next(keys), 1, 1, cin, bn_size * growth_rate),
                           "norm2": _bn_params(bn_size * growth_rate),
                           "conv2": _kaiming(next(keys), 3, 3, bn_size * growth_rate,
                                             growth_rate)})
        params["blocks"].append(layers)
        num_features += num_layers * growth_rate
        if i != len(block_config) - 1:
            params["transitions"].append({"norm": _bn_params(num_features),
                                          "conv": _kaiming(next(keys), 1, 1, num_features,
                                                           num_features // 2)})
            num_features //= 2
    params["norm5"] = _bn_params(num_features)
    return params


def make_cfg(input_hw, block_config, growth_rate, num_init_features, bn_size):
    H_in, W_in = input_hw
    Hc = (H_in + 6 - 7) // 2 + 1        # conv0 output spatial
    Wc = (W_in + 6 - 7) // 2 + 1
    Hp = (Hc + 2 - 3) // 2 + 1          # pool0 output spatial
    Wp = (Wc + 2 - 3) // 2 + 1
    stages, c, H, W = [], num_init_features, Hp, Wp
    for i, nl in enumerate(block_config):
        has_trans = i != len(block_config) - 1
        stages.append((H, W, c, nl, has_trans))
        c += nl * growth_rate
        if has_trans:
            c //= 2
            H //= 2
            W //= 2
    max_w = max(s[1] for s in stages)
    return {"conv_hw": (Hc, Wc), "stages": tuple(stages), "growth": growth_rate,
            "cb": bn_size * growth_rate, "final_features": c,
            "pad_rows": ((max_w + 1 + 7) // 8) * 8}


def prepare_params(params, cfg):
    """Fold BN scales into conv weights (f32), cast weights to bf16, pack BN vectors and
    the static pooling matrices.  Done once, outside the jitted forward."""
    growth, cb = cfg["growth"], cfg["cb"]
    Hc, Wc = cfg["conv_hw"]
    stages = cfg["stages"]
    prep = {}

    # conv0 with norm0 scale folded into the output columns
    s0, b0 = _bn_scale_shift(params["norm0"])
    kh, kw, cin0, c0 = params["conv0"].shape
    prep["w0"] = (params["conv0"] * s0[None, None, None, :]).reshape(
        kh * kw * cin0, c0).astype(jnp.bfloat16)
    prep["b0"] = b0.reshape(1, c0)

    # pool0 one-hot selection matrices, stacked over the 9 taps
    Hp, Wp = stages[0][0], stages[0][1]
    sel = np.zeros((9 * Hp * Wp, Hc * Wc), np.float32)
    for di in range(3):
        for dj in range(3):
            t = di * 3 + dj
            for ho in range(Hp):
                for wo in range(Wp):
                    hi, wi = 2 * ho + di - 1, 2 * wo + dj - 1
                    if 0 <= hi < Hc and 0 <= wi < Wc:
                        sel[t * Hp * Wp + ho * Wp + wo, hi * Wc + wi] = 1.0
    prep["pool_sel"] = jnp.asarray(sel, jnp.bfloat16)

    prep["layers"], prep["transitions"] = [], {}
    for si, (H, W, Cin, nlayers, has_trans) in enumerate(stages):
        lst, c = [], Cin
        for li in range(nlayers):
            lp = params["blocks"][si][li]
            s1, sh1 = _bn_scale_shift(lp["norm1"])
            s2, sh2 = _bn_scale_shift(lp["norm2"])
            w1 = lp["conv1"].reshape(c, cb) * s2[None, :]     # fold norm2 scale
            lst.append({"bn1": jnp.stack([s1, sh1], axis=0),
                        "w1": w1.astype(jnp.bfloat16),
                        "b2": sh2.reshape(1, cb),
                        "w2": lp["conv2"].reshape(9 * cb, growth).astype(jnp.bfloat16)})
            c += growth
        prep["layers"].append(lst)
        if has_trans:
            tr = params["transitions"][si]
            st, bt = _bn_scale_shift(tr["norm"])
            P = np.zeros((H // 2 * (W // 2), H * W), np.float32)
            for ho in range(H // 2):
                for wo in range(W // 2):
                    for ai in range(2):
                        for bi in range(2):
                            P[ho * (W // 2) + wo, (2 * ho + ai) * W + (2 * wo + bi)] = 0.25
            prep["transitions"][si] = {"bn": jnp.stack([st, bt], axis=0),
                                       "w": tr["conv"].reshape(c, c // 2).astype(jnp.bfloat16),
                                       "pool": jnp.asarray(P, jnp.bfloat16)}
    s5, b5 = _bn_scale_shift(params["norm5"])
    prep["bn5"] = jnp.stack([s5, b5], axis=0)
    return prep


# ----------------------------------------------------------------------------
# Forward pass (matches DenseNetEncoder.forward, eval mode) -- 2 pallas_calls
# ----------------------------------------------------------------------------
def dense_encoder_forward(prep, x_nchw, cfg):
    Hc, Wc = cfg["conv_hw"]
    stages = cfg["stages"]
    N = x_nchw.shape[0]
    C0 = stages[0][2]

    # conv0 (7x7 / 2, pad 3) with norm0 folded into the weights + ReLU epilogue.
    # TODO(synk): the 7x7 im2col below is XLA glue (stride-2 slices of the padded input);
    #             one-time, 1-channel, a few KB.
    x = jnp.transpose(x_nchw, (0, 2, 3, 1)).astype(jnp.bfloat16)          # NHWC, bf16
    xp = jnp.pad(x, ((0, 0), (3, 3), (3, 3), (0, 0)))
    cols = [xp[:, i:i + 2 * Hc:2, j:j + 2 * Wc:2, :] for i in range(7) for j in range(7)]
    patches = jnp.concatenate(cols, axis=-1).reshape(N * Hc * Wc, 49 * x.shape[-1])
    act0 = conv0_matmul(patches, prep["w0"], prep["b0"]).reshape(N, Hc * Wc, C0)

    # pool0 + all dense blocks + transitions + norm5/relu in one kernel, grid over batch
    out = encoder_pallas_call(act0, prep, cfg)                            # (N, Hf*Wf, Cf) f32
    Hf, Wf = stages[-1][0], stages[-1][1]
    return out.reshape(N, Hf, Wf, cfg["final_features"])                  # NHWC == permute


# ----------------------------------------------------------------------------
# Pure-JAX f32 reference (independent lax.conv / reduce_window path)
# ----------------------------------------------------------------------------
def _bn_apply(x, bn):
    s, b = _bn_scale_shift(bn)
    return x * s + b


def reference_forward(params, x_nchw, block_config):
    dn = ("NHWC", "HWIO", "NHWC")
    x = jnp.transpose(x_nchw, (0, 2, 3, 1))
    x = lax.conv_general_dilated(x, params["conv0"], (2, 2), ((3, 3), (3, 3)),
                                 dimension_numbers=dn)
    x = jax.nn.relu(_bn_apply(x, params["norm0"]))
    x = lax.reduce_window(x, -jnp.inf, lax.max, (1, 3, 3, 1), (1, 2, 2, 1),
                          ((0, 0), (1, 1), (1, 1), (0, 0)))
    for i in range(len(block_config)):
        for layer in params["blocks"][i]:
            a = jax.nn.relu(_bn_apply(x, layer["norm1"]))
            z = jnp.einsum("nhwc,co->nhwo", a, layer["conv1"].reshape(a.shape[-1], -1))
            b = jax.nn.relu(_bn_apply(z, layer["norm2"]))
            y = lax.conv_general_dilated(b, layer["conv2"], (1, 1), ((1, 1), (1, 1)),
                                         dimension_numbers=dn)
            x = jnp.concatenate([x, y], axis=-1)
        if i != len(block_config) - 1:
            t = params["transitions"][i]
            a = jax.nn.relu(_bn_apply(x, t["norm"]))
            c = jnp.einsum("nhwc,co->nhwo", a, t["conv"].reshape(a.shape[-1], -1))
            x = lax.reduce_window(c, 0.0, lax.add, (1, 2, 2, 1), (1, 2, 2, 1),
                                  ((0, 0),) * 4) * 0.25
    return jax.nn.relu(_bn_apply(x, params["norm5"]))


# ----------------------------------------------------------------------------
# Main
# ----------------------------------------------------------------------------
if __name__ == "__main__":
    key = jax.random.PRNGKey(0)
    kp, kx = jax.random.split(key)

    # Small DenseNet-BC configuration (same architecture, reduced hyper-parameters).
    growth_rate = 8
    block_config = (2, 2, 2)
    num_init_features = 16
    bn_size = 4
    input_channel = 1
    H_in = W_in = 32
    batch = 2

    cfg = make_cfg((H_in, W_in), block_config, growth_rate, num_init_features, bn_size)
    params = init_params(kp, growth_rate, block_config, num_init_features, bn_size,
                         input_channel)
    prep = prepare_params(params, cfg)
    x = jax.random.normal(kx, (batch, input_channel, H_in, W_in), jnp.float32)  # NCHW

    fwd = jax.jit(functools.partial(dense_encoder_forward, cfg=cfg))
    out = jax.block_until_ready(fwd(prep, x))

    # 32 -> conv0/2 -> 16 -> pool0/2 -> 8 -> trans1/2 -> 4 -> trans2/2 -> 2
    expected = (batch, cfg["stages"][-1][0], cfg["stages"][-1][1], cfg["final_features"])
    assert out.shape == expected, (out.shape, expected)
    assert bool(jnp.all(out >= 0.0))  # final ReLU

    # Loose numeric check vs an f32 reference (kernel path uses bf16 MXU operands).
    ref = jax.jit(functools.partial(reference_forward, block_config=block_config))(params, x)
    err = float(jnp.max(jnp.abs(out - ref) / (jnp.abs(ref) + 1.0)))
    assert err < 0.1, err

    print("KERNEL_OK")
</pallas_src>

<mosaic_0001>
module attributes {stable_mosaic.version = 11 : i64} {
  func.func @_conv0_kernel(%arg0: i32, %arg1: memref<256x49xbf16, #tpu.memory_space<vmem>>, %arg2: memref<49x16xbf16, #tpu.memory_space<vmem>>, %arg3: memref<1x16xf32, #tpu.memory_space<vmem>>, %arg4: memref<256x16xbf16, #tpu.memory_space<vmem>>) attributes {dimension_semantics = [#tpu.dimension_semantics<parallel>], iteration_bounds = array<i64: 2>, scalar_prefetch = 0 : i64, scratch_operands = 0 : i64, tpu.core_type = #tpu.core_type<tc>, window_params = [{transform_indices = @transform_0, window_bounds = array<i64: 256, 49>}, {pipeline_mode = #tpu.pipeline_mode<synchronous>, transform_indices = @transform_1, window_bounds = array<i64: 49, 16>}, {pipeline_mode = #tpu.pipeline_mode<synchronous>, transform_indices = @transform_2, window_bounds = array<i64: 1, 16>}, {transform_indices = @transform_3, window_bounds = array<i64: 256, 16>}]} {
    %c0 = arith.constant 0 : index
    %c0_0 = arith.constant 0 : index
    %0 = vector.load %arg1[%c0, %c0_0] : memref<256x49xbf16, #tpu.memory_space<vmem>>, vector<256x49xbf16>
    %c0_1 = arith.constant 0 : index
    %c0_2 = arith.constant 0 : index
    %1 = vector.load %arg2[%c0_1, %c0_2] : memref<49x16xbf16, #tpu.memory_space<vmem>>, vector<49x16xbf16>
    %cst = arith.constant dense<0.000000e+00> : vector<256x16xf32>
    %2 = tpu.matmul %0, %1, %cst {dimension_numbers = #tpu.dot_dimension_numbers<[1], [0], [0], [1], [0, 0, 1, 1], [], []>} : vector<256x49xbf16>, vector<49x16xbf16>, vector<256x16xf32> -> vector<256x16xf32>
    %c0_3 = arith.constant 0 : index
    %c0_4 = arith.constant 0 : index
    %3 = vector.load %arg3[%c0_3, %c0_4] : memref<1x16xf32, #tpu.memory_space<vmem>>, vector<1x16xf32>
    %4 = vector.broadcast %3 : vector<1x16xf32> to vector<256x16xf32>
    %5 = arith.addf %2, %4 : vector<256x16xf32>
    %cst_5 = arith.constant 0.000000e+00 : f32
    %6 = vector.broadcast %cst_5 : f32 to vector<256x16xf32>
    %7 = arith.maximumf %5, %6 : vector<256x16xf32>
    %8 = arith.truncf %7 : vector<256x16xf32> to vector<256x16xbf16>
    %c0_6 = arith.constant 0 : index
    %c0_7 = arith.constant 0 : index
    %9 = vector.load %arg4[%c0_6, %c0_7] : memref<256x16xbf16, #tpu.memory_space<vmem>>, vector<256x16xbf16>
    tpu.vector_store %arg4[%c0_6, %c0_7], %8 {strides = array<i32>} : memref<256x16xbf16, #tpu.memory_space<vmem>>, vector<256x16xbf16>,
    return
  }
  func.func @transform_0(%arg0: i32) -> (i32, i32) {
    %c0_i32 = arith.constant 0 : i32
    %c0_i32_0 = arith.constant 0 : i32
    return %arg0, %c0_i32 : i32, i32
  }
  func.func @transform_1(%arg0: i32) -> (i32, i32) {
    %c0_i32 = arith.constant 0 : i32
    %c0_i32_0 = arith.constant 0 : i32
    %c0_i32_1 = arith.constant 0 : i32
    return %c0_i32, %c0_i32_0 : i32, i32
  }
  func.func @transform_2(%arg0: i32) -> (i32, i32) {
    %c0_i32 = arith.constant 0 : i32
    %c0_i32_0 = arith.constant 0 : i32
    %c0_i32_1 = arith.constant 0 : i32
    return %c0_i32, %c0_i32_0 : i32, i32
  }
  func.func @transform_3(%arg0: i32) -> (i32, i32) {
    %c0_i32 = arith.constant 0 : i32
    %c0_i32_0 = arith.constant 0 : i32
    return %arg0, %c0_i32 : i32, i32
  }
}

module attributes {stable_mosaic.version = 11 : i64} {
  func.func @kernel(%arg0: i32, %arg1: memref<1x256x16xbf16, #tpu.memory_space<vmem>>, %arg2: memref<576x256xbf16, #tpu.memory_space<vmem>>, %arg3: memref<2x16xf32, #tpu.memory_space<vmem>>, %arg4: memref<16x32xbf16, #tpu.memory_space<vmem>>, %arg5: memref<1x32xf32, #tpu.memory_space<vmem>>, %arg6: memref<288x8xbf16, #tpu.memory_space<vmem>>, %arg7: memref<2x24xf32, #tpu.memory_space<vmem>>, %arg8: memref<24x32xbf16, #tpu.memory_space<vmem>>, %arg9: memref<1x32xf32, #tpu.memory_space<vmem>>, %arg10: memref<288x8xbf16, #tpu.memory_space<vmem>>, %arg11: memref<2x32xf32, #tpu.memory_space<vmem>>, %arg12: memref<32x16xbf16, #tpu.memory_space<vmem>>, %arg13: memref<16x64xbf16, #tpu.memory_space<vmem>>, %arg14: memref<2x16xf32, #tpu.memory_space<vmem>>, %arg15: memref<16x32xbf16, #tpu.memory_space<vmem>>, %arg16: memref<1x32xf32, #tpu.memory_space<vmem>>, %arg17: memref<288x8xbf16, #tpu.memory_space<vmem>>, %arg18: memref<2x24xf32, #tpu.memory_space<vmem>>, %arg19: memref<24x32xbf16, #tpu.memory_space<vmem>>, %arg20: memref<1x32xf32, #tpu.memory_space<vmem>>, %arg21: memref<288x8xbf16, #tpu.memory_space<vmem>>, %arg22: memref<2x32xf32, #tpu.memory_space<vmem>>, %arg23: memref<32x16xbf16, #tpu.memory_space<vmem>>, %arg24: memref<4x16xbf16, #tpu.memory_space<vmem>>, %arg25: memref<2x16xf32, #tpu.memory_space<vmem>>, %arg26: memref<16x32xbf16, #tpu.memory_space<vmem>>, %arg27: memref<1x32xf32, #tpu.memory_space<vmem>>, %arg28: memref<288x8xbf16, #tpu.memory_space<vmem>>, %arg29: memref<2x24xf32, #tpu.memory_space<vmem>>, %arg30: memref<24x32xbf16, #tpu.memory_space<vmem>>, %arg31: memref<1x32xf32, #tpu.memory_space<vmem>>, %arg32: memref<288x8xbf16, #tpu.memory_space<vmem>>, %arg33: memref<2x32xf32, #tpu.memory_space<vmem>>, %arg34: memref<1x4x32xf32, #tpu.memory_space<vmem>>, %arg35: memref<64x32xf32, #tpu.memory_space<vmem>>, %arg36: memref<96x32xbf16, #tpu.memory_space<vmem>>) attributes {dimension_semantics = [#tpu.dimension_semantics<parallel>], iteration_bounds = array<i64: 2>, scalar_prefetch = 0 : i64, scratch_operands = 2 : i64, tpu.core_type = #tpu.core_type<tc>, window_params = [{transform_indices = @transform_0, window_bounds = array<i64: 1, 256, 16>}, {pipeline_mode = #tpu.pipeline_mode<synchronous>, transform_indices = @transform_1, window_bounds = array<i64: 576, 256>}, {pipeline_mode = #tpu.pipeline_mode<synchronous>, transform_indices = @transform_2, window_bounds = array<i64: 2, 16>}, {pipeline_mode = #tpu.pipeline_mode<synchronous>, transform_indices = @transform_3, window_bounds = array<i64: 16, 32>}, {pipeline_mode = #tpu.pipeline_mode<synchronous>, transform_indices = @transform_4, window_bounds = array<i64: 1, 32>}, {pipeline_mode = #tpu.pipeline_mode<synchronous>, transform_indices = @transform_5, window_bounds = array<i64: 288, 8>}, {pipeline_mode = #tpu.pipeline_mode<synchronous>, transform_indices = @transform_6, window_bounds = array<i64: 2, 24>}, {pipeline_mode = #tpu.pipeline_mode<synchronous>, transform_indices = @transform_7, window_bounds = array<i64: 24, 32>}, {pipeline_mode = #tpu.pipeline_mode<synchronous>, transform_indices = @transform_8, window_bounds = array<i64: 1, 32>}, {pipeline_mode = #tpu.pipeline_mode<synchronous>, transform_indices = @transform_9, window_bounds = array<i64: 288, 8>}, {pipeline_mode = #tpu.pipeline_mode<synchronous>, transform_indices = @transform_10, window_bounds = array<i64: 2, 32>}, {pipeline_mode = #tpu.pipeline_mode<synchronous>, transform_indices = @transform_11, window_bounds = array<i64: 32, 16>}, {pipeline_mode = #tpu.pipeline_mode<synchronous>, transform_indices = @transform_12, window_bounds = array<i64: 16, 64>}, {pipeline_mode = #tpu.pipeline_mode<synchronous>, transform_indices = @transform_13, window_bounds = array<i64: 2, 16>}, {pipeline_mode = #tpu.pipeline_mode<synchronous>, transform_indices = @transform_14, window_bounds = array<i64: 16, 32>}, {pipeline_mode = #tpu.pipeline_mode<synchronous>, transform_indices = @transform_15, window_bounds = array<i64: 1, 32>}, {pipeline_mode = #tpu.pipeline_mode<synchronous>, transform_indices = @transform_16, window_bounds = array<i64: 288, 8>}, {pipeline_mode = #tpu.pipeline_mode<synchronous>, transform_indices = @transform_17, window_bounds = array<i64: 2, 24>}, {pipeline_mode = #tpu.pipeline_mode<synchronous>, transform_indices = @transform_18, window_bounds = array<i64: 24, 32>}, {pipeline_mode = #tpu.pipeline_mode<synchronous>, transform_indices = @transform_19, window_bounds = array<i64: 1, 32>}, {pipeline_mode = #tpu.pipeline_mode<synchronous>, transform_indices = @transform_20, window_bounds = array<i64: 288, 8>}, {pipeline_mode = #tpu.pipeline_mode<synchronous>, transform_indices = @transform_21, window_bounds = array<i64: 2, 32>}, {pipeline_mode = #tpu.pipeline_mode<synchronous>, transform_indices = @transform_22, window_bounds = array<i64: 32, 16>}, {pipeline_mode = #tpu.pipeline_mode<synchronous>, transform_indices = @transform_23, window_bounds = array<i64: 4, 16>}, {pipeline_mode = #tpu.pipeline_mode<synchronous>, transform_indices = @transform_24, window_bounds = array<i64: 2, 16>}, {pipeline_mode = #tpu.pipeline_mode<synchronous>, transform_indices = @transform_25, window_bounds = array<i64: 16, 32>}, {pipeline_mode = #tpu.pipeline_mode<synchronous>, transform_indices = @transform_26, window_bounds = array<i64: 1, 32>}, {pipeline_mode = #tpu.pipeline_mode<synchronous>, transform_indices = @transform_27, window_bounds = array<i64: 288, 8>}, {pipeline_mode = #tpu.pipeline_mode<synchronous>, transform_indices = @transform_28, window_bounds = array<i64: 2, 24>}, {pipeline_mode = #tpu.pipeline_mode<synchronous>, transform_indices = @transform_29, window_bounds = array<i64: 24, 32>}, {pipeline_mode = #tpu.pipeline_mode<synchronous>, transform_indices = @transform_30, window_bounds = array<i64: 1, 32>}, {pipeline_mode = #tpu.pipeline_mode<synchronous>, transform_indices = @transform_31, window_bounds = array<i64: 288, 8>}, {pipeline_mode = #tpu.pipeline_mode<synchronous>, transform_indices = @transform_32, window_bounds = array<i64: 2, 32>}, {transform_indices = @transform_33, window_bounds = array<i64: 1, 4, 32>}]} {
    %c0 = arith.constant 0 : index
    %c0_0 = arith.constant 0 : index
    %0 = vector.load %arg2[%c0, %c0_0] : memref<576x256xbf16, #tpu.memory_space<vmem>>, vector<64x256xbf16>
    %c0_1 = arith.constant 0 : index
    %c0_2 = arith.constant 0 : index
    %c0_3 = arith.constant 0 : index
    %1 = vector.load %arg1[%c0_1, %c0_2, %c0_3] : memref<1x256x16xbf16, #tpu.memory_space<vmem>>, vector<1x256x16xbf16>
    %2 = vector.shape_cast %1 : vector<1x256x16xbf16> to vector<256x16xbf16>
    %cst = arith.constant dense<0.000000e+00> : vector<64x16xf32>
    %3 = tpu.matmul %0, %2, %cst {dimension_numbers = #tpu.dot_dimension_numbers<[1], [0], [0], [1], [0, 0, 1, 1], [], []>} : vector<64x256xbf16>, vector<256x16xbf16>, vector<64x16xf32> -> vector<64x16xf32>
    %c64 = arith.constant 64 : index
    %c0_4 = arith.constant 0 : index
    %4 = vector.load %arg2[%c64, %c0_4] : memref<576x256xbf16, #tpu.memory_space<vmem>>, vector<64x256xbf16>
    %c0_5 = arith.constant 0 : index
    %c0_6 = arith.constant 0 : index
    %c0_7 = arith.constant 0 : index
    %5 = vector.load %arg1[%c0_5, %c0_6, %c0_7] : memref<1x256x16xbf16, #tpu.memory_space<vmem>>, vector<1x256x16xbf16>
    %6 = vector.shape_cast %5 : vector<1x256x16xbf16> to vector<256x16xbf16>
    %cst_8 = arith.constant dense<0.000000e+00> : vector<64x16xf32>
    %7 = tpu.matmul %4, %6, %cst_8 {dimension_numbers = #tpu.dot_dimension_numbers<[1], [0], [0], [1], [0, 0, 1, 1], [], []>} : vector<64x256xbf16>, vector<256x16xbf16>, vector<64x16xf32> -> vector<64x16xf32>
    %8 = arith.maximumf %3, %7 : vector<64x16xf32>
    %c128 = arith.constant 128 : index
    %c0_9 = arith.constant 0 : index
    %9 = vector.load %arg2[%c128, %c0_9] : memref<576x256xbf16, #tpu.memory_space<vmem>>, vector<64x256xbf16>
    %c0_10 = arith.constant 0 : index
    %c0_11 = arith.constant 0 : index
    %c0_12 = arith.constant 0 : index
    %10 = vector.load %arg1[%c0_10, %c0_11, %c0_12] : memref<1x256x16xbf16, #tpu.memory_space<vmem>>, vector<1x256x16xbf16>
    %11 = vector.shape_cast %10 : vector<1x256x16xbf16> to vector<256x16xbf16>
    %cst_13 = arith.constant dense<0.000000e+00> : vector<64x16xf32>
    %12 = tpu.matmul %9, %11, %cst_13 {dimension_numbers = #tpu.dot_dimension_numbers<[1], [0], [0], [1], [0, 0, 1, 1], [], []>} : vector<64x256xbf16>, vector<256x16xbf16>, vector<64x16xf32> -> vector<64x16xf32>
    %13 = arith.maximumf %8, %12 : vector<64x16xf32>
    %c192 = arith.constant 192 : index
    %c0_14 = arith.constant 0 : index
    %14 = vector.load %arg2[%c192, %c0_14] : memref<576x256xbf16, #tpu.memory_space<vmem>>, vector<64x256xbf16>
    %c0_15 = arith.constant 0 : index
    %c0_16 = arith.constant 0 : index
    %c0_17 = arith.constant 0 : index
    %15 = vector.load %arg1[%c0_15, %c0_16, %c0_17] : memref<1x256x16xbf16, #tpu.memory_space<vmem>>, vector<1x256x16xbf16>
    %16 = vector.shape_cast %15 : vector<1x256x16xbf16> to vector<256x16xbf16>
    %cst_18 = arith.constant dense<0.000000e+00> : vector<64x16xf32>
    %17 = tpu.matmul %14, %16, %cst_18 {dimension_numbers = #tpu.dot_dimension_numbers<[1], [0], [0], [1], [0, 0, 1, 1], [], []>} : vector<64x256xbf16>, vector<256x16xbf16>, vector<64x16xf32> -> vector<64x16xf32>
    %18 = arith.maximumf %13, %17 : vector<64x16xf32>
    %c256 = arith.constant 256 : index
    %c0_19 = arith.constant 0 : index
    %19 = vector.load %arg2[%c256, %c0_19] : memref<576x256xbf16, #tpu.memory_space<vmem>>, vector<64x256xbf16>
    %c0_20 = arith.constant 0 : index
    %c0_21 = arith.constant 0 : index
    %c0_22 = arith.constant 0 : index
    %20 = vector.load %arg1[%c0_20, %c0_21, %c0_22] : memref<1x256x16xbf16, #tpu.memory_space<vmem>>, vector<1x256x16xbf16>
    %21 = vector.shape_cast %20 : vector<1x256x16xbf16> to vector<256x16xbf16>
    %cst_23 = arith.constant dense<0.000000e+00> : vector<64x16xf32>
    %22 = tpu.matmul %19, %21, %cst_23 {dimension_numbers = #tpu.dot_dimension_numbers<[1], [0], [0], [1], [0, 0, 1, 1], [], []>} : vector<64x256xbf16>, vector<256x16xbf16>, vector<64x16xf32> -> vector<64x16xf32>
    %23 = arith.maximumf %18, %22 : vector<64x16xf32>
    %c320 = arith.constant 320 : index
    %c0_24 = arith.constant 0 : index
    %24 = vector.load %arg2[%c320, %c0_24] : memref<576x256xbf16, #tpu.memory_space<vmem>>, vector<64x256xbf16>
    %c0_25 = arith.constant 0 : index
    %c0_26 = arith.constant 0 : index
    %c0_27 = arith.constant 0 : index
    %25 = vector.load %arg1[%c0_25, %c0_26, %c0_27] : memref<1x256x16xbf16, #tpu.memory_space<vmem>>, vector<1x256x16xbf16>
    %26 = vector.shape_cast %25 : vector<1x256x16xbf16> to vector<256x16xbf16>
    %cst_28 = arith.constant dense<0.000000e+00> : vector<64x16xf32>
    %27 = tpu.matmul %24, %26, %cst_28 {dimension_numbers = #tpu.dot_dimension_numbers<[1], [0], [0], [1], [0, 0, 1, 1], [], []>} : vector<64x256xbf16>, vector<256x16xbf16>, vector<64x16xf32> -> vector<64x16xf32>
    %28 = arith.maximumf %23, %27 : vector<64x16xf32>
    %c384 = arith.constant 384 : index
    %c0_29 = arith.constant 0 : index
    %29 = vector.load %arg2[%c384, %c0_29] : memref<576x256xbf16, #tpu.memory_space<vmem>>, vector<64x256xbf16>
    %c0_30 = arith.constant 0 : index
    %c0_31 = arith.constant 0 : index
    %c0_32 = arith.constant 0 : index
    %30 = vector.load %arg1[%c0_30, %c0_31, %c0_32] : memref<1x256x16xbf16, #tpu.memory_space<vmem>>, vector<1x256x16xbf16>
    %31 = vector.shape_cast %30 : vector<1x256x16xbf16> to vector<256x16xbf16>
    %cst_33 = arith.constant dense<0.000000e+00> : vector<64x16xf32>
    %32 = tpu.matmul %29, %31, %cst_33 {dimension_numbers = #tpu.dot_dimension_numbers<[1], [0], [0], [1], [0, 0, 1, 1], [], []>} : vector<64x256xbf16>, vector<256x16xbf16>, vector<64x16xf32> -> vector<64x16xf32>
    %33 = arith.maximumf %28, %32 : vector<64x16xf32>
    %c448 = arith.constant 448 : index
    %c0_34 = arith.constant 0 : index
    %34 = vector.load %arg2[%c448, %c0_34] : memref<576x256xbf16, #tpu.memory_space<vmem>>, vector<64x256xbf16>
    %c0_35 = arith.constant 0 : index
    %c0_36 = arith.constant 0 : index
    %c0_37 = arith.constant 0 : index
    %35 = vector.load %arg1[%c0_35, %c0_36, %c0_37] : memref<1x256x16xbf16, #tpu.memory_space<vmem>>, vector<1x256x16xbf16>
    %36 = vector.shape_cast %35 : vector<1x256x16xbf16> to vector<256x16xbf16>
    %cst_38 = arith.constant dense<0.000000e+00> : vector<64x16xf32>
    %37 = tpu.matmul %34, %36, %cst_38 {dimension_numbers = #tpu.dot_dimension_numbers<[1], [0], [0], [1], [0, 0, 1, 1], [], []>} : vector<64x256xbf16>, vector<256x16xbf16>, vector<64x16xf32> -> vector<64x16xf32>
    %38 = arith.maximumf %33, %37 : vector<64x16xf32>
    %c512 = arith.constant 512 : index
    %c0_39 = arith.constant 0 : index
    %39 = vector.load %arg2[%c512, %c0_39] : memref<576x256xbf16, #tpu.memory_space<vmem>>, vector<64x256xbf16>
    %c0_40 = arith.constant 0 : index
    %c0_41 = arith.constant 0 : index
    %c0_42 = arith.constant 0 : index
    %40 = vector.load %arg1[%c0_40, %c0_41, %c0_42] : memref<1x256x16xbf16, #tpu.memory_space<vmem>>, vector<1x256x16xbf16>
    %41 = vector.shape_cast %40 : vector<1x256x16xbf16> to vector<256x16xbf16>
    %cst_43 = arith.constant dense<0.000000e+00> : vector<64x16xf32>
    %42 = tpu.matmul %39, %41, %cst_43 {dimension_numbers = #tpu.dot_dimension_numbers<[1], [0], [0], [1], [0, 0, 1, 1], [], []>} : vector<64x256xbf16>, vector<256x16xbf16>, vector<64x16xf32> -> vector<64x16xf32>
    %43 = arith.maximumf %38, %42 : vector<64x16xf32>
    %c0_44 = arith.constant 0 : index
    %c0_45 = arith.constant 0 : index
    %44 = vector.load %arg35[%c0_44, %c0_45] : memref<64x32xf32, #tpu.memory_space<vmem>>, vector<64x16xf32>
    tpu.vector_store %arg35[%c0_44, %c0_45], %43 {strides = array<i32>} : memref<64x32xf32, #tpu.memory_space<vmem>>, vector<64x16xf32>,
    %45 = tpu.iota {dimensions = array<i32: 0>} : vector<64x1xi32>
    %c8_i32 = arith.constant 8 : i32
    %c0_i32 = arith.constant 0 : i32
    %46 = arith.cmpi eq, %c8_i32, %c0_i32 : i32
    %c1_i32 = arith.constant 1 : i32
    %47 = arith.select %46, %c1_i32, %c8_i32 : i32
    %48 = vector.broadcast %47 : i32 to vector<64x1xi32>
    %49 = arith.remsi %45, %48 : vector<64x1xi32>
    %c0_i32_46 = arith.constant 0 : i32
    %50 = vector.broadcast %c0_i32_46 : i32 to vector<64x1xi32>
    %51 = arith.cmpi ne, %49, %50 : vector<64x1xi32>
    %c0_i32_47 = arith.constant 0 : i32
    %52 = vector.broadcast %c0_i32_47 : i32 to vector<64x1xi32>
    %53 = arith.cmpi slt, %49, %52 : vector<64x1xi32>
    %c0_i32_48 = arith.constant 0 : i32
    %54 = arith.cmpi slt, %47, %c0_i32_48 : i32
    %55 = vector.broadcast %54 : i1 to vector<64x1xi1>
    %56 = vector.broadcast %55 : vector<64x1xi1> to vector<64x1xi1>
    %57 = arith.xori %53, %56 : vector<64x1xi1>
    %58 = arith.andi %57, %51 : vector<64x1xi1>
    %59 = vector.broadcast %47 : i32 to vector<64x1xi32>
    %60 = arith.addi %49, %59 : vector<64x1xi32>
    %61 = arith.select %58, %60, %49 : vector<64x1xi1>, vector<64x1xi32>
    %c0_49 = arith.constant 0 : index
    %c0_50 = arith.constant 0 : index
    %62 = vector.load %arg35[%c0_49, %c0_50] : memref<64x32xf32, #tpu.memory_space<vmem>>, vector<64x16xf32>
    %c0_51 = arith.constant 0 : index
    %c0_52 = arith.constant 0 : index
    %63 = vector.load %arg3[%c0_51, %c0_52] : memref<2x16xf32, #tpu.memory_space<vmem>>, vector<1x16xf32>
    %64 = vector.broadcast %63 : vector<1x16xf32> to vector<64x16xf32>
    %65 = arith.mulf %62, %64 : vector<64x16xf32>
    %c1 = arith.constant 1 : index
    %c0_53 = arith.constant 0 : index
    %66 = vector.load %arg3[%c1, %c0_53] : memref<2x16xf32, #tpu.memory_space<vmem>>, vector<1x16xf32>
    %67 = vector.broadcast %66 : vector<1x16xf32> to vector<64x16xf32>
    %68 = arith.addf %65, %67 : vector<64x16xf32>
    %cst_54 = arith.constant 0.000000e+00 : f32
    %69 = vector.broadcast %cst_54 : f32 to vector<64x16xf32>
    %70 = arith.maximumf %68, %69 : vector<64x16xf32>
    %71 = arith.truncf %70 : vector<64x16xf32> to vector<64x16xbf16>
    %c0_55 = arith.constant 0 : index
    %c0_56 = arith.constant 0 : index
    %72 = vector.load %arg4[%c0_55, %c0_56] : memref<16x32xbf16, #tpu.memory_space<vmem>>, vector<16x32xbf16>
    %cst_57 = arith.constant dense<0.000000e+00> : vector<64x32xf32>
    %73 = tpu.matmul %71, %72, %cst_57 {dimension_numbers = #tpu.dot_dimension_numbers<[1], [0], [0], [1], [0, 0, 1, 1], [], []>} : vector<64x16xbf16>, vector<16x32xbf16>, vector<64x32xf32> -> vector<64x32xf32>
    %c0_58 = arith.constant 0 : index
    %c0_59 = arith.constant 0 : index
    %74 = vector.load %arg5[%c0_58, %c0_59] : memref<1x32xf32, #tpu.memory_space<vmem>>, vector<1x32xf32>
    %75 = vector.broadcast %74 : vector<1x32xf32> to vector<64x32xf32>
    %76 = arith.addf %73, %75 : vector<64x32xf32>
    %cst_60 = arith.constant 0.000000e+00 : f32
    %77 = vector.broadcast %cst_60 : f32 to vector<64x32xf32>
    %78 = arith.maximumf %76, %77 : vector<64x32xf32>
    %cst_61 = arith.constant 0.000000e+00 : bf16
    %79 = vector.broadcast %cst_61 : bf16 to vector<96x32xbf16>
    %c0_62 = arith.constant 0 : index
    %c0_63 = arith.constant 0 : index
    %80 = vector.load %arg36[%c0_62, %c0_63] : memref<96x32xbf16, #tpu.memory_space<vmem>>, vector<96x32xbf16>
    tpu.vector_store %arg36[%c0_62, %c0_63], %79 {strides = array<i32>} : memref<96x32xbf16, #tpu.memory_space<vmem>>, vector<96x32xbf16>,
    %81 = arith.truncf %78 : vector<64x32xf32> to vector<64x32xbf16>
    %c16 = arith.constant 16 : index
    %c0_64 = arith.constant 0 : index
    %82 = vector.load %arg36[%c16, %c0_64] : memref<96x32xbf16, #tpu.memory_space<vmem>>, vector<64x32xbf16>
    tpu.vector_store %arg36[%c16, %c0_64], %81 {strides = array<i32>} : memref<96x32xbf16, #tpu.memory_space<vmem>>, vector<64x32xbf16>,
    %cst_65 = arith.constant 0.000000e+00 : f32
    %83 = vector.broadcast %cst_65 : f32 to vector<64x8xf32>
    %c7 = arith.constant 7 : index
    %c0_66 = arith.constant 0 : index
    %84 = vector.load %arg36[%c7, %c0_66] : memref<96x32xbf16, #tpu.memory_space<vmem>>, vector<64x32xbf16>
    %c0_67 = arith.constant 0 : index
    %c0_68 = arith.constant 0 : index
    %85 = vector.load %arg6[%c0_67, %c0_68] : memref<288x8xbf16, #tpu.memory_space<vmem>>, vector<32x8xbf16>
    %cst_69 = arith.constant dense<0.000000e+00> : vector<64x8xf32>
    %86 = tpu.matmul %84, %85, %cst_69 {dimension_numbers = #tpu.dot_dimension_numbers<[1], [0], [0], [1], [0, 0, 1, 1], [], []>} : vector<64x32xbf16>, vector<32x8xbf16>, vector<64x8xf32> -> vector<64x8xf32>
    %c1_i32_70 = arith.constant 1 : i32
    %87 = vector.broadcast %c1_i32_70 : i32 to vector<64x1xi32>
    %88 = arith.cmpi sge, %61, %87 : vector<64x1xi32>
    %cst_71 = arith.constant 0.000000e+00 : f32
    %89 = vector.shape_cast %88 : vector<64x1xi1> to vector<64x1xi1>
    %90 = vector.broadcast %89 : vector<64x1xi1> to vector<64x8xi1>
    %91 = vector.broadcast %cst_71 : f32 to vector<64x8xf32>
    %92 = arith.select %90, %86, %91 : vector<64x8xi1>, vector<64x8xf32>
    %93 = arith.addf %83, %92 : vector<64x8xf32>
    %c8 = arith.constant 8 : index
    %c0_72 = arith.constant 0 : index
    %94 = vector.load %arg36[%c8, %c0_72] : memref<96x32xbf16, #tpu.memory_space<vmem>>, vector<64x32xbf16>
    %c32 = arith.constant 32 : index
    %c0_73 = arith.constant 0 : index
    %95 = vector.load %arg6[%c32, %c0_73] : memref<288x8xbf16, #tpu.memory_space<vmem>>, vector<32x8xbf16>
    %cst_74 = arith.constant dense<0.000000e+00> : vector<64x8xf32>
    %96 = tpu.matmul %94, %95, %cst_74 {dimension_numbers = #tpu.dot_dimension_numbers<[1], [0], [0], [1], [0, 0, 1, 1], [], []>} : vector<64x32xbf16>, vector<32x8xbf16>, vector<64x8xf32> -> vector<64x8xf32>
    %97 = arith.addf %93, %96 : vector<64x8xf32>
    %c9 = arith.constant 9 : index
    %c0_75 = arith.constant 0 : index
    %98 = vector.load %arg36[%c9, %c0_75] : memref<96x32xbf16, #tpu.memory_space<vmem>>, vector<64x32xbf16>
    %c64_76 = arith.constant 64 : index
    %c0_77 = arith.constant 0 : index
    %99 = vector.load %arg6[%c64_76, %c0_77] : memref<288x8xbf16, #tpu.memory_space<vmem>>, vector<32x8xbf16>
    %cst_78 = arith.constant dense<0.000000e+00> : vector<64x8xf32>
    %100 = tpu.matmul %98, %99, %cst_78 {dimension_numbers = #tpu.dot_dimension_numbers<[1], [0], [0], [1], [0, 0, 1, 1], [], []>} : vector<64x32xbf16>, vector<32x8xbf16>, vector<64x8xf32> -> vector<64x8xf32>
    %c7_i32 = arith.constant 7 : i32
    %101 = vector.broadcast %c7_i32 : i32 to vector<64x1xi32>
    %102 = arith.cmpi slt, %61, %101 : vector<64x1xi32>
    %cst_79 = arith.constant 0.000000e+00 : f32
    %103 = vector.shape_cast %102 : vector<64x1xi1> to vector<64x1xi1>
    %104 = vector.broadcast %103 : vector<64x1xi1> to vector<64x8xi1>
    %105 = vector.broadcast %cst_79 : f32 to vector<64x8xf32>
    %106 = arith.select %104, %100, %105 : vector<64x8xi1>, vector<64x8xf32>
    %107 = arith.addf %97, %106 : vector<64x8xf32>
    %c15 = arith.constant 15 : index
    %c0_80 = arith.constant 0 : index
    %108 = vector.load %arg36[%c15, %c0_80] : memref<96x32xbf16, #tpu.memory_space<vmem>>, vector<64x32xbf16>
    %c96 = arith.constant 96 : index
    %c0_81 = arith.constant 0 : index
    %109 = vector.load %arg6[%c96, %c0_81] : memref<288x8xbf16, #tpu.memory_space<vmem>>, vector<32x8xbf16>
    %cst_82 = arith.constant dense<0.000000e+00> : vector<64x8xf32>
    %110 = tpu.matmul %108, %109, %cst_82 {dimension_numbers = #tpu.dot_dimension_numbers<[1], [0], [0], [1], [0, 0, 1, 1], [], []>} : vector<64x32xbf16>, vector<32x8xbf16>, vector<64x8xf32> -> vector<64x8xf32>
    %c1_i32_83 = arith.constant 1 : i32
    %111 = vector.broadcast %c1_i32_83 : i32 to vector<64x1xi32>
    %112 = arith.cmpi sge, %61, %111 : vector<64x1xi32>
    %cst_84 = arith.constant 0.000000e+00 : f32
    %113 = vector.shape_cast %112 : vector<64x1xi1> to vector<64x1xi1>
    %114 = vector.broadcast %113 : vector<64x1xi1> to vector<64x8xi1>
    %115 = vector.broadcast %cst_84 : f32 to vector<64x8xf32>
    %116 = arith.select %114, %110, %115 : vector<64x8xi1>, vector<64x8xf32>
    %117 = arith.addf %107, %116 : vector<64x8xf32>
    %c16_85 = arith.constant 16 : index
    %c0_86 = arith.constant 0 : index
    %118 = vector.load %arg36[%c16_85, %c0_86] : memref<96x32xbf16, #tpu.memory_space<vmem>>, vector<64x32xbf16>
    %c128_87 = arith.constant 128 : index
    %c0_88 = arith.constant 0 : index
    %119 = vector.load %arg6[%c128_87, %c0_88] : memref<288x8xbf16, #tpu.memory_space<vmem>>, vector<32x8xbf16>
    %cst_89 = arith.constant dense<0.000000e+00> : vector<64x8xf32>
    %120 = tpu.matmul %118, %119, %cst_89 {dimension_numbers = #tpu.dot_dimension_numbers<[1], [0], [0], [1], [0, 0, 1, 1], [], []>} : vector<64x32xbf16>, vector<32x8xbf16>, vector<64x8xf32> -> vector<64x8xf32>
    %121 = arith.addf %117, %120 : vector<64x8xf32>
    %c17 = arith.constant 17 : index
    %c0_90 = arith.constant 0 : index
    %122 = vector.load %arg36[%c17, %c0_90] : memref<96x32xbf16, #tpu.memory_space<vmem>>, vector<64x32xbf16>
    %c160 = arith.constant 160 : index
    %c0_91 = arith.constant 0 : index
    %123 = vector.load %arg6[%c160, %c0_91] : memref<288x8xbf16, #tpu.memory_space<vmem>>, vector<32x8xbf16>
    %cst_92 = arith.constant dense<0.000000e+00> : vector<64x8xf32>
    %124 = tpu.matmul %122, %123, %cst_92 {dimension_numbers = #tpu.dot_dimension_numbers<[1], [0], [0], [1], [0, 0, 1, 1], [], []>} : vector<64x32xbf16>, vector<32x8xbf16>, vector<64x8xf32> -> vector<64x8xf32>
    %c7_i32_93 = arith.constant 7 : i32
    %125 = vector.broadcast %c7_i32_93 : i32 to vector<64x1xi32>
    %126 = arith.cmpi slt, %61, %125 : vector<64x1xi32>
    %cst_94 = arith.constant 0.000000e+00 : f32
    %127 = vector.shape_cast %126 : vector<64x1xi1> to vector<64x1xi1>
    %128 = vector.broadcast %127 : vector<64x1xi1> to vector<64x8xi1>
    %129 = vector.broadcast %cst_94 : f32 to vector<64x8xf32>
    %130 = arith.select %128, %124, %129 : vector<64x8xi1>, vector<64x8xf32>
    %131 = arith.addf %121, %130 : vector<64x8xf32>
    %c23 = arith.constant 23 : index
    %c0_95 = arith.constant 0 : index
    %132 = vector.load %arg36[%c23, %c0_95] : memref<96x32xbf16, #tpu.memory_space<vmem>>, vector<64x32xbf16>
    %c192_96 = arith.constant 192 : index
    %c0_97 = arith.constant 0 : index
    %133 = vector.load %arg6[%c192_96, %c0_97] : memref<288x8xbf16, #tpu.memory_space<vmem>>, vector<32x8xbf16>
    %cst_98 = arith.constant dense<0.000000e+00> : vector<64x8xf32>
    %134 = tpu.matmul %132, %133, %cst_98 {dimension_numbers = #tpu.dot_dimension_numbers<[1], [0], [0], [1], [0, 0, 1, 1], [], []>} : vector<64x32xbf16>, vector<32x8xbf16>, vector<64x8xf32> -> vector<64x8xf32>
    %c1_i32_99 = arith.constant 1 : i32
    %135 = vector.broadcast %c1_i32_99 : i32 to vector<64x1xi32>
    %136 = arith.cmpi sge, %61, %135 : vector<64x1xi32>
    %cst_100 = arith.constant 0.000000e+00 : f32
    %137 = vector.shape_cast %136 : vector<64x1xi1> to vector<64x1xi1>
    %138 = vector.broadcast %137 : vector<64x1xi1> to vector<64x8xi1>
    %139 = vector.broadcast %cst_100 : f32 to vector<64x8xf32>
    %140 = arith.select %138, %134, %139 : vector<64x8xi1>, vector<64x8xf32>
    %141 = arith.addf %131, %140 : vector<64x8xf32>
    %c24 = arith.constant 24 : index
    %c0_101 = arith.constant 0 : index
    %142 = vector.load %arg36[%c24, %c0_101] : memref<96x32xbf16, #tpu.memory_space<vmem>>, vector<64x32xbf16>
    %c224 = arith.constant 224 : index
    %c0_102 = arith.constant 0 : index
    %143 = vector.load %arg6[%c224, %c0_102] : memref<288x8xbf16, #tpu.memory_space<vmem>>, vector<32x8xbf16>
    %cst_103 = arith.constant dense<0.000000e+00> : vector<64x8xf32>
    %144 = tpu.matmul %142, %143, %cst_103 {dimension_numbers = #tpu.dot_dimension_numbers<[1], [0], [0], [1], [0, 0, 1, 1], [], []>} : vector<64x32xbf16>, vector<32x8xbf16>, vector<64x8xf32> -> vector<64x8xf32>
    %145 = arith.addf %141, %144 : vector<64x8xf32>
    %c25 = arith.constant 25 : index
    %c0_104 = arith.constant 0 : index
    %146 = vector.load %arg36[%c25, %c0_104] : memref<96x32xbf16, #tpu.memory_space<vmem>>, vector<64x32xbf16>
    %c256_105 = arith.constant 256 : index
    %c0_106 = arith.constant 0 : index
    %147 = vector.load %arg6[%c256_105, %c0_106] : memref<288x8xbf16, #tpu.memory_space<vmem>>, vector<32x8xbf16>
    %cst_107 = arith.constant dense<0.000000e+00> : vector<64x8xf32>
    %148 = tpu.matmul %146, %147, %cst_107 {dimension_numbers = #tpu.dot_dimension_numbers<[1], [0], [0], [1], [0, 0, 1, 1], [], []>} : vector<64x32xbf16>, vector<32x8xbf16>, vector<64x8xf32> -> vector<64x8xf32>
    %c7_i32_108 = arith.constant 7 : i32
    %149 = vector.broadcast %c7_i32_108 : i32 to vector<64x1xi32>
    %150 = arith.cmpi slt, %61, %149 : vector<64x1xi32>
    %cst_109 = arith.constant 0.000000e+00 : f32
    %151 = vector.shape_cast %150 : vector<64x1xi1> to vector<64x1xi1>
    %152 = vector.broadcast %151 : vector<64x1xi1> to vector<64x8xi1>
    %153 = vector.broadcast %cst_109 : f32 to vector<64x8xf32>
    %154 = arith.select %152, %148, %153 : vector<64x8xi1>, vector<64x8xf32>
    %155 = arith.addf %145, %154 : vector<64x8xf32>
    %c0_110 = arith.constant 0 : index
    %c16_111 = arith.constant 16 : index
    %156 = vector.load %arg35[%c0_110, %c16_111] : memref<64x32xf32, #tpu.memory_space<vmem>>, vector<64x8xf32>
    tpu.vector_store %arg35[%c0_110, %c16_111], %155 {strides = array<i32>} : memref<64x32xf32, #tpu.memory_space<vmem>>, vector<64x8xf32>,
    %c0_112 = arith.constant 0 : index
    %c0_113 = arith.constant 0 : index
    %157 = vector.load %arg35[%c0_112, %c0_113] : memref<64x32xf32, #tpu.memory_space<vmem>>, vector<64x24xf32>
    %c0_114 = arith.constant 0 : index
    %c0_115 = arith.constant 0 : index
    %158 = vector.load %arg7[%c0_114, %c0_115] : memref<2x24xf32, #tpu.memory_space<vmem>>, vector<1x24xf32>
    %159 = vector.broadcast %158 : vector<1x24xf32> to vector<64x24xf32>
    %160 = arith.mulf %157, %159 : vector<64x24xf32>
    %c1_116 = arith.constant 1 : index
    %c0_117 = arith.constant 0 : index
    %161 = vector.load %arg7[%c1_116, %c0_117] : memref<2x24xf32, #tpu.memory_space<vmem>>, vector<1x24xf32>
    %162 = vector.broadcast %161 : vector<1x24xf32> to vector<64x24xf32>
    %163 = arith.addf %160, %162 : vector<64x24xf32>
    %cst_118 = arith.constant 0.000000e+00 : f32
    %164 = vector.broadcast %cst_118 : f32 to vector<64x24xf32>
    %165 = arith.maximumf %163, %164 : vector<64x24xf32>
    %166 = arith.truncf %165 : vector<64x24xf32> to vector<64x24xbf16>
    %c0_119 = arith.constant 0 : index
    %c0_120 = arith.constant 0 : index
    %167 = vector.load %arg8[%c0_119, %c0_120] : memref<24x32xbf16, #tpu.memory_space<vmem>>, vector<24x32xbf16>
    %cst_121 = arith.constant dense<0.000000e+00> : vector<64x32xf32>
    %168 = tpu.matmul %166, %167, %cst_121 {dimension_numbers = #tpu.dot_dimension_numbers<[1], [0], [0], [1], [0, 0, 1, 1], [], []>} : vector<64x24xbf16>, vector<24x32xbf16>, vector<64x32xf32> -> vector<64x32xf32>
    %c0_122 = arith.constant 0 : index
    %c0_123 = arith.constant 0 : index
    %169 = vector.load %arg9[%c0_122, %c0_123] : memref<1x32xf32, #tpu.memory_space<vmem>>, vector<1x32xf32>
    %170 = vector.broadcast %169 : vector<1x32xf32> to vector<64x32xf32>
    %171 = arith.addf %168, %170 : vector<64x32xf32>
    %cst_124 = arith.constant 0.000000e+00 : f32
    %172 = vector.broadcast %cst_124 : f32 to vector<64x32xf32>
    %173 = arith.maximumf %171, %172 : vector<64x32xf32>
    %cst_125 = arith.constant 0.000000e+00 : bf16
    %174 = vector.broadcast %cst_125 : bf16 to vector<96x32xbf16>
    %c0_126 = arith.constant 0 : index
    %c0_127 = arith.constant 0 : index
    %175 = vector.load %arg36[%c0_126, %c0_127] : memref<96x32xbf16, #tpu.memory_space<vmem>>, vector<96x32xbf16>
    tpu.vector_store %arg36[%c0_126, %c0_127], %174 {strides = array<i32>} : memref<96x32xbf16, #tpu.memory_space<vmem>>, vector<96x32xbf16>,
    %176 = arith.truncf %173 : vector<64x32xf32> to vector<64x32xbf16>
    %c16_128 = arith.constant 16 : index
    %c0_129 = arith.constant 0 : index
    %177 = vector.load %arg36[%c16_128, %c0_129] : memref<96x32xbf16, #tpu.memory_space<vmem>>, vector<64x32xbf16>
    tpu.vector_store %arg36[%c16_128, %c0_129], %176 {strides = array<i32>} : memref<96x32xbf16, #tpu.memory_space<vmem>>, vector<64x32xbf16>,
    %cst_130 = arith.constant 0.000000e+00 : f32
    %178 = vector.broadcast %cst_130 : f32 to vector<64x8xf32>
    %c7_131 = arith.constant 7 : index
    %c0_132 = arith.constant 0 : index
    %179 = vector.load %arg36[%c7_131, %c0_132] : memref<96x32xbf16, #tpu.memory_space<vmem>>, vector<64x32xbf16>
    %c0_133 = arith.constant 0 : index
    %c0_134 = arith.constant 0 : index
    %180 = vector.load %arg10[%c0_133, %c0_134] : memref<288x8xbf16, #tpu.memory_space<vmem>>, vector<32x8xbf16>
    %cst_135 = arith.constant dense<0.000000e+00> : vector<64x8xf32>
    %181 = tpu.matmul %179, %180, %cst_135 {dimension_numbers = #tpu.dot_dimension_numbers<[1], [0], [0], [1], [0, 0, 1, 1], [], []>} : vector<64x32xbf16>, vector<32x8xbf16>, vector<64x8xf32> -> vector<64x8xf32>
    %c1_i32_136 = arith.constant 1 : i32
    %182 = vector.broadcast %c1_i32_136 : i32 to vector<64x1xi32>
    %183 = arith.cmpi sge, %61, %182 : vector<64x1xi32>
    %cst_137 = arith.constant 0.000000e+00 : f32
    %184 = vector.shape_cast %183 : vector<64x1xi1> to vector<64x1xi1>
    %185 = vector.broadcast %184 : vector<64x1xi1> to vector<64x8xi1>
    %186 = vector.broadcast %cst_137 : f32 to vector<64x8xf32>
    %187 = arith.select %185, %181, %186 : vector<64x8xi1>, vector<64x8xf32>
    %188 = arith.addf %178, %187 : vector<64x8xf32>
    %c8_138 = arith.constant 8 : index
    %c0_139 = arith.constant 0 : index
    %189 = vector.load %arg36[%c8_138, %c0_139] : memref<96x32xbf16, #tpu.memory_space<vmem>>, vector<64x32xbf16>
    %c32_140 = arith.constant 32 : index
    %c0_141 = arith.constant 0 : index
    %190 = vector.load %arg10[%c32_140, %c0_141] : memref<288x8xbf16, #tpu.memory_space<vmem>>, vector<32x8xbf16>
    %cst_142 = arith.constant dense<0.000000e+00> : vector<64x8xf32>
    %191 = tpu.matmul %189, %190, %cst_142 {dimension_numbers = #tpu.dot_dimension_numbers<[1], [0], [0], [1], [0, 0, 1, 1], [], []>} : vector<64x32xbf16>, vector<32x8xbf16>, vector<64x8xf32> -> vector<64x8xf32>
    %192 = arith.addf %188, %191 : vector<64x8xf32>
    %c9_143 = arith.constant 9 : index
    %c0_144 = arith.constant 0 : index
    %193 = vector.load %arg36[%c9_143, %c0_144] : memref<96x32xbf16, #tpu.memory_space<vmem>>, vector<64x32xbf16>
    %c64_145 = arith.constant 64 : index
    %c0_146 = arith.constant 0 : index
    %194 = vector.load %arg10[%c64_145, %c0_146] : memref<288x8xbf16, #tpu.memory_space<vmem>>, vector<32x8xbf16>
    %cst_147 = arith.constant dense<0.000000e+00> : vector<64x8xf32>
    %195 = tpu.matmul %193, %194, %cst_147 {dimension_numbers = #tpu.dot_dimension_numbers<[1], [0], [0], [1], [0, 0, 1, 1], [], []>} : vector<64x32xbf16>, vector<32x8xbf16>, vector<64x8xf32> -> vector<64x8xf32>
    %c7_i32_148 = arith.constant 7 : i32
    %196 = vector.broadcast %c7_i32_148 : i32 to vector<64x1xi32>
    %197 = arith.cmpi slt, %61, %196 : vector<64x1xi32>
    %cst_149 = arith.constant 0.000000e+00 : f32
    %198 = vector.shape_cast %197 : vector<64x1xi1> to vector<64x1xi1>
    %199 = vector.broadcast %198 : vector<64x1xi1> to vector<64x8xi1>
    %200 = vector.broadcast %cst_149 : f32 to vector<64x8xf32>
    %201 = arith.select %199, %195, %200 : vector<64x8xi1>, vector<64x8xf32>
    %202 = arith.addf %192, %201 : vector<64x8xf32>
    %c15_150 = arith.constant 15 : index
    %c0_151 = arith.constant 0 : index
    %203 = vector.load %arg36[%c15_150, %c0_151] : memref<96x32xbf16, #tpu.memory_space<vmem>>, vector<64x32xbf16>
    %c96_152 = arith.constant 96 : index
    %c0_153 = arith.constant 0 : index
    %204 = vector.load %arg10[%c96_152, %c0_153] : memref<288x8xbf16, #tpu.memory_space<vmem>>, vector<32x8xbf16>
    %cst_154 = arith.constant dense<0.000000e+00> : vector<64x8xf32>
    %205 = tpu.matmul %203, %204, %cst_154 {dimension_numbers = #tpu.dot_dimension_numbers<[1], [0], [0], [1], [0, 0, 1, 1], [], []>} : vector<64x32xbf16>, vector<32x8xbf16>, vector<64x8xf32> -> vector<64x8xf32>
    %c1_i32_155 = arith.constant 1 : i32
    %206 = vector.broadcast %c1_i32_155 : i32 to vector<64x1xi32>
    %207 = arith.cmpi sge, %61, %206 : vector<64x1xi32>
    %cst_156 = arith.constant 0.000000e+00 : f32
    %208 = vector.shape_cast %207 : vector<64x1xi1> to vector<64x1xi1>
    %209 = vector.broadcast %208 : vector<64x1xi1> to vector<64x8xi1>
    %210 = vector.broadcast %cst_156 : f32 to vector<64x8xf32>
    %211 = arith.select %209, %205, %210 : vector<64x8xi1>, vector<64x8xf32>
    %212 = arith.addf %202, %211 : vector<64x8xf32>
    %c16_157 = arith.constant 16 : index
    %c0_158 = arith.constant 0 : index
    %213 = vector.load %arg36[%c16_157, %c0_158] : memref<96x32xbf16, #tpu.memory_space<vmem>>, vector<64x32xbf16>
    %c128_159 = arith.constant 128 : index
    %c0_160 = arith.constant 0 : index
    %214 = vector.load %arg10[%c128_159, %c0_160] : memref<288x8xbf16, #tpu.memory_space<vmem>>, vector<32x8xbf16>
    %cst_161 = arith.constant dense<0.000000e+00> : vector<64x8xf32>
    %215 = tpu.matmul %213, %214, %cst_161 {dimension_numbers = #tpu.dot_dimension_numbers<[1], [0], [0], [1], [0, 0, 1, 1], [], []>} : vector<64x32xbf16>, vector<32x8xbf16>, vector<64x8xf32> -> vector<64x8xf32>
    %216 = arith.addf %212, %215 : vector<64x8xf32>
    %c17_162 = arith.constant 17 : index
    %c0_163 = arith.constant 0 : index
    %217 = vector.load %arg36[%c17_162, %c0_163] : memref<96x32xbf16, #tpu.memory_space<vmem>>, vector<64x32xbf16>
    %c160_164 = arith.constant 160 : index
    %c0_165 = arith.constant 0 : index
    %218 = vector.load %arg10[%c160_164, %c0_165] : memref<288x8xbf16, #tpu.memory_space<vmem>>, vector<32x8xbf16>
    %cst_166 = arith.constant dense<0.000000e+00> : vector<64x8xf32>
    %219 = tpu.matmul %217, %218, %cst_166 {dimension_numbers = #tpu.dot_dimension_numbers<[1], [0], [0], [1], [0, 0, 1, 1], [], []>} : vector<64x32xbf16>, vector<32x8xbf16>, vector<64x8xf32> -> vector<64x8xf32>
    %c7_i32_167 = arith.constant 7 : i32
    %220 = vector.broadcast %c7_i32_167 : i32 to vector<64x1xi32>
    %221 = arith.cmpi slt, %61, %220 : vector<64x1xi32>
    %cst_168 = arith.constant 0.000000e+00 : f32
    %222 = vector.shape_cast %221 : vector<64x1xi1> to vector<64x1xi1>
    %223 = vector.broadcast %222 : vector<64x1xi1> to vector<64x8xi1>
    %224 = vector.broadcast %cst_168 : f32 to vector<64x8xf32>
    %225 = arith.select %223, %219, %224 : vector<64x8xi1>, vector<64x8xf32>
    %226 = arith.addf %216, %225 : vector<64x8xf32>
    %c23_169 = arith.constant 23 : index
    %c0_170 = arith.constant 0 : index
    %227 = vector.load %arg36[%c23_169, %c0_170] : memref<96x32xbf16, #tpu.memory_space<vmem>>, vector<64x32xbf16>
    %c192_171 = arith.constant 192 : index
    %c0_172 = arith.constant 0 : index
    %228 = vector.load %arg10[%c192_171, %c0_172] : memref<288x8xbf16, #tpu.memory_space<vmem>>, vector<32x8xbf16>
    %cst_173 = arith.constant dense<0.000000e+00> : vector<64x8xf32>
    %229 = tpu.matmul %227, %228, %cst_173 {dimension_numbers = #tpu.dot_dimension_numbers<[1], [0], [0], [1], [0, 0, 1, 1], [], []>} : vector<64x32xbf16>, vector<32x8xbf16>, vector<64x8xf32> -> vector<64x8xf32>
    %c1_i32_174 = arith.constant 1 : i32
    %230 = vector.broadcast %c1_i32_174 : i32 to vector<64x1xi32>
    %231 = arith.cmpi sge, %61, %230 : vector<64x1xi32>
    %cst_175 = arith.constant 0.000000e+00 : f32
    %232 = vector.shape_cast %231 : vector<64x1xi1> to vector<64x1xi1>
    %233 = vector.broadcast %232 : vector<64x1xi1> to vector<64x8xi1>
    %234 = vector.broadcast %cst_175 : f32 to vector<64x8xf32>
    %235 = arith.select %233, %229, %234 : vector<64x8xi1>, vector<64x8xf32>
    %236 = arith.addf %226, %235 : vector<64x8xf32>
    %c24_176 = arith.constant 24 : index
    %c0_177 = arith.constant 0 : index
    %237 = vector.load %arg36[%c24_176, %c0_177] : memref<96x32xbf16, #tpu.memory_space<vmem>>, vector<64x32xbf16>
    %c224_178 = arith.constant 224 : index
    %c0_179 = arith.constant 0 : index
    %238 = vector.load %arg10[%c224_178, %c0_179] : memref<288x8xbf16, #tpu.memory_space<vmem>>, vector<32x8xbf16>
    %cst_180 = arith.constant dense<0.000000e+00> : vector<64x8xf32>
    %239 = tpu.matmul %237, %238, %cst_180 {dimension_numbers = #tpu.dot_dimension_numbers<[1], [0], [0], [1], [0, 0, 1, 1], [], []>} : vector<64x32xbf16>, vector<32x8xbf16>, vector<64x8xf32> -> vector<64x8xf32>
    %240 = arith.addf %236, %239 : vector<64x8xf32>
    %c25_181 = arith.constant 25 : index
    %c0_182 = arith.constant 0 : index
    %241 = vector.load %arg36[%c25_181, %c0_182] : memref<96x32xbf16, #tpu.memory_space<vmem>>, vector<64x32xbf16>
    %c256_183 = arith.constant 256 : index
    %c0_184 = arith.constant 0 : index
    %242 = vector.load %arg10[%c256_183, %c0_184] : memref<288x8xbf16, #tpu.memory_space<vmem>>, vector<32x8xbf16>
    %cst_185 = arith.constant dense<0.000000e+00> : vector<64x8xf32>
    %243 = tpu.matmul %241, %242, %cst_185 {dimension_numbers = #tpu.dot_dimension_numbers<[1], [0], [0], [1], [0, 0, 1, 1], [], []>} : vector<64x32xbf16>, vector<32x8xbf16>, vector<64x8xf32> -> vector<64x8xf32>
    %c7_i32_186 = arith.constant 7 : i32
    %244 = vector.broadcast %c7_i32_186 : i32 to vector<64x1xi32>
    %245 = arith.cmpi slt, %61, %244 : vector<64x1xi32>
    %cst_187 = arith.constant 0.000000e+00 : f32
    %246 = vector.shape_cast %245 : vector<64x1xi1> to vector<64x1xi1>
    %247 = vector.broadcast %246 : vector<64x1xi1> to vector<64x8xi1>
    %248 = vector.broadcast %cst_187 : f32 to vector<64x8xf32>
    %249 = arith.select %247, %243, %248 : vector<64x8xi1>, vector<64x8xf32>
    %250 = arith.addf %240, %249 : vector<64x8xf32>
    %c0_188 = arith.constant 0 : index
    %c24_189 = arith.constant 24 : index
    %251 = vector.load %arg35[%c0_188, %c24_189] : memref<64x32xf32, #tpu.memory_space<vmem>>, vector<64x8xf32>
    tpu.vector_store %arg35[%c0_188, %c24_189], %250 {strides = array<i32>} : memref<64x32xf32, #tpu.memory_space<vmem>>, vector<64x8xf32>,
    %c0_190 = arith.constant 0 : index
    %c0_191 = arith.constant 0 : index
    %252 = vector.load %arg35[%c0_190, %c0_191] : memref<64x32xf32, #tpu.memory_space<vmem>>, vector<64x32xf32>
    %c0_192 = arith.constant 0 : index
    %c0_193 = arith.constant 0 : index
    %253 = vector.load %arg11[%c0_192, %c0_193] : memref<2x32xf32, #tpu.memory_space<vmem>>, vector<1x32xf32>
    %254 = vector.broadcast %253 : vector<1x32xf32> to vector<64x32xf32>
    %255 = arith.mulf %252, %254 : vector<64x32xf32>
    %c1_194 = arith.constant 1 : index
    %c0_195 = arith.constant 0 : index
    %256 = vector.load %arg11[%c1_194, %c0_195] : memref<2x32xf32, #tpu.memory_space<vmem>>, vector<1x32xf32>
    %257 = vector.broadcast %256 : vector<1x32xf32> to vector<64x32xf32>
    %258 = arith.addf %255, %257 : vector<64x32xf32>
    %cst_196 = arith.constant 0.000000e+00 : f32
    %259 = vector.broadcast %cst_196 : f32 to vector<64x32xf32>
    %260 = arith.maximumf %258, %259 : vector<64x32xf32>
    %c0_197 = arith.constant 0 : index
    %c0_198 = arith.constant 0 : index
    %261 = vector.load %arg13[%c0_197, %c0_198] : memref<16x64xbf16, #tpu.memory_space<vmem>>, vector<16x64xbf16>
    %262 = arith.truncf %260 : vector<64x32xf32> to vector<64x32xbf16>
    %cst_199 = arith.constant dense<0.000000e+00> : vector<16x32xf32>
    %263 = tpu.matmul %261, %262, %cst_199 {dimension_numbers = #tpu.dot_dimension_numbers<[1], [0], [0], [1], [0, 0, 1, 1], [], []>} : vector<16x64xbf16>, vector<64x32xbf16>, vector<16x32xf32> -> vector<16x32xf32>
    %264 = arith.truncf %263 : vector<16x32xf32> to vector<16x32xbf16>
    %c0_200 = arith.constant 0 : index
    %c0_201 = arith.constant 0 : index
    %265 = vector.load %arg12[%c0_200, %c0_201] : memref<32x16xbf16, #tpu.memory_space<vmem>>, vector<32x16xbf16>
    %cst_202 = arith.constant dense<0.000000e+00> : vector<16x16xf32>
    %266 = tpu.matmul %264, %265, %cst_202 {dimension_numbers = #tpu.dot_dimension_numbers<[1], [0], [0], [1], [0, 0, 1, 1], [], []>} : vector<16x32xbf16>, vector<32x16xbf16>, vector<16x16xf32> -> vector<16x16xf32>
    %c0_203 = arith.constant 0 : index
    %c0_204 = arith.constant 0 : index
    %267 = vector.load %arg35[%c0_203, %c0_204] : memref<64x32xf32, #tpu.memory_space<vmem>>, vector<16x16xf32>
    tpu.vector_store %arg35[%c0_203, %c0_204], %266 {strides = array<i32>} : memref<64x32xf32, #tpu.memory_space<vmem>>, vector<16x16xf32>,
    %268 = tpu.iota {dimensions = array<i32: 0>} : vector<16x1xi32>
    %c4_i32 = arith.constant 4 : i32
    %c0_i32_205 = arith.constant 0 : i32
    %269 = arith.cmpi eq, %c4_i32, %c0_i32_205 : i32
    %c1_i32_206 = arith.constant 1 : i32
    %270 = arith.select %269, %c1_i32_206, %c4_i32 : i32
    %271 = vector.broadcast %270 : i32 to vector<16x1xi32>
    %272 = arith.remsi %268, %271 : vector<16x1xi32>
    %c0_i32_207 = arith.constant 0 : i32
    %273 = vector.broadcast %c0_i32_207 : i32 to vector<16x1xi32>
    %274 = arith.cmpi ne, %272, %273 : vector<16x1xi32>
    %c0_i32_208 = arith.constant 0 : i32
    %275 = vector.broadcast %c0_i32_208 : i32 to vector<16x1xi32>
    %276 = arith.cmpi slt, %272, %275 : vector<16x1xi32>
    %c0_i32_209 = arith.constant 0 : i32
    %277 = arith.cmpi slt, %270, %c0_i32_209 : i32
    %278 = vector.broadcast %277 : i1 to vector<16x1xi1>
    %279 = vector.broadcast %278 : vector<16x1xi1> to vector<16x1xi1>
    %280 = arith.xori %276, %279 : vector<16x1xi1>
    %281 = arith.andi %280, %274 : vector<16x1xi1>
    %282 = vector.broadcast %270 : i32 to vector<16x1xi32>
    %283 = arith.addi %272, %282 : vector<16x1xi32>
    %284 = arith.select %281, %283, %272 : vector<16x1xi1>, vector<16x1xi32>
    %c0_210 = arith.constant 0 : index
    %c0_211 = arith.constant 0 : index
    %285 = vector.load %arg35[%c0_210, %c0_211] : memref<64x32xf32, #tpu.memory_space<vmem>>, vector<16x16xf32>
    %c0_212 = arith.constant 0 : index
    %c0_213 = arith.constant 0 : index
    %286 = vector.load %arg14[%c0_212, %c0_213] : memref<2x16xf32, #tpu.memory_space<vmem>>, vector<1x16xf32>
    %287 = vector.broadcast %286 : vector<1x16xf32> to vector<16x16xf32>
    %288 = arith.mulf %285, %287 : vector<16x16xf32>
    %c1_214 = arith.constant 1 : index
    %c0_215 = arith.constant 0 : index
    %289 = vector.load %arg14[%c1_214, %c0_215] : memref<2x16xf32, #tpu.memory_space<vmem>>, vector<1x16xf32>
    %290 = vector.broadcast %289 : vector<1x16xf32> to vector<16x16xf32>
    %291 = arith.addf %288, %290 : vector<16x16xf32>
    %cst_216 = arith.constant 0.000000e+00 : f32
    %292 = vector.broadcast %cst_216 : f32 to vector<16x16xf32>
    %293 = arith.maximumf %291, %292 : vector<16x16xf32>
    %294 = arith.truncf %293 : vector<16x16xf32> to vector<16x16xbf16>
    %c0_217 = arith.constant 0 : index
    %c0_218 = arith.constant 0 : index
    %295 = vector.load %arg15[%c0_217, %c0_218] : memref<16x32xbf16, #tpu.memory_space<vmem>>, vector<16x32xbf16>
    %cst_219 = arith.constant dense<0.000000e+00> : vector<16x32xf32>
    %296 = tpu.matmul %294, %295, %cst_219 {dimension_numbers = #tpu.dot_dimension_numbers<[1], [0], [0], [1], [0, 0, 1, 1], [], []>} : vector<16x16xbf16>, vector<16x32xbf16>, vector<16x32xf32> -> vector<16x32xf32>
    %c0_220 = arith.constant 0 : index
    %c0_221 = arith.constant 0 : index
    %297 = vector.load %arg16[%c0_220, %c0_221] : memref<1x32xf32, #tpu.memory_space<vmem>>, vector<1x32xf32>
    %298 = vector.broadcast %297 : vector<1x32xf32> to vector<16x32xf32>
    %299 = arith.addf %296, %298 : vector<16x32xf32>
    %cst_222 = arith.constant 0.000000e+00 : f32
    %300 = vector.broadcast %cst_222 : f32 to vector<16x32xf32>
    %301 = arith.maximumf %299, %300 : vector<16x32xf32>
    %cst_223 = arith.constant 0.000000e+00 : bf16
    %302 = vector.broadcast %cst_223 : bf16 to vector<96x32xbf16>
    %c0_224 = arith.constant 0 : index
    %c0_225 = arith.constant 0 : index
    %303 = vector.load %arg36[%c0_224, %c0_225] : memref<96x32xbf16, #tpu.memory_space<vmem>>, vector<96x32xbf16>
    tpu.vector_store %arg36[%c0_224, %c0_225], %302 {strides = array<i32>} : memref<96x32xbf16, #tpu.memory_space<vmem>>, vector<96x32xbf16>,
    %304 = arith.truncf %301 : vector<16x32xf32> to vector<16x32xbf16>
    %c16_226 = arith.constant 16 : index
    %c0_227 = arith.constant 0 : index
    %305 = vector.load %arg36[%c16_226, %c0_227] : memref<96x32xbf16, #tpu.memory_space<vmem>>, vector<16x32xbf16>
    tpu.vector_store %arg36[%c16_226, %c0_227], %304 {strides = array<i32>} : memref<96x32xbf16, #tpu.memory_space<vmem>>, vector<16x32xbf16>,
    %cst_228 = arith.constant 0.000000e+00 : f32
    %306 = vector.broadcast %cst_228 : f32 to vector<16x8xf32>
    %c11 = arith.constant 11 : index
    %c0_229 = arith.constant 0 : index
    %307 = vector.load %arg36[%c11, %c0_229] : memref<96x32xbf16, #tpu.memory_space<vmem>>, vector<16x32xbf16>
    %c0_230 = arith.constant 0 : index
    %c0_231 = arith.constant 0 : index
    %308 = vector.load %arg17[%c0_230, %c0_231] : memref<288x8xbf16, #tpu.memory_space<vmem>>, vector<32x8xbf16>
    %cst_232 = arith.constant dense<0.000000e+00> : vector<16x8xf32>
    %309 = tpu.matmul %307, %308, %cst_232 {dimension_numbers = #tpu.dot_dimension_numbers<[1], [0], [0], [1], [0, 0, 1, 1], [], []>} : vector<16x32xbf16>, vector<32x8xbf16>, vector<16x8xf32> -> vector<16x8xf32>
    %c1_i32_233 = arith.constant 1 : i32
    %310 = vector.broadcast %c1_i32_233 : i32 to vector<16x1xi32>
    %311 = arith.cmpi sge, %284, %310 : vector<16x1xi32>
    %cst_234 = arith.constant 0.000000e+00 : f32
    %312 = vector.shape_cast %311 : vector<16x1xi1> to vector<16x1xi1>
    %313 = vector.broadcast %312 : vector<16x1xi1> to vector<16x8xi1>
    %314 = vector.broadcast %cst_234 : f32 to vector<16x8xf32>
    %315 = arith.select %313, %309, %314 : vector<16x8xi1>, vector<16x8xf32>
    %316 = arith.addf %306, %315 : vector<16x8xf32>
    %c12 = arith.constant 12 : index
    %c0_235 = arith.constant 0 : index
    %317 = vector.load %arg36[%c12, %c0_235] : memref<96x32xbf16, #tpu.memory_space<vmem>>, vector<16x32xbf16>
    %c32_236 = arith.constant 32 : index
    %c0_237 = arith.constant 0 : index
    %318 = vector.load %arg17[%c32_236, %c0_237] : memref<288x8xbf16, #tpu.memory_space<vmem>>, vector<32x8xbf16>
    %cst_238 = arith.constant dense<0.000000e+00> : vector<16x8xf32>
    %319 = tpu.matmul %317, %318, %cst_238 {dimension_numbers = #tpu.dot_dimension_numbers<[1], [0], [0], [1], [0, 0, 1, 1], [], []>} : vector<16x32xbf16>, vector<32x8xbf16>, vector<16x8xf32> -> vector<16x8xf32>
    %320 = arith.addf %316, %319 : vector<16x8xf32>
    %c13 = arith.constant 13 : index
    %c0_239 = arith.constant 0 : index
    %321 = vector.load %arg36[%c13, %c0_239] : memref<96x32xbf16, #tpu.memory_space<vmem>>, vector<16x32xbf16>
    %c64_240 = arith.constant 64 : index
    %c0_241 = arith.constant 0 : index
    %322 = vector.load %arg17[%c64_240, %c0_241] : memref<288x8xbf16, #tpu.memory_space<vmem>>, vector<32x8xbf16>
    %cst_242 = arith.constant dense<0.000000e+00> : vector<16x8xf32>
    %323 = tpu.matmul %321, %322, %cst_242 {dimension_numbers = #tpu.dot_dimension_numbers<[1], [0], [0], [1], [0, 0, 1, 1], [], []>} : vector<16x32xbf16>, vector<32x8xbf16>, vector<16x8xf32> -> vector<16x8xf32>
    %c3_i32 = arith.constant 3 : i32
    %324 = vector.broadcast %c3_i32 : i32 to vector<16x1xi32>
    %325 = arith.cmpi slt, %284, %324 : vector<16x1xi32>
    %cst_243 = arith.constant 0.000000e+00 : f32
    %326 = vector.shape_cast %325 : vector<16x1xi1> to vector<16x1xi1>
    %327 = vector.broadcast %326 : vector<16x1xi1> to vector<16x8xi1>
    %328 = vector.broadcast %cst_243 : f32 to vector<16x8xf32>
    %329 = arith.select %327, %323, %328 : vector<16x8xi1>, vector<16x8xf32>
    %330 = arith.addf %320, %329 : vector<16x8xf32>
    %c15_244 = arith.constant 15 : index
    %c0_245 = arith.constant 0 : index
    %331 = vector.load %arg36[%c15_244, %c0_245] : memref<96x32xbf16, #tpu.memory_space<vmem>>, vector<16x32xbf16>
    %c96_246 = arith.constant 96 : index
    %c0_247 = arith.constant 0 : index
    %332 = vector.load %arg17[%c96_246, %c0_247] : memref<288x8xbf16, #tpu.memory_space<vmem>>, vector<32x8xbf16>
    %cst_248 = arith.constant dense<0.000000e+00> : vector<16x8xf32>
    %333 = tpu.matmul %331, %332, %cst_248 {dimension_numbers = #tpu.dot_dimension_numbers<[1], [0], [0], [1], [0, 0, 1, 1], [], []>} : vector<16x32xbf16>, vector<32x8xbf16>, vector<16x8xf32> -> vector<16x8xf32>
    %c1_i32_249 = arith.constant 1 : i32
    %334 = vector.broadcast %c1_i32_249 : i32 to vector<16x1xi32>
    %335 = arith.cmpi sge, %284, %334 : vector<16x1xi32>
    %cst_250 = arith.constant 0.000000e+00 : f32
    %336 = vector.shape_cast %335 : vector<16x1xi1> to vector<16x1xi1>
    %337 = vector.broadcast %336 : vector<16x1xi1> to vector<16x8xi1>
    %338 = vector.broadcast %cst_250 : f32 to vector<16x8xf32>
    %339 = arith.select %337, %333, %338 : vector<16x8xi1>, vector<16x8xf32>
    %340 = arith.addf %330, %339 : vector<16x8xf32>
    %c16_251 = arith.constant 16 : index
    %c0_252 = arith.constant 0 : index
    %341 = vector.load %arg36[%c16_251, %c0_252] : memref<96x32xbf16, #tpu.memory_space<vmem>>, vector<16x32xbf16>
    %c128_253 = arith.constant 128 : index
    %c0_254 = arith.constant 0 : index
    %342 = vector.load %arg17[%c128_253, %c0_254] : memref<288x8xbf16, #tpu.memory_space<vmem>>, vector<32x8xbf16>
    %cst_255 = arith.constant dense<0.000000e+00> : vector<16x8xf32>
    %343 = tpu.matmul %341, %342, %cst_255 {dimension_numbers = #tpu.dot_dimension_numbers<[1], [0], [0], [1], [0, 0, 1, 1], [], []>} : vector<16x32xbf16>, vector<32x8xbf16>, vector<16x8xf32> -> vector<16x8xf32>
    %344 = arith.addf %340, %343 : vector<16x8xf32>
    %c17_256 = arith.constant 17 : index
    %c0_257 = arith.constant 0 : index
    %345 = vector.load %arg36[%c17_256, %c0_257] : memref<96x32xbf16, #tpu.memory_space<vmem>>, vector<16x32xbf16>
    %c160_258 = arith.constant 160 : index
    %c0_259 = arith.constant 0 : index
    %346 = vector.load %arg17[%c160_258, %c0_259] : memref<288x8xbf16, #tpu.memory_space<vmem>>, vector<32x8xbf16>
    %cst_260 = arith.constant dense<0.000000e+00> : vector<16x8xf32>
    %347 = tpu.matmul %345, %346, %cst_260 {dimension_numbers = #tpu.dot_dimension_numbers<[1], [0], [0], [1], [0, 0, 1, 1], [], []>} : vector<16x32xbf16>, vector<32x8xbf16>, vector<16x8xf32> -> vector<16x8xf32>
    %c3_i32_261 = arith.constant 3 : i32
    %348 = vector.broadcast %c3_i32_261 : i32 to vector<16x1xi32>
    %349 = arith.cmpi slt, %284, %348 : vector<16x1xi32>
    %cst_262 = arith.constant 0.000000e+00 : f32
    %350 = vector.shape_cast %349 : vector<16x1xi1> to vector<16x1xi1>
    %351 = vector.broadcast %350 : vector<16x1xi1> to vector<16x8xi1>
    %352 = vector.broadcast %cst_262 : f32 to vector<16x8xf32>
    %353 = arith.select %351, %347, %352 : vector<16x8xi1>, vector<16x8xf32>
    %354 = arith.addf %344, %353 : vector<16x8xf32>
    %c19 = arith.constant 19 : index
    %c0_263 = arith.constant 0 : index
    %355 = vector.load %arg36[%c19, %c0_263] : memref<96x32xbf16, #tpu.memory_space<vmem>>, vector<16x32xbf16>
    %c192_264 = arith.constant 192 : index
    %c0_265 = arith.constant 0 : index
    %356 = vector.load %arg17[%c192_264, %c0_265] : memref<288x8xbf16, #tpu.memory_space<vmem>>, vector<32x8xbf16>
    %cst_266 = arith.constant dense<0.000000e+00> : vector<16x8xf32>
    %357 = tpu.matmul %355, %356, %cst_266 {dimension_numbers = #tpu.dot_dimension_numbers<[1], [0], [0], [1], [0, 0, 1, 1], [], []>} : vector<16x32xbf16>, vector<32x8xbf16>, vector<16x8xf32> -> vector<16x8xf32>
    %c1_i32_267 = arith.constant 1 : i32
    %358 = vector.broadcast %c1_i32_267 : i32 to vector<16x1xi32>
    %359 = arith.cmpi sge, %284, %358 : vector<16x1xi32>
    %cst_268 = arith.constant 0.000000e+00 : f32
    %360 = vector.shape_cast %359 : vector<16x1xi1> to vector<16x1xi1>
    %361 = vector.broadcast %360 : vector<16x1xi1> to vector<16x8xi1>
    %362 = vector.broadcast %cst_268 : f32 to vector<16x8xf32>
    %363 = arith.select %361, %357, %362 : vector<16x8xi1>, vector<16x8xf32>
    %364 = arith.addf %354, %363 : vector<16x8xf32>
    %c20 = arith.constant 20 : index
    %c0_269 = arith.constant 0 : index
    %365 = vector.load %arg36[%c20, %c0_269] : memref<96x32xbf16, #tpu.memory_space<vmem>>, vector<16x32xbf16>
    %c224_270 = arith.constant 224 : index
    %c0_271 = arith.constant 0 : index
    %366 = vector.load %arg17[%c224_270, %c0_271] : memref<288x8xbf16, #tpu.memory_space<vmem>>, vector<32x8xbf16>
    %cst_272 = arith.constant dense<0.000000e+00> : vector<16x8xf32>
    %367 = tpu.matmul %365, %366, %cst_272 {dimension_numbers = #tpu.dot_dimension_numbers<[1], [0], [0], [1], [0, 0, 1, 1], [], []>} : vector<16x32xbf16>, vector<32x8xbf16>, vector<16x8xf32> -> vector<16x8xf32>
    %368 = arith.addf %364, %367 : vector<16x8xf32>
    %c21 = arith.constant 21 : index
    %c0_273 = arith.constant 0 : index
    %369 = vector.load %arg36[%c21, %c0_273] : memref<96x32xbf16, #tpu.memory_space<vmem>>, vector<16x32xbf16>
    %c256_274 = arith.constant 256 : index
    %c0_275 = arith.constant 0 : index
    %370 = vector.load %arg17[%c256_274, %c0_275] : memref<288x8xbf16, #tpu.memory_space<vmem>>, vector<32x8xbf16>
    %cst_276 = arith.constant dense<0.000000e+00> : vector<16x8xf32>
    %371 = tpu.matmul %369, %370, %cst_276 {dimension_numbers = #tpu.dot_dimension_numbers<[1], [0], [0], [1], [0, 0, 1, 1], [], []>} : vector<16x32xbf16>, vector<32x8xbf16>, vector<16x8xf32> -> vector<16x8xf32>
    %c3_i32_277 = arith.constant 3 : i32
    %372 = vector.broadcast %c3_i32_277 : i32 to vector<16x1xi32>
    %373 = arith.cmpi slt, %284, %372 : vector<16x1xi32>
    %cst_278 = arith.constant 0.000000e+00 : f32
    %374 = vector.shape_cast %373 : vector<16x1xi1> to vector<16x1xi1>
    %375 = vector.broadcast %374 : vector<16x1xi1> to vector<16x8xi1>
    %376 = vector.broadcast %cst_278 : f32 to vector<16x8xf32>
    %377 = arith.select %375, %371, %376 : vector<16x8xi1>, vector<16x8xf32>
    %378 = arith.addf %368, %377 : vector<16x8xf32>
    %c0_279 = arith.constant 0 : index
    %c16_280 = arith.constant 16 : index
    %379 = vector.load %arg35[%c0_279, %c16_280] : memref<64x32xf32, #tpu.memory_space<vmem>>, vector<16x8xf32>
    tpu.vector_store %arg35[%c0_279, %c16_280], %378 {strides = array<i32>} : memref<64x32xf32, #tpu.memory_space<vmem>>, vector<16x8xf32>,
    %c0_281 = arith.constant 0 : index
    %c0_282 = arith.constant 0 : index
    %380 = vector.load %arg35[%c0_281, %c0_282] : memref<64x32xf32, #tpu.memory_space<vmem>>, vector<16x24xf32>
    %c0_283 = arith.constant 0 : index
    %c0_284 = arith.constant 0 : index
    %381 = vector.load %arg18[%c0_283, %c0_284] : memref<2x24xf32, #tpu.memory_space<vmem>>, vector<1x24xf32>
    %382 = vector.broadcast %381 : vector<1x24xf32> to vector<16x24xf32>
    %383 = arith.mulf %380, %382 : vector<16x24xf32>
    %c1_285 = arith.constant 1 : index
    %c0_286 = arith.constant 0 : index
    %384 = vector.load %arg18[%c1_285, %c0_286] : memref<2x24xf32, #tpu.memory_space<vmem>>, vector<1x24xf32>
    %385 = vector.broadcast %384 : vector<1x24xf32> to vector<16x24xf32>
    %386 = arith.addf %383, %385 : vector<16x24xf32>
    %cst_287 = arith.constant 0.000000e+00 : f32
    %387 = vector.broadcast %cst_287 : f32 to vector<16x24xf32>
    %388 = arith.maximumf %386, %387 : vector<16x24xf32>
    %389 = arith.truncf %388 : vector<16x24xf32> to vector<16x24xbf16>
    %c0_288 = arith.constant 0 : index
    %c0_289 = arith.constant 0 : index
    %390 = vector.load %arg19[%c0_288, %c0_289] : memref<24x32xbf16, #tpu.memory_space<vmem>>, vector<24x32xbf16>
    %cst_290 = arith.constant dense<0.000000e+00> : vector<16x32xf32>
    %391 = tpu.matmul %389, %390, %cst_290 {dimension_numbers = #tpu.dot_dimension_numbers<[1], [0], [0], [1], [0, 0, 1, 1], [], []>} : vector<16x24xbf16>, vector<24x32xbf16>, vector<16x32xf32> -> vector<16x32xf32>
    %c0_291 = arith.constant 0 : index
    %c0_292 = arith.constant 0 : index
    %392 = vector.load %arg20[%c0_291, %c0_292] : memref<1x32xf32, #tpu.memory_space<vmem>>, vector<1x32xf32>
    %393 = vector.broadcast %392 : vector<1x32xf32> to vector<16x32xf32>
    %394 = arith.addf %391, %393 : vector<16x32xf32>
    %cst_293 = arith.constant 0.000000e+00 : f32
    %395 = vector.broadcast %cst_293 : f32 to vector<16x32xf32>
    %396 = arith.maximumf %394, %395 : vector<16x32xf32>
    %cst_294 = arith.constant 0.000000e+00 : bf16
    %397 = vector.broadcast %cst_294 : bf16 to vector<96x32xbf16>
    %c0_295 = arith.constant 0 : index
    %c0_296 = arith.constant 0 : index
    %398 = vector.load %arg36[%c0_295, %c0_296] : memref<96x32xbf16, #tpu.memory_space<vmem>>, vector<96x32xbf16>
    tpu.vector_store %arg36[%c0_295, %c0_296], %397 {strides = array<i32>} : memref<96x32xbf16, #tpu.memory_space<vmem>>, vector<96x32xbf16>,
    %399 = arith.truncf %396 : vector<16x32xf32> to vector<16x32xbf16>
    %c16_297 = arith.constant 16 : index
    %c0_298 = arith.constant 0 : index
    %400 = vector.load %arg36[%c16_297, %c0_298] : memref<96x32xbf16, #tpu.memory_space<vmem>>, vector<16x32xbf16>
    tpu.vector_store %arg36[%c16_297, %c0_298], %399 {strides = array<i32>} : memref<96x32xbf16, #tpu.memory_space<vmem>>, vector<16x32xbf16>,
    %cst_299 = arith.constant 0.000000e+00 : f32
    %401 = vector.broadcast %cst_299 : f32 to vector<16x8xf32>
    %c11_300 = arith.constant 11 : index
    %c0_301 = arith.constant 0 : index
    %402 = vector.load %arg36[%c11_300, %c0_301] : memref<96x32xbf16, #tpu.memory_space<vmem>>, vector<16x32xbf16>
    %c0_302 = arith.constant 0 : index
    %c0_303 = arith.constant 0 : index
    %403 = vector.load %arg21[%c0_302, %c0_303] : memref<288x8xbf16, #tpu.memory_space<vmem>>, vector<32x8xbf16>
    %cst_304 = arith.constant dense<0.000000e+00> : vector<16x8xf32>
    %404 = tpu.matmul %402, %403, %cst_304 {dimension_numbers = #tpu.dot_dimension_numbers<[1], [0], [0], [1], [0, 0, 1, 1], [], []>} : vector<16x32xbf16>, vector<32x8xbf16>, vector<16x8xf32> -> vector<16x8xf32>
    %c1_i32_305 = arith.constant 1 : i32
    %405 = vector.broadcast %c1_i32_305 : i32 to vector<16x1xi32>
    %406 = arith.cmpi sge, %284, %405 : vector<16x1xi32>
    %cst_306 = arith.constant 0.000000e+00 : f32
    %407 = vector.shape_cast %406 : vector<16x1xi1> to vector<16x1xi1>
    %408 = vector.broadcast %407 : vector<16x1xi1> to vector<16x8xi1>
    %409 = vector.broadcast %cst_306 : f32 to vector<16x8xf32>
    %410 = arith.select %408, %404, %409 : vector<16x8xi1>, vector<16x8xf32>
    %411 = arith.addf %401, %410 : vector<16x8xf32>
    %c12_307 = arith.constant 12 : index
    %c0_308 = arith.constant 0 : index
    %412 = vector.load %arg36[%c12_307, %c0_308] : memref<96x32xbf16, #tpu.memory_space<vmem>>, vector<16x32xbf16>
    %c32_309 = arith.constant 32 : index
    %c0_310 = arith.constant 0 : index
    %413 = vector.load %arg21[%c32_309, %c0_310] : memref<288x8xbf16, #tpu.memory_space<vmem>>, vector<32x8xbf16>
    %cst_311 = arith.constant dense<0.000000e+00> : vector<16x8xf32>
    %414 = tpu.matmul %412, %413, %cst_311 {dimension_numbers = #tpu.dot_dimension_numbers<[1], [0], [0], [1], [0, 0, 1, 1], [], []>} : vector<16x32xbf16>, vector<32x8xbf16>, vector<16x8xf32> -> vector<16x8xf32>
    %415 = arith.addf %411, %414 : vector<16x8xf32>
    %c13_312 = arith.constant 13 : index
    %c0_313 = arith.constant 0 : index
    %416 = vector.load %arg36[%c13_312, %c0_313] : memref<96x32xbf16, #tpu.memory_space<vmem>>, vector<16x32xbf16>
    %c64_314 = arith.constant 64 : index
    %c0_315 = arith.constant 0 : index
    %417 = vector.load %arg21[%c64_314, %c0_315] : memref<288x8xbf16, #tpu.memory_space<vmem>>, vector<32x8xbf16>
    %cst_316 = arith.constant dense<0.000000e+00> : vector<16x8xf32>
    %418 = tpu.matmul %416, %417, %cst_316 {dimension_numbers = #tpu.dot_dimension_numbers<[1], [0], [0], [1], [0, 0, 1, 1], [], []>} : vector<16x32xbf16>, vector<32x8xbf16>, vector<16x8xf32> -> vector<16x8xf32>
    %c3_i32_317 = arith.constant 3 : i32
    %419 = vector.broadcast %c3_i32_317 : i32 to vector<16x1xi32>
    %420 = arith.cmpi slt, %284, %419 : vector<16x1xi32>
    %cst_318 = arith.constant 0.000000e+00 : f32
    %421 = vector.shape_cast %420 : vector<16x1xi1> to vector<16x1xi1>
    %422 = vector.broadcast %421 : vector<16x1xi1> to vector<16x8xi1>
    %423 = vector.broadcast %cst_318 : f32 to vector<16x8xf32>
    %424 = arith.select %422, %418, %423 : vector<16x8xi1>, vector<16x8xf32>
    %425 = arith.addf %415, %424 : vector<16x8xf32>
    %c15_319 = arith.constant 15 : index
    %c0_320 = arith.constant 0 : index
    %426 = vector.load %arg36[%c15_319, %c0_320] : memref<96x32xbf16, #tpu.memory_space<vmem>>, vector<16x32xbf16>
    %c96_321 = arith.constant 96 : index
    %c0_322 = arith.constant 0 : index
    %427 = vector.load %arg21[%c96_321, %c0_322] : memref<288x8xbf16, #tpu.memory_space<vmem>>, vector<32x8xbf16>
    %cst_323 = arith.constant dense<0.000000e+00> : vector<16x8xf32>
    %428 = tpu.matmul %426, %427, %cst_323 {dimension_numbers = #tpu.dot_dimension_numbers<[1], [0], [0], [1], [0, 0, 1, 1], [], []>} : vector<16x32xbf16>, vector<32x8xbf16>, vector<16x8xf32> -> vector<16x8xf32>
    %c1_i32_324 = arith.constant 1 : i32
    %429 = vector.broadcast %c1_i32_324 : i32 to vector<16x1xi32>
    %430 = arith.cmpi sge, %284, %429 : vector<16x1xi32>
    %cst_325 = arith.constant 0.000000e+00 : f32
    %431 = vector.shape_cast %430 : vector<16x1xi1> to vector<16x1xi1>
    %432 = vector.broadcast %431 : vector<16x1xi1> to vector<16x8xi1>
    %433 = vector.broadcast %cst_325 : f32 to vector<16x8xf32>
    %434 = arith.select %432, %428, %433 : vector<16x8xi1>, vector<16x8xf32>
    %435 = arith.addf %425, %434 : vector<16x8xf32>
    %c16_326 = arith.constant 16 : index
    %c0_327 = arith.constant 0 : index
    %436 = vector.load %arg36[%c16_326, %c0_327] : memref<96x32xbf16, #tpu.memory_space<vmem>>, vector<16x32xbf16>
    %c128_328 = arith.constant 128 : index
    %c0_329 = arith.constant 0 : index
    %437 = vector.load %arg21[%c128_328, %c0_329] : memref<288x8xbf16, #tpu.memory_space<vmem>>, vector<32x8xbf16>
    %cst_330 = arith.constant dense<0.000000e+00> : vector<16x8xf32>
    %438 = tpu.matmul %436, %437, %cst_330 {dimension_numbers = #tpu.dot_dimension_numbers<[1], [0], [0], [1], [0, 0, 1, 1], [], []>} : vector<16x32xbf16>, vector<32x8xbf16>, vector<16x8xf32> -> vector<16x8xf32>
    %439 = arith.addf %435, %438 : vector<16x8xf32>
    %c17_331 = arith.constant 17 : index
    %c0_332 = arith.constant 0 : index
    %440 = vector.load %arg36[%c17_331, %c0_332] : memref<96x32xbf16, #tpu.memory_space<vmem>>, vector<16x32xbf16>
    %c160_333 = arith.constant 160 : index
    %c0_334 = arith.constant 0 : index
    %441 = vector.load %arg21[%c160_333, %c0_334] : memref<288x8xbf16, #tpu.memory_space<vmem>>, vector<32x8xbf16>
    %cst_335 = arith.constant dense<0.000000e+00> : vector<16x8xf32>
    %442 = tpu.matmul %440, %441, %cst_335 {dimension_numbers = #tpu.dot_dimension_numbers<[1], [0], [0], [1], [0, 0, 1, 1], [], []>} : vector<16x32xbf16>, vector<32x8xbf16>, vector<16x8xf32> -> vector<16x8xf32>
    %c3_i32_336 = arith.constant 3 : i32
    %443 = vector.broadcast %c3_i32_336 : i32 to vector<16x1xi32>
    %444 = arith.cmpi slt, %284, %443 : vector<16x1xi32>
    %cst_337 = arith.constant 0.000000e+00 : f32
    %445 = vector.shape_cast %444 : vector<16x1xi1> to vector<16x1xi1>
    %446 = vector.broadcast %445 : vector<16x1xi1> to vector<16x8xi1>
    %447 = vector.broadcast %cst_337 : f32 to vector<16x8xf32>
    %448 = arith.select %446, %442, %447 : vector<16x8xi1>, vector<16x8xf32>
    %449 = arith.addf %439, %448 : vector<16x8xf32>
    %c19_338 = arith.constant 19 : index
    %c0_339 = arith.constant 0 : index
    %450 = vector.load %arg36[%c19_338, %c0_339] : memref<96x32xbf16, #tpu.memory_space<vmem>>, vector<16x32xbf16>
    %c192_340 = arith.constant 192 : index
    %c0_341 = arith.constant 0 : index
    %451 = vector.load %arg21[%c192_340, %c0_341] : memref<288x8xbf16, #tpu.memory_space<vmem>>, vector<32x8xbf16>
    %cst_342 = arith.constant dense<0.000000e+00> : vector<16x8xf32>
    %452 = tpu.matmul %450, %451, %cst_342 {dimension_numbers = #tpu.dot_dimension_numbers<[1], [0], [0], [1], [0, 0, 1, 1], [], []>} : vector<16x32xbf16>, vector<32x8xbf16>, vector<16x8xf32> -> vector<16x8xf32>
    %c1_i32_343 = arith.constant 1 : i32
    %453 = vector.broadcast %c1_i32_343 : i32 to vector<16x1xi32>
    %454 = arith.cmpi sge, %284, %453 : vector<16x1xi32>
    %cst_344 = arith.constant 0.000000e+00 : f32
    %455 = vector.shape_cast %454 : vector<16x1xi1> to vector<16x1xi1>
    %456 = vector.broadcast %455 : vector<16x1xi1> to vector<16x8xi1>
    %457 = vector.broadcast %cst_344 : f32 to vector<16x8xf32>
    %458 = arith.select %456, %452, %457 : vector<16x8xi1>, vector<16x8xf32>
    %459 = arith.addf %449, %458 : vector<16x8xf32>
    %c20_345 = arith.constant 20 : index
    %c0_346 = arith.constant 0 : index
    %460 = vector.load %arg36[%c20_345, %c0_346] : memref<96x32xbf16, #tpu.memory_space<vmem>>, vector<16x32xbf16>
    %c224_347 = arith.constant 224 : index
    %c0_348 = arith.constant 0 : index
    %461 = vector.load %arg21[%c224_347, %c0_348] : memref<288x8xbf16, #tpu.memory_space<vmem>>, vector<32x8xbf16>
    %cst_349 = arith.constant dense<0.000000e+00> : vector<16x8xf32>
    %462 = tpu.matmul %460, %461, %cst_349 {dimension_numbers = #tpu.dot_dimension_numbers<[1], [0], [0], [1], [0, 0, 1, 1], [], []>} : vector<16x32xbf16>, vector<32x8xbf16>, vector<16x8xf32> -> vector<16x8xf32>
    %463 = arith.addf %459, %462 : vector<16x8xf32>
    %c21_350 = arith.constant 21 : index
    %c0_351 = arith.constant 0 : index
    %464 = vector.load %arg36[%c21_350, %c0_351] : memref<96x32xbf16, #tpu.memory_space<vmem>>, vector<16x32xbf16>
    %c256_352 = arith.constant 256 : index
    %c0_353 = arith.constant 0 : index
    %465 = vector.load %arg21[%c256_352, %c0_353] : memref<288x8xbf16, #tpu.memory_space<vmem>>, vector<32x8xbf16>
    %cst_354 = arith.constant dense<0.000000e+00> : vector<16x8xf32>
    %466 = tpu.matmul %464, %465, %cst_354 {dimension_numbers = #tpu.dot_dimension_numbers<[1], [0], [0], [1], [0, 0, 1, 1], [], []>} : vector<16x32xbf16>, vector<32x8xbf16>, vector<16x8xf32> -> vector<16x8xf32>
    %c3_i32_355 = arith.constant 3 : i32
    %467 = vector.broadcast %c3_i32_355 : i32 to vector<16x1xi32>
    %468 = arith.cmpi slt, %284, %467 : vector<16x1xi32>
    %cst_356 = arith.constant 0.000000e+00 : f32
    %469 = vector.shape_cast %468 : vector<16x1xi1> to vector<16x1xi1>
    %470 = vector.broadcast %469 : vector<16x1xi1> to vector<16x8xi1>
    %471 = vector.broadcast %cst_356 : f32 to vector<16x8xf32>
    %472 = arith.select %470, %466, %471 : vector<16x8xi1>, vector<16x8xf32>
    %473 = arith.addf %463, %472 : vector<16x8xf32>
    %c0_357 = arith.constant 0 : index
    %c24_358 = arith.constant 24 : index
    %474 = vector.load %arg35[%c0_357, %c24_358] : memref<64x32xf32, #tpu.memory_space<vmem>>, vector<16x8xf32>
    tpu.vector_store %arg35[%c0_357, %c24_358], %473 {strides = array<i32>} : memref<64x32xf32, #tpu.memory_space<vmem>>, vector<16x8xf32>,
    %c0_359 = arith.constant 0 : index
    %c0_360 = arith.constant 0 : index
    %475 = vector.load %arg35[%c0_359, %c0_360] : memref<64x32xf32, #tpu.memory_space<vmem>>, vector<16x32xf32>
    %c0_361 = arith.constant 0 : index
    %c0_362 = arith.constant 0 : index
    %476 = vector.load %arg22[%c0_361, %c0_362] : memref<2x32xf32, #tpu.memory_space<vmem>>, vector<1x32xf32>
    %477 = vector.broadcast %476 : vector<1x32xf32> to vector<16x32xf32>
    %478 = arith.mulf %475, %477 : vector<16x32xf32>
    %c1_363 = arith.constant 1 : index
    %c0_364 = arith.constant 0 : index
    %479 = vector.load %arg22[%c1_363, %c0_364] : memref<2x32xf32, #tpu.memory_space<vmem>>, vector<1x32xf32>
    %480 = vector.broadcast %479 : vector<1x32xf32> to vector<16x32xf32>
    %481 = arith.addf %478, %480 : vector<16x32xf32>
    %cst_365 = arith.constant 0.000000e+00 : f32
    %482 = vector.broadcast %cst_365 : f32 to vector<16x32xf32>
    %483 = arith.maximumf %481, %482 : vector<16x32xf32>
    %c0_366 = arith.constant 0 : index
    %c0_367 = arith.constant 0 : index
    %484 = vector.load %arg24[%c0_366, %c0_367] : memref<4x16xbf16, #tpu.memory_space<vmem>>, vector<4x16xbf16>
    %485 = arith.truncf %483 : vector<16x32xf32> to vector<16x32xbf16>
    %cst_368 = arith.constant dense<0.000000e+00> : vector<4x32xf32>
    %486 = tpu.matmul %484, %485, %cst_368 {dimension_numbers = #tpu.dot_dimension_numbers<[1], [0], [0], [1], [0, 0, 1, 1], [], []>} : vector<4x16xbf16>, vector<16x32xbf16>, vector<4x32xf32> -> vector<4x32xf32>
    %487 = arith.truncf %486 : vector<4x32xf32> to vector<4x32xbf16>
    %c0_369 = arith.constant 0 : index
    %c0_370 = arith.constant 0 : index
    %488 = vector.load %arg23[%c0_369, %c0_370] : memref<32x16xbf16, #tpu.memory_space<vmem>>, vector<32x16xbf16>
    %cst_371 = arith.constant dense<0.000000e+00> : vector<4x16xf32>
    %489 = tpu.matmul %487, %488, %cst_371 {dimension_numbers = #tpu.dot_dimension_numbers<[1], [0], [0], [1], [0, 0, 1, 1], [], []>} : vector<4x32xbf16>, vector<32x16xbf16>, vector<4x16xf32> -> vector<4x16xf32>
    %c0_372 = arith.constant 0 : index
    %c0_373 = arith.constant 0 : index
    %490 = vector.load %arg35[%c0_372, %c0_373] : memref<64x32xf32, #tpu.memory_space<vmem>>, vector<4x16xf32>
    tpu.vector_store %arg35[%c0_372, %c0_373], %489 {strides = array<i32>} : memref<64x32xf32, #tpu.memory_space<vmem>>, vector<4x16xf32>,
    %491 = tpu.iota {dimensions = array<i32: 0>} : vector<4x1xi32>
    %c2_i32 = arith.constant 2 : i32
    %c0_i32_374 = arith.constant 0 : i32
    %492 = arith.cmpi eq, %c2_i32, %c0_i32_374 : i32
    %c1_i32_375 = arith.constant 1 : i32
    %493 = arith.select %492, %c1_i32_375, %c2_i32 : i32
    %494 = vector.broadcast %493 : i32 to vector<4x1xi32>
    %495 = arith.remsi %491, %494 : vector<4x1xi32>
    %c0_i32_376 = arith.constant 0 : i32
    %496 = vector.broadcast %c0_i32_376 : i32 to vector<4x1xi32>
    %497 = arith.cmpi ne, %495, %496 : vector<4x1xi32>
    %c0_i32_377 = arith.constant 0 : i32
    %498 = vector.broadcast %c0_i32_377 : i32 to vector<4x1xi32>
    %499 = arith.cmpi slt, %495, %498 : vector<4x1xi32>
    %c0_i32_378 = arith.constant 0 : i32
    %500 = arith.cmpi slt, %493, %c0_i32_378 : i32
    %501 = vector.broadcast %500 : i1 to vector<4x1xi1>
    %502 = vector.broadcast %501 : vector<4x1xi1> to vector<4x1xi1>
    %503 = arith.xori %499, %502 : vector<4x1xi1>
    %504 = arith.andi %503, %497 : vector<4x1xi1>
    %505 = vector.broadcast %493 : i32 to vector<4x1xi32>
    %506 = arith.addi %495, %505 : vector<4x1xi32>
    %507 = arith.select %504, %506, %495 : vector<4x1xi1>, vector<4x1xi32>
    %c0_379 = arith.constant 0 : index
    %c0_380 = arith.constant 0 : index
    %508 = vector.load %arg35[%c0_379, %c0_380] : memref<64x32xf32, #tpu.memory_space<vmem>>, vector<4x16xf32>
    %c0_381 = arith.constant 0 : index
    %c0_382 = arith.constant 0 : index
    %509 = vector.load %arg25[%c0_381, %c0_382] : memref<2x16xf32, #tpu.memory_space<vmem>>, vector<1x16xf32>
    %510 = vector.broadcast %509 : vector<1x16xf32> to vector<4x16xf32>
    %511 = arith.mulf %508, %510 : vector<4x16xf32>
    %c1_383 = arith.constant 1 : index
    %c0_384 = arith.constant 0 : index
    %512 = vector.load %arg25[%c1_383, %c0_384] : memref<2x16xf32, #tpu.memory_space<vmem>>, vector<1x16xf32>
    %513 = vector.broadcast %512 : vector<1x16xf32> to vector<4x16xf32>
    %514 = arith.addf %511, %513 : vector<4x16xf32>
    %cst_385 = arith.constant 0.000000e+00 : f32
    %515 = vector.broadcast %cst_385 : f32 to vector<4x16xf32>
    %516 = arith.maximumf %514, %515 : vector<4x16xf32>
    %517 = arith.truncf %516 : vector<4x16xf32> to vector<4x16xbf16>
    %c0_386 = arith.constant 0 : index
    %c0_387 = arith.constant 0 : index
    %518 = vector.load %arg26[%c0_386, %c0_387] : memref<16x32xbf16, #tpu.memory_space<vmem>>, vector<16x32xbf16>
    %cst_388 = arith.constant dense<0.000000e+00> : vector<4x32xf32>
    %519 = tpu.matmul %517, %518, %cst_388 {dimension_numbers = #tpu.dot_dimension_numbers<[1], [0], [0], [1], [0, 0, 1, 1], [], []>} : vector<4x16xbf16>, vector<16x32xbf16>, vector<4x32xf32> -> vector<4x32xf32>
    %c0_389 = arith.constant 0 : index
    %c0_390 = arith.constant 0 : index
    %520 = vector.load %arg27[%c0_389, %c0_390] : memref<1x32xf32, #tpu.memory_space<vmem>>, vector<1x32xf32>
    %521 = vector.broadcast %520 : vector<1x32xf32> to vector<4x32xf32>
    %522 = arith.addf %519, %521 : vector<4x32xf32>
    %cst_391 = arith.constant 0.000000e+00 : f32
    %523 = vector.broadcast %cst_391 : f32 to vector<4x32xf32>
    %524 = arith.maximumf %522, %523 : vector<4x32xf32>
    %cst_392 = arith.constant 0.000000e+00 : bf16
    %525 = vector.broadcast %cst_392 : bf16 to vector<96x32xbf16>
    %c0_393 = arith.constant 0 : index
    %c0_394 = arith.constant 0 : index
    %526 = vector.load %arg36[%c0_393, %c0_394] : memref<96x32xbf16, #tpu.memory_space<vmem>>, vector<96x32xbf16>
    tpu.vector_store %arg36[%c0_393, %c0_394], %525 {strides = array<i32>} : memref<96x32xbf16, #tpu.memory_space<vmem>>, vector<96x32xbf16>,
    %527 = arith.truncf %524 : vector<4x32xf32> to vector<4x32xbf16>
    %c16_395 = arith.constant 16 : index
    %c0_396 = arith.constant 0 : index
    %528 = vector.load %arg36[%c16_395, %c0_396] : memref<96x32xbf16, #tpu.memory_space<vmem>>, vector<4x32xbf16>
    tpu.vector_store %arg36[%c16_395, %c0_396], %527 {strides = array<i32>} : memref<96x32xbf16, #tpu.memory_space<vmem>>, vector<4x32xbf16>,
    %cst_397 = arith.constant 0.000000e+00 : f32
    %529 = vector.broadcast %cst_397 : f32 to vector<4x8xf32>
    %c13_398 = arith.constant 13 : index
    %c0_399 = arith.constant 0 : index
    %530 = vector.load %arg36[%c13_398, %c0_399] : memref<96x32xbf16, #tpu.memory_space<vmem>>, vector<4x32xbf16>
    %c0_400 = arith.constant 0 : index
    %c0_401 = arith.constant 0 : index
    %531 = vector.load %arg28[%c0_400, %c0_401] : memref<288x8xbf16, #tpu.memory_space<vmem>>, vector<32x8xbf16>
    %cst_402 = arith.constant dense<0.000000e+00> : vector<4x8xf32>
    %532 = tpu.matmul %530, %531, %cst_402 {dimension_numbers = #tpu.dot_dimension_numbers<[1], [0], [0], [1], [0, 0, 1, 1], [], []>} : vector<4x32xbf16>, vector<32x8xbf16>, vector<4x8xf32> -> vector<4x8xf32>
    %c1_i32_403 = arith.constant 1 : i32
    %533 = vector.broadcast %c1_i32_403 : i32 to vector<4x1xi32>
    %534 = arith.cmpi sge, %507, %533 : vector<4x1xi32>
    %cst_404 = arith.constant 0.000000e+00 : f32
    %535 = vector.shape_cast %534 : vector<4x1xi1> to vector<4x1xi1>
    %536 = vector.broadcast %535 : vector<4x1xi1> to vector<4x8xi1>
    %537 = vector.broadcast %cst_404 : f32 to vector<4x8xf32>
    %538 = arith.select %536, %532, %537 : vector<4x8xi1>, vector<4x8xf32>
    %539 = arith.addf %529, %538 : vector<4x8xf32>
    %c14 = arith.constant 14 : index
    %c0_405 = arith.constant 0 : index
    %540 = vector.load %arg36[%c14, %c0_405] : memref<96x32xbf16, #tpu.memory_space<vmem>>, vector<4x32xbf16>
    %c32_406 = arith.constant 32 : index
    %c0_407 = arith.constant 0 : index
    %541 = vector.load %arg28[%c32_406, %c0_407] : memref<288x8xbf16, #tpu.memory_space<vmem>>, vector<32x8xbf16>
    %cst_408 = arith.constant dense<0.000000e+00> : vector<4x8xf32>
    %542 = tpu.matmul %540, %541, %cst_408 {dimension_numbers = #tpu.dot_dimension_numbers<[1], [0], [0], [1], [0, 0, 1, 1], [], []>} : vector<4x32xbf16>, vector<32x8xbf16>, vector<4x8xf32> -> vector<4x8xf32>
    %543 = arith.addf %539, %542 : vector<4x8xf32>
    %c15_409 = arith.constant 15 : index
    %c0_410 = arith.constant 0 : index
    %544 = vector.load %arg36[%c15_409, %c0_410] : memref<96x32xbf16, #tpu.memory_space<vmem>>, vector<4x32xbf16>
    %c64_411 = arith.constant 64 : index
    %c0_412 = arith.constant 0 : index
    %545 = vector.load %arg28[%c64_411, %c0_412] : memref<288x8xbf16, #tpu.memory_space<vmem>>, vector<32x8xbf16>
    %cst_413 = arith.constant dense<0.000000e+00> : vector<4x8xf32>
    %546 = tpu.matmul %544, %545, %cst_413 {dimension_numbers = #tpu.dot_dimension_numbers<[1], [0], [0], [1], [0, 0, 1, 1], [], []>} : vector<4x32xbf16>, vector<32x8xbf16>, vector<4x8xf32> -> vector<4x8xf32>
    %c1_i32_414 = arith.constant 1 : i32
    %547 = vector.broadcast %c1_i32_414 : i32 to vector<4x1xi32>
    %548 = arith.cmpi slt, %507, %547 : vector<4x1xi32>
    %cst_415 = arith.constant 0.000000e+00 : f32
    %549 = vector.shape_cast %548 : vector<4x1xi1> to vector<4x1xi1>
    %550 = vector.broadcast %549 : vector<4x1xi1> to vector<4x8xi1>
    %551 = vector.broadcast %cst_415 : f32 to vector<4x8xf32>
    %552 = arith.select %550, %546, %551 : vector<4x8xi1>, vector<4x8xf32>
    %553 = arith.addf %543, %552 : vector<4x8xf32>
    %c15_416 = arith.constant 15 : index
    %c0_417 = arith.constant 0 : index
    %554 = vector.load %arg36[%c15_416, %c0_417] : memref<96x32xbf16, #tpu.memory_space<vmem>>, vector<4x32xbf16>
    %c96_418 = arith.constant 96 : index
    %c0_419 = arith.constant 0 : index
    %555 = vector.load %arg28[%c96_418, %c0_419] : memref<288x8xbf16, #tpu.memory_space<vmem>>, vector<32x8xbf16>
    %cst_420 = arith.constant dense<0.000000e+00> : vector<4x8xf32>
    %556 = tpu.matmul %554, %555, %cst_420 {dimension_numbers = #tpu.dot_dimension_numbers<[1], [0], [0], [1], [0, 0, 1, 1], [], []>} : vector<4x32xbf16>, vector<32x8xbf16>, vector<4x8xf32> -> vector<4x8xf32>
    %c1_i32_421 = arith.constant 1 : i32
    %557 = vector.broadcast %c1_i32_421 : i32 to vector<4x1xi32>
    %558 = arith.cmpi sge, %507, %557 : vector<4x1xi32>
    %cst_422 = arith.constant 0.000000e+00 : f32
    %559 = vector.shape_cast %558 : vector<4x1xi1> to vector<4x1xi1>
    %560 = vector.broadcast %559 : vector<4x1xi1> to vector<4x8xi1>
    %561 = vector.broadcast %cst_422 : f32 to vector<4x8xf32>
    %562 = arith.select %560, %556, %561 : vector<4x8xi1>, vector<4x8xf32>
    %563 = arith.addf %553, %562 : vector<4x8xf32>
    %c16_423 = arith.constant 16 : index
    %c0_424 = arith.constant 0 : index
    %564 = vector.load %arg36[%c16_423, %c0_424] : memref<96x32xbf16, #tpu.memory_space<vmem>>, vector<4x32xbf16>
    %c128_425 = arith.constant 128 : index
    %c0_426 = arith.constant 0 : index
    %565 = vector.load %arg28[%c128_425, %c0_426] : memref<288x8xbf16, #tpu.memory_space<vmem>>, vector<32x8xbf16>
    %cst_427 = arith.constant dense<0.000000e+00> : vector<4x8xf32>
    %566 = tpu.matmul %564, %565, %cst_427 {dimension_numbers = #tpu.dot_dimension_numbers<[1], [0], [0], [1], [0, 0, 1, 1], [], []>} : vector<4x32xbf16>, vector<32x8xbf16>, vector<4x8xf32> -> vector<4x8xf32>
    %567 = arith.addf %563, %566 : vector<4x8xf32>
    %c17_428 = arith.constant 17 : index
    %c0_429 = arith.constant 0 : index
    %568 = vector.load %arg36[%c17_428, %c0_429] : memref<96x32xbf16, #tpu.memory_space<vmem>>, vector<4x32xbf16>
    %c160_430 = arith.constant 160 : index
    %c0_431 = arith.constant 0 : index
    %569 = vector.load %arg28[%c160_430, %c0_431] : memref<288x8xbf16, #tpu.memory_space<vmem>>, vector<32x8xbf16>
    %cst_432 = arith.constant dense<0.000000e+00> : vector<4x8xf32>
    %570 = tpu.matmul %568, %569, %cst_432 {dimension_numbers = #tpu.dot_dimension_numbers<[1], [0], [0], [1], [0, 0, 1, 1], [], []>} : vector<4x32xbf16>, vector<32x8xbf16>, vector<4x8xf32> -> vector<4x8xf32>
    %c1_i32_433 = arith.constant 1 : i32
    %571 = vector.broadcast %c1_i32_433 : i32 to vector<4x1xi32>
    %572 = arith.cmpi slt, %507, %571 : vector<4x1xi32>
    %cst_434 = arith.constant 0.000000e+00 : f32
    %573 = vector.shape_cast %572 : vector<4x1xi1> to vector<4x1xi1>
    %574 = vector.broadcast %573 : vector<4x1xi1> to vector<4x8xi1>
    %575 = vector.broadcast %cst_434 : f32 to vector<4x8xf32>
    %576 = arith.select %574, %570, %575 : vector<4x8xi1>, vector<4x8xf32>
    %577 = arith.addf %567, %576 : vector<4x8xf32>
    %c17_435 = arith.constant 17 : index
    %c0_436 = arith.constant 0 : index
    %578 = vector.load %arg36[%c17_435, %c0_436] : memref<96x32xbf16, #tpu.memory_space<vmem>>, vector<4x32xbf16>
    %c192_437 = arith.constant 192 : index
    %c0_438 = arith.constant 0 : index
    %579 = vector.load %arg28[%c192_437, %c0_438] : memref<288x8xbf16, #tpu.memory_space<vmem>>, vector<32x8xbf16>
    %cst_439 = arith.constant dense<0.000000e+00> : vector<4x8xf32>
    %580 = tpu.matmul %578, %579, %cst_439 {dimension_numbers = #tpu.dot_dimension_numbers<[1], [0], [0], [1], [0, 0, 1, 1], [], []>} : vector<4x32xbf16>, vector<32x8xbf16>, vector<4x8xf32> -> vector<4x8xf32>
    %c1_i32_440 = arith.constant 1 : i32
    %581 = vector.broadcast %c1_i32_440 : i32 to vector<4x1xi32>
    %582 = arith.cmpi sge, %507, %581 : vector<4x1xi32>
    %cst_441 = arith.constant 0.000000e+00 : f32
    %583 = vector.shape_cast %582 : vector<4x1xi1> to vector<4x1xi1>
    %584 = vector.broadcast %583 : vector<4x1xi1> to vector<4x8xi1>
    %585 = vector.broadcast %cst_441 : f32 to vector<4x8xf32>
    %586 = arith.select %584, %580, %585 : vector<4x8xi1>, vector<4x8xf32>
    %587 = arith.addf %577, %586 : vector<4x8xf32>
    %c18 = arith.constant 18 : index
    %c0_442 = arith.constant 0 : index
    %588 = vector.load %arg36[%c18, %c0_442] : memref<96x32xbf16, #tpu.memory_space<vmem>>, vector<4x32xbf16>
    %c224_443 = arith.constant 224 : index
    %c0_444 = arith.constant 0 : index
    %589 = vector.load %arg28[%c224_443, %c0_444] : memref<288x8xbf16, #tpu.memory_space<vmem>>, vector<32x8xbf16>
    %cst_445 = arith.constant dense<0.000000e+00> : vector<4x8xf32>
    %590 = tpu.matmul %588, %589, %cst_445 {dimension_numbers = #tpu.dot_dimension_numbers<[1], [0], [0], [1], [0, 0, 1, 1], [], []>} : vector<4x32xbf16>, vector<32x8xbf16>, vector<4x8xf32> -> vector<4x8xf32>
    %591 = arith.addf %587, %590 : vector<4x8xf32>
    %c19_446 = arith.constant 19 : index
    %c0_447 = arith.constant 0 : index
    %592 = vector.load %arg36[%c19_446, %c0_447] : memref<96x32xbf16, #tpu.memory_space<vmem>>, vector<4x32xbf16>
    %c256_448 = arith.constant 256 : index
    %c0_449 = arith.constant 0 : index
    %593 = vector.load %arg28[%c256_448, %c0_449] : memref<288x8xbf16, #tpu.memory_space<vmem>>, vector<32x8xbf16>
    %cst_450 = arith.constant dense<0.000000e+00> : vector<4x8xf32>
    %594 = tpu.matmul %592, %593, %cst_450 {dimension_numbers = #tpu.dot_dimension_numbers<[1], [0], [0], [1], [0, 0, 1, 1], [], []>} : vector<4x32xbf16>, vector<32x8xbf16>, vector<4x8xf32> -> vector<4x8xf32>
    %c1_i32_451 = arith.constant 1 : i32
    %595 = vector.broadcast %c1_i32_451 : i32 to vector<4x1xi32>
    %596 = arith.cmpi slt, %507, %595 : vector<4x1xi32>
    %cst_452 = arith.constant 0.000000e+00 : f32
    %597 = vector.shape_cast %596 : vector<4x1xi1> to vector<4x1xi1>
    %598 = vector.broadcast %597 : vector<4x1xi1> to vector<4x8xi1>
    %599 = vector.broadcast %cst_452 : f32 to vector<4x8xf32>
    %600 = arith.select %598, %594, %599 : vector<4x8xi1>, vector<4x8xf32>
    %601 = arith.addf %591, %600 : vector<4x8xf32>
    %c0_453 = arith.constant 0 : index
    %c16_454 = arith.constant 16 : index
    %602 = vector.load %arg35[%c0_453, %c16_454] : memref<64x32xf32, #tpu.memory_space<vmem>>, vector<4x8xf32>
    tpu.vector_store %arg35[%c0_453, %c16_454], %601 {strides = array<i32>} : memref<64x32xf32, #tpu.memory_space<vmem>>, vector<4x8xf32>,
    %c0_455 = arith.constant 0 : index
    %c0_456 = arith.constant 0 : index
    %603 = vector.load %arg35[%c0_455, %c0_456] : memref<64x32xf32, #tpu.memory_space<vmem>>, vector<4x24xf32>
    %c0_457 = arith.constant 0 : index
    %c0_458 = arith.constant 0 : index
    %604 = vector.load %arg29[%c0_457, %c0_458] : memref<2x24xf32, #tpu.memory_space<vmem>>, vector<1x24xf32>
    %605 = vector.broadcast %604 : vector<1x24xf32> to vector<4x24xf32>
    %606 = arith.mulf %603, %605 : vector<4x24xf32>
    %c1_459 = arith.constant 1 : index
    %c0_460 = arith.constant 0 : index
    %607 = vector.load %arg29[%c1_459, %c0_460] : memref<2x24xf32, #tpu.memory_space<vmem>>, vector<1x24xf32>
    %608 = vector.broadcast %607 : vector<1x24xf32> to vector<4x24xf32>
    %609 = arith.addf %606, %608 : vector<4x24xf32>
    %cst_461 = arith.constant 0.000000e+00 : f32
    %610 = vector.broadcast %cst_461 : f32 to vector<4x24xf32>
    %611 = arith.maximumf %609, %610 : vector<4x24xf32>
    %612 = arith.truncf %611 : vector<4x24xf32> to vector<4x24xbf16>
    %c0_462 = arith.constant 0 : index
    %c0_463 = arith.constant 0 : index
    %613 = vector.load %arg30[%c0_462, %c0_463] : memref<24x32xbf16, #tpu.memory_space<vmem>>, vector<24x32xbf16>
    %cst_464 = arith.constant dense<0.000000e+00> : vector<4x32xf32>
    %614 = tpu.matmul %612, %613, %cst_464 {dimension_numbers = #tpu.dot_dimension_numbers<[1], [0], [0], [1], [0, 0, 1, 1], [], []>} : vector<4x24xbf16>, vector<24x32xbf16>, vector<4x32xf32> -> vector<4x32xf32>
    %c0_465 = arith.constant 0 : index
    %c0_466 = arith.constant 0 : index
    %615 = vector.load %arg31[%c0_465, %c0_466] : memref<1x32xf32, #tpu.memory_space<vmem>>, vector<1x32xf32>
    %616 = vector.broadcast %615 : vector<1x32xf32> to vector<4x32xf32>
    %617 = arith.addf %614, %616 : vector<4x32xf32>
    %cst_467 = arith.constant 0.000000e+00 : f32
    %618 = vector.broadcast %cst_467 : f32 to vector<4x32xf32>
    %619 = arith.maximumf %617, %618 : vector<4x32xf32>
    %cst_468 = arith.constant 0.000000e+00 : bf16
    %620 = vector.broadcast %cst_468 : bf16 to vector<96x32xbf16>
    %c0_469 = arith.constant 0 : index
    %c0_470 = arith.constant 0 : index
    %621 = vector.load %arg36[%c0_469, %c0_470] : memref<96x32xbf16, #tpu.memory_space<vmem>>, vector<96x32xbf16>
    tpu.vector_store %arg36[%c0_469, %c0_470], %620 {strides = array<i32>} : memref<96x32xbf16, #tpu.memory_space<vmem>>, vector<96x32xbf16>,
    %622 = arith.truncf %619 : vector<4x32xf32> to vector<4x32xbf16>
    %c16_471 = arith.constant 16 : index
    %c0_472 = arith.constant 0 : index
    %623 = vector.load %arg36[%c16_471, %c0_472] : memref<96x32xbf16, #tpu.memory_space<vmem>>, vector<4x32xbf16>
    tpu.vector_store %arg36[%c16_471, %c0_472], %622 {strides = array<i32>} : memref<96x32xbf16, #tpu.memory_space<vmem>>, vector<4x32xbf16>,
    %cst_473 = arith.constant 0.000000e+00 : f32
    %624 = vector.broadcast %cst_473 : f32 to vector<4x8xf32>
    %c13_474 = arith.constant 13 : index
    %c0_475 = arith.constant 0 : index
    %625 = vector.load %arg36[%c13_474, %c0_475] : memref<96x32xbf16, #tpu.memory_space<vmem>>, vector<4x32xbf16>
    %c0_476 = arith.constant 0 : index
    %c0_477 = arith.constant 0 : index
    %626 = vector.load %arg32[%c0_476, %c0_477] : memref<288x8xbf16, #tpu.memory_space<vmem>>, vector<32x8xbf16>
    %cst_478 = arith.constant dense<0.000000e+00> : vector<4x8xf32>
    %627 = tpu.matmul %625, %626, %cst_478 {dimension_numbers = #tpu.dot_dimension_numbers<[1], [0], [0], [1], [0, 0, 1, 1], [], []>} : vector<4x32xbf16>, vector<32x8xbf16>, vector<4x8xf32> -> vector<4x8xf32>
    %c1_i32_479 = arith.constant 1 : i32
    %628 = vector.broadcast %c1_i32_479 : i32 to vector<4x1xi32>
    %629 = arith.cmpi sge, %507, %628 : vector<4x1xi32>
    %cst_480 = arith.constant 0.000000e+00 : f32
    %630 = vector.shape_cast %629 : vector<4x1xi1> to vector<4x1xi1>
    %631 = vector.broadcast %630 : vector<4x1xi1> to vector<4x8xi1>
    %632 = vector.broadcast %cst_480 : f32 to vector<4x8xf32>
    %633 = arith.select %631, %627, %632 : vector<4x8xi1>, vector<4x8xf32>
    %634 = arith.addf %624, %633 : vector<4x8xf32>
    %c14_481 = arith.constant 14 : index
    %c0_482 = arith.constant 0 : index
    %635 = vector.load %arg36[%c14_481, %c0_482] : memref<96x32xbf16, #tpu.memory_space<vmem>>, vector<4x32xbf16>
    %c32_483 = arith.constant 32 : index
    %c0_484 = arith.constant 0 : index
    %636 = vector.load %arg32[%c32_483, %c0_484] : memref<288x8xbf16, #tpu.memory_space<vmem>>, vector<32x8xbf16>
    %cst_485 = arith.constant dense<0.000000e+00> : vector<4x8xf32>
    %637 = tpu.matmul %635, %636, %cst_485 {dimension_numbers = #tpu.dot_dimension_numbers<[1], [0], [0], [1], [0, 0, 1, 1], [], []>} : vector<4x32xbf16>, vector<32x8xbf16>, vector<4x8xf32> -> vector<4x8xf32>
    %638 = arith.addf %634, %637 : vector<4x8xf32>
    %c15_486 = arith.constant 15 : index
    %c0_487 = arith.constant 0 : index
    %639 = vector.load %arg36[%c15_486, %c0_487] : memref<96x32xbf16, #tpu.memory_space<vmem>>, vector<4x32xbf16>
    %c64_488 = arith.constant 64 : index
    %c0_489 = arith.constant 0 : index
    %640 = vector.load %arg32[%c64_488, %c0_489] : memref<288x8xbf16, #tpu.memory_space<vmem>>, vector<32x8xbf16>
    %cst_490 = arith.constant dense<0.000000e+00> : vector<4x8xf32>
    %641 = tpu.matmul %639, %640, %cst_490 {dimension_numbers = #tpu.dot_dimension_numbers<[1], [0], [0], [1], [0, 0, 1, 1], [], []>} : vector<4x32xbf16>, vector<32x8xbf16>, vector<4x8xf32> -> vector<4x8xf32>
    %c1_i32_491 = arith.constant 1 : i32
    %642 = vector.broadcast %c1_i32_491 : i32 to vector<4x1xi32>
    %643 = arith.cmpi slt, %507, %642 : vector<4x1xi32>
    %cst_492 = arith.constant 0.000000e+00 : f32
    %644 = vector.shape_cast %643 : vector<4x1xi1> to vector<4x1xi1>
    %645 = vector.broadcast %644 : vector<4x1xi1> to vector<4x8xi1>
    %646 = vector.broadcast %cst_492 : f32 to vector<4x8xf32>
    %647 = arith.select %645, %641, %646 : vector<4x8xi1>, vector<4x8xf32>
    %648 = arith.addf %638, %647 : vector<4x8xf32>
    %c15_493 = arith.constant 15 : index
    %c0_494 = arith.constant 0 : index
    %649 = vector.load %arg36[%c15_493, %c0_494] : memref<96x32xbf16, #tpu.memory_space<vmem>>, vector<4x32xbf16>
    %c96_495 = arith.constant 96 : index
    %c0_496 = arith.constant 0 : index
    %650 = vector.load %arg32[%c96_495, %c0_496] : memref<288x8xbf16, #tpu.memory_space<vmem>>, vector<32x8xbf16>
    %cst_497 = arith.constant dense<0.000000e+00> : vector<4x8xf32>
    %651 = tpu.matmul %649, %650, %cst_497 {dimension_numbers = #tpu.dot_dimension_numbers<[1], [0], [0], [1], [0, 0, 1, 1], [], []>} : vector<4x32xbf16>, vector<32x8xbf16>, vector<4x8xf32> -> vector<4x8xf32>
    %c1_i32_498 = arith.constant 1 : i32
    %652 = vector.broadcast %c1_i32_498 : i32 to vector<4x1xi32>
    %653 = arith.cmpi sge, %507, %652 : vector<4x1xi32>
    %cst_499 = arith.constant 0.000000e+00 : f32
    %654 = vector.shape_cast %653 : vector<4x1xi1> to vector<4x1xi1>
    %655 = vector.broadcast %654 : vector<4x1xi1> to vector<4x8xi1>
    %656 = vector.broadcast %cst_499 : f32 to vector<4x8xf32>
    %657 = arith.select %655, %651, %656 : vector<4x8xi1>, vector<4x8xf32>
    %658 = arith.addf %648, %657 : vector<4x8xf32>
    %c16_500 = arith.constant 16 : index
    %c0_501 = arith.constant 0 : index
    %659 = vector.load %arg36[%c16_500, %c0_501] : memref<96x32xbf16, #tpu.memory_space<vmem>>, vector<4x32xbf16>
    %c128_502 = arith.constant 128 : index
    %c0_503 = arith.constant 0 : index
    %660 = vector.load %arg32[%c128_502, %c0_503] : memref<288x8xbf16, #tpu.memory_space<vmem>>, vector<32x8xbf16>
    %cst_504 = arith.constant dense<0.000000e+00> : vector<4x8xf32>
    %661 = tpu.matmul %659, %660, %cst_504 {dimension_numbers = #tpu.dot_dimension_numbers<[1], [0], [0], [1], [0, 0, 1, 1], [], []>} : vector<4x32xbf16>, vector<32x8xbf16>, vector<4x8xf32> -> vector<4x8xf32>
    %662 = arith.addf %658, %661 : vector<4x8xf32>
    %c17_505 = arith.constant 17 : index
    %c0_506 = arith.constant 0 : index
    %663 = vector.load %arg36[%c17_505, %c0_506] : memref<96x32xbf16, #tpu.memory_space<vmem>>, vector<4x32xbf16>
    %c160_507 = arith.constant 160 : index
    %c0_508 = arith.constant 0 : index
    %664 = vector.load %arg32[%c160_507, %c0_508] : memref<288x8xbf16, #tpu.memory_space<vmem>>, vector<32x8xbf16>
    %cst_509 = arith.constant dense<0.000000e+00> : vector<4x8xf32>
    %665 = tpu.matmul %663, %664, %cst_509 {dimension_numbers = #tpu.dot_dimension_numbers<[1], [0], [0], [1], [0, 0, 1, 1], [], []>} : vector<4x32xbf16>, vector<32x8xbf16>, vector<4x8xf32> -> vector<4x8xf32>
    %c1_i32_510 = arith.constant 1 : i32
    %666 = vector.broadcast %c1_i32_510 : i32 to vector<4x1xi32>
    %667 = arith.cmpi slt, %507, %666 : vector<4x1xi32>
    %cst_511 = arith.constant 0.000000e+00 : f32
    %668 = vector.shape_cast %667 : vector<4x1xi1> to vector<4x1xi1>
    %669 = vector.broadcast %668 : vector<4x1xi1> to vector<4x8xi1>
    %670 = vector.broadcast %cst_511 : f32 to vector<4x8xf32>
    %671 = arith.select %669, %665, %670 : vector<4x8xi1>, vector<4x8xf32>
    %672 = arith.addf %662, %671 : vector<4x8xf32>
    %c17_512 = arith.constant 17 : index
    %c0_513 = arith.constant 0 : index
    %673 = vector.load %arg36[%c17_512, %c0_513] : memref<96x32xbf16, #tpu.memory_space<vmem>>, vector<4x32xbf16>
    %c192_514 = arith.constant 192 : index
    %c0_515 = arith.constant 0 : index
    %674 = vector.load %arg32[%c192_514, %c0_515] : memref<288x8xbf16, #tpu.memory_space<vmem>>, vector<32x8xbf16>
    %cst_516 = arith.constant dense<0.000000e+00> : vector<4x8xf32>
    %675 = tpu.matmul %673, %674, %cst_516 {dimension_numbers = #tpu.dot_dimension_numbers<[1], [0], [0], [1], [0, 0, 1, 1], [], []>} : vector<4x32xbf16>, vector<32x8xbf16>, vector<4x8xf32> -> vector<4x8xf32>
    %c1_i32_517 = arith.constant 1 : i32
    %676 = vector.broadcast %c1_i32_517 : i32 to vector<4x1xi32>
    %677 = arith.cmpi sge, %507, %676 : vector<4x1xi32>
    %cst_518 = arith.constant 0.000000e+00 : f32
    %678 = vector.shape_cast %677 : vector<4x1xi1> to vector<4x1xi1>
    %679 = vector.broadcast %678 : vector<4x1xi1> to vector<4x8xi1>
    %680 = vector.broadcast %cst_518 : f32 to vector<4x8xf32>
    %681 = arith.select %679, %675, %680 : vector<4x8xi1>, vector<4x8xf32>
    %682 = arith.addf %672, %681 : vector<4x8xf32>
    %c18_519 = arith.constant 18 : index
    %c0_520 = arith.constant 0 : index
    %683 = vector.load %arg36[%c18_519, %c0_520] : memref<96x32xbf16, #tpu.memory_space<vmem>>, vector<4x32xbf16>
    %c224_521 = arith.constant 224 : index
    %c0_522 = arith.constant 0 : index
    %684 = vector.load %arg32[%c224_521, %c0_522] : memref<288x8xbf16, #tpu.memory_space<vmem>>, vector<32x8xbf16>
    %cst_523 = arith.constant dense<0.000000e+00> : vector<4x8xf32>
    %685 = tpu.matmul %683, %684, %cst_523 {dimension_numbers = #tpu.dot_dimension_numbers<[1], [0], [0], [1], [0, 0, 1, 1], [], []>} : vector<4x32xbf16>, vector<32x8xbf16>, vector<4x8xf32> -> vector<4x8xf32>
    %686 = arith.addf %682, %685 : vector<4x8xf32>
    %c19_524 = arith.constant 19 : index
    %c0_525 = arith.constant 0 : index
    %687 = vector.load %arg36[%c19_524, %c0_525] : memref<96x32xbf16, #tpu.memory_space<vmem>>, vector<4x32xbf16>
    %c256_526 = arith.constant 256 : index
    %c0_527 = arith.constant 0 : index
    %688 = vector.load %arg32[%c256_526, %c0_527] : memref<288x8xbf16, #tpu.memory_space<vmem>>, vector<32x8xbf16>
    %cst_528 = arith.constant dense<0.000000e+00> : vector<4x8xf32>
    %689 = tpu.matmul %687, %688, %cst_528 {dimension_numbers = #tpu.dot_dimension_numbers<[1], [0], [0], [1], [0, 0, 1, 1], [], []>} : vector<4x32xbf16>, vector<32x8xbf16>, vector<4x8xf32> -> vector<4x8xf32>
    %c1_i32_529 = arith.constant 1 : i32
    %690 = vector.broadcast %c1_i32_529 : i32 to vector<4x1xi32>
    %691 = arith.cmpi slt, %507, %690 : vector<4x1xi32>
    %cst_530 = arith.constant 0.000000e+00 : f32
    %692 = vector.shape_cast %691 : vector<4x1xi1> to vector<4x1xi1>
    %693 = vector.broadcast %692 : vector<4x1xi1> to vector<4x8xi1>
    %694 = vector.broadcast %cst_530 : f32 to vector<4x8xf32>
    %695 = arith.select %693, %689, %694 : vector<4x8xi1>, vector<4x8xf32>
    %696 = arith.addf %686, %695 : vector<4x8xf32>
    %c0_531 = arith.constant 0 : index
    %c24_532 = arith.constant 24 : index
    %697 = vector.load %arg35[%c0_531, %c24_532] : memref<64x32xf32, #tpu.memory_space<vmem>>, vector<4x8xf32>
    tpu.vector_store %arg35[%c0_531, %c24_532], %696 {strides = array<i32>} : memref<64x32xf32, #tpu.memory_space<vmem>>, vector<4x8xf32>,
    %c0_533 = arith.constant 0 : index
    %c0_534 = arith.constant 0 : index
    %698 = vector.load %arg35[%c0_533, %c0_534] : memref<64x32xf32, #tpu.memory_space<vmem>>, vector<4x32xf32>
    %c0_535 = arith.constant 0 : index
    %c0_536 = arith.constant 0 : index
    %699 = vector.load %arg33[%c0_535, %c0_536] : memref<2x32xf32, #tpu.memory_space<vmem>>, vector<1x32xf32>
    %700 = vector.broadcast %699 : vector<1x32xf32> to vector<4x32xf32>
    %701 = arith.mulf %698, %700 : vector<4x32xf32>
    %c1_537 = arith.constant 1 : index
    %c0_538 = arith.constant 0 : index
    %702 = vector.load %arg33[%c1_537, %c0_538] : memref<2x32xf32, #tpu.memory_space<vmem>>, vector<1x32xf32>
    %703 = vector.broadcast %702 : vector<1x32xf32> to vector<4x32xf32>
    %704 = arith.addf %701, %703 : vector<4x32xf32>
    %cst_539 = arith.constant 0.000000e+00 : f32
    %705 = vector.broadcast %cst_539 : f32 to vector<4x32xf32>
    %706 = arith.maximumf %704, %705 : vector<4x32xf32>
    %c0_540 = arith.constant 0 : index
    %c0_541 = arith.constant 0 : index
    %c0_542 = arith.constant 0 : index
    %707 = vector.load %arg34[%c0_540, %c0_541, %c0_542] : memref<1x4x32xf32, #tpu.memory_space<vmem>>, vector<1x4x32xf32>
    %708 = vector.shape_cast %707 : vector<1x4x32xf32> to vector<4x32xf32>
    %709 = vector.shape_cast %706 : vector<4x32xf32> to vector<1x4x32xf32>
    tpu.vector_store %arg34[%c0_540, %c0_541, %c0_542], %709 {strides = array<i32>} : memref<1x4x32xf32, #tpu.memory_space<vmem>>, vector<1x4x32xf32>,
    return
  }
  func.func @transform_0(%arg0: i32) -> (i32, i32, i32) {
    %c0_i32 = arith.constant 0 : i32
    %c0_i32_0 = arith.constant 0 : i32
    %c0_i32_1 = arith.constant 0 : i32
    return %arg0, %c0_i32, %c0_i32_0 : i32, i32, i32
  }
  func.func @transform_1(%arg0: i32) -> (i32, i32) {
    %c0_i32 = arith.constant 0 : i32
    %c0_i32_0 = arith.constant 0 : i32
    %c0_i32_1 = arith.constant 0 : i32
    return %c0_i32, %c0_i32_0 : i32, i32
  }
  func.func @transform_2(%arg0: i32) -> (i32, i32) {
    %c0_i32 = arith.constant 0 : i32
    %c0_i32_0 = arith.constant 0 : i32
    %c0_i32_1 = arith.constant 0 : i32
    return %c0_i32, %c0_i32_0 : i32, i32
  }
  func.func @transform_3(%arg0: i32) -> (i32, i32) {
    %c0_i32 = arith.constant 0 : i32
    %c0_i32_0 = arith.constant 0 : i32
    %c0_i32_1 = arith.constant 0 : i32
    return %c0_i32, %c0_i32_0 : i32, i32
  }
  func.func @transform_4(%arg0: i32) -> (i32, i32) {
    %c0_i32 = arith.constant 0 : i32
    %c0_i32_0 = arith.constant 0 : i32
    %c0_i32_1 = arith.constant 0 : i32
    return %c0_i32, %c0_i32_0 : i32, i32
  }
  func.func @transform_5(%arg0: i32) -> (i32, i32) {
    %c0_i32 = arith.constant 0 : i32
    %c0_i32_0 = arith.constant 0 : i32
    %c0_i32_1 = arith.constant 0 : i32
    return %c0_i32, %c0_i32_0 : i32, i32
  }
  func.func @transform_6(%arg0: i32) -> (i32, i32) {
    %c0_i32 = arith.constant 0 : i32
    %c0_i32_0 = arith.constant 0 : i32
    %c0_i32_1 = arith.constant 0 : i32
    return %c0_i32, %c0_i32_0 : i32, i32
  }
  func.func @transform_7(%arg0: i32) -> (i32, i32) {
    %c0_i32 = arith.constant 0 : i32
    %c0_i32_0 = arith.constant 0 : i32
    %c0_i32_1 = arith.constant 0 : i32
    return %c0_i32, %c0_i32_0 : i32, i32
  }
  func.func @transform_8(%arg0: i32) -> (i32, i32) {
    %c0_i32 = arith.constant 0 : i32
    %c0_i32_0 = arith.constant 0 : i32
    %c0_i32_1 = arith.constant 0 : i32
    return %c0_i32, %c0_i32_0 : i32, i32
  }
  func.func @transform_9(%arg0: i32) -> (i32, i32) {
    %c0_i32 = arith.constant 0 : i32
    %c0_i32_0 = arith.constant 0 : i32
    %c0_i32_1 = arith.constant 0 : i32
    return %c0_i32, %c0_i32_0 : i32, i32
  }
  func.func @transform_10(%arg0: i32) -> (i32, i32) {
    %c0_i32 = arith.constant 0 : i32
    %c0_i32_0 = arith.constant 0 : i32
    %c0_i32_1 = arith.constant 0 : i32
    return %c0_i32, %c0_i32_0 : i32, i32
  }
  func.func @transform_11(%arg0: i32) -> (i32, i32) {
    %c0_i32 = arith.constant 0 : i32
    %c0_i32_0 = arith.constant 0 : i32
    %c0_i32_1 = arith.constant 0 : i32
    return %c0_i32, %c0_i32_0 : i32, i32
  }
  func.func @transform_12(%arg0: i32) -> (i32, i32) {
    %c0_i32 = arith.constant 0 : i32
    %c0_i32_0 = arith.constant 0 : i32
    %c0_i32_1 = arith.constant 0 : i32
    return %c0_i32, %c0_i32_0 : i32, i32
  }
  func.func @transform_13(%arg0: i32) -> (i32, i32) {
    %c0_i32 = arith.constant 0 : i32
    %c0_i32_0 = arith.constant 0 : i32
    %c0_i32_1 = arith.constant 0 : i32
    return %c0_i32, %c0_i32_0 : i32, i32
  }
  func.func @transform_14(%arg0: i32) -> (i32, i32) {
    %c0_i32 = arith.constant 0 : i32
    %c0_i32_0 = arith.constant 0 : i32
    %c0_i32_1 = arith.constant 0 : i32
    return %c0_i32, %c0_i32_0 : i32, i32
  }
  func.func @transform_15(%arg0: i32) -> (i32, i32) {
    %c0_i32 = arith.constant 0 : i32
    %c0_i32_0 = arith.constant 0 : i32
    %c0_i32_1 = arith.constant 0 : i32
    return %c0_i32, %c0_i32_0 : i32, i32
  }
  func.func @transform_16(%arg0: i32) -> (i32, i32) {
    %c0_i32 = arith.constant 0 : i32
    %c0_i32_0 = arith.constant 0 : i32
    %c0_i32_1 = arith.constant 0 : i32
    return %c0_i32, %c0_i32_0 : i32, i32
  }
  func.func @transform_17(%arg0: i32) -> (i32, i32) {
    %c0_i32 = arith.constant 0 : i32
    %c0_i32_0 = arith.constant 0 : i32
    %c0_i32_1 = arith.constant 0 : i32
    return %c0_i32, %c0_i32_0 : i32, i32
  }
  func.func @transform_18(%arg0: i32) -> (i32, i32) {
    %c0_i32 = arith.constant 0 : i32
    %c0_i32_0 = arith.constant 0 : i32
    %c0_i32_1 = arith.constant 0 : i32
    return %c0_i32, %c0_i32_0 : i32, i32
  }
  func.func @transform_19(%arg0: i32) -> (i32, i32) {
    %c0_i32 = arith.constant 0 : i32
    %c0_i32_0 = arith.constant 0 : i32
    %c0_i32_1 = arith.constant 0 : i32
    return %c0_i32, %c0_i32_0 : i32, i32
  }
  func.func @transform_20(%arg0: i32) -> (i32, i32) {
    %c0_i32 = arith.constant 0 : i32
    %c0_i32_0 = arith.constant 0 : i32
    %c0_i32_1 = arith.constant 0 : i32
    return %c0_i32, %c0_i32_0 : i32, i32
  }
  func.func @transform_21(%arg0: i32) -> (i32, i32) {
    %c0_i32 = arith.constant 0 : i32
    %c0_i32_0 = arith.constant 0 : i32
    %c0_i32_1 = arith.constant 0 : i32
    return %c0_i32, %c0_i32_0 : i32, i32
  }
  func.func @transform_22(%arg0: i32) -> (i32, i32) {
    %c0_i32 = arith.constant 0 : i32
    %c0_i32_0 = arith.constant 0 : i32
    %c0_i32_1 = arith.constant 0 : i32
    return %c0_i32, %c0_i32_0 : i32, i32
  }
  func.func @transform_23(%arg0: i32) -> (i32, i32) {
    %c0_i32 = arith.constant 0 : i32
    %c0_i32_0 = arith.constant 0 : i32
    %c0_i32_1 = arith.constant 0 : i32
    return %c0_i32, %c0_i32_0 : i32, i32
  }
  func.func @transform_24(%arg0: i32) -> (i32, i32) {
    %c0_i32 = arith.constant 0 : i32
    %c0_i32_0 = arith.constant 0 : i32
    %c0_i32_1 = arith.constant 0 : i32
    return %c0_i32, %c0_i32_0 : i32, i32
  }
  func.func @transform_25(%arg0: i32) -> (i32, i32) {
    %c0_i32 = arith.constant 0 : i32
    %c0_i32_0 = arith.constant 0 : i32
    %c0_i32_1 = arith.constant 0 : i32
    return %c0_i32, %c0_i32_0 : i32, i32
  }
  func.func @transform_26(%arg0: i32) -> (i32, i32) {
    %c0_i32 = arith.constant 0 : i32
    %c0_i32_0 = arith.constant 0 : i32
    %c0_i32_1 = arith.constant 0 : i32
    return %c0_i32, %c0_i32_0 : i32, i32
  }
  func.func @transform_27(%arg0: i32) -> (i32, i32) {
    %c0_i32 = arith.constant 0 : i32
    %c0_i32_0 = arith.constant 0 : i32
    %c0_i32_1 = arith.constant 0 : i32
    return %c0_i32, %c0_i32_0 : i32, i32
  }
  func.func @transform_28(%arg0: i32) -> (i32, i32) {
    %c0_i32 = arith.constant 0 : i32
    %c0_i32_0 = arith.constant 0 : i32
    %c0_i32_1 = arith.constant 0 : i32
    return %c0_i32, %c0_i32_0 : i32, i32
  }
  func.func @transform_29(%arg0: i32) -> (i32, i32) {
    %c0_i32 = arith.constant 0 : i32
    %c0_i32_0 = arith.constant 0 : i32
    %c0_i32_1 = arith.constant 0 : i32
    return %c0_i32, %c0_i32_0 : i32, i32
  }
  func.func @transform_30(%arg0: i32) -> (i32, i32) {
    %c0_i32 = arith.constant 0 : i32
    %c0_i32_0 = arith.constant 0 : i32
    %c0_i32_1 = arith.constant 0 : i32
    return %c0_i32, %c0_i32_0 : i32, i32
  }
  func.func @transform_31(%arg0: i32) -> (i32, i32) {
    %c0_i32 = arith.constant 0 : i32
    %c0_i32_0 = arith.constant 0 : i32
    %c0_i32_1 = arith.constant 0 : i32
    return %c0_i32, %c0_i32_0 : i32, i32
  }
  func.func @transform_32(%arg0: i32) -> (i32, i32) {
    %c0_i32 = arith.constant 0 : i32
    %c0_i32_0 = arith.constant 0 : i32
    %c0_i32_1 = arith.constant 0 : i32
    return %c0_i32, %c0_i32_0 : i32, i32
  }
  func.func @transform_33(%arg0: i32) -> (i32, i32, i32) {
    %c0_i32 = arith.constant 0 : i32
    %c0_i32_0 = arith.constant 0 : i32
    %c0_i32_1 = arith.constant 0 : i32
    return %arg0, %c0_i32, %c0_i32_0 : i32, i32, i32
  }
}

</mosaic_0001>

<bundles_post_ra>
// kernel: dense_encoder_forward.2
= control target key start
LH: loop header
LB: loop body
LE: loop exit
PB: predicated region body
PF: predicated region fallthrough
CT: control target
= control target key end

     0   :  { %s789_s12 = smov 0   ;;  %s962_s0 = inlined_call_operand.vmem [shape: bf16[512,49], index: 0, kind: input, shape index: {}]   ;;  %s963_s1 = inlined_call_operand.vmem [shape: bf16[49,16], index: 1, kind: input, shape index: {}]   ;;  %s964_s2 = inlined_call_operand.vmem [shape: f32[1,16], index: 2, kind: input, shape index: {}]   ;;  %s965_s3 = inlined_call_operand.vmem [shape: bf16[512,16], index: 3, kind: output, shape index: {}]  }
   0x1 LB: > { %s616_s13 = sadd.s32 4294967295, %s766_s12   ;;  %p620_p0 = scmp.ge.s32.totalorder %s766_s12, 1  ;;  %s766_s12 = sphi %s789_s12, %s13_s12  }
   0x2   : > { %p138_p1 = scmp.lt.s32.totalorder %s766_s12, 3 }
   0x4   : > { %p139_p2 = pnand %p620_p0, %p138_p1 }
   0x5   : > { %s621_s16 = sshll.u32 (!%p139_p2), %s616_s13, 5 }
   0x6   : > { %142 = sbr.rel (%p139_p2) target bundleno = 230 (0xe6), region = 32  ;;  %p163_p3 = scmp.lt.s32.totalorder (!%p139_p2), %s621_s16, 63 }
   0xb   : > { %v213_v0 = vld [vmem:[%s963_s1 + $0x18] sm:$0x1]  ;;  %vm368_vm0 = vcmask 1040384   ;;  %v768_v2 = vmov 0   ;;  %v737_v6 = vld [vmem:[%s963_s1 + $0x10] sm:$0xff]  ;;  %s967_s16 = smov (!%p163_p3, %s621_s16), 63 }
   0xc   : > { %v311_v1 = vunpack.c.l.b16 %v213_v0  ;;  %v370_v3 = vsel %vm368_vm0, 65535, %v768_v2  ;;  %v736_v7 = vld [vmem:[%s963_s1 + $0x8] sm:$0xff]  ;;  %s622_s21 = sshll.u32 %s967_s16, 2  ;;  %v735_v8 = vld [vmem:[%s963_s1] sm:$0xff]  ;;  %vm319_vm1 = vcmask 400384   ;;  %vm527_vm2 = vcmask 125952  }
   0xd   : > { %s817_s26 = scalar_lea.vmem %s962_s0, %s622_s21  ;;  %v854_v25 = vld [vmem:[%s964_s2] ss:$0 sm:$0xff]  ;;  %s863_s4 = scalar_lea.vmem %s965_s3, %s622_s21 }
   0xe   : > { %v315_v4 = vpack.c.b16 %v311_v1, %v311_v1  ;;  %v719_v9 = vld [vmem:[%s817_s26] sm:$0xff]  ;;  %v720_v13 = vld [vmem:[%s817_s26 + $0x8] sm:$0xff]  ;;  %v721_v17 = vld [vmem:[%s817_s26 + $0x10] sm:$0xff] }
   0xf   : > { %v723_v10 = vld [vmem:[%s817_s26 + $0x20] sm:$0xff]  ;;  %v724_v14 = vld [vmem:[%s817_s26 + $0x28] sm:$0xff]  ;;  %v725_v18 = vld [vmem:[%s817_s26 + $0x30] sm:$0xff] }
  0x10   : > { %v372_v5 = vand.u32 %v370_v3, %v315_v4  ;;  %v727_v11 = vld [vmem:[%s817_s26 + $0x40] sm:$0xff]  ;;  %v728_v15 = vld [vmem:[%s817_s26 + $0x48] sm:$0xff]  ;;  %v729_v19 = vld [vmem:[%s817_s26 + $0x50] sm:$0xff] }
  0x11   : > { %v731_v12 = vld [vmem:[%s817_s26 + $0x60] sm:$0xff]  ;;  %v732_v16 = vld [vmem:[%s817_s26 + $0x68] sm:$0xff]  ;;  %v733_v20 = vld [vmem:[%s817_s26 + $0x70] sm:$0xff] }
  0x12   : > { %378 = vmatpush.bf16.msra.mxu0 %v372_v5  ;;  %738 = vmatpush.bf16.msra.mxu1 %v372_v5  ;;  %v722_v21 = vld [vmem:[%s817_s26 + $0x18] sm:$0xff] }
  0x13   : > { %739 = vmatpush.bf16.msra.mxu2 %v372_v5  ;;  %740 = vmatpush.bf16.msra.mxu3 %v372_v5  ;;  %v726_v22 = vld [vmem:[%s817_s26 + $0x38] sm:$0xff] }
  0x14   : > { %v730_v23 = vld [vmem:[%s817_s26 + $0x58] sm:$0xff] }
  0x15   : > { %v734_v24 = vld [vmem:[%s817_s26 + $0x78] sm:$0xff] }
  0x16   : > { %379 = vmatpush.bf16.msra.mxu0 %v737_v6  ;;  %741 = vmatpush.bf16.msra.mxu1 %v737_v6 }
  0x17   : > { %742 = vmatpush.bf16.msra.mxu2 %v737_v6  ;;  %743 = vmatpush.bf16.msra.mxu3 %v737_v6 }
  0x1a   : > { %380 = vmatpush.bf16.msra.mxu0 %v736_v7  ;;  %744 = vmatpush.bf16.msra.mxu1 %v736_v7 }
  0x1b   : > { %745 = vmatpush.bf16.msra.mxu2 %v736_v7  ;;  %746 = vmatpush.bf16.msra.mxu3 %v736_v7 }
  0x1e   : > { %381 = vmatpush.bf16.msra.mxu0 %v735_v8  ;;  %747 = vmatpush.bf16.msra.mxu1 %v735_v8 }
  0x1f   : > { %748 = vmatpush.bf16.msra.mxu2 %v735_v8  ;;  %749 = vmatpush.bf16.msra.mxu3 %v735_v8 }
  0x21   : > { %701 = vmatmul.msk.bf16.vlgmr.msra.gmra.mxu0 %vm319_vm1, %v719_v9  ;;  %705 = vmatmul.msk.bf16.vlgmr.msra.gmra.mxu1 %vm319_vm1, %v723_v10 }
  0x22   : > { %709 = vmatmul.msk.bf16.vlgmr.msra.gmra.mxu2 %vm319_vm1, %v727_v11  ;;  %713 = vmatmul.msk.bf16.vlgmr.msra.gmra.mxu3 %vm319_vm1, %v731_v12 }
  0x31   : > { %702 = vmatmul.msk.bf16.gmra.mxu0 %vm319_vm1, %v720_v13  ;;  %706 = vmatmul.msk.bf16.gmra.mxu1 %vm319_vm1, %v724_v14 }
  0x32   : > { %710 = vmatmul.msk.bf16.gmra.mxu2 %vm319_vm1, %v728_v15  ;;  %714 = vmatmul.msk.bf16.gmra.mxu3 %vm319_vm1, %v732_v16 }
  0x41   : > { %703 = vmatmul.msk.bf16.gmra.mxu0 %vm319_vm1, %v721_v17  ;;  %707 = vmatmul.msk.bf16.gmra.mxu1 %vm319_vm1, %v725_v18 }
  0x42   : > { %711 = vmatmul.msk.bf16.gmra.mxu2 %vm319_vm1, %v729_v19  ;;  %715 = vmatmul.msk.bf16.gmra.mxu3 %vm319_vm1, %v733_v20 }
  0x51   : > { %704 = vmatmul.msk.bf16.gmra.mxu0 %vm319_vm1, %v722_v21  ;;  %708 = vmatmul.msk.bf16.gmra.mxu1 %vm319_vm1, %v726_v22 }
  0x52   : > { %712 = vmatmul.msk.bf16.gmra.mxu2 %vm319_vm1, %v730_v23  ;;  %716 = vmatmul.msk.bf16.gmra.mxu3 %vm319_vm1, %v734_v24 }
  0x9e   : > { %v383_v26 = vpop.f32.mrf.mxu0  ;;  %v403_v27 = vpop.f32.mrf.mxu1 }
  0x9f   : > { %v384_v28 = vadd.f32 %v854_v25, %v383_v26  ;;  %v404_v29 = vadd.f32 %v854_v25, %v403_v27 }
  0xa1   : > { %v463_v30 = vmax.f32 %v384_v28, 0.0  ;;  %v471_v31 = vmax.f32 %v404_v29, 0.0 }
  0xa3   : > { %v495_v32 = vpack.c.bf16 %v463_v30, %v463_v30  ;;  %v503_v33 = vpack.c.bf16 %v471_v31, %v471_v31 }
  0xa5   : > { %528 = vst.msk [vmem:[%s863_s4] sm:$0xf] %vm527_vm2, %v495_v32  ;;  %v423_v34 = vpop.f32.mrf.mxu2  ;;  %v443_v35 = vpop.f32.mrf.mxu3 }
  0xa6   : > { %536 = vst.msk [vmem:[%s863_s4 + $0x20] sm:$0xf] %vm527_vm2, %v503_v33  ;;  %v424_v36 = vadd.f32 %v854_v25, %v423_v34  ;;  %v444_v37 = vadd.f32 %v854_v25, %v443_v35  ;;  %v385_v38 = vpop.f32.mrf.mxu0  ;;  %v405_v39 = vpop.f32.mrf.mxu1 }
  0xa7   : > { %v386_v40 = vadd.f32 %v854_v25, %v385_v38  ;;  %v406_v41 = vadd.f32 %v854_v25, %v405_v39 }
  0xa8   : > { %v479_v42 = vmax.f32 %v424_v36, 0.0  ;;  %v487_v43 = vmax.f32 %v444_v37, 0.0 }
  0xa9   : > { %v464_v44 = vmax.f32 %v386_v40, 0.0  ;;  %v472_v45 = vmax.f32 %v406_v41, 0.0 }
  0xaa   : > { %v511_v46 = vpack.c.bf16 %v479_v42, %v479_v42  ;;  %v519_v47 = vpack.c.bf16 %v487_v43, %v487_v43 }
  0xab   : > { %v496_v48 = vpack.c.bf16 %v464_v44, %v464_v44  ;;  %v504_v49 = vpack.c.bf16 %v472_v45, %v472_v45 }
  0xac   : > { %544 = vst.msk [vmem:[%s863_s4 + $0x40] sm:$0xf] %vm527_vm2, %v511_v46 }
  0xad   : > { %552 = vst.msk [vmem:[%s863_s4 + $0x60] sm:$0xf] %vm527_vm2, %v519_v47  ;;  %v425_v50 = vpop.f32.mrf.mxu2  ;;  %v445_v51 = vpop.f32.mrf.mxu3 }
  0xae   : > { %529 = vst.msk [vmem:[%s863_s4 + $0x4] sm:$0xf] %vm527_vm2, %v496_v48  ;;  %v426_v52 = vadd.f32 %v854_v25, %v425_v50  ;;  %v446_v53 = vadd.f32 %v854_v25, %v445_v51  ;;  %v388_v54 = vpop.f32.mrf.mxu0  ;;  %v408_v55 = vpop.f32.mrf.mxu1 }
  0xaf   : > { %537 = vst.msk [vmem:[%s863_s4 + $0x24] sm:$0xf] %vm527_vm2, %v504_v49  ;;  %v389_v56 = vadd.f32 %v854_v25, %v388_v54  ;;  %v409_v57 = vadd.f32 %v854_v25, %v408_v55 }
  0xb0   : > { %v480_v58 = vmax.f32 %v426_v52, 0.0  ;;  %v488_v59 = vmax.f32 %v446_v53, 0.0 }
  0xb1   : > { %v465_v60 = vmax.f32 %v389_v56, 0.0  ;;  %v473_v61 = vmax.f32 %v409_v57, 0.0 }
  0xb2   : > { %v512_v62 = vpack.c.bf16 %v480_v58, %v480_v58  ;;  %v520_v63 = vpack.c.bf16 %v488_v59, %v488_v59 }
  0xb3   : > { %v497_v0 = vpack.c.bf16 %v465_v60, %v465_v60  ;;  %v505_v1 = vpack.c.bf16 %v473_v61, %v473_v61 }
  0xb4   : > { %545 = vst.msk [vmem:[%s863_s4 + $0x44] sm:$0xf] %vm527_vm2, %v512_v62 }
  0xb5   : > { %553 = vst.msk [vmem:[%s863_s4 + $0x64] sm:$0xf] %vm527_vm2, %v520_v63  ;;  %v428_v2 = vpop.f32.mrf.mxu2  ;;  %v448_v3 = vpop.f32.mrf.mxu3 }
  0xb6   : > { %530 = vst.msk [vmem:[%s863_s4 + $0x8] sm:$0xf] %vm527_vm2, %v497_v0  ;;  %v429_v4 = vadd.f32 %v854_v25, %v428_v2  ;;  %v449_v5 = vadd.f32 %v854_v25, %v448_v3  ;;  %v390_v6 = vpop.f32.mrf.mxu0  ;;  %v410_v7 = vpop.f32.mrf.mxu1 }
  0xb7   : > { %538 = vst.msk [vmem:[%s863_s4 + $0x28] sm:$0xf] %vm527_vm2, %v505_v1  ;;  %v391_v8 = vadd.f32 %v854_v25, %v390_v6  ;;  %v411_v9 = vadd.f32 %v854_v25, %v410_v7 }
  0xb8   : > { %v481_v10 = vmax.f32 %v429_v4, 0.0  ;;  %v489_v11 = vmax.f32 %v449_v5, 0.0 }
  0xb9   : > { %v466_v12 = vmax.f32 %v391_v8, 0.0  ;;  %v474_v13 = vmax.f32 %v411_v9, 0.0 }
  0xba   : > { %v513_v14 = vpack.c.bf16 %v481_v10, %v481_v10  ;;  %v521_v15 = vpack.c.bf16 %v489_v11, %v489_v11 }
  0xbb   : > { %v498_v16 = vpack.c.bf16 %v466_v12, %v466_v12  ;;  %v506_v17 = vpack.c.bf16 %v474_v13, %v474_v13 }
  0xbc   : > { %546 = vst.msk [vmem:[%s863_s4 + $0x48] sm:$0xf] %vm527_vm2, %v513_v14 }
  0xbd   : > { %554 = vst.msk [vmem:[%s863_s4 + $0x68] sm:$0xf] %vm527_vm2, %v521_v15  ;;  %v430_v18 = vpop.f32.mrf.mxu2  ;;  %v450_v19 = vpop.f32.mrf.mxu3 }
  0xbe   : > { %531 = vst.msk [vmem:[%s863_s4 + $0xc] sm:$0xf] %vm527_vm2, %v498_v16  ;;  %v431_v20 = vadd.f32 %v854_v25, %v430_v18  ;;  %v451_v21 = vadd.f32 %v854_v25, %v450_v19  ;;  %v393_v22 = vpop.f32.mrf.mxu0  ;;  %v413_v23 = vpop.f32.mrf.mxu1 }
  0xbf   : > { %539 = vst.msk [vmem:[%s863_s4 + $0x2c] sm:$0xf] %vm527_vm2, %v506_v17  ;;  %v394_v24 = vadd.f32 %v854_v25, %v393_v22  ;;  %v414_v26 = vadd.f32 %v854_v25, %v413_v23 }
  0xc0   : > { %v482_v27 = vmax.f32 %v431_v20, 0.0  ;;  %v490_v28 = vmax.f32 %v451_v21, 0.0 }
  0xc1   : > { %v467_v29 = vmax.f32 %v394_v24, 0.0  ;;  %v475_v30 = vmax.f32 %v414_v26, 0.0 }
  0xc2   : > { %v514_v31 = vpack.c.bf16 %v482_v27, %v482_v27  ;;  %v522_v32 = vpack.c.bf16 %v490_v28, %v490_v28 }
  0xc3   : > { %v499_v33 = vpack.c.bf16 %v467_v29, %v467_v29  ;;  %v507_v34 = vpack.c.bf16 %v475_v30, %v475_v30 }
  0xc4   : > { %547 = vst.msk [vmem:[%s863_s4 + $0x4c] sm:$0xf] %vm527_vm2, %v514_v31 }
  0xc5   : > { %555 = vst.msk [vmem:[%s863_s4 + $0x6c] sm:$0xf] %vm527_vm2, %v522_v32  ;;  %v433_v35 = vpop.f32.mrf.mxu2  ;;  %v453_v36 = vpop.f32.mrf.mxu3 }
  0xc6   : > { %532 = vst.msk [vmem:[%s863_s4 + $0x10] sm:$0xf] %vm527_vm2, %v499_v33  ;;  %v434_v37 = vadd.f32 %v854_v25, %v433_v35  ;;  %v454_v38 = vadd.f32 %v854_v25, %v453_v36  ;;  %v395_v39 = vpop.f32.mrf.mxu0  ;;  %v415_v40 = vpop.f32.mrf.mxu1 }
  0xc7   : > { %540 = vst.msk [vmem:[%s863_s4 + $0x30] sm:$0xf] %vm527_vm2, %v507_v34  ;;  %v396_v41 = vadd.f32 %v854_v25, %v395_v39  ;;  %v416_v42 = vadd.f32 %v854_v25, %v415_v40 }
  0xc8   : > { %v483_v43 = vmax.f32 %v434_v37, 0.0  ;;  %v491_v44 = vmax.f32 %v454_v38, 0.0 }
  0xc9   : > { %v468_v45 = vmax.f32 %v396_v41, 0.0  ;;  %v476_v46 = vmax.f32 %v416_v42, 0.0 }
  0xca   : > { %v515_v47 = vpack.c.bf16 %v483_v43, %v483_v43  ;;  %v523_v48 = vpack.c.bf16 %v491_v44, %v491_v44 }
  0xcb   : > { %v500_v49 = vpack.c.bf16 %v468_v45, %v468_v45  ;;  %v508_v50 = vpack.c.bf16 %v476_v46, %v476_v46 }
  0xcc   : > { %548 = vst.msk [vmem:[%s863_s4 + $0x50] sm:$0xf] %vm527_vm2, %v515_v47 }
  0xcd   : > { %556 = vst.msk [vmem:[%s863_s4 + $0x70] sm:$0xf] %vm527_vm2, %v523_v48  ;;  %v435_v51 = vpop.f32.mrf.mxu2  ;;  %v455_v52 = vpop.f32.mrf.mxu3 }
  0xce   : > { %533 = vst.msk [vmem:[%s863_s4 + $0x14] sm:$0xf] %vm527_vm2, %v500_v49  ;;  %v436_v53 = vadd.f32 %v854_v25, %v435_v51  ;;  %v456_v54 = vadd.f32 %v854_v25, %v455_v52  ;;  %v398_v55 = vpop.f32.mrf.mxu0  ;;  %v418_v56 = vpop.f32.mrf.mxu1 }
  0xcf   : > { %541 = vst.msk [vmem:[%s863_s4 + $0x34] sm:$0xf] %vm527_vm2, %v508_v50  ;;  %v399_v57 = vadd.f32 %v854_v25, %v398_v55  ;;  %v419_v58 = vadd.f32 %v854_v25, %v418_v56 }
  0xd0   : > { %v484_v59 = vmax.f32 %v436_v53, 0.0  ;;  %v492_v60 = vmax.f32 %v456_v54, 0.0 }
  0xd1   : > { %v469_v61 = vmax.f32 %v399_v57, 0.0  ;;  %v477_v62 = vmax.f32 %v419_v58, 0.0 }
  0xd2   : > { %v516_v63 = vpack.c.bf16 %v484_v59, %v484_v59  ;;  %v524_v0 = vpack.c.bf16 %v492_v60, %v492_v60 }
  0xd3   : > { %v501_v1 = vpack.c.bf16 %v469_v61, %v469_v61  ;;  %v509_v2 = vpack.c.bf16 %v477_v62, %v477_v62 }
  0xd4   : > { %549 = vst.msk [vmem:[%s863_s4 + $0x54] sm:$0xf] %vm527_vm2, %v516_v63 }
  0xd5   : > { %557 = vst.msk [vmem:[%s863_s4 + $0x74] sm:$0xf] %vm527_vm2, %v524_v0  ;;  %v438_v3 = vpop.f32.mrf.mxu2  ;;  %v458_v4 = vpop.f32.mrf.mxu3 }
  0xd6   : > { %534 = vst.msk [vmem:[%s863_s4 + $0x18] sm:$0xf] %vm527_vm2, %v501_v1  ;;  %v439_v5 = vadd.f32 %v854_v25, %v438_v3  ;;  %v459_v6 = vadd.f32 %v854_v25, %v458_v4  ;;  %v400_v7 = vpop.f32.mrf.mxu0  ;;  %v420_v8 = vpop.f32.mrf.mxu1 }
  0xd7   : > { %542 = vst.msk [vmem:[%s863_s4 + $0x38] sm:$0xf] %vm527_vm2, %v509_v2  ;;  %v401_v9 = vadd.f32 %v854_v25, %v400_v7  ;;  %v421_v10 = vadd.f32 %v854_v25, %v420_v8 }
  0xd8   : > { %v485_v11 = vmax.f32 %v439_v5, 0.0  ;;  %v493_v12 = vmax.f32 %v459_v6, 0.0 }
  0xd9   : > { %v470_v13 = vmax.f32 %v401_v9, 0.0  ;;  %v478_v14 = vmax.f32 %v421_v10, 0.0 }
  0xda   : > { %v517_v15 = vpack.c.bf16 %v485_v11, %v485_v11  ;;  %v525_v16 = vpack.c.bf16 %v493_v12, %v493_v12 }
  0xdb   : > { %v502_v17 = vpack.c.bf16 %v470_v13, %v470_v13  ;;  %v510_v18 = vpack.c.bf16 %v478_v14, %v478_v14 }
  0xdc   : > { %550 = vst.msk [vmem:[%s863_s4 + $0x58] sm:$0xf] %vm527_vm2, %v517_v15 }
  0xdd   : > { %558 = vst.msk [vmem:[%s863_s4 + $0x78] sm:$0xf] %vm527_vm2, %v525_v16  ;;  %v440_v19 = vpop.f32.mrf.mxu2  ;;  %v460_v20 = vpop.f32.mrf.mxu3 }
  0xde   : > { %535 = vst.msk [vmem:[%s863_s4 + $0x1c] sm:$0xf] %vm527_vm2, %v502_v17  ;;  %v441_v21 = vadd.f32 %v854_v25, %v440_v19  ;;  %v461_v22 = vadd.f32 %v854_v25, %v460_v20 }
  0xdf   : > { %543 = vst.msk [vmem:[%s863_s4 + $0x3c] sm:$0xf] %vm527_vm2, %v510_v18 }
  0xe0   : > { %v486_v23 = vmax.f32 %v441_v21, 0.0  ;;  %v494_v24 = vmax.f32 %v461_v22, 0.0 }
  0xe2   : > { %v518_v26 = vpack.c.bf16 %v486_v23, %v486_v23  ;;  %v526_v27 = vpack.c.bf16 %v494_v24, %v494_v24 }
  0xe4   : > { %551 = vst.msk [vmem:[%s863_s4 + $0x5c] sm:$0xf] %vm527_vm2, %v518_v26 }
  0xe5   : > { %559 = vst.msk [vmem:[%s863_s4 + $0x7c] sm:$0xf] %vm527_vm2, %v526_v27 }
  0xe6 PF: > { %s13_s12 = sadd.s32 1, %s766_s12  }
  0xe7   : > { %p10_p4 = scmp.ge.s32.totalorder %s13_s12, 4  }
  0xe9   :  { %12 = sbr.rel (!%p10_p4) target bundleno = 1 (0x1), region = 62 }

// kernel: dense_encoder_forward.3
= control target key start
LH: loop header
LB: loop body
LE: loop exit
PB: predicated region body
PF: predicated region fallthrough
CT: control target
= control target key end

     0   :  { %s8536_s6 = smov 1   ;;  %s8537_s10 = smov 2   ;;  %s10884_s0 = inlined_call_operand.smem [shape: u32[34], index: -1, kind: input, shape index: {}] }
   0x1   :  { %s8580_s5 = sld [smem:[%s10884_s0]]   ;;  %s8538_s14 = smov 3  }
   0x2   :  { %s8585_s9 = sld [smem:[%s10884_s0 + %s8536_s6]]   ;;  %s8539_s18 = smov 4  }
   0x3   :  { %s8590_s13 = sld [smem:[%s10884_s0 + %s8537_s10]]   ;;  %s8540_s22 = smov 5  }
   0x4   :  { %s8595_s17 = sld [smem:[%s10884_s0 + %s8538_s14]]   ;;  %s8541_s26 = smov 6  }
   0x5   :  { %s8600_s21 = sld [smem:[%s10884_s0 + %s8539_s18]]   ;;  %s8542_s30 = smov 7  }
   0x6   :  { %s8605_s25 = sld [smem:[%s10884_s0 + %s8540_s22]]   ;;  %s8543_s4 = smov 8  }
   0x7   :  { %10938 = sst [smem:[#allocation7_spill]] %s8580_s5  ;;  %s8544_s10 = smov 9  }
   0x8   :  { %10939 = sst [smem:[#allocation8_spill]] %s8585_s9  ;;  %s8545_s15 = smov 10  }
   0x9   :  { %10940 = sst [smem:[#allocation9_spill]] %s8590_s13  ;;  %s8546_s20 = smov 11  }
   0xa   :  { %s8610_s29 = sld [smem:[%s10884_s0 + %s8541_s26]]   ;;  %s8547_s26 = smov 12  }
   0xb   :  { %s8615_s3 = sld [smem:[%s10884_s0 + %s8542_s30]]   ;;  %s8548_s1 = smov 13  }
   0xc   :  { %s8620_s8 = sld [smem:[%s10884_s0 + %s8543_s4]]   ;;  %s8549_s7 = smov 14  }
   0xd   :  { %s8625_s14 = sld [smem:[%s10884_s0 + %s8544_s10]]   ;;  %s8551_s22 = smov 16  }
   0xe   :  { %s8630_s19 = sld [smem:[%s10884_s0 + %s8545_s15]]   ;;  %s8550_s15 = smov 15  }
   0xf   :  { %s8635_s24 = sld [smem:[%s10884_s0 + %s8546_s20]]   ;;  %s8552_s28 = smov 17  }
  0x10   :  { %s8640_s30 = sld [smem:[%s10884_s0 + %s8547_s26]]  }
  0x11   :  { %10941 = sst [smem:[#allocation10_spill]] %s8615_s3 }
  0x12   :  { %10942 = sst [smem:[#allocation11_spill]] %s8620_s8 }
  0x13   :  { %10943 = sst [smem:[#allocation12_spill]] %s8625_s14 }
  0x14   :  { %s8645_s6 = sld [smem:[%s10884_s0 + %s8548_s1]]  }
  0x15   :  { %s8650_s12 = sld [smem:[%s10884_s0 + %s8549_s7]]   ;;  %s8553_s7 = smov 18  }
  0x16   :  { %s8655_s20 = sld [smem:[%s10884_s0 + %s8550_s15]]   ;;  %s8554_s15 = smov 19  }
  0x17   :  { %s8660_s27 = sld [smem:[%s10884_s0 + %s8551_s22]]   ;;  %s8555_s22 = smov 20  }
  0x18   :  { %s8665_s4 = sld [smem:[%s10884_s0 + %s8552_s28]]   ;;  %s8556_s28 = smov 21  }
  0x1a   :  { %10944 = sst [smem:[#allocation13_spill]] %s8645_s6 }
  0x1b   :  { %10945 = sst [smem:[#allocation14_spill]] %s8650_s12 }
  0x1c   :  { %10946 = sst [smem:[#allocation15_spill]] %s8655_s20 }
  0x1d   :  { %10947 = sst [smem:[#allocation16_spill]] %s8660_s27 }
  0x1e   :  { %10948 = sst [smem:[#allocation17_spill]] %s8665_s4 }
  0x1f   :  { %s8670_s6 = sld [smem:[%s10884_s0 + %s8553_s7]]   ;;  %s8557_s7 = smov 22  }
  0x20   :  { %s8675_s20 = sld [smem:[%s10884_s0 + %s8554_s15]]   ;;  %s8558_s15 = smov 23  }
  0x21   :  { %s8680_s27 = sld [smem:[%s10884_s0 + %s8555_s22]]   ;;  %s8559_s22 = smov 24  }
  0x22   :  { %s8685_s4 = sld [smem:[%s10884_s0 + %s8556_s28]]   ;;  %s8560_s28 = smov 25  }
  0x25   :  { %10949 = sst [smem:[#allocation18_spill]] %s8670_s6 }
  0x26   :  { %10950 = sst [smem:[#allocation19_spill]] %s8675_s20 }
  0x27   :  { %10951 = sst [smem:[#allocation20_spill]] %s8680_s27 }
  0x28   :  { %10952 = sst [smem:[#allocation21_spill]] %s8685_s4 }
  0x29   :  { %s8690_s6 = sld [smem:[%s10884_s0 + %s8557_s7]]   ;;  %s8561_s7 = smov 26  }
  0x2a   :  { %s8695_s20 = sld [smem:[%s10884_s0 + %s8558_s15]]   ;;  %s8562_s15 = smov 27  }
  0x2b   :  { %s8700_s27 = sld [smem:[%s10884_s0 + %s8559_s22]]   ;;  %s8563_s22 = smov 28  }
  0x2c   :  { %s8705_s4 = sld [smem:[%s10884_s0 + %s8560_s28]]   ;;  %s8564_s28 = smov 29  }
  0x2f   :  { %10953 = sst [smem:[#allocation22_spill]] %s8690_s6 }
  0x30   :  { %10954 = sst [smem:[#allocation23_spill]] %s8695_s20 }
  0x31   :  { %10955 = sst [smem:[#allocation24_spill]] %s8700_s27 }
  0x32   :  { %10956 = sst [smem:[#allocation25_spill]] %s8705_s4 }
  0x33   :  { %s8710_s6 = sld [smem:[%s10884_s0 + %s8561_s7]]   ;;  %s8565_s7 = smov 30  }
  0x34   :  { %s8715_s20 = sld [smem:[%s10884_s0 + %s8562_s15]]   ;;  %s8566_s15 = smov 31  }
  0x35   :  { %s8720_s27 = sld [smem:[%s10884_s0 + %s8563_s22]]   ;;  %s8567_s22 = smov 32  }
  0x36   :  { %s8725_s4 = sld [smem:[%s10884_s0 + %s8564_s28]]   ;;  %s8568_s28 = smov 33  }
  0x39   :  { %10957 = sst [smem:[#allocation26_spill]] %s8710_s6 }
  0x3a   :  { %10958 = sst [smem:[#allocation27_spill]] %s8715_s20 }
  0x3b   :  { %10959 = sst [smem:[#allocation28_spill]] %s8720_s27 }
  0x3c   :  { %10960 = sst [smem:[#allocation29_spill]] %s8725_s4 }
  0x3d   :  { %s8730_s6 = sld [smem:[%s10884_s0 + %s8565_s7]]  }
  0x3e   :  { %s8735_s20 = sld [smem:[%s10884_s0 + %s8566_s15]]  }
  0x3f   :  { %s8740_s27 = sld [smem:[%s10884_s0 + %s8567_s22]]  }
  0x40   :  { %s8745_s4 = sld [smem:[%s10884_s0 + %s8568_s28]]  }
  0x43   :  { %10961 = sst [smem:[#allocation30_spill]] %s8730_s6 }
  0x44   :  { %72 = vsyncpa [#allocation5], 0 }
  0x45   :  { %74 = vsyncpa [#allocation5 + $0x1], 0  ;;  %s8747_s7 = smov 0   ;;  %s8749_s10 = smov 0  }
  0x46   :  { %s8751_s11 = smov 0   ;;  %s8753_s15 = smov 0  }
  0x47 LB: > { %s10962_s14 = sld [smem:[#allocation12_spill]]  ;;  %s8768_s0 = sadd.s32 4294967295, %s8534_s15   ;;  %s8534_s15 = sphi %s8753_s15, %s11233_s15   ;;  %s8530_s11 = sphi %s8751_s11, %s11232_s11   ;;  %s8526_s10 = sphi %s8749_s10, %s11231_s10   ;;  %s8522_s7 = sphi %s8747_s7, %s11230_s7  }
  0x48   : > { %s10963_s13 = sld [smem:[#allocation9_spill]]  ;;  %s6968_s16 = sadd.s32 4294967294, %s8534_s15  }
  0x49   : > { %s10964_s9 = sld [smem:[#allocation8_spill]]  ;;  %s8772_s18 = sadd.s32 1, %s8534_s15  }
  0x4a   : > { %s10965_s3 = sld [smem:[#allocation10_spill]]  ;;  %s785_s22 = sadd.s32 1, %s8530_s11 }
  0x4b   : > { %s782_s23 = ssub.s32 %s8534_s15, %s8772_s18  ;;  %p795_p0 = scmp.ne.s32.totalorder %s8530_s11, %s8526_s10 }
  0x4c   : > { %p783_p1 = scmp.eq.s32.totalorder %s782_s23, 0  ;;  %p796_p2 = scmp.eq.s32.totalorder %s8768_s0, 1 }
  0x4d   : > { %p801_p3 = scmp.ne.s32.totalorder %s8526_s10, %s8522_s7  ;;  %p802_p4 = scmp.eq.s32.totalorder %s6968_s16, 1 }
  0x4e   : > { %s8783_s26 = scalar_select %p783_p1, %s8530_s11, %s785_s22  }
  0x4f   : > { %p8785_p5 = por %p796_p2, %p795_p0  ;;  %p8789_p6 = por %p802_p4, %p801_p3 }
  0x50   : > { %p6971_p7 = scmp.ge.s32.totalorder %s8534_s15, 1  ;;  %p924_p8 = scmp.lt.s32.totalorder %s8534_s15, 3 }
  0x52   : > { %p925_p9 = pnand %p6971_p7, %p924_p8 }
  0x54   : > { %928 = sbr.rel (%p925_p9) target bundleno = 4121 (0x1019), region = 152 }
  0x59   : > { %s10968_s5 = sld [smem:[#allocation7_spill]]  ;;  %p1008_p10 = scmp.lt.s32.totalorder %s8768_s0, 1  ;;  %v6977_v14 = vld [vmem:[%s10964_s9] sm:$0xf]  ;;  %v7965_v16 = vld [vmem:[%s10964_s9 + $0x4] sm:$0xf0] }
  0x5a   : > { %v7964_v17 = vld [vmem:[%s10964_s9 + $0x4] sm:$0xf]  ;;  %v6979_v19 = vld [vmem:[%s10964_s9 + $0x8] sm:$0xf0]  ;;  %v7073_v20 = vld [vmem:[%s10964_s9 + $0x40] sm:$0xf]  ;;  %v6978_v24 = vor.u32 %v7965_v16, %v6977_v14 }
  0x5b   : > { %s1009_s2 = scalar_select %p1008_p10, %s8768_s0, 1  ;;  %v7989_v21 = vld [vmem:[%s10964_s9 + $0x44] sm:$0xf0]  ;;  %v7988_v22 = vld [vmem:[%s10964_s9 + $0x44] sm:$0xf]  ;;  %v6982_v25 = vor.u32 %v7964_v17, %v6979_v19  ;;  %vm10896_vm0 = vcmask 130048  }
  0x5c   : > { %v7075_v23 = vld [vmem:[%s10964_s9 + $0x48] sm:$0xf0]  ;;  %v7074_v26 = vor.u32 %v7989_v21, %v7073_v20  ;;  %v6985_v28 = vld [vmem:[%s10964_s9 + $0x10] sm:$0xf]  ;;  %v7967_v29 = vld [vmem:[%s10964_s9 + $0x14] sm:$0xf0] }
  0x5d   : > { %s7963_s16 = sshll.u32 %s1009_s2, 7  ;;  %v7078_v27 = vor.u32 %v7988_v22, %v7075_v23  ;;  %v7966_v30 = vld [vmem:[%s10964_s9 + $0x14] sm:$0xf]  ;;  %v6987_v31 = vld [vmem:[%s10964_s9 + $0x18] sm:$0xf0]  ;;  %v6986_v36 = vor.u32 %v7967_v29, %v6985_v28  ;;  %vm10900_vm1 = vcmask 257024  }
  0x5e   : > { %v7081_v32 = vld [vmem:[%s10964_s9 + $0x50] sm:$0xf]  ;;  %v7991_v33 = vld [vmem:[%s10964_s9 + $0x54] sm:$0xf0]  ;;  %v7990_v34 = vld [vmem:[%s10964_s9 + $0x54] sm:$0xf]  ;;  %v6990_v37 = vor.u32 %v7966_v30, %v6987_v31 }
  0x5f   : > { %s8798_s22 = scalar_lea.vmem %s10968_s5, %s7963_s16  ;;  %v7083_v35 = vld [vmem:[%s10964_s9 + $0x58] sm:$0xf0]  ;;  %v7082_v38 = vor.u32 %v7991_v33, %v7081_v32  ;;  %v6993_v40 = vld [vmem:[%s10964_s9 + $0x20] sm:$0xf]  ;;  %v7969_v41 = vld [vmem:[%s10964_s9 + $0x24] sm:$0xf0] }
  0x60   : > { %v8801_v0 = vld [vmem:[%s8798_s22 + $0x38] sm:$0xff]  ;;  %v8809_v2 = vld [vmem:[%s8798_s22 + $0x30] sm:$0xff]  ;;  %v8819_v4 = vld [vmem:[%s8798_s22 + $0x28] sm:$0xff]  ;;  %v7086_v39 = vor.u32 %v7990_v34, %v7083_v35  ;;  %v6994_v48 = vor.u32 %v7969_v41, %v6993_v40  ;;  %vm10899_vm2 = vcmask 261120   ;;  %vm10898_vm3 = vsmask.f32 4352 }
  0x61   : > { %v8804_v1 = vld [vmem:[%s8798_s22 + $0x78] sm:$0xff]  ;;  %1190 = vmatpush.bf16.msra.mxu0 %v8801_v0  ;;  %v8812_v3 = vld [vmem:[%s8798_s22 + $0x70] sm:$0xff]  ;;  %1296 = vmatpush.bf16.msra.mxu2 %v8801_v0  ;;  %v8822_v5 = vld [vmem:[%s8798_s22 + $0x68] sm:$0xff]  ;;  %vm10897_vm4 = vsmask.f32 7424  ;;  %s10926_s23 = smov 16  }
  0x62   : > { %1219 = vmatpush.bf16.msra.mxu1 %v8804_v1  ;;  %1325 = vmatpush.bf16.msra.mxu3 %v8804_v1  ;;  %v8827_v6 = vld [vmem:[%s8798_s22 + $0x20] sm:$0xff]  ;;  %v8839_v8 = vld [vmem:[%s8798_s22 + $0x18] sm:$0xff]  ;;  %v8849_v10 = vld [vmem:[%s8798_s22 + $0x10] sm:$0xff]  ;;  %s11019_s8 = sld [smem:[#allocation11_spill]]  ;;  %s10923_s2 = smov 24  }
  0x63   : > { %v8830_v7 = vld [vmem:[%s8798_s22 + $0x60] sm:$0xff]  ;;  %v8842_v9 = vld [vmem:[%s8798_s22 + $0x58] sm:$0xff]  ;;  %v8852_v11 = vld [vmem:[%s8798_s22 + $0x50] sm:$0xff]  ;;  %s11129_s12 = sld [smem:[#allocation14_spill]] }
  0x64   : > { %v8859_v12 = vld [vmem:[%s8798_s22 + $0x8] sm:$0xff]  ;;  %v8868_v15 = vld [vmem:[%s8798_s22] sm:$0xff]  ;;  %v7001_v52 = vld [vmem:[%s10964_s9 + $0x30] sm:$0xf]  ;;  %s11130_s16 = sld [smem:[#allocation13_spill]] }
  0x65   : > { %1191 = vmatpush.bf16.msra.mxu0 %v8809_v2  ;;  %1297 = vmatpush.bf16.msra.mxu2 %v8809_v2  ;;  %v8862_v13 = vld [vmem:[%s8798_s22 + $0x48] sm:$0xff]  ;;  %v8875_v18 = vld [vmem:[%s8798_s22 + $0x40] sm:$0xff]  ;;  %v7971_v53 = vld [vmem:[%s10964_s9 + $0x34] sm:$0xf0]  ;;  %s11132_s22 = sld [smem:[#allocation16_spill]] }
  0x66   : > { %1220 = vmatpush.bf16.msra.mxu1 %v8812_v3  ;;  %1326 = vmatpush.bf16.msra.mxu3 %v8812_v3  ;;  %v7968_v42 = vld [vmem:[%s10964_s9 + $0x24] sm:$0xf]  ;;  %v6995_v43 = vld [vmem:[%s10964_s9 + $0x28] sm:$0xf0]  ;;  %v7089_v44 = vld [vmem:[%s10964_s9 + $0x60] sm:$0xf]  ;;  %v7002_v60 = vor.u32 %v7971_v53, %v7001_v52 }
  0x67   : > { %v7993_v45 = vld [vmem:[%s10964_s9 + $0x64] sm:$0xf0]  ;;  %v7992_v46 = vld [vmem:[%s10964_s9 + $0x64] sm:$0xf]  ;;  %v7091_v47 = vld [vmem:[%s10964_s9 + $0x68] sm:$0xf0]  ;;  %v6998_v49 = vor.u32 %v7968_v42, %v6995_v43 }
  0x68   : > { %v7090_v50 = vor.u32 %v7993_v45, %v7089_v44  ;;  %v7094_v51 = vor.u32 %v7992_v46, %v7091_v47  ;;  %v7970_v54 = vld [vmem:[%s10964_s9 + $0x34] sm:$0xf]  ;;  %v7003_v55 = vld [vmem:[%s10964_s9 + $0x38] sm:$0xf0]  ;;  %v7097_v56 = vld [vmem:[%s10964_s9 + $0x70] sm:$0xf] }
  0x69   : > { %1192 = vmatpush.bf16.msra.mxu0 %v8819_v4  ;;  %1298 = vmatpush.bf16.msra.mxu2 %v8819_v4  ;;  %v7995_v57 = vld [vmem:[%s10964_s9 + $0x74] sm:$0xf0]  ;;  %v7994_v58 = vld [vmem:[%s10964_s9 + $0x74] sm:$0xf]  ;;  %v7099_v59 = vld [vmem:[%s10964_s9 + $0x78] sm:$0xf0]  ;;  %v7006_v61 = vor.u32 %v7970_v54, %v7003_v55 }
  0x6a   : > { %1221 = vmatpush.bf16.msra.mxu1 %v8822_v5  ;;  %1327 = vmatpush.bf16.msra.mxu3 %v8822_v5  ;;  %v7098_v62 = vor.u32 %v7995_v57, %v7097_v56  ;;  %v7102_v63 = vor.u32 %v7994_v58, %v7099_v59  ;;  %v7105_v14 = vld [vmem:[%s10964_s9 + $0x80] sm:$0xf]  ;;  %v7997_v16 = vld [vmem:[%s10964_s9 + $0x84] sm:$0xf0]  ;;  %v7996_v17 = vld [vmem:[%s10964_s9 + $0x84] sm:$0xf] }
  0x6b   : > { %v7107_v19 = vld [vmem:[%s10964_s9 + $0x88] sm:$0xf0]  ;;  %v7137_v20 = vld [vmem:[%s10964_s9 + $0xc0] sm:$0xf]  ;;  %v8005_v21 = vld [vmem:[%s10964_s9 + $0xc4] sm:$0xf0] }
  0x6c   : > { %v8004_v22 = vld [vmem:[%s10964_s9 + $0xc4] sm:$0xf]  ;;  %v7139_v23 = vld [vmem:[%s10964_s9 + $0xc8] sm:$0xf0]  ;;  %v7113_v28 = vld [vmem:[%s10964_s9 + $0x90] sm:$0xf] }
  0x6d   : > { %1193 = vmatpush.bf16.msra.mxu0 %v8827_v6  ;;  %1299 = vmatpush.bf16.msra.mxu2 %v8827_v6  ;;  %v7999_v29 = vld [vmem:[%s10964_s9 + $0x94] sm:$0xf0]  ;;  %v7998_v30 = vld [vmem:[%s10964_s9 + $0x94] sm:$0xf]  ;;  %v7115_v31 = vld [vmem:[%s10964_s9 + $0x98] sm:$0xf0] }
  0x6e   : > { %1222 = vmatpush.bf16.msra.mxu1 %v8830_v7  ;;  %1328 = vmatpush.bf16.msra.mxu3 %v8830_v7  ;;  %v7145_v32 = vld [vmem:[%s10964_s9 + $0xd0] sm:$0xf]  ;;  %v8007_v33 = vld [vmem:[%s10964_s9 + $0xd4] sm:$0xf0]  ;;  %v8006_v34 = vld [vmem:[%s10964_s9 + $0xd4] sm:$0xf] }
  0x6f   : > { %v7147_v35 = vld [vmem:[%s10964_s9 + $0xd8] sm:$0xf0]  ;;  %v7121_v40 = vld [vmem:[%s10964_s9 + $0xa0] sm:$0xf]  ;;  %v8001_v41 = vld [vmem:[%s10964_s9 + $0xa4] sm:$0xf0] }
  0x70   : > { %v8000_v42 = vld [vmem:[%s10964_s9 + $0xa4] sm:$0xf]  ;;  %v7123_v43 = vld [vmem:[%s10964_s9 + $0xa8] sm:$0xf0]  ;;  %v7153_v44 = vld [vmem:[%s10964_s9 + $0xe0] sm:$0xf] }
  0x71   : > { %1194 = vmatpush.bf16.msra.mxu0 %v8839_v8  ;;  %1300 = vmatpush.bf16.msra.mxu2 %v8839_v8  ;;  %v8009_v45 = vld [vmem:[%s10964_s9 + $0xe4] sm:$0xf0]  ;;  %v8008_v46 = vld [vmem:[%s10964_s9 + $0xe4] sm:$0xf]  ;;  %v7155_v47 = vld [vmem:[%s10964_s9 + $0xe8] sm:$0xf0] }
  0x72   : > { %1223 = vmatpush.bf16.msra.mxu1 %v8842_v9  ;;  %1329 = vmatpush.bf16.msra.mxu3 %v8842_v9  ;;  %v7129_v52 = vld [vmem:[%s10964_s9 + $0xb0] sm:$0xf]  ;;  %v8003_v53 = vld [vmem:[%s10964_s9 + $0xb4] sm:$0xf0]  ;;  %v8002_v54 = vld [vmem:[%s10964_s9 + $0xb4] sm:$0xf] }
  0x73   : > { %v7131_v55 = vld [vmem:[%s10964_s9 + $0xb8] sm:$0xf0]  ;;  %v7161_v56 = vld [vmem:[%s10964_s9 + $0xf0] sm:$0xf]  ;;  %v8011_v57 = vld [vmem:[%s10964_s9 + $0xf4] sm:$0xf0] }
  0x74   : > { %v8010_v58 = vld [vmem:[%s10964_s9 + $0xf4] sm:$0xf]  ;;  %v7163_v59 = vld [vmem:[%s10964_s9 + $0xf8] sm:$0xf0]  ;;  %s11167_s5 = sld [smem:[#allocation20_spill]] }
  0x75   : > { %1195 = vmatpush.bf16.msra.mxu0 %v8849_v10  ;;  %1301 = vmatpush.bf16.msra.mxu2 %v8849_v10  ;;  %s11220_s6 = sld [smem:[#allocation30_spill]] }
  0x76   : > { %1224 = vmatpush.bf16.msra.mxu1 %v8852_v11  ;;  %1330 = vmatpush.bf16.msra.mxu3 %v8852_v11 }
  0x79   : > { %1196 = vmatpush.bf16.msra.mxu0 %v8859_v12  ;;  %1302 = vmatpush.bf16.msra.mxu2 %v8859_v12 }
  0x7a   : > { %1225 = vmatpush.bf16.msra.mxu1 %v8862_v13  ;;  %1331 = vmatpush.bf16.msra.mxu3 %v8862_v13 }
  0x7d   : > { %1197 = vmatpush.bf16.msra.mxu0 %v8868_v15  ;;  %1303 = vmatpush.bf16.msra.mxu2 %v8868_v15 }
  0x7e   : > { %1226 = vmatpush.bf16.msra.mxu1 %v8875_v18  ;;  %1332 = vmatpush.bf16.msra.mxu3 %v8875_v18 }
  0x80   : > { %1198 = vmatmul.bf16.vlgmr.msra.gmra.mxu0 %v6978_v24  ;;  %1304 = vmatmul.bf16.vlgmr.msra.gmra.mxu2 %v7074_v26  ;;  %v7106_v24 = vor.u32 %v7997_v16, %v7105_v14  ;;  %v7138_v26 = vor.u32 %v8005_v21, %v7137_v20  ;;  %v7169_v14 = vld [vmem:[%s10964_s9 + $0x100] sm:$0xf]  ;;  %v8013_v16 = vld [vmem:[%s10964_s9 + $0x104] sm:$0xf0] }
  0x81   : > { %1410 = vmatpush.bf16.msrb.mxu0 %v8801_v0  ;;  %1227 = vmatmul.bf16.vlgmr.msra.gmra.mxu1 %v6982_v25  ;;  %v7110_v25 = vor.u32 %v7996_v17, %v7107_v19  ;;  %v8012_v17 = vld [vmem:[%s10964_s9 + $0x104] sm:$0xf]  ;;  %v7171_v19 = vld [vmem:[%s10964_s9 + $0x108] sm:$0xf0]  ;;  %v7201_v20 = vld [vmem:[%s10964_s9 + $0x140] sm:$0xf] }
  0x82   : > { %1439 = vmatpush.bf16.msrb.mxu1 %v8804_v1  ;;  %1333 = vmatmul.bf16.vlgmr.msra.gmra.mxu3 %v7078_v27  ;;  %v7142_v27 = vor.u32 %v8004_v22, %v7139_v23  ;;  %v8021_v21 = vld [vmem:[%s10964_s9 + $0x144] sm:$0xf0]  ;;  %v8020_v22 = vld [vmem:[%s10964_s9 + $0x144] sm:$0xf]  ;;  %v7203_v23 = vld [vmem:[%s10964_s9 + $0x148] sm:$0xf0] }
  0x83   : > { %1524 = vmatpush.bf16.msrb.mxu2 %v8801_v0  ;;  %1553 = vmatpush.bf16.msrb.mxu3 %v8804_v1 }
  0x85   : > { %1411 = vmatpush.bf16.msrb.mxu0 %v8809_v2 }
  0x86   : > { %1440 = vmatpush.bf16.msrb.mxu1 %v8812_v3 }
  0x87   : > { %1525 = vmatpush.bf16.msrb.mxu2 %v8809_v2  ;;  %1554 = vmatpush.bf16.msrb.mxu3 %v8812_v3 }
  0x89   : > { %1412 = vmatpush.bf16.msrb.mxu0 %v8819_v4 }
  0x8a   : > { %1441 = vmatpush.bf16.msrb.mxu1 %v8822_v5 }
  0x8b   : > { %1526 = vmatpush.bf16.msrb.mxu2 %v8819_v4  ;;  %1555 = vmatpush.bf16.msrb.mxu3 %v8822_v5 }
  0x8d   : > { %1413 = vmatpush.bf16.msrb.mxu0 %v8827_v6 }
  0x8e   : > { %1442 = vmatpush.bf16.msrb.mxu1 %v8830_v7 }
  0x8f   : > { %1527 = vmatpush.bf16.msrb.mxu2 %v8827_v6  ;;  %1556 = vmatpush.bf16.msrb.mxu3 %v8830_v7 }
  0x90   : > { %1203 = vmatmul.bf16.gmra.mxu0 %v6986_v36  ;;  %1309 = vmatmul.bf16.gmra.mxu2 %v7082_v38  ;;  %v7114_v36 = vor.u32 %v7999_v29, %v7113_v28  ;;  %v7146_v38 = vor.u32 %v8007_v33, %v7145_v32  ;;  %v7202_v28 = vor.u32 %v8021_v21, %v7201_v20 }
  0x91   : > { %1414 = vmatpush.bf16.msrb.mxu0 %v8839_v8  ;;  %1232 = vmatmul.bf16.gmra.mxu1 %v6990_v37  ;;  %v7118_v37 = vor.u32 %v7998_v30, %v7115_v31  ;;  %v7206_v29 = vor.u32 %v8020_v22, %v7203_v23 }
  0x92   : > { %1443 = vmatpush.bf16.msrb.mxu1 %v8842_v9  ;;  %1338 = vmatmul.bf16.gmra.mxu3 %v7086_v39  ;;  %v7150_v39 = vor.u32 %v8006_v34, %v7147_v35 }
  0x93   : > { %1528 = vmatpush.bf16.msrb.mxu2 %v8839_v8  ;;  %1557 = vmatpush.bf16.msrb.mxu3 %v8842_v9 }
  0x95   : > { %1415 = vmatpush.bf16.msrb.mxu0 %v8849_v10 }
  0x96   : > { %1444 = vmatpush.bf16.msrb.mxu1 %v8852_v11 }
  0x97   : > { %1529 = vmatpush.bf16.msrb.mxu2 %v8849_v10  ;;  %1558 = vmatpush.bf16.msrb.mxu3 %v8852_v11 }
  0x99   : > { %1416 = vmatpush.bf16.msrb.mxu0 %v8859_v12 }
  0x9a   : > { %1445 = vmatpush.bf16.msrb.mxu1 %v8862_v13 }
  0x9b   : > { %1530 = vmatpush.bf16.msrb.mxu2 %v8859_v12  ;;  %1559 = vmatpush.bf16.msrb.mxu3 %v8862_v13 }
  0x9d   : > { %1417 = vmatpush.bf16.msrb.mxu0 %v8868_v15 }
  0x9e   : > { %1446 = vmatpush.bf16.msrb.mxu1 %v8875_v18 }
  0x9f   : > { %1531 = vmatpush.bf16.msrb.mxu2 %v8868_v15  ;;  %1560 = vmatpush.bf16.msrb.mxu3 %v8875_v18 }
  0xa0   : > { %1208 = vmatmul.bf16.gmra.mxu0 %v6994_v48  ;;  %1314 = vmatmul.bf16.gmra.mxu2 %v7090_v50  ;;  %v7122_v48 = vor.u32 %v8001_v41, %v7121_v40  ;;  %v7154_v50 = vor.u32 %v8009_v45, %v7153_v44  ;;  %v7209_v40 = vld [vmem:[%s10964_s9 + $0x150] sm:$0xf]  ;;  %v8023_v41 = vld [vmem:[%s10964_s9 + $0x154] sm:$0xf0] }
  0xa1   : > { %1638 = vmatpush.bf16.msra.mxu0 %v8801_v0  ;;  %1237 = vmatmul.bf16.gmra.mxu1 %v6998_v49  ;;  %v7126_v49 = vor.u32 %v8000_v42, %v7123_v43  ;;  %v8022_v42 = vld [vmem:[%s10964_s9 + $0x154] sm:$0xf]  ;;  %v7211_v43 = vld [vmem:[%s10964_s9 + $0x158] sm:$0xf0] }
  0xa2   : > { %1667 = vmatpush.bf16.msra.mxu1 %v8804_v1  ;;  %1343 = vmatmul.bf16.gmra.mxu3 %v7094_v51  ;;  %v7158_v51 = vor.u32 %v8008_v46, %v7155_v47 }
  0xa3   : > { %1752 = vmatpush.bf16.msra.mxu2 %v8801_v0  ;;  %1781 = vmatpush.bf16.msra.mxu3 %v8804_v1 }
  0xa5   : > { %1639 = vmatpush.bf16.msra.mxu0 %v8809_v2 }
  0xa6   : > { %1668 = vmatpush.bf16.msra.mxu1 %v8812_v3 }
  0xa7   : > { %1753 = vmatpush.bf16.msra.mxu2 %v8809_v2  ;;  %1782 = vmatpush.bf16.msra.mxu3 %v8812_v3 }
  0xa9   : > { %1640 = vmatpush.bf16.msra.mxu0 %v8819_v4 }
  0xaa   : > { %1669 = vmatpush.bf16.msra.mxu1 %v8822_v5 }
  0xab   : > { %1754 = vmatpush.bf16.msra.mxu2 %v8819_v4  ;;  %1783 = vmatpush.bf16.msra.mxu3 %v8822_v5 }
  0xad   : > { %1641 = vmatpush.bf16.msra.mxu0 %v8827_v6 }
  0xae   : > { %1670 = vmatpush.bf16.msra.mxu1 %v8830_v7 }
  0xaf   : > { %1755 = vmatpush.bf16.msra.mxu2 %v8827_v6  ;;  %1784 = vmatpush.bf16.msra.mxu3 %v8830_v7 }
  0xb0   : > { %1213 = vmatmul.bf16.gmra.mxu0 %v7002_v60  ;;  %1319 = vmatmul.bf16.gmra.mxu2 %v7098_v62  ;;  %v7130_v60 = vor.u32 %v8003_v53, %v7129_v52  ;;  %v7162_v62 = vor.u32 %v8011_v57, %v7161_v56  ;;  %v8017_v56 = vld [vmem:[%s10964_s9 + $0x124] sm:$0xf0]  ;;  %v7187_v57 = vld [vmem:[%s10964_s9 + $0x128] sm:$0xf0] }
  0xb1   : > { %1642 = vmatpush.bf16.msra.mxu0 %v8839_v8  ;;  %1242 = vmatmul.bf16.gmra.mxu1 %v7006_v61  ;;  %v7134_v61 = vor.u32 %v8002_v54, %v7131_v55  ;;  %v7185_v55 = vld [vmem:[%s10964_s9 + $0x120] sm:$0xf] }
  0xb2   : > { %1671 = vmatpush.bf16.msra.mxu1 %v8842_v9  ;;  %1348 = vmatmul.bf16.gmra.mxu3 %v7102_v63  ;;  %v7166_v63 = vor.u32 %v8010_v58, %v7163_v59  ;;  %v7217_v58 = vld [vmem:[%s10964_s9 + $0x160] sm:$0xf]  ;;  %v8025_v59 = vld [vmem:[%s10964_s9 + $0x164] sm:$0xf0] }
  0xb3   : > { %1756 = vmatpush.bf16.msra.mxu2 %v8839_v8  ;;  %1785 = vmatpush.bf16.msra.mxu3 %v8842_v9 }
  0xb5   : > { %1643 = vmatpush.bf16.msra.mxu0 %v8849_v10 }
  0xb6   : > { %1672 = vmatpush.bf16.msra.mxu1 %v8852_v11 }
  0xb7   : > { %1757 = vmatpush.bf16.msra.mxu2 %v8849_v10  ;;  %1786 = vmatpush.bf16.msra.mxu3 %v8852_v11 }
  0xb9   : > { %1644 = vmatpush.bf16.msra.mxu0 %v8859_v12 }
  0xba   : > { %1673 = vmatpush.bf16.msra.mxu1 %v8862_v13 }
  0xbb   : > { %1758 = vmatpush.bf16.msra.mxu2 %v8859_v12  ;;  %1787 = vmatpush.bf16.msra.mxu3 %v8862_v13 }
  0xbd   : > { %1645 = vmatpush.bf16.msra.mxu0 %v8868_v15 }
  0xbe   : > { %1674 = vmatpush.bf16.msra.mxu1 %v8875_v18 }
  0xbf   : > { %1759 = vmatpush.bf16.msra.mxu2 %v8868_v15  ;;  %1788 = vmatpush.bf16.msra.mxu3 %v8875_v18 }
  0xc0   : > { %1418 = vmatmul.bf16.vlgmr.msrb.gmra.mxu0 %v7106_v24  ;;  %1532 = vmatmul.bf16.vlgmr.msrb.gmra.mxu2 %v7138_v26  ;;  %v7170_v24 = vor.u32 %v8013_v16, %v7169_v14 }
  0xc1   : > { %1447 = vmatmul.bf16.vlgmr.msrb.gmra.mxu1 %v7110_v25  ;;  %1866 = vmatpush.bf16.msrb.mxu0 %v8801_v0  ;;  %v7174_v25 = vor.u32 %v8012_v17, %v7171_v19  ;;  %v7218_v19 = vor.u32 %v8025_v59, %v7217_v58  ;;  %v8036_v58 = vld [vmem:[%s10964_s9 + $0x1c4] sm:$0xf]  ;;  %v7267_v59 = vld [vmem:[%s10964_s9 + $0x1c8] sm:$0xf0] }
  0xc2   : > { %1561 = vmatmul.bf16.vlgmr.msrb.gmra.mxu3 %v7142_v27  ;;  %1895 = vmatpush.bf16.msrb.mxu1 %v8804_v1 }
  0xc3   : > { %1980 = vmatpush.bf16.msrb.mxu2 %v8801_v0  ;;  %2009 = vmatpush.bf16.msrb.mxu3 %v8804_v1 }
  0xc5   : > { %1867 = vmatpush.bf16.msrb.mxu0 %v8809_v2 }
  0xc6   : > { %1896 = vmatpush.bf16.msrb.mxu1 %v8812_v3 }
  0xc7   : > { %1981 = vmatpush.bf16.msrb.mxu2 %v8809_v2  ;;  %2010 = vmatpush.bf16.msrb.mxu3 %v8812_v3 }
  0xc9   : > { %1868 = vmatpush.bf16.msrb.mxu0 %v8819_v4 }
  0xca   : > { %1897 = vmatpush.bf16.msrb.mxu1 %v8822_v5 }
  0xcb   : > { %1982 = vmatpush.bf16.msrb.mxu2 %v8819_v4  ;;  %2011 = vmatpush.bf16.msrb.mxu3 %v8822_v5 }
  0xcd   : > { %1869 = vmatpush.bf16.msrb.mxu0 %v8827_v6 }
  0xce   : > { %1898 = vmatpush.bf16.msrb.mxu1 %v8830_v7 }
  0xcf   : > { %1983 = vmatpush.bf16.msrb.mxu2 %v8827_v6  ;;  %2012 = vmatpush.bf16.msrb.mxu3 %v8830_v7 }
  0xd0   : > { %1423 = vmatmul.bf16.gmra.mxu0 %v7114_v36  ;;  %1537 = vmatmul.bf16.gmra.mxu2 %v7146_v38  ;;  %v8015_v38 = vld [vmem:[%s10964_s9 + $0x114] sm:$0xf0] }
  0xd1   : > { %1452 = vmatmul.bf16.gmra.mxu1 %v7118_v37  ;;  %1870 = vmatpush.bf16.msrb.mxu0 %v8839_v8  ;;  %v7177_v37 = vld [vmem:[%s10964_s9 + $0x110] sm:$0xf] }
  0xd2   : > { %1566 = vmatmul.bf16.gmra.mxu3 %v7150_v39  ;;  %1899 = vmatpush.bf16.msrb.mxu1 %v8842_v9  ;;  %v7179_v39 = vld [vmem:[%s10964_s9 + $0x118] sm:$0xf0] }
  0xd3   : > { %1984 = vmatpush.bf16.msrb.mxu2 %v8839_v8  ;;  %2013 = vmatpush.bf16.msrb.mxu3 %v8842_v9 }
  0xd5   : > { %1871 = vmatpush.bf16.msrb.mxu0 %v8849_v10 }
  0xd6   : > { %1900 = vmatpush.bf16.msrb.mxu1 %v8852_v11 }
  0xd7   : > { %1985 = vmatpush.bf16.msrb.mxu2 %v8849_v10  ;;  %2014 = vmatpush.bf16.msrb.mxu3 %v8852_v11 }
  0xd9   : > { %1872 = vmatpush.bf16.msrb.mxu0 %v8859_v12 }
  0xda   : > { %1901 = vmatpush.bf16.msrb.mxu1 %v8862_v13 }
  0xdb   : > { %1986 = vmatpush.bf16.msrb.mxu2 %v8859_v12  ;;  %2015 = vmatpush.bf16.msrb.mxu3 %v8862_v13 }
  0xdd   : > { %1873 = vmatpush.bf16.msrb.mxu0 %v8868_v15 }
  0xde   : > { %1902 = vmatpush.bf16.msrb.mxu1 %v8875_v18 }
  0xdf   : > { %1987 = vmatpush.bf16.msrb.mxu2 %v8868_v15  ;;  %2016 = vmatpush.bf16.msrb.mxu3 %v8875_v18 }
  0xe0   : > { %1428 = vmatmul.bf16.gmra.mxu0 %v7122_v48  ;;  %1542 = vmatmul.bf16.gmra.mxu2 %v7154_v50  ;;  %v7214_v50 = vor.u32 %v8022_v42, %v7211_v43 }
  0xe1   : > { %1457 = vmatmul.bf16.gmra.mxu1 %v7126_v49  ;;  %v7210_v49 = vor.u32 %v8023_v41, %v7209_v40 }
  0xe2   : > { %1571 = vmatmul.bf16.gmra.mxu3 %v7158_v51 }
  0xf0   : > { %1433 = vmatmul.bf16.gmra.mxu0 %v7130_v60  ;;  %1547 = vmatmul.bf16.gmra.mxu2 %v7162_v62  ;;  %v8024_v60 = vld [vmem:[%s10964_s9 + $0x164] sm:$0xf] }
  0xf1   : > { %1462 = vmatmul.bf16.gmra.mxu1 %v7134_v61  ;;  %v7219_v61 = vld [vmem:[%s10964_s9 + $0x168] sm:$0xf0] }
  0xf2   : > { %1576 = vmatmul.bf16.gmra.mxu3 %v7166_v63  ;;  %v7222_v20 = vor.u32 %v8024_v60, %v7219_v61 }
  0xfd   : > { %v1199_v26 = vpop.f32.mrf.mxu0 }
  0xfe   : > { %v1228_v27 = vpop.f32.mrf.mxu1 }
  0xff   : > { %v9048_v30 = vadd.f32 %v1228_v27, %v1199_v26  ;;  %v7193_v26 = vld [vmem:[%s10964_s9 + $0x130] sm:$0xf]  ;;  %v8019_v27 = vld [vmem:[%s10964_s9 + $0x134] sm:$0xf0] }
 0x100   : > { %1646 = vmatmul.bf16.vlgmr.msra.gmra.mxu0 %v7170_v24  ;;  %1760 = vmatmul.bf16.vlgmr.msra.gmra.mxu2 %v7202_v28  ;;  %v8018_v28 = vld [vmem:[%s10964_s9 + $0x134] sm:$0xf] }
 0x101   : > { %1675 = vmatmul.bf16.vlgmr.msra.gmra.mxu1 %v7174_v25  ;;  %2094 = vmatpush.bf16.msra.mxu0 %v8801_v0 }
 0x102   : > { %1789 = vmatmul.bf16.vlgmr.msra.gmra.mxu3 %v7206_v29  ;;  %2123 = vmatpush.bf16.msra.mxu1 %v8804_v1  ;;  %v8014_v1 = vld [vmem:[%s10964_s9 + $0x114] sm:$0xf]  ;;  %v7195_v29 = vld [vmem:[%s10964_s9 + $0x138] sm:$0xf0] }
 0x103   : > { %v1305_v31 = vpop.f32.mrf.mxu2  ;;  %v7182_v46 = vor.u32 %v8014_v1, %v7179_v39  ;;  %v7194_v1 = vor.u32 %v8019_v27, %v7193_v26  ;;  %v7198_v39 = vor.u32 %v8018_v28, %v7195_v29 }
 0x105   : > { %v1334_v32 = vpop.f32.mrf.mxu3  ;;  %v1201_v34 = vpop.f32.mrf.mxu0  ;;  %2095 = vmatpush.bf16.msra.mxu0 %v8809_v2  ;;  %v7178_v2 = vor.u32 %v8015_v38, %v7177_v37 }
 0x106   : > { %v9052_v33 = vadd.f32 %v1334_v32, %v1305_v31  ;;  %v1230_v35 = vpop.f32.mrf.mxu1  ;;  %2124 = vmatpush.bf16.msra.mxu1 %v8812_v3  ;;  %v7225_v31 = vld [vmem:[%s10964_s9 + $0x170] sm:$0xf]  ;;  %v8027_v32 = vld [vmem:[%s10964_s9 + $0x174] sm:$0xf0] }
 0x107   : > { %v9054_v36 = vadd.f32 %v1230_v35, %v1201_v34  ;;  %v8026_v34 = vld [vmem:[%s10964_s9 + $0x174] sm:$0xf]  ;;  %v7227_v35 = vld [vmem:[%s10964_s9 + $0x178] sm:$0xf0]  ;;  %v7226_v43 = vor.u32 %v8027_v32, %v7225_v31  ;;  %v8031_v31 = vld [vmem:[%s10964_s9 + $0x194] sm:$0xf0] }
 0x108   : > { %v1354_v0 = vmax.f32 %v9048_v30, %v9052_v33  ;;  %v8030_v32 = vld [vmem:[%s10964_s9 + $0x194] sm:$0xf] }
 0x109   : > { %2096 = vmatpush.bf16.msra.mxu0 %v8819_v4 }
 0x10a   : > { %2125 = vmatpush.bf16.msra.mxu1 %v8822_v5 }
 0x10b   : > { %v1307_v44 = vpop.f32.mrf.mxu2 }
 0x10d   : > { %v1336_v45 = vpop.f32.mrf.mxu3  ;;  %v1204_v47 = vpop.f32.mrf.mxu0  ;;  %2097 = vmatpush.bf16.msra.mxu0 %v8827_v6 }
 0x10e   : > { %v9070_v3 = vadd.f32 %v1336_v45, %v1307_v44  ;;  %v1233_v48 = vpop.f32.mrf.mxu1  ;;  %2126 = vmatpush.bf16.msra.mxu1 %v8830_v7  ;;  %v7230_v44 = vor.u32 %v8026_v34, %v7227_v35  ;;  %v7243_v34 = vld [vmem:[%s10964_s9 + $0x198] sm:$0xf0]  ;;  %v7273_v35 = vld [vmem:[%s10964_s9 + $0x1d0] sm:$0xf] }
 0x10f   : > { %v9072_v51 = vadd.f32 %v1233_v48, %v1204_v47 }
 0x110   : > { %v1355_v4 = vmax.f32 %v9054_v36, %v9070_v3  ;;  %1651 = vmatmul.bf16.gmra.mxu0 %v7178_v2  ;;  %1765 = vmatmul.bf16.gmra.mxu2 %v7210_v49 }
 0x111   : > { %1680 = vmatmul.bf16.gmra.mxu1 %v7182_v46  ;;  %2098 = vmatpush.bf16.msra.mxu0 %v8839_v8 }
 0x112   : > { %1794 = vmatmul.bf16.gmra.mxu3 %v7214_v50  ;;  %2127 = vmatpush.bf16.msra.mxu1 %v8842_v9  ;;  %v8016_v9 = vld [vmem:[%s10964_s9 + $0x124] sm:$0xf] }
 0x113   : > { %v1310_v5 = vpop.f32.mrf.mxu2  ;;  %v7190_v14 = vor.u32 %v8016_v9, %v7187_v57  ;;  %v7265_v9 = vld [vmem:[%s10964_s9 + $0x1c0] sm:$0xf]  ;;  %v8037_v57 = vld [vmem:[%s10964_s9 + $0x1c4] sm:$0xf0] }
 0x115   : > { %v1339_v6 = vpop.f32.mrf.mxu3  ;;  %v1206_v52 = vpop.f32.mrf.mxu0  ;;  %2099 = vmatpush.bf16.msra.mxu0 %v8849_v10  ;;  %v7186_v10 = vor.u32 %v8017_v56, %v7185_v55  ;;  %v8028_v55 = vld [vmem:[%s10964_s9 + $0x184] sm:$0xf]  ;;  %v7235_v56 = vld [vmem:[%s10964_s9 + $0x188] sm:$0xf0] }
 0x116   : > { %v9080_v7 = vadd.f32 %v1339_v6, %v1310_v5  ;;  %v1235_v53 = vpop.f32.mrf.mxu1  ;;  %2128 = vmatpush.bf16.msra.mxu1 %v8852_v11 }
 0x117   : > { %v9082_v54 = vadd.f32 %v1235_v53, %v1206_v52  ;;  %v7233_v52 = vld [vmem:[%s10964_s9 + $0x180] sm:$0xf]  ;;  %v8029_v53 = vld [vmem:[%s10964_s9 + $0x184] sm:$0xf0] }
 0x118   : > { %v1356_v8 = vmax.f32 %v9072_v51, %v9080_v7 }
 0x119   : > { %2100 = vmatpush.bf16.msra.mxu0 %v8859_v12 }
 0x11a   : > { %2129 = vmatpush.bf16.msra.mxu1 %v8862_v13 }
 0x11b   : > { %v1312_v62 = vpop.f32.mrf.mxu2 }
 0x11d   : > { %v1341_v63 = vpop.f32.mrf.mxu3  ;;  %v1209_v16 = vpop.f32.mrf.mxu0  ;;  %2101 = vmatpush.bf16.msra.mxu0 %v8868_v15 }
 0x11e   : > { %v9098_v11 = vadd.f32 %v1341_v63, %v1312_v62  ;;  %v1238_v17 = vpop.f32.mrf.mxu1  ;;  %2130 = vmatpush.bf16.msra.mxu1 %v8875_v18  ;;  %v7234_v62 = vor.u32 %v8029_v53, %v7233_v52  ;;  %v7238_v63 = vor.u32 %v8028_v55, %v7235_v56 }
 0x11f   : > { %v9100_v21 = vadd.f32 %v1238_v17, %v1209_v16  ;;  %v7266_v17 = vor.u32 %v8037_v57, %v7265_v9  ;;  %v8033_v9 = vld [vmem:[%s10964_s9 + $0x1a4] sm:$0xf0]  ;;  %v8032_v57 = vld [vmem:[%s10964_s9 + $0x1a4] sm:$0xf] }
 0x120   : > { %v1357_v12 = vmax.f32 %v9082_v54, %v9098_v11  ;;  %1656 = vmatmul.bf16.gmra.mxu0 %v7186_v10  ;;  %1770 = vmatmul.bf16.gmra.mxu2 %v7218_v19  ;;  %v7270_v19 = vor.u32 %v8036_v58, %v7267_v59  ;;  %v7251_v58 = vld [vmem:[%s10964_s9 + $0x1a8] sm:$0xf0]  ;;  %v7281_v59 = vld [vmem:[%s10964_s9 + $0x1e0] sm:$0xf] }
 0x121   : > { %1685 = vmatmul.bf16.gmra.mxu1 %v7190_v14 }
 0x122   : > { %1799 = vmatmul.bf16.gmra.mxu3 %v7222_v20 }
 0x123   : > { %v1315_v13 = vpop.f32.mrf.mxu2 }
 0x125   : > { %v1344_v22 = vpop.f32.mrf.mxu3  ;;  %v1211_v15 = vpop.f32.mrf.mxu0 }
 0x126   : > { %v9106_v23 = vadd.f32 %v1344_v22, %v1315_v13  ;;  %v1240_v24 = vpop.f32.mrf.mxu1 }
 0x127   : > { %v9108_v25 = vadd.f32 %v1240_v24, %v1211_v15 }
 0x128   : > { %v1358_v18 = vmax.f32 %v9100_v21, %v9106_v23 }
 0x12b   : > { %v1317_v37 = vpop.f32.mrf.mxu2 }
 0x12d   : > { %v1346_v38 = vpop.f32.mrf.mxu3  ;;  %v1214_v41 = vpop.f32.mrf.mxu0 }
 0x12e   : > { %v9120_v40 = vadd.f32 %v1346_v38, %v1317_v37  ;;  %v1243_v42 = vpop.f32.mrf.mxu1  ;;  %v8039_v37 = vld [vmem:[%s10964_s9 + $0x1d4] sm:$0xf0]  ;;  %v8038_v38 = vld [vmem:[%s10964_s9 + $0x1d4] sm:$0xf] }
 0x12f   : > { %v9122_v45 = vadd.f32 %v1243_v42, %v1214_v41 }
 0x130   : > { %v1359_v2 = vmax.f32 %v9108_v25, %v9120_v40  ;;  %1661 = vmatmul.bf16.gmra.mxu0 %v7194_v1  ;;  %1775 = vmatmul.bf16.gmra.mxu2 %v7226_v43  ;;  %v7275_v1 = vld [vmem:[%s10964_s9 + $0x1d8] sm:$0xf0]  ;;  %v7246_v43 = vor.u32 %v8030_v32, %v7243_v34  ;;  %v8035_v32 = vld [vmem:[%s10964_s9 + $0x1b4] sm:$0xf0]  ;;  %v8034_v34 = vld [vmem:[%s10964_s9 + $0x1b4] sm:$0xf] }
 0x131   : > { %1690 = vmatmul.bf16.gmra.mxu1 %v7198_v39  ;;  %v7278_v36 = vor.u32 %v8038_v38, %v7275_v1  ;;  %v8043_v38 = vld [vmem:[%s10964_s9 + $0x1f4] sm:$0xf0]  ;;  %v8042_v1 = vld [vmem:[%s10964_s9 + $0x1f4] sm:$0xf] }
 0x132   : > { %1804 = vmatmul.bf16.gmra.mxu3 %v7230_v44 }
 0x133   : > { %v1320_v46 = vpop.f32.mrf.mxu2 }
 0x135   : > { %v1349_v47 = vpop.f32.mrf.mxu3  ;;  %v1216_v49 = vpop.f32.mrf.mxu0 }
 0x136   : > { %v9126_v48 = vadd.f32 %v1349_v47, %v1320_v46  ;;  %v1245_v50 = vpop.f32.mrf.mxu1  ;;  %v7274_v47 = vor.u32 %v8039_v37, %v7273_v35  ;;  %v7259_v35 = vld [vmem:[%s10964_s9 + $0x1b8] sm:$0xf0]  ;;  %v7289_v37 = vld [vmem:[%s10964_s9 + $0x1f0] sm:$0xf] }
 0x137   : > { %v9128_v5 = vadd.f32 %v1245_v50, %v1216_v49 }
 0x138   : > { %v1360_v6 = vmax.f32 %v9122_v45, %v9126_v48  ;;  %v7297_v48 = vld [vmem:[%s10964_s9 + $0x200] sm:$0xf] }
 0x13b   : > { %v1322_v60 = vpop.f32.mrf.mxu2 }
 0x13d   : > { %v1351_v61 = vpop.f32.mrf.mxu3  ;;  %v1419_v14 = vpop.f32.mrf.mxu0 }
 0x13e   : > { %v9140_v10 = vadd.f32 %v1351_v61, %v1322_v60  ;;  %v1448_v16 = vpop.f32.mrf.mxu1  ;;  %v8041_v60 = vld [vmem:[%s10964_s9 + $0x1e4] sm:$0xf0]  ;;  %v8040_v61 = vld [vmem:[%s10964_s9 + $0x1e4] sm:$0xf] }
 0x13f   : > { %v1449_v20 = vadd.f32 %v1448_v16, %v1419_v14 }
 0x140   : > { %v1361_v13 = vmax.f32 %v9128_v5, %v9140_v10  ;;  %1874 = vmatmul.bf16.vlgmr.msrb.gmra.mxu0 %v7234_v62  ;;  %1988 = vmatmul.bf16.vlgmr.msrb.gmra.mxu2 %v7266_v17  ;;  %v7283_v62 = vld [vmem:[%s10964_s9 + $0x1e8] sm:$0xf0]  ;;  %v7254_v17 = vor.u32 %v8032_v57, %v7251_v58  ;;  %v8044_v58 = vld [vmem:[%s10964_s9 + $0x204] sm:$0xf] }
 0x141   : > { %v9147_v22 = vmax.f32 %v1354_v0, %v1449_v20  ;;  %1903 = vmatmul.bf16.vlgmr.msrb.gmra.mxu1 %v7238_v63  ;;  %v7241_v0 = vld [vmem:[%s10964_s9 + $0x190] sm:$0xf]  ;;  %v7286_v54 = vor.u32 %v8040_v61, %v7283_v62 }
 0x142   : > { %2017 = vmatmul.bf16.vlgmr.msrb.gmra.mxu3 %v7270_v19  ;;  %v7242_v42 = vor.u32 %v8031_v31, %v7241_v0 }
 0x143   : > { %v1533_v15 = vpop.f32.mrf.mxu2 }
 0x145   : > { %v1562_v24 = vpop.f32.mrf.mxu3  ;;  %v1421_v27 = vpop.f32.mrf.mxu0 }
 0x146   : > { %v9149_v26 = vadd.f32 %v1562_v24, %v1533_v15  ;;  %v1450_v28 = vpop.f32.mrf.mxu1  ;;  %v7282_v15 = vor.u32 %v8041_v60, %v7281_v59  ;;  %v7299_v59 = vld [vmem:[%s10964_s9 + $0x208] sm:$0xf0] }
 0x147   : > { %v1451_v29 = vadd.f32 %v1450_v28, %v1421_v27  ;;  %v7302_v61 = vor.u32 %v8044_v58, %v7299_v59 }
 0x148   : > { %v1582_v30 = vmax.f32 %v9147_v22, %v9149_v26 }
 0x149   : > { %v9156_v33 = vmax.f32 %v1355_v4, %v1451_v29 }
 0x14b   : > { %v9166_v39 = vpop.f32.mrf.mxu2 }
 0x14d   : > { %v9168_v41 = vpop.f32.mrf.mxu3  ;;  %v1424_v44 = vpop.f32.mrf.mxu0 }
 0x14e   : > { %v1453_v46 = vpop.f32.mrf.mxu1 }
 0x14f   : > { %v1454_v3 = vadd.f32 %v1453_v46, %v1424_v44 }
 0x150   : > { %1879 = vmatmul.bf16.gmra.mxu0 %v7242_v42  ;;  %1993 = vmatmul.bf16.gmra.mxu2 %v7274_v47  ;;  %v7291_v42 = vld [vmem:[%s10964_s9 + $0x1f8] sm:$0xf0]  ;;  %v7262_v47 = vor.u32 %v8034_v34, %v7259_v35  ;;  %v7313_v35 = vld [vmem:[%s10964_s9 + $0x220] sm:$0xf] }
 0x151   : > { %v9173_v4 = vmax.f32 %v1356_v8, %v1454_v3  ;;  %1908 = vmatmul.bf16.gmra.mxu1 %v7246_v43  ;;  %v7249_v8 = vld [vmem:[%s10964_s9 + $0x1a0] sm:$0xf]  ;;  %v7294_v25 = vor.u32 %v8042_v1, %v7291_v42  ;;  %v7315_v1 = vld [vmem:[%s10964_s9 + $0x228] sm:$0xf0] }
 0x152   : > { %2022 = vmatmul.bf16.gmra.mxu3 %v7278_v36  ;;  %v7250_v16 = vor.u32 %v8033_v9, %v7249_v8 }
 0x153   : > { %v1538_v49 = vpop.f32.mrf.mxu2 }
 0x155   : > { %v1567_v50 = vpop.f32.mrf.mxu3  ;;  %v1426_v53 = vpop.f32.mrf.mxu0 }
 0x156   : > { %v9175_v52 = vadd.f32 %v1567_v50, %v1538_v49  ;;  %v1455_v55 = vpop.f32.mrf.mxu1  ;;  %v7290_v49 = vor.u32 %v8043_v38, %v7289_v37  ;;  %v8049_v37 = vld [vmem:[%s10964_s9 + $0x224] sm:$0xf0]  ;;  %v8048_v38 = vld [vmem:[%s10964_s9 + $0x224] sm:$0xf] }
 0x157   : > { %v1456_v56 = vadd.f32 %v1455_v55, %v1426_v53 }
 0x158   : > { %v1584_v51 = vmax.f32 %v9173_v4, %v9175_v52  ;;  %v7314_v4 = vor.u32 %v8049_v37, %v7313_v35  ;;  %v7318_v52 = vor.u32 %v8048_v38, %v7315_v1 }
 0x159   : > { %v9182_v7 = vmax.f32 %v1357_v12, %v1456_v56 }
 0x15b   : > { %v9192_v63 = vpop.f32.mrf.mxu2 }
 0x15d   : > { %v9194_v14 = vpop.f32.mrf.mxu3  ;;  %v1429_v19 = vpop.f32.mrf.mxu0 }
 0x15e   : > { %v1458_v20 = vpop.f32.mrf.mxu1 }
 0x15f   : > { %v1459_v11 = vadd.f32 %v1458_v20, %v1429_v19  ;;  %v8047_v20 = vld [vmem:[%s10964_s9 + $0x214] sm:$0xf0] }
 0x160   : > { %1884 = vmatmul.bf16.gmra.mxu0 %v7250_v16  ;;  %1998 = vmatmul.bf16.gmra.mxu2 %v7282_v15  ;;  %v8046_v15 = vld [vmem:[%s10964_s9 + $0x214] sm:$0xf] }
 0x161   : > { %v9199_v12 = vmax.f32 %v1358_v18, %v1459_v11  ;;  %1913 = vmatmul.bf16.gmra.mxu1 %v7254_v17  ;;  %v7257_v18 = vld [vmem:[%s10964_s9 + $0x1b0] sm:$0xf] }
 0x162   : > { %2027 = vmatmul.bf16.gmra.mxu3 %v7286_v54  ;;  %v7258_v46 = vor.u32 %v8035_v32, %v7257_v18  ;;  %v7307_v54 = vld [vmem:[%s10964_s9 + $0x218] sm:$0xf0] }
 0x163   : > { %v1543_v24 = vpop.f32.mrf.mxu2 }
 0x165   : > { %v1572_v27 = vpop.f32.mrf.mxu3  ;;  %v1431_v29 = vpop.f32.mrf.mxu0 }
 0x166   : > { %v9201_v28 = vadd.f32 %v1572_v27, %v1543_v24  ;;  %v1460_v0 = vpop.f32.mrf.mxu1  ;;  %v7310_v24 = vor.u32 %v8046_v15, %v7307_v54 }
 0x167   : > { %v1461_v31 = vadd.f32 %v1460_v0, %v1431_v29 }
 0x168   : > { %v1586_v21 = vmax.f32 %v9199_v12, %v9201_v28 }
 0x169   : > { %v9208_v23 = vmax.f32 %v1359_v2, %v1461_v31 }
 0x16b   : > { %v9218_v43 = vpop.f32.mrf.mxu2 }
 0x16d   : > { %v9220_v44 = vpop.f32.mrf.mxu3  ;;  %v1434_v36 = vpop.f32.mrf.mxu0 }
 0x16e   : > { %v1463_v3 = vpop.f32.mrf.mxu1 }
 0x16f   : > { %v1464_v40 = vadd.f32 %v1463_v3, %v1434_v36 }
 0x170   : > { %1889 = vmatmul.bf16.gmra.mxu0 %v7258_v46  ;;  %2003 = vmatmul.bf16.gmra.mxu2 %v7290_v49 }
 0x171   : > { %v9225_v2 = vmax.f32 %v1360_v6, %v1464_v40  ;;  %1918 = vmatmul.bf16.gmra.mxu1 %v7262_v47  ;;  %v8045_v6 = vld [vmem:[%s10964_s9 + $0x204] sm:$0xf0]  ;;  %v7321_v40 = vld [vmem:[%s10964_s9 + $0x230] sm:$0xf] }
 0x172   : > { %2032 = vmatmul.bf16.gmra.mxu3 %v7294_v25  ;;  %v7298_v60 = vor.u32 %v8045_v6, %v7297_v48 }
 0x173   : > { %v1548_v50 = vpop.f32.mrf.mxu2 }
 0x175   : > { %v1577_v53 = vpop.f32.mrf.mxu3  ;;  %v1436_v56 = vpop.f32.mrf.mxu0 }
 0x176   : > { %v9227_v55 = vadd.f32 %v1577_v53, %v1548_v50  ;;  %v1465_v8 = vpop.f32.mrf.mxu1  ;;  %v8050_v50 = vld [vmem:[%s10964_s9 + $0x234] sm:$0xf]  ;;  %v7323_v53 = vld [vmem:[%s10964_s9 + $0x238] sm:$0xf0] }
 0x177   : > { %v1466_v9 = vadd.f32 %v1465_v8, %v1436_v56  ;;  %v7326_v28 = vor.u32 %v8050_v50, %v7323_v53 }
 0x178   : > { %v1588_v57 = vmax.f32 %v9225_v2, %v9227_v55  ;;  %v8051_v2 = vld [vmem:[%s10964_s9 + $0x234] sm:$0xf0] }
 0x179   : > { %v9234_v45 = vmax.f32 %v1361_v13, %v1466_v9  ;;  %v7305_v13 = vld [vmem:[%s10964_s9 + $0x210] sm:$0xf]  ;;  %v7322_v12 = vor.u32 %v8051_v2, %v7321_v40  ;;  %s11195_s9 = sld [smem:[#allocation24_spill]] }
 0x17a   : > { %v7306_v11 = vor.u32 %v8047_v20, %v7305_v13 }
 0x17b   : > { %10969 = vst [vmem:[#allocation31_spill] sm:$0xff] %v9234_v45  ;;  %v9253_v26 = vpop.f32.mrf.mxu2 }
 0x17d   : > { %v1647_v62 = vpop.f32.mrf.mxu0 }
 0x17e   : > { %v1676_v16 = vpop.f32.mrf.mxu1 }
 0x17f   : > { %v1677_v17 = vadd.f32 %v1676_v16, %v1647_v62 }
 0x180   : > { %2102 = vmatmul.bf16.vlgmr.msra.gmra.mxu0 %v7298_v60 }
 0x181   : > { %v9243_v19 = vmax.f32 %v1582_v30, %v1677_v17  ;;  %2131 = vmatmul.bf16.vlgmr.msra.gmra.mxu1 %v7302_v61  ;;  %v9255_v30 = vpop.f32.mrf.mxu3 }
 0x183   : > { %v9266_v32 = vpop.f32.mrf.mxu2 }
 0x185   : > { %v9245_v5 = vpop.f32.mrf.mxu0 }
 0x186   : > { %v9247_v10 = vpop.f32.mrf.mxu1 }
 0x189   : > { %v9268_v34 = vpop.f32.mrf.mxu3 }
 0x18b   : > { %v9279_v36 = vpop.f32.mrf.mxu2 }
 0x18d   : > { %v1652_v27 = vpop.f32.mrf.mxu0 }
 0x18e   : > { %v1681_v22 = vpop.f32.mrf.mxu1 }
 0x18f   : > { %v1682_v29 = vadd.f32 %v1681_v22, %v1652_v27 }
 0x190   : > { %2107 = vmatmul.bf16.gmra.mxu0 %v7306_v11 }
 0x191   : > { %v9260_v0 = vmax.f32 %v1584_v51, %v1682_v29  ;;  %2136 = vmatmul.bf16.gmra.mxu1 %v7310_v24  ;;  %v9281_v3 = vpop.f32.mrf.mxu3 }
 0x193   : > { %v9291_v55 = vpop.f32.mrf.mxu2 }
 0x195   : > { %v9262_v31 = vpop.f32.mrf.mxu0 }
 0x196   : > { %v9264_v18 = vpop.f32.mrf.mxu1 }
 0x199   : > { %v9293_v56 = vpop.f32.mrf.mxu3 }
 0x19b   : > { %v9301_v59 = vpop.f32.mrf.mxu2 }
 0x19d   : > { %v1657_v51 = vpop.f32.mrf.mxu0 }
 0x19e   : > { %v1686_v42 = vpop.f32.mrf.mxu1 }
 0x19f   : > { %v1687_v46 = vadd.f32 %v1686_v42, %v1657_v51 }
 0x1a0   : > { %2112 = vmatmul.bf16.gmra.mxu0 %v7314_v4 }
 0x1a1   : > { %v9277_v47 = vmax.f32 %v1586_v21, %v1687_v46  ;;  %2141 = vmatmul.bf16.gmra.mxu1 %v7318_v52  ;;  %v9303_v60 = vpop.f32.mrf.mxu3  ;;  %v8052_v46 = vld [vmem:[%s8595_s17] sm:$0xff] }
 0x1a2   : > { %2345 = vmatpush.bf16.msra.mxu2 %v8052_v46 }
 0x1a3   : > { %v9305_v16 = vpop.f32.mrf.mxu2 }
 0x1a5   : > { %v9283_v49 = vpop.f32.mrf.mxu0 }
 0x1a6   : > { %v9285_v25 = vpop.f32.mrf.mxu1 }
 0x1a9   : > { %v9307_v17 = vpop.f32.mrf.mxu3 }
 0x1ad   : > { %v1662_v21 = vpop.f32.mrf.mxu0 }
 0x1ae   : > { %v1691_v8 = vpop.f32.mrf.mxu1 }
 0x1af   : > { %v1692_v9 = vadd.f32 %v1691_v8, %v1662_v21  ;;  %v1791_v21 = vadd.f32 %v9268_v34, %v9266_v32  ;;  %v1793_v32 = vadd.f32 %v9281_v3, %v9279_v36 }
 0x1b0   : > { %2117 = vmatmul.bf16.gmra.mxu0 %v7322_v12 }
 0x1b1   : > { %v9295_v48 = vmax.f32 %v1588_v57, %v1692_v9  ;;  %2146 = vmatmul.bf16.gmra.mxu1 %v7326_v28  ;;  %v9309_v57 = vpop.f32.mrf.mxu2  ;;  %v9311_v15 = vpop.f32.mrf.mxu3  ;;  %v1565_v9 = vadd.f32 %v9168_v41, %v9166_v39 }
 0x1b3   : > { %10970 = vst [vmem:[#allocation32_spill] sm:$0xff] %v9295_v48 }
 0x1b5   : > { %v9297_v6 = vpop.f32.mrf.mxu0 }
 0x1b6   : > { %10971 = vst [vmem:[#allocation33_spill] sm:$0xff] %v9297_v6  ;;  %v9299_v58 = vpop.f32.mrf.mxu1 }
 0x1b7   : > { %10972 = vst [vmem:[#allocation34_spill] sm:$0xff] %v9299_v58 }
 0x1b9   : > { %v9313_v24 = vpop.f32.mrf.mxu2  ;;  %v9315_v27 = vpop.f32.mrf.mxu3 }
 0x1bd   : > { %v1875_v61 = vpop.f32.mrf.mxu0 }
 0x1be   : > { %v1904_v62 = vpop.f32.mrf.mxu1 }
 0x1bf   : > { %v1905_v8 = vadd.f32 %v1904_v62, %v1875_v61 }
 0x1c1   : > { %v9325_v38 = vpop.f32.mrf.mxu2  ;;  %v9327_v1 = vpop.f32.mrf.mxu3 }
 0x1c2   : > { %10973 = vst [vmem:[#allocation35_spill] sm:$0xff] %v9325_v38  ;;  %v1679_v38 = vadd.f32 %v9247_v10, %v9245_v5 }
 0x1c3   : > { %10974 = vst [vmem:[#allocation36_spill] sm:$0xff] %v9327_v1  ;;  %v1810_v1 = vmax.f32 %v9243_v19, %v1791_v21 }
 0x1c5   : > { %v1877_v13 = vpop.f32.mrf.mxu0  ;;  %v1924_v45 = vmax.f32 %v1810_v1, %v1905_v8 }
 0x1c6   : > { %v1906_v20 = vpop.f32.mrf.mxu1 }
 0x1c7   : > { %v1907_v41 = vadd.f32 %v1906_v20, %v1877_v13  ;;  %v1570_v13 = vadd.f32 %v9194_v14, %v9192_v63 }
 0x1c9   : > { %v1989_v51 = vpop.f32.mrf.mxu2  ;;  %v2018_v42 = vpop.f32.mrf.mxu3 }
 0x1ca   : > { %v2019_v46 = vadd.f32 %v2018_v42, %v1989_v51 }
 0x1cc   : > { %v2038_v34 = vmax.f32 %v1924_v45, %v2019_v46 }
 0x1cd   : > { %v1880_v54 = vpop.f32.mrf.mxu0 }
 0x1ce   : > { %v1909_v11 = vpop.f32.mrf.mxu1 }
 0x1cf   : > { %v1910_v3 = vadd.f32 %v1909_v11, %v1880_v54 }
 0x1d1   : > { %v1991_v50 = vpop.f32.mrf.mxu2  ;;  %v2020_v53 = vpop.f32.mrf.mxu3 }
 0x1d2   : > { %v2021_v51 = vadd.f32 %v2020_v53, %v1991_v50  ;;  %v9360_v50 = vld [vmem:[%s10963_s13] ss:$0 sm:$0xff] }
 0x1d5   : > { %v9317_v22 = vpop.f32.mrf.mxu0 }
 0x1d6   : > { %v9319_v29 = vpop.f32.mrf.mxu1 }
 0x1d7   : > { %v1912_v8 = vadd.f32 %v9319_v29, %v9317_v22 }
 0x1d9   : > { %v1994_v58 = vpop.f32.mrf.mxu2  ;;  %v2023_v6 = vpop.f32.mrf.mxu3 }
 0x1dd   : > { %v9321_v35 = vpop.f32.mrf.mxu0 }
 0x1de   : > { %v9323_v37 = vpop.f32.mrf.mxu1 }
 0x1e1   : > { %v1996_v21 = vpop.f32.mrf.mxu2  ;;  %v2025_v36 = vpop.f32.mrf.mxu3 }
 0x1e5   : > { %v9329_v4 = vpop.f32.mrf.mxu0 }
 0x1e6   : > { %v9331_v52 = vpop.f32.mrf.mxu1 }
 0x1ed   : > { %v9334_v40 = vpop.f32.mrf.mxu0 }
 0x1ee   : > { %v9336_v2 = vpop.f32.mrf.mxu1 }
 0x1f5   : > { %v9338_v12 = vpop.f32.mrf.mxu0 }
 0x1f6   : > { %10975 = vst [vmem:[#allocation37_spill] sm:$0xff] %v9338_v12  ;;  %v9340_v28 = vpop.f32.mrf.mxu1 }
 0x1f7   : > { %10976 = vst [vmem:[#allocation38_spill] sm:$0xff] %v9340_v28  ;;  %v1583_v28 = vmax.f32 %v9156_v33, %v1565_v9  ;;  %v1796_v33 = vadd.f32 %v9293_v56, %v9291_v55  ;;  %v1684_v55 = vadd.f32 %v9264_v18, %v9262_v31  ;;  %v1999_v9 = vpop.f32.mrf.mxu2  ;;  %v2028_v31 = vpop.f32.mrf.mxu3 }
 0x1f9   : > { %v1697_v39 = vmax.f32 %v1583_v28, %v1679_v38  ;;  %v1812_v20 = vmax.f32 %v9260_v0, %v1796_v33  ;;  %v2024_v38 = vadd.f32 %v2023_v6, %v1994_v58  ;;  %v1798_v28 = vadd.f32 %v9303_v60, %v9301_v59  ;;  %v9369_v6 = vld [vmem:[%s10963_s13 + $0x1] ss:$0 sm:$0xff] }
 0x1fa   : > { %v1575_v33 = vadd.f32 %v9220_v44, %v9218_v43  ;;  %v1803_v43 = vadd.f32 %v9311_v15, %v9309_v57 }
 0x1fb   : > { %v1811_v62 = vmax.f32 %v1697_v39, %v1793_v32  ;;  %v1926_v56 = vmax.f32 %v1812_v20, %v1910_v3  ;;  %v2026_v32 = vadd.f32 %v2025_v36, %v1996_v21  ;;  %v1801_v39 = vadd.f32 %v9307_v17, %v9305_v16 }
 0x1fc   : > { %v2029_v21 = vadd.f32 %v2028_v31, %v1999_v9  ;;  %v1689_v17 = vadd.f32 %v9285_v25, %v9283_v49  ;;  %v1580_v31 = vadd.f32 %v9255_v30, %v9253_v26 }
 0x1fd   : > { %v2103_v48 = vpop.f32.mrf.mxu0  ;;  %v1925_v5 = vmax.f32 %v1811_v62, %v1907_v41  ;;  %v2040_v63 = vmax.f32 %v1926_v56, %v2024_v38  ;;  %v1917_v38 = vadd.f32 %v9331_v52, %v9329_v4 }
 0x1fe   : > { %v2132_v12 = vpop.f32.mrf.mxu1 }
 0x1ff   : > { %v2133_v61 = vadd.f32 %v2132_v12, %v2103_v48  ;;  %v2039_v42 = vmax.f32 %v1925_v5, %v2021_v51  ;;  %v1585_v12 = vmax.f32 %v9182_v7, %v1570_v13  ;;  %v1915_v5 = vadd.f32 %v9323_v37, %v9321_v35  ;;  %v2001_v36 = vpop.f32.mrf.mxu2 }
 0x200   : > { %v1587_v35 = vmax.f32 %v9208_v23, %v1575_v33 }
 0x201   : > { %v2152_v19 = vmax.f32 %v2038_v34, %v2133_v61  ;;  %v1699_v58 = vmax.f32 %v1585_v12, %v1684_v55 }
 0x202   : > { %v1701_v20 = vmax.f32 %v1587_v35, %v1689_v17 }
 0x203   : > { %2161 = vst.msk [vmem:[#allocation2] sm:$0xff] %vm10896_vm0, %v2152_v19  ;;  %v1813_v7 = vmax.f32 %v1699_v58, %v1798_v28  ;;  %v1920_v58 = vadd.f32 %v9336_v2, %v9334_v40 }
 0x204   : > { %v1815_v56 = vmax.f32 %v1701_v20, %v1803_v43 }
 0x205   : > { %v2105_v10 = vpop.f32.mrf.mxu0  ;;  %v1927_v34 = vmax.f32 %v1813_v7, %v1912_v8 }
 0x206   : > { %v2134_v1 = vpop.f32.mrf.mxu1  ;;  %v1929_v12 = vmax.f32 %v1815_v56, %v1917_v38 }
 0x207   : > { %v2135_v45 = vadd.f32 %v2134_v1, %v2105_v10  ;;  %v2041_v29 = vmax.f32 %v1927_v34, %v2026_v32  ;;  %v2004_v57 = vpop.f32.mrf.mxu2  ;;  %v10979_v32 = vld [vmem:[#allocation34_spill] sm:$0xff]  ;;  %v10980_v34 = vld [vmem:[#allocation31_spill] sm:$0xff] }
 0x209   : > { %v2153_v48 = vmax.f32 %v2039_v42, %v2135_v45  ;;  %v1814_v42 = vmax.f32 %v9277_v47, %v1801_v39  ;;  %v2030_v45 = vpop.f32.mrf.mxu3  ;;  %v10981_v39 = vld [vmem:[#allocation35_spill] sm:$0xff] }
 0x20a   : > { %v2274_v53 = vld [vmem:[#allocation2] sm:$0xff]  ;;  %v2031_v49 = vadd.f32 %v2030_v45, %v2001_v36 }
 0x20b   : > { %2162 = vst.msk [vmem:[#allocation2 + $0x8] sm:$0xff] %vm10896_vm0, %v2153_v48  ;;  %v2284_v0 = vmul.f32 %v9360_v50, %v2274_v53  ;;  %v1928_v3 = vmax.f32 %v1814_v42, %v1915_v5  ;;  %v10983_v5 = vld [vmem:[#allocation37_spill] sm:$0xff] }
 0x20c   : > { %v2043_v52 = vmax.f32 %v1929_v12, %v2031_v49 }
 0x20d   : > { %v2108_v54 = vpop.f32.mrf.mxu0  ;;  %v2294_v60 = vadd.f32 %v9369_v6, %v2284_v0  ;;  %v2042_v44 = vmax.f32 %v1928_v3, %v2029_v21 }
 0x20e   : > { %v2137_v11 = vpop.f32.mrf.mxu1 }
 0x20f   : > { %v2138_v14 = vadd.f32 %v2137_v11, %v2108_v54  ;;  %v2302_v62 = vmax.f32 %v2294_v60, 0.0  ;;  %v1806_v11 = vadd.f32 %v9315_v27, %v9313_v24  ;;  %v10978_v27 = vld [vmem:[#allocation33_spill] sm:$0xff] }
 0x211   : > { %v2154_v18 = vmax.f32 %v2040_v63, %v2138_v14  ;;  %v2033_v15 = vpop.f32.mrf.mxu3 }
 0x212   : > { %v2275_v46 = vld [vmem:[#allocation2 + $0x8] sm:$0xff]  ;;  %v2034_v7 = vadd.f32 %v2033_v15, %v2004_v57  ;;  %v10918_v15 = vmov 0  }
 0x213   : > { %2163 = vst.msk [vmem:[#allocation2 + $0x10] sm:$0xff] %vm10896_vm0, %v2154_v18  ;;  %v2285_v59 = vmul.f32 %v9360_v50, %v2275_v46  ;;  %v10977_v18 = vld [vmem:[#allocation32_spill] sm:$0xff] }
 0x214   : > { %v1816_v46 = vmax.f32 %v10977_v18, %v1806_v11  ;;  %2378 = vst.msk [vmem:[#allocation3 + $0x8] sm:$0xf] %vm10900_vm1, %v10918_v15  ;;  %v8057_v18 = vld [vmem:[%s8605_s25 + $0x20] sm:$0xff] }
 0x215   : > { %v2295_v61 = vadd.f32 %v9369_v6, %v2285_v59  ;;  %v2110_v41 = vpop.f32.mrf.mxu0  ;;  %v1694_v59 = vadd.f32 %v10979_v32, %v10978_v27  ;;  %2376 = vst.msk [vmem:[#allocation3] sm:$0xf] %vm10900_vm1, %v10918_v15 }
 0x216   : > { %v2139_v22 = vpop.f32.mrf.mxu1  ;;  %v1930_v60 = vmax.f32 %v1816_v46, %v1920_v58  ;;  %2377 = vst.msk [vmem:[#allocation3 + $0x4] sm:$0xf] %vm10900_vm1, %v10918_v15 }
 0x217   : > { %v2140_v19 = vadd.f32 %v2139_v22, %v2110_v41  ;;  %v2303_v51 = vmax.f32 %v2295_v61, 0.0  ;;  %v1589_v61 = vmax.f32 %v10980_v34, %v1580_v31  ;;  %v10982_v41 = vld [vmem:[#allocation36_spill] sm:$0xff]  ;;  %2379 = vst.msk [vmem:[#allocation3 + $0xc] sm:$0xf] %vm10900_vm1, %v10918_v15 }
 0x218   : > { %v1808_v22 = vadd.f32 %v10982_v41, %v10981_v39  ;;  %v2044_v26 = vmax.f32 %v1930_v60, %v2034_v7  ;;  %2380 = vst.msk [vmem:[#allocation3 + $0x10] sm:$0xf] %vm10900_vm1, %v10918_v15  ;;  %v8059_v7 = vld [vmem:[%s8605_s25 + $0x30] sm:$0xff] }
 0x219   : > { %v2155_v10 = vmax.f32 %v2041_v29, %v2140_v19  ;;  %v2310_v1 = vpack.c.bf16 %v2303_v51, %v2302_v62  ;;  %v2006_v19 = vpop.f32.mrf.mxu2  ;;  %v2035_v62 = vpop.f32.mrf.mxu3  ;;  %v1703_v51 = vmax.f32 %v1589_v61, %v1694_v59  ;;  %2381 = vst.msk [vmem:[#allocation3 + $0x14] sm:$0xf] %vm10900_vm1, %v10918_v15 }
 0x21a   : > { %v2276_v16 = vld [vmem:[#allocation2 + $0x10] sm:$0xff]  ;;  %v2036_v36 = vadd.f32 %v2035_v62, %v2006_v19  ;;  %2382 = vst.msk [vmem:[#allocation3 + $0x18] sm:$0xf] %vm10900_vm1, %v10918_v15 }
 0x21b   : > { %2164 = vst.msk [vmem:[#allocation2 + $0x18] sm:$0xff] %vm10896_vm0, %v2155_v10  ;;  %7331 = vmatmul.msk.bf16.vlgmr.msra.gmra.mxu2 %vm10896_vm0, %v2310_v1  ;;  %v2286_v13 = vmul.f32 %v9360_v50, %v2276_v16  ;;  %v10984_v10 = vld [vmem:[#allocation38_spill] sm:$0xff]  ;;  %v1817_v21 = vmax.f32 %v1703_v51, %v1808_v22 }
 0x21c   : > { %v1922_v1 = vadd.f32 %v10984_v10, %v10983_v5  ;;  %2383 = vst.msk [vmem:[#allocation3 + $0x1c] sm:$0xf] %vm10900_vm1, %v10918_v15 }
 0x21d   : > { %v2113_v37 = vpop.f32.mrf.mxu0  ;;  %v2296_v25 = vadd.f32 %v9369_v6, %v2286_v13  ;;  %2384 = vst.msk [vmem:[#allocation3 + $0x20] sm:$0xf] %vm10900_vm1, %v10918_v15  ;;  %v2405_v11 = vld [vmem:[#allocation3 + $0x4] sm:$0xf] }
 0x21e   : > { %v2142_v48 = vpop.f32.mrf.mxu1  ;;  %v1931_v17 = vmax.f32 %v1817_v21, %v1922_v1  ;;  %2385 = vst.msk [vmem:[#allocation3 + $0x24] sm:$0xf] %vm10900_vm1, %v10918_v15  ;;  %v2427_v27 = vunpack.c.l.b16 %v2405_v11 }
 0x21f   : > { %v2143_v47 = vadd.f32 %v2142_v48, %v2113_v37  ;;  %v2304_v14 = vmax.f32 %v2296_v25, 0.0  ;;  %2386 = vst.msk [vmem:[#allocation3 + $0x28] sm:$0xf] %vm10900_vm1, %v10918_v15 }
 0x220   : > { %v2045_v48 = vmax.f32 %v1931_v17, %v2036_v36  ;;  %2387 = vst.msk [vmem:[#allocation3 + $0x2c] sm:$0xf] %vm10900_vm1, %v10918_v15 }
 0x221   : > { %v2156_v53 = vmax.f32 %v2042_v44, %v2143_v47 }
 0x222   : > { %v2277_v55 = vld [vmem:[#allocation2 + $0x18] sm:$0xff] }
 0x223   : > { %2165 = vst.msk [vmem:[#allocation2 + $0x20] sm:$0xff] %vm10896_vm0, %v2156_v53  ;;  %v2287_v23 = vmul.f32 %v9360_v50, %v2277_v55 }
 0x225   : > { %v2297_v54 = vadd.f32 %v9369_v6, %v2287_v23  ;;  %v2115_v28 = vpop.f32.mrf.mxu0 }
 0x226   : > { %v2144_v4 = vpop.f32.mrf.mxu1 }
 0x227   : > { %v2145_v63 = vadd.f32 %v2144_v4, %v2115_v28  ;;  %v2305_v0 = vmax.f32 %v2297_v54, 0.0  ;;  %v8054_v54 = vld [vmem:[%s8605_s25 + $0x8] sm:$0xff]  ;;  %v8055_v28 = vld [vmem:[%s8605_s25 + $0x10] sm:$0xff]  ;;  %v2648_v4 = vld [vmem:[#allocation3 + $0x4] sm:$0xf] }
 0x228   : > { %2516 = vmatpush.bf16.msra.mxu3 %v8054_v54  ;;  %v2670_v10 = vunpack.c.l.b16 %v2648_v4 }
 0x229   : > { %v2157_v8 = vmax.f32 %v2043_v52, %v2145_v63  ;;  %v2311_v9 = vpack.c.bf16 %v2305_v0, %v2304_v14  ;;  %v2814_v52 = vld [vmem:[#allocation3 + $0x4] sm:$0x8]  ;;  %v9459_v14 = vld [vmem:[%s8600_s21] ss:$0 sm:$0xff]  ;;  %v8058_v0 = vld [vmem:[%s8605_s25 + $0x28] sm:$0xff] }
 0x22a   : > { %v2278_v24 = vld [vmem:[#allocation2 + $0x20] sm:$0xff]  ;;  %3606 = vst.msk [vmem:[#allocation3 + $0x4] sm:$0xf] %vm10900_vm1, %v10918_v15  ;;  %2751 = vmatpush.bf16.msrb.mxu1 %v8058_v0  ;;  %v2822_v1 = vunpack.c.l.b16 %v2814_v52 }
 0x22b   : > { %2166 = vst.msk [vmem:[#allocation2 + $0x28] sm:$0xff] %vm10896_vm0, %v2157_v8  ;;  %7332 = vmatmul.msk.bf16.gmra.mxu2 %vm10896_vm0, %v2311_v9  ;;  %v2288_v29 = vmul.f32 %v9360_v50, %v2278_v24  ;;  %v8053_v63 = vld [vmem:[%s8605_s25] sm:$0xff]  ;;  %v8060_v9 = vld [vmem:[%s8605_s25 + $0x38] sm:$0xff] }
 0x22c   : > { %2517 = vmatpush.bf16.msra.mxu3 %v8053_v63  ;;  %2885 = vmatpush.bf16.msrb.mxu2 %v8060_v9 }
 0x22d   : > { %v2118_v40 = vpop.f32.mrf.mxu0  ;;  %v2298_v16 = vadd.f32 %v9369_v6, %v2288_v29 }
 0x22e   : > { %v2147_v2 = vpop.f32.mrf.mxu1  ;;  %2752 = vmatpush.bf16.msrb.mxu1 %v8057_v18 }
 0x22f   : > { %v2148_v30 = vadd.f32 %v2147_v2, %v2118_v40  ;;  %v2306_v44 = vmax.f32 %v2298_v16, 0.0 }
 0x230   : > { %2886 = vmatpush.bf16.msrb.mxu2 %v8059_v7 }
 0x231   : > { %v2158_v33 = vmax.f32 %v2044_v26, %v2148_v30 }
 0x232   : > { %v2279_v42 = vld [vmem:[#allocation2 + $0x28] sm:$0xff] }
 0x233   : > { %2167 = vst.msk [vmem:[#allocation2 + $0x30] sm:$0xff] %vm10896_vm0, %v2158_v33  ;;  %v2289_v45 = vmul.f32 %v9360_v50, %v2279_v42 }
 0x235   : > { %v2299_v3 = vadd.f32 %v9369_v6, %v2289_v45  ;;  %v2120_v35 = vpop.f32.mrf.mxu0 }
 0x236   : > { %v2149_v37 = vpop.f32.mrf.mxu1 }
 0x237   : > { %v2150_v43 = vadd.f32 %v2149_v37, %v2120_v35  ;;  %v2307_v47 = vmax.f32 %v2299_v3, 0.0 }
 0x239   : > { %v2159_v13 = vmax.f32 %v2045_v48, %v2150_v43  ;;  %v2312_v20 = vpack.c.bf16 %v2307_v47, %v2306_v44 }
 0x23a   : > { %v2280_v38 = vld [vmem:[#allocation2 + $0x30] sm:$0xff] }
 0x23b   : > { %2168 = vst.msk [vmem:[#allocation2 + $0x38] sm:$0xff] %vm10896_vm0, %v2159_v13  ;;  %7333 = vmatmul.msk.bf16.gmra.mxu2 %vm10896_vm0, %v2312_v20  ;;  %v2290_v53 = vmul.f32 %v9360_v50, %v2280_v38 }
 0x23d   : > { %v2300_v49 = vadd.f32 %v9369_v6, %v2290_v53 }
 0x23f   : > { %v2308_v25 = vmax.f32 %v2300_v49, 0.0 }
 0x242   : > { %v2281_v55 = vld [vmem:[#allocation2 + $0x38] sm:$0xff] }
 0x243   : > { %v2291_v56 = vmul.f32 %v9360_v50, %v2281_v55  ;;  %v8056_v50 = vld [vmem:[%s8605_s25 + $0x18] sm:$0xff] }
 0x244   : > { %2617 = vmatpush.bf16.msrb.mxu0 %v8056_v50 }
 0x245   : > { %v2301_v23 = vadd.f32 %v9369_v6, %v2291_v56  ;;  %v2404_v6 = vld [vmem:[#allocation3] sm:$0x8] }
 0x246   : > { %3605 = vst.msk [vmem:[#allocation3] sm:$0xf] %vm10900_vm1, %v10918_v15  ;;  %v2426_v32 = vunpack.c.l.b16 %v2404_v6 }
 0x247   : > { %v2309_v12 = vmax.f32 %v2301_v23, 0.0 }
 0x248   : > { %2618 = vmatpush.bf16.msrb.mxu0 %v8055_v28  ;;  %v2435_v34 = vpack.c.b16 %v2427_v27, %v2426_v32 }
 0x249   : > { %v2313_v57 = vpack.c.bf16 %v2309_v12, %v2308_v25 }
 0x24a   : > { %v2442_v2 = vshrl.u32 %v2435_v34, 16  ;;  %v2445_v39 = vshll.u32 %v2435_v34, 16 }
 0x24b   : > { %7334 = vmatmul.msk.bf16.gmra.mxu2 %vm10896_vm0, %v2313_v57 }
 0x24c   : > { %v2444_v26 = vrot.slane %v2442_v2, 3  ;;  %v2447_v30 = vrot.slane %v2445_v39, 4 }
 0x24e   : > { %v2448_v16 = vor.u32 %v2447_v30, %v2444_v26 }
 0x29e   : > { %v2347_v58 = vpop.f32.mrf.mxu2 }
 0x29f   : > { %v2348_v8 = vadd.f32 %v9459_v14, %v2347_v58 }
 0x2a1   : > { %v2367_v31 = vmax.f32 %v2348_v8, 0.0 }
 0x2a3   : > { %v2388_v46 = vpack.c.bf16 %v2367_v31, %v2367_v31 }
 0x2a5   : > { %2396 = vst.msk [vmem:[#allocation3 + $0x8] sm:$0xf] %vm10900_vm1, %v2388_v46 }
 0x2a6   : > { %v2349_v24 = vpop.f32.mrf.mxu2 }
 0x2a7   : > { %v2350_v59 = vadd.f32 %v9459_v14, %v2349_v24 }
 0x2a9   : > { %v2368_v60 = vmax.f32 %v2350_v59, 0.0 }
 0x2ab   : > { %v2389_v61 = vpack.c.bf16 %v2368_v60, %v2368_v60 }
 0x2ac   : > { %v9470_v29 = vld [vmem:[#allocation3 + $0x8] sm:$0x8] }
 0x2ad   : > { %2397 = vst.msk [vmem:[#allocation3 + $0xc] sm:$0xf] %vm10900_vm1, %v2389_v61 }
 0x2ae   : > { %v2352_v40 = vpop.f32.mrf.mxu2 }
 0x2af   : > { %v2353_v41 = vadd.f32 %v9459_v14, %v2352_v40 }
 0x2b1   : > { %v2369_v22 = vmax.f32 %v2353_v41, 0.0  ;;  %v8062_v41 = vld [vmem:[%s8605_s25 + $0x48] sm:$0xff] }
 0x2b2   : > { %2962 = vmatpush.bf16.msrb.mxu3 %v8062_v41 }
 0x2b3   : > { %v2390_v19 = vpack.c.bf16 %v2369_v22, %v2369_v22 }
 0x2b4   : > { %v9472_v62 = vld [vmem:[#allocation3 + $0x8] sm:$0xff]  }
 0x2b5   : > { %v9474_v51 = vld [vmem:[#allocation3 + $0xc] sm:$0xf]  ;;  %3607 = vst.msk [vmem:[#allocation3 + $0x8] sm:$0xf] %vm10900_vm1, %v10918_v15  ;;  %v8181_v42 = vunpack.c.l.b16 %v9472_v62  ;;  %v2450_v21 = vshrl.u32 %v9472_v62, 16  ;;  %v2453_v36 = vshll.u32 %v9472_v62, 16 }
 0x2b6   : > { %v8365_v5 = vld [vmem:[#allocation3 + $0xc] sm:$0xf]  ;;  %v2354_v45 = vpop.f32.mrf.mxu2  ;;  %2398 = vst.msk [vmem:[#allocation3 + $0x10] sm:$0xf] %vm10900_vm1, %v2390_v19  ;;  %v8064_v19 = vld [vmem:[%s8605_s25 + $0x58] sm:$0xff] }
 0x2b7   : > { %v9476_v33 = vld [vmem:[#allocation3 + $0xc] sm:$0xf]  ;;  %v2355_v17 = vadd.f32 %v9459_v14, %v2354_v45  ;;  %v2583_v3 = vpack.c.b16 %v8181_v42, %v2427_v27  ;;  %v2452_v35 = vrot.slane %v2450_v21, 3  ;;  %v2455_v37 = vrot.slane %v2453_v36, 4  ;;  %3095 = vmatpush.bf16.msra.mxu0 %v8064_v19 }
 0x2b8   : > { %3608 = vst.msk [vmem:[#allocation3 + $0xc] sm:$0xf] %vm10900_vm1, %v10918_v15  ;;  %v2679_v48 = vpack.c.b16 %v8181_v42, %v2670_v10  ;;  %v2824_v43 = vpack.c.b16 %v8181_v42, %v2822_v1 }
 0x2b9   : > { %v2370_v44 = vmax.f32 %v2355_v17, 0.0  ;;  %7355 = vmatmul.msk.bf16.vlgmr.msrb.gmra.mxu0 %vm10899_vm2, %v2583_v3  ;;  %v2456_v47 = vor.u32 %v2455_v37, %v2452_v35 }
 0x2ba   : > { %v2688_v13 = vshll.u32 %v2679_v48, 16  ;;  %v2827_v53 = vshrl.u32 %v2824_v43, 16  ;;  %v2830_v55 = vshll.u32 %v2824_v43, 16  ;;  %v2686_v57 = vshrl.u32 %v2679_v48, 16 }
 0x2bb   : > { %v2391_v20 = vpack.c.bf16 %v2370_v44, %v2370_v44  ;;  %v2457_v38 = vsel %vm10898_vm3, %v2448_v16, %v2456_v47 }
 0x2bc   : > { %7343 = vmatmul.msk.bf16.vlgmr.msra.gmra.mxu3 %vm10899_vm2, %v2457_v38  ;;  %v2690_v23 = vrot.slane %v2688_v13, 1  ;;  %v2829_v50 = vrot.slane %v2827_v53, 3  ;;  %v2832_v6 = vrot.slane %v2830_v55, 4 }
 0x2bd   : > { %2399 = vst.msk [vmem:[#allocation3 + $0x14] sm:$0xf] %vm10900_vm1, %v2391_v20  ;;  %v8367_v49 = vld [vmem:[#allocation3 + $0xc] sm:$0xf0]  }
 0x2be   : > { %v2357_v56 = vpop.f32.mrf.mxu2  ;;  %v8337_v12 = vor.u32 %v8367_v49, %v8365_v5  ;;  %v2691_v4 = vor.u32 %v2690_v23, %v2686_v57  ;;  %v8331_v8 = vld [vmem:[#allocation3 + $0xc] sm:$0xf0]   ;;  %v2833_v31 = vor.u32 %v2832_v6, %v2829_v50  ;;  %v8061_v57 = vld [vmem:[%s8605_s25 + $0x40] sm:$0xff] }
 0x2bf   : > { %v2358_v25 = vadd.f32 %v9459_v14, %v2357_v56  ;;  %v9502_v27 = vld [vmem:[#allocation3 + $0xc] sm:$0xf0]  ;;  %v8274_v59 = vor.u32 %v8331_v8, %v9474_v51  ;;  %v9528_v51 = vld [vmem:[#allocation3 + $0x2c] sm:$0x1]  ;;  %2963 = vmatpush.bf16.msrb.mxu3 %v8061_v57  ;;  %v8065_v8 = vld [vmem:[%s8605_s25 + $0x60] sm:$0xff] }
 0x2c0   : > { %v2693_v11 = vshll.u32 %v8337_v12, 16  ;;  %v2697_v28 = vshrl.u32 %v8337_v12, 16  ;;  %3616 = vst.msk [vmem:[#allocation3 + $0x2c] sm:$0xf] %vm10900_vm1, %v10918_v15  ;;  %v8063_v49 = vld [vmem:[%s8605_s25 + $0x50] sm:$0xff] }
 0x2c1   : > { %v2371_v54 = vmax.f32 %v2358_v25, 0.0  ;;  %3096 = vmatpush.bf16.msra.mxu0 %v8063_v49 }
 0x2c2   : > { %v2695_v63 = vrot.slane %v2693_v11, 1  ;;  %v2834_v0 = vrot.slane %v2697_v28, 3  ;;  %v2835_v58 = vrot.slane %v2693_v11, 4 }
 0x2c3   : > { %v2392_v52 = vpack.c.bf16 %v2371_v54, %v2371_v54 }
 0x2c4   : > { %v9496_v9 = vld [vmem:[#allocation3 + $0x10] sm:$0xff]   ;;  %v2696_v18 = vsel %vm10897_vm4, %v2691_v4, %v2695_v63  ;;  %v2836_v46 = vor.u32 %v2835_v58, %v2834_v0  ;;  %v2699_v35 = vor.u32 %v2697_v28, %v2695_v63  ;;  %v8066_v4 = vld [vmem:[%s8605_s25 + $0x68] sm:$0xff]  ;;  %v8068_v58 = vld [vmem:[%s8605_s25 + $0x78] sm:$0xff] }
 0x2c5   : > { %2400 = vst.msk [vmem:[#allocation3 + $0x18] sm:$0xf] %vm10900_vm1, %v2392_v52  ;;  %v2459_v7 = vshrl.u32 %v9496_v9, 16  ;;  %v2462_v24 = vshll.u32 %v9496_v9, 16  ;;  %7367 = vmatmul.msk.bf16.vlgmr.msrb.gmra.mxu1 %vm10899_vm2, %v2696_v18  ;;  %3282 = vmatpush.bf16.msra.mxu2 %v8068_v58 }
 0x2c6   : > { %v2359_v32 = vpop.f32.mrf.mxu2  ;;  %3609 = vst.msk [vmem:[#allocation3 + $0x10] sm:$0xf] %vm10900_vm1, %v10918_v15  ;;  %v2837_v34 = vsel %vm10898_vm3, %v2833_v31, %v2836_v46  ;;  %3205 = vmatpush.bf16.msra.mxu1 %v8066_v4 }
 0x2c7   : > { %v2360_v60 = vadd.f32 %v9459_v14, %v2359_v32  ;;  %v2461_v61 = vrot.slane %v2459_v7, 3  ;;  %v2464_v40 = vrot.slane %v2462_v24, 4  ;;  %3610 = vst.msk [vmem:[#allocation3 + $0x14] sm:$0xf] %vm10900_vm1, %v10918_v15  ;;  %7379 = vmatmul.msk.bf16.vlgmr.msrb.gmra.mxu2 %vm10899_vm2, %v2837_v34  ;;  %v3039_v58 = vrot.slane %v2462_v24, 1 }
 0x2c9   : > { %v2372_v2 = vmax.f32 %v2360_v60, 0.0  ;;  %7356 = vmatmul.msk.bf16.gmra.mxu0 %vm10899_vm2, %v8274_v59  ;;  %v9518_v39 = vor.u32 %v2464_v40, %v2461_v61 }
 0x2ca   : > { %3206 = vmatpush.bf16.msra.mxu1 %v8065_v8 }
 0x2cb   : > { %v2393_v22 = vpack.c.bf16 %v2372_v2, %v2372_v2  ;;  %v2466_v26 = vsel %vm10898_vm3, %v2456_v47, %v9518_v39 }
 0x2cc   : > { %7344 = vmatmul.msk.bf16.gmra.mxu3 %vm10899_vm2, %v2466_v26 }
 0x2cd   : > { %2401 = vst.msk [vmem:[#allocation3 + $0x1c] sm:$0xf] %vm10900_vm1, %v2393_v22 }
 0x2ce   : > { %v9524_v30 = vld [vmem:[#allocation3 + $0x14] sm:$0xff]   ;;  %v2362_v5 = vpop.f32.mrf.mxu2 }
 0x2cf   : > { %v2701_v10 = vshll.u32 %v9524_v30, 16  ;;  %v2705_v1 = vshrl.u32 %v9524_v30, 16  ;;  %v2363_v42 = vadd.f32 %v9459_v14, %v2362_v5  ;;  %v8332_v47 = vld [vmem:[#allocation3 + $0x14] sm:$0xff]  }
 0x2d0   : > { %v9545_v53 = vld [vmem:[#allocation3 + $0x14] sm:$0xff]  }
 0x2d1   : > { %v2703_v45 = vrot.slane %v2701_v10, 1  ;;  %v2838_v16 = vrot.slane %v2705_v1, 3  ;;  %v2839_v17 = vrot.slane %v2701_v10, 4  ;;  %v2373_v3 = vmax.f32 %v2363_v42, 0.0  ;;  %v9547_v55 = vld [vmem:[#allocation3 + $0x14] sm:$0xff] }
 0x2d3   : > { %v9535_v37 = vor.u32 %v2839_v17, %v2838_v16  ;;  %v2394_v48 = vpack.c.bf16 %v2373_v3, %v2373_v3  ;;  %v2704_v43 = vsel %vm10897_vm4, %v2699_v35, %v2703_v45  ;;  %v2707_v61 = vor.u32 %v2705_v1, %v2703_v45  ;;  %v9602_v35 = vld [vmem:[#allocation3 + $0x28] sm:$0x1] }
 0x2d4   : > { %v9538_v44 = vld [vmem:[#allocation3 + $0x18] sm:$0xff]  }
 0x2d5   : > { %2402 = vst.msk [vmem:[#allocation3 + $0x20] sm:$0xf] %vm10900_vm1, %v2394_v48  ;;  %v2841_v13 = vsel %vm10898_vm3, %v2836_v46, %v9535_v37  ;;  %v2468_v20 = vshrl.u32 %v9538_v44, 16  ;;  %v2471_v38 = vshll.u32 %v9538_v44, 16  ;;  %7368 = vmatmul.msk.bf16.gmra.mxu1 %vm10899_vm2, %v2704_v43  ;;  %v8202_v52 = vunpack.c.h.b16 %v9538_v44  ;;  %v8067_v46 = vld [vmem:[%s8605_s25 + $0x70] sm:$0xff] }
 0x2d6   : > { %v2364_v56 = vpop.f32.mrf.mxu2  ;;  %3611 = vst.msk [vmem:[#allocation3 + $0x18] sm:$0xf] %vm10900_vm1, %v10918_v15  ;;  %3283 = vmatpush.bf16.msra.mxu2 %v8067_v46  ;;  %v9604_v48 = vld [vmem:[#allocation3 + $0x24] sm:$0xf0] }
 0x2d7   : > { %v2365_v23 = vadd.f32 %v9459_v14, %v2364_v56  ;;  %v2470_v25 = vrot.slane %v2468_v20, 3  ;;  %v2473_v12 = vrot.slane %v2471_v38, 4  ;;  %3612 = vst.msk [vmem:[#allocation3 + $0x1c] sm:$0xf] %vm10900_vm1, %v10918_v15  ;;  %7380 = vmatmul.msk.bf16.gmra.mxu2 %vm10899_vm2, %v2841_v13 }
 0x2d9   : > { %v2374_v50 = vmax.f32 %v2365_v23, 0.0  ;;  %7357 = vmatmul.msk.bf16.gmra.mxu0 %vm10899_vm2, %v8332_v47  ;;  %v9563_v14 = vor.u32 %v2473_v12, %v2470_v25 }
 0x2db   : > { %v2395_v6 = vpack.c.bf16 %v2374_v50, %v2374_v50  ;;  %v9568_v54 = vsel %vm10898_vm3, %v9518_v39, %v9563_v14 }
 0x2dc   : > { %7345 = vmatmul.msk.bf16.gmra.mxu3 %vm10899_vm2, %v9568_v54  ;;  %v9572_v11 = vld [vmem:[#allocation3 + $0x20] sm:$0xf] }
 0x2dd   : > { %v2412_v28 = vld [vmem:[#allocation3 + $0x20] sm:$0xf]  ;;  %2403 = vst.msk [vmem:[#allocation3 + $0x24] sm:$0xf] %vm10900_vm1, %v2395_v6  ;;  %v2677_v63 = vunpack.c.l.b16 %v9572_v11 }
 0x2de   : > { %v2434_v0 = vunpack.c.l.b16 %v2412_v28  ;;  %v9583_v26 = vld [vmem:[#allocation3 + $0x1c] sm:$0xff]   ;;  %v3034_v28 = vrot.slane %v2453_v36, 1 }
 0x2df   : > { %v2682_v31 = vpack.c.b16 %v2677_v63, %v8202_v52  ;;  %v9585_v30 = vld [vmem:[#allocation3 + $0x1c] sm:$0xff] }
 0x2e0   : > { %v2439_v18 = vpack.c.b16 %v2434_v0, %v2434_v0  ;;  %v2586_v47 = vpack.c.b16 %v2434_v0, %v8202_v52  ;;  %v8206_v0 = vunpack.c.h.b16 %v9472_v62 }
 0x2e1   : > { %v2709_v32 = vshll.u32 %v2682_v31, 16  ;;  %v2713_v59 = vshrl.u32 %v2682_v31, 16  ;;  %v3142_v31 = vunpack.c.l.b16 %v9470_v29 }
 0x2e2   : > { %v2477_v60 = vshrl.u32 %v2439_v18, 16  ;;  %v2480_v34 = vshll.u32 %v2439_v18, 16  ;;  %v3035_v18 = vor.u32 %v3034_v28, %v2450_v21 }
 0x2e3   : > { %v2711_v40 = vrot.slane %v2709_v32, 1  ;;  %v2842_v2 = vrot.slane %v2713_v59, 3  ;;  %v2843_v41 = vrot.slane %v2709_v32, 4  ;;  %v3144_v32 = vpack.c.b16 %v8206_v0, %v3142_v31 }
 0x2e4   : > { %v2479_v22 = vrot.slane %v2477_v60, 3  ;;  %v2656_v19 = vld [vmem:[#allocation3 + $0x24] sm:$0x1]  ;;  %v2482_v42 = vrot.slane %v2480_v34, 4  ;;  %v3040_v36 = vsel %vm10897_vm4, %v3035_v18, %v3039_v58  ;;  %v8209_v34 = vunpack.c.l.b16 %v9496_v9 }
 0x2e5   : > { %v9587_v5 = vld [vmem:[#allocation3 + $0x24] sm:$0xff]   ;;  %v2712_v1 = vsel %vm10897_vm4, %v2707_v61, %v2711_v40  ;;  %v2844_v45 = vor.u32 %v2843_v41, %v2842_v2  ;;  %v2678_v17 = vunpack.c.l.b16 %v2656_v19  ;;  %v2715_v4 = vor.u32 %v2713_v59, %v2711_v40 }
 0x2e6   : > { %v9589_v10 = vld [vmem:[#allocation3 + $0x20] sm:$0xff]   ;;  %7369 = vmatmul.msk.bf16.gmra.mxu1 %vm10899_vm2, %v2712_v1  ;;  %v9600_v3 = vunpack.c.l.b16 %v9587_v5  ;;  %v2483_v13 = vor.u32 %v2482_v42, %v2479_v22  ;;  %3615 = vst.msk [vmem:[#allocation3 + $0x28] sm:$0xf] %vm10900_vm1, %v10918_v15  ;;  %v3147_v24 = vshrl.u32 %v3144_v32, 16  ;;  %v3150_v59 = vshll.u32 %v3144_v32, 16  ;;  %v8074_v22 = vld [vmem:[%s8605_s25 + $0x88] sm:$0xff] }
 0x2e7   : > { %v9591_v16 = vld [vmem:[#allocation3 + $0x24] sm:$0xf]  ;;  %3613 = vst.msk [vmem:[#allocation3 + $0x20] sm:$0xf] %vm10900_vm1, %v10918_v15  ;;  %v2845_v43 = vsel %vm10898_vm3, %v9535_v37, %v2844_v45  ;;  %v2683_v49 = vpack.c.b16 %v2678_v17, %v2678_v17  ;;  %v3047_v61 = vrot.slane %v2471_v38, 1  ;;  %v3248_v2 = vpack.c.b16 %v8209_v34, %v8206_v0  ;;  %3415 = vmatpush.bf16.msra.mxu3 %v8074_v22 }
 0x2e8   : > { %3614 = vst.msk [vmem:[#allocation3 + $0x24] sm:$0xf] %vm10900_vm1, %v10918_v15  ;;  %7381 = vmatmul.msk.bf16.gmra.mxu2 %vm10899_vm2, %v2845_v43  ;;  %v2825_v56 = vpack.c.b16 %v9600_v3, %v9600_v3  ;;  %v2484_v23 = vsel %vm10898_vm3, %v9563_v14, %v2483_v13  ;;  %v3149_v29 = vrot.slane %v3147_v24, 3  ;;  %v3152_v60 = vrot.slane %v3150_v59, 4  ;;  %v8073_v1 = vld [vmem:[%s8605_s25 + $0x80] sm:$0xff] }
 0x2e9   : > { %7358 = vmatmul.msk.bf16.gmra.mxu0 %vm10899_vm2, %v2586_v47  ;;  %v2717_v37 = vshll.u32 %v2683_v49, 16  ;;  %v3043_v41 = vor.u32 %v3039_v58, %v2459_v7  ;;  %v3051_v7 = vor.u32 %v3047_v61, %v2468_v20  ;;  %v3023_v42 = vunpack.c.l.b16 %v9602_v35 }
 0x2ea   : > { %v2847_v25 = vshrl.u32 %v2825_v56, 16  ;;  %v2850_v12 = vshll.u32 %v2825_v56, 16  ;;  %v3153_v21 = vor.u32 %v3152_v60, %v3149_v29  ;;  %v3361_v0 = vshrl.u32 %v9547_v55, 16 }
 0x2eb   : > { %v2719_v6 = vrot.slane %v2717_v37, 1  ;;  %3416 = vmatpush.bf16.msra.mxu3 %v8073_v1  ;;  %v3369_v59 = vshrl.u32 %v9585_v30, 16 }
 0x2ec   : > { %7346 = vmatmul.msk.bf16.gmra.mxu3 %vm10899_vm2, %v2484_v23  ;;  %v2849_v57 = vrot.slane %v2847_v25, 3  ;;  %v2852_v50 = vrot.slane %v2850_v12, 4  ;;  %v3157_v40 = vsel %vm10898_vm3, %v3153_v21, %v9518_v39  ;;  %v3053_v39 = vshll.u32 %v9589_v10, 16 }
 0x2ed   : > { %v2720_v8 = vsel %vm10897_vm4, %v2715_v4, %v2719_v6  ;;  %v7434_v12 = vor.u32 %v9502_v27, %v9476_v33  ;;  %v3365_v27 = vshll.u32 %v9585_v30, 16  ;;  %v3343_v21 = vunpack.c.l.b16 %v9528_v51 }
 0x2ee   : > { %v2853_v52 = vor.u32 %v2852_v50, %v2849_v57  ;;  %v3055_v38 = vrot.slane %v3053_v39, 1  ;;  %v3163_v17 = vrot.slane %v3053_v39, 4  ;;  %v3357_v50 = vshll.u32 %v9547_v55, 16 }
 0x2ef   : > { %v3352_v57 = vshll.u32 %v7434_v12, 16  ;;  %v3367_v58 = vrot.slane %v3365_v27, 1 }
 0x2f0   : > { %v2854_v46 = vsel %vm10898_vm3, %v2844_v45, %v2853_v52  ;;  %v3056_v19 = vsel %vm10897_vm4, %v3051_v7, %v3055_v38 }
 0x2f1   : > { %v3354_v28 = vrot.slane %v3352_v57, 1  ;;  %v3371_v60 = vor.u32 %v3369_v59, %v3367_v58 }
 0x2f6   : > { %7370 = vmatmul.msk.bf16.gmra.mxu1 %vm10899_vm2, %v2720_v8 }
 0x2f8   : > { %7382 = vmatmul.msk.bf16.gmra.mxu2 %vm10899_vm2, %v2854_v46  ;;  %v7446_v46 = vor.u32 %v9604_v48, %v9591_v16 }
 0x2f9   : > { %7403 = vmatmul.msk.bf16.vlgmr.msra.gmra.mxu0 %vm10899_vm2, %v3040_v36 }
 0x2fa   : > { %v3373_v32 = vshll.u32 %v7446_v46, 16 }
 0x2fc   : > { %7391 = vmatmul.msk.bf16.vlgmr.msrb.gmra.mxu3 %vm10899_vm2, %v9472_v62  ;;  %v3048_v62 = vsel %vm10897_vm4, %v3043_v41, %v3047_v61  ;;  %v3375_v29 = vrot.slane %v3373_v32, 1  ;;  %v10991_v32 = vmov 0 }
 0x2fe   : > { %v3376_v34 = vsel %vm10897_vm4, %v3371_v60, %v3375_v29 }
 0x306   : > { %7415 = vmatmul.msk.bf16.vlgmr.msra.gmra.mxu1 %vm10899_vm2, %v3157_v40  ;;  %v3348_v40 = vpack.c.b16 %v3343_v21, %v3343_v21 }
 0x308   : > { %7427 = vmatmul.msk.bf16.vlgmr.msra.gmra.mxu2 %vm10899_vm2, %v3248_v2  ;;  %v3381_v48 = vshll.u32 %v3348_v40, 16 }
 0x309   : > { %7404 = vmatmul.msk.bf16.gmra.mxu0 %vm10899_vm2, %v3048_v62  ;;  %v3377_v62 = vshrl.u32 %v7446_v46, 16 }
 0x30a   : > { %v3383_v39 = vrot.slane %v3381_v48, 1 }
 0x30b   : > { %v3379_v30 = vor.u32 %v3377_v62, %v3375_v29 }
 0x30c   : > { %7392 = vmatmul.msk.bf16.gmra.mxu3 %vm10899_vm2, %v9496_v9  ;;  %v3057_v9 = vshrl.u32 %v9589_v10, 16 }
 0x30d   : > { %v3384_v51 = vsel %vm10897_vm4, %v3379_v30, %v3383_v39 }
 0x30e   : > { %v3162_v45 = vrot.slane %v3057_v9, 3  ;;  %v3059_v47 = vor.u32 %v3057_v9, %v3055_v38 }
 0x310   : > { %v3164_v43 = vor.u32 %v3163_v17, %v3162_v45 }
 0x312   : > { %v3165_v35 = vsel %vm10898_vm3, %v9563_v14, %v3164_v43 }
 0x316   : > { %7416 = vmatmul.msk.bf16.gmra.mxu1 %vm10899_vm2, %v9568_v54  ;;  %v3028_v54 = vpack.c.b16 %v3023_v42, %v3023_v42 }
 0x318   : > { %7428 = vmatmul.msk.bf16.gmra.mxu2 %vm10899_vm2, %v9545_v53  ;;  %v3061_v20 = vshll.u32 %v3028_v54, 16  ;;  %v3143_v53 = vunpack.c.h.b16 %v9587_v5  ;;  %v2931_v5 = vpack.c.b16 %v9600_v3, %v2677_v63  ;;  %v3350_v63 = vshrl.u32 %v7434_v12, 16 }
 0x319   : > { %7405 = vmatmul.msk.bf16.gmra.mxu0 %vm10899_vm2, %v3056_v19  ;;  %v3359_v3 = vrot.slane %v3357_v50, 1  ;;  %v2169_v12 = vlaneseq }
 0x31a   : > { %v3063_v13 = vrot.slane %v3061_v20, 1  ;;  %v3145_v56 = vpack.c.b16 %v3143_v53, %v3143_v53  ;;  %v3355_v4 = vor.u32 %v3354_v28, %v3350_v63 }
 0x31b   : > { %v3363_v8 = vor.u32 %v3361_v0, %v3359_v3  ;;  %v9750_v57 = vshrl.u32 %v2169_v12, 7 }
 0x31c   : > { %7393 = vmatmul.msk.bf16.gmra.mxu3 %vm10899_vm2, %v9538_v44  ;;  %v3064_v44 = vsel %vm10897_vm4, %v3059_v47, %v3063_v13  ;;  %v3167_v49 = vshrl.u32 %v3145_v56, 16  ;;  %v3170_v23 = vshll.u32 %v3145_v56, 16  ;;  %v3360_v52 = vsel %vm10897_vm4, %v3355_v4, %v3359_v3 }
 0x31d   : > { %v3368_v31 = vsel %vm10897_vm4, %v3363_v8, %v3367_v58  ;;  %10985 = vst [vmem:[#allocation32_spill] sm:$0xff] %v9750_v57  ;;  %v9764_v63 = vadd.s32 8, %v9750_v57  ;;  %v2172_v59 = vadd.s32 16, %v9750_v57 }
 0x31e   : > { %v3169_v25 = vrot.slane %v3167_v49, 3  ;;  %v3172_v14 = vrot.slane %v3170_v23, 4 }
 0x31f   : > { %10988 = vst [vmem:[#allocation33_spill] sm:$0xff] %v9764_v63  ;;  %v2189_v58 = vand.u32 7, %v9764_v63  ;;  %v2196_v40 = vand.u32 7, %v2172_v59 }
 0x320   : > { %v3173_v37 = vor.u32 %v3172_v14, %v3169_v25 }
 0x321   : > { %vm9778_vm7 = vcmp.ge.s32.totalorder %v2189_v58, 1  ;;  %vm9790_vm8 = vcmp.lt.s32.totalorder %v2189_v58, 7  ;;  %vm9797_vm9 = vcmp.ge.s32.totalorder %v2196_v40, 1  ;;  %vm9814_vm10 = vcmp.lt.s32.totalorder %v2196_v40, 7 }
 0x322   : > { %v3174_v6 = vsel %vm10898_vm3, %v3164_v43, %v3173_v37  ;;  %v10992_v32 = vsel %vm9778_vm7, 4294967295, %v10991_v32 }
 0x326   : > { %7417 = vmatmul.msk.bf16.gmra.mxu1 %vm10899_vm2, %v3165_v35 }
 0x328   : > { %7429 = vmatmul.msk.bf16.gmra.mxu2 %vm10899_vm2, %v9583_v26  ;;  %v8218_v26 = vunpack.c.h.b16 %v9589_v10 }
 0x329   : > { %7406 = vmatmul.msk.bf16.gmra.mxu0 %vm10899_vm2, %v3064_v44 }
 0x32a   : > { %v3251_v11 = vpack.c.b16 %v3143_v53, %v8218_v26 }
 0x32c   : > { %7394 = vmatmul.msk.bf16.gmra.mxu3 %vm10899_vm2, %v2931_v5 }
 0x336   : > { %7418 = vmatmul.msk.bf16.gmra.mxu1 %vm10899_vm2, %v3174_v6  ;;  %v2620_v36 = vpop.f32.mrf.mxu0  ;;  %v2182_v6 = vand.u32 7, %v9750_v57 }
 0x338   : > { %7430 = vmatmul.msk.bf16.gmra.mxu2 %vm10899_vm2, %v3251_v11  ;;  %vm9759_vm5 = vcmp.ge.s32.totalorder %v2182_v6, 1  ;;  %vm9771_vm6 = vcmp.lt.s32.totalorder %v2182_v6, 7 }
 0x33c   : > { %7455 = vmatmul.msk.bf16.vlgmr.msra.gmra.mxu3 %vm10899_vm2, %v3360_v52 }
 0x33e   : > { %v2622_v16 = vpop.f32.mrf.mxu0 }
 0x33f   : > { %v9682_v33 = vpop.f32.mrf.mxu3 }
 0x340   : > { %v2563_v27 = vsel %vm9759_vm5, %v9682_v33, 0.0 }
 0x341   : > { %v2640_v8 = vadd.f32 %v2620_v36, %v2563_v27 }
 0x342   : > { %v2754_v55 = vpop.f32.mrf.mxu1 }
 0x346   : > { %v9708_v7 = vpop.f32.mrf.mxu0 }
 0x347   : > { %v9685_v10 = vpop.f32.mrf.mxu3 }
 0x348   : > { %v2564_v36 = vsel %vm9778_vm7, %v9685_v10, 0.0 }
 0x349   : > { %v2641_v62 = vadd.f32 %v2622_v16, %v2564_v36 }
 0x34a   : > { %v2888_v2 = vpop.f32.mrf.mxu2  ;;  %v9702_v41 = vpop.f32.mrf.mxu1 }
 0x34b   : > { %v2908_v33 = vsel %vm9759_vm5, %v2888_v2, 0.0  ;;  %v2799_v39 = vsel %vm9790_vm8, %v9702_v41, 0.0 }
 0x34c   : > { %7456 = vmatmul.msk.bf16.gmra.mxu3 %vm10899_vm2, %v3368_v31  ;;  %v2798_v31 = vsel %vm9771_vm6, %v2754_v55, 0.0  ;;  %v10993_v55 = vmov 0  ;;  %v2807_v6 = vadd.f32 %v2799_v39, %v2641_v62 }
 0x34d   : > { %v2806_v60 = vadd.f32 %v2798_v31, %v2640_v8  ;;  %v10994_v55 = vsel %vm9790_vm8, 4294967295, %v10993_v55 }
 0x34e   : > { %v9718_v9 = vpop.f32.mrf.mxu0 }
 0x34f   : > { %v9690_v18 = vpop.f32.mrf.mxu3  ;;  %v2916_v21 = vadd.f32 %v2908_v33, %v2806_v60 }
 0x350   : > { %v2565_v41 = vsel %vm9797_vm9, %v9690_v18, 0.0 }
 0x351   : > { %v2642_v33 = vadd.f32 %v9708_v7, %v2565_v41 }
 0x352   : > { %v9706_v38 = vpop.f32.mrf.mxu2  ;;  %v9712_v19 = vpop.f32.mrf.mxu1 }
 0x353   : > { %v2909_v12 = vsel %vm9778_vm7, %v9706_v38, 0.0 }
 0x354   : > { %v2917_v31 = vadd.f32 %v2909_v12, %v2807_v6 }
 0x356   : > { %v9726_v20 = vpop.f32.mrf.mxu0 }
 0x357   : > { %v9694_v24 = vpop.f32.mrf.mxu3 }
 0x35a   : > { %v9716_v1 = vpop.f32.mrf.mxu2  ;;  %v9722_v45 = vpop.f32.mrf.mxu1 }
 0x35b   : > { %v2910_v62 = vsel %vm9797_vm9, %v9716_v1, 0.0 }
 0x35c   : > { %7457 = vmatmul.msk.bf16.gmra.mxu3 %vm10899_vm2, %v3376_v34 }
 0x35e   : > { %v9732_v35 = vpop.f32.mrf.mxu0 }
 0x35f   : > { %v9700_v61 = vpop.f32.mrf.mxu3 }
 0x362   : > { %v9724_v17 = vpop.f32.mrf.mxu2 }
 0x363   : > { %v9728_v53 = vpop.f32.mrf.mxu1 }
 0x366   : > { %v9740_v23 = vpop.f32.mrf.mxu0 }
 0x367   : > { %v9704_v22 = vpop.f32.mrf.mxu3 }
 0x36b   : > { %v9730_v47 = vpop.f32.mrf.mxu2  ;;  %v9734_v56 = vpop.f32.mrf.mxu1 }
 0x36c   : > { %7458 = vmatmul.msk.bf16.gmra.mxu3 %vm10899_vm2, %v3384_v51  ;;  %v2173_v51 = vadd.s32 24, %v9750_v57 }
 0x36e   : > { %v9748_v37 = vpop.f32.mrf.mxu0  ;;  %v2203_v59 = vand.u32 7, %v2173_v51 }
 0x36f   : > { %v9714_v42 = vpop.f32.mrf.mxu3 }
 0x370   : > { %vm9822_vm11 = vcmp.ge.s32.totalorder %v2203_v59, 1  ;;  %vm9839_vm12 = vcmp.lt.s32.totalorder %v2203_v59, 7 }
 0x373   : > { %v9738_v49 = vpop.f32.mrf.mxu2  ;;  %v9742_v5 = vpop.f32.mrf.mxu1 }
 0x376   : > { %v3098_v3 = vpop.f32.mrf.mxu0 }
 0x377   : > { %v9720_v54 = vpop.f32.mrf.mxu3  ;;  %v3118_v16 = vsel %vm9771_vm6, %v3098_v3, 0.0 }
 0x37b   : > { %v9746_v14 = vpop.f32.mrf.mxu2  ;;  %v9752_v26 = vpop.f32.mrf.mxu1 }
 0x37e   : > { %v3100_v34 = vpop.f32.mrf.mxu0 }
 0x37f   : > { %v2965_v43 = vpop.f32.mrf.mxu3  ;;  %v3119_v7 = vsel %vm9790_vm8, %v3100_v34, 0.0 }
 0x380   : > { %v2985_v30 = vadd.f32 %v2965_v43, %v2916_v21  ;;  %v2800_v21 = vsel %vm9814_vm10, %v9712_v19, 0.0 }
 0x381   : > { %v2808_v39 = vadd.f32 %v2800_v21, %v2642_v33 }
 0x382   : > { %v3126_v27 = vadd.f32 %v3118_v16, %v2985_v30  ;;  %v2174_v30 = vadd.s32 32, %v9750_v57 }
 0x383   : > { %v9757_v28 = vpop.f32.mrf.mxu2  ;;  %v3208_v52 = vpop.f32.mrf.mxu1  ;;  %v2918_v6 = vadd.f32 %v2910_v62, %v2808_v39 }
 0x384   : > { %v3228_v58 = vsel %vm9759_vm5, %v3208_v52, 0.0  ;;  %v2210_v34 = vand.u32 7, %v2174_v30 }
 0x385   : > { %v3236_v3 = vadd.f32 %v3228_v58, %v3126_v27 }
 0x386   : > { %v3103_v38 = vpop.f32.mrf.mxu0  ;;  %vm9849_vm13 = vcmp.ge.s32.totalorder %v2210_v34, 1  ;;  %vm9863_vm14 = vcmp.lt.s32.totalorder %v2210_v34, 7 }
 0x387   : > { %v2967_v13 = vpop.f32.mrf.mxu3 }
 0x388   : > { %v2986_v60 = vadd.f32 %v2967_v13, %v2917_v31 }
 0x38a   : > { %v3127_v19 = vadd.f32 %v3119_v7, %v2986_v60  ;;  %v2911_v60 = vsel %vm9822_vm11, %v9724_v17, 0.0  ;;  %v2567_v17 = vsel %vm9849_vm13, %v9700_v61, 0.0  ;;  %v2176_v61 = vadd.s32 48, %v9750_v57 }
 0x38b   : > { %v3285_v46 = vpop.f32.mrf.mxu2  ;;  %v3210_v48 = vpop.f32.mrf.mxu1 }
 0x38c   : > { %v3305_v52 = vadd.f32 %v3285_v46, %v3236_v3  ;;  %v2566_v46 = vsel %vm9822_vm11, %v9694_v24, 0.0  ;;  %v3229_v12 = vsel %vm9778_vm7, %v3210_v48, 0.0  ;;  %v2801_v24 = vsel %vm9839_vm12, %v9722_v45, 0.0 }
 0x38d   : > { %v2643_v27 = vadd.f32 %v9718_v9, %v2566_v46  ;;  %v3237_v41 = vadd.f32 %v3229_v12, %v3127_v19  ;;  %v3120_v9 = vsel %vm9814_vm10, %v3103_v38, 0.0  ;;  %v2175_v45 = vadd.s32 40, %v9750_v57 }
 0x38e   : > { %v3105_v58 = vpop.f32.mrf.mxu0  ;;  %v2644_v19 = vadd.f32 %v9726_v20, %v2567_v17  ;;  %vm10906_vm7 = vcmask 195712  }
 0x38f   : > { %v9736_v44 = vpop.f32.mrf.mxu3  ;;  %v2809_v21 = vadd.f32 %v2801_v24, %v2643_v27  ;;  %v2217_v7 = vand.u32 7, %v2175_v45  ;;  %v3121_v34 = vsel %vm9839_vm12, %v3105_v58, 0.0 }
 0x390   : > { %v2987_v31 = vadd.f32 %v9736_v44, %v2918_v6  ;;  %v2912_v6 = vsel %vm9849_vm13, %v9730_v47, 0.0  ;;  %v11009_v47 = vmov 0 }
 0x391   : > { %v2919_v62 = vadd.f32 %v2911_v60, %v2809_v21  ;;  %vm9884_vm15 = vcmp.ge.s32.totalorder %v2217_v7, 1  ;;  %vm9890_vm0 = vcmp.lt.s32.totalorder %v2217_v7, 7  ;;  %v11013_v7 = vmov 0 }
 0x392   : > { %v11010_v47 = vsel %vm9890_vm0, 4294967295, %v11009_v47  ;;  %v2568_v58 = vsel %vm9884_vm15, %v9704_v22, 0.0  ;;  %v2913_v22 = vsel %vm9884_vm15, %v9738_v49, 0.0 }
 0x393   : > { %v3287_v43 = vpop.f32.mrf.mxu2  ;;  %v3213_v36 = vpop.f32.mrf.mxu1 }
 0x394   : > { %v3306_v48 = vadd.f32 %v3287_v43, %v3237_v41  ;;  %v3128_v43 = vadd.f32 %v3120_v9, %v2987_v31  ;;  %v2803_v9 = vsel %vm9890_vm0, %v9734_v56, 0.0 }
 0x397   : > { %v9744_v25 = vpop.f32.mrf.mxu3 }
 0x398   : > { %v2988_v39 = vadd.f32 %v9744_v25, %v2919_v62 }
 0x39a   : > { %v3129_v20 = vadd.f32 %v3121_v34, %v2988_v39 }
 0x39b   : > { %v3290_v16 = vpop.f32.mrf.mxu2  ;;  %v3215_v59 = vpop.f32.mrf.mxu1 }
 0x39c   : > { %v3231_v31 = vsel %vm9822_vm11, %v3215_v59, 0.0 }
 0x39f   : > { %v9754_v50 = vpop.f32.mrf.mxu3 }
 0x3a3   : > { %v3292_v38 = vpop.f32.mrf.mxu2 }
 0x3a7   : > { %v9766_v4 = vpop.f32.mrf.mxu3 }
 0x3ab   : > { %v3295_v59 = vpop.f32.mrf.mxu2 }
 0x3af   : > { %v9783_v29 = vpop.f32.mrf.mxu3 }
 0x3b7   : > { %v9802_v10 = vpop.f32.mrf.mxu3 }
 0x3bf   : > { %v3418_v40 = vpop.f32.mrf.mxu3 }
 0x3c0   : > { %v3438_v13 = vsel %vm9771_vm6, %v3418_v40, 0.0  ;;  %v3230_v40 = vsel %vm9797_vm9, %v3213_v36, 0.0  ;;  %v2802_v36 = vsel %vm9863_vm14, %v9728_v53, 0.0  ;;  %v11007_v53 = vmov 0 }
 0x3c1   : > { %v3446_v51 = vadd.f32 %v3438_v13, %v3305_v52  ;;  %v3238_v13 = vadd.f32 %v3230_v40, %v3128_v43  ;;  %v2810_v27 = vadd.f32 %v2802_v36, %v2644_v19  ;;  %v11008_v53 = vsel %vm9884_vm15, 4294967295, %v11007_v53 }
 0x3c2   : > { %v2177_v40 = vadd.s32 56, %v9750_v57 }
 0x3c3   : > { %3462 = vrot.lane.b32.xlu0 %v3446_v51, %s10926_s23  ;;  %v3108_v51 = vpop.f32.mrf.mxu0  ;;  %v3307_v46 = vadd.f32 %v3290_v16, %v3238_v13  ;;  %v3218_v16 = vpop.f32.mrf.mxu1  ;;  %v2920_v24 = vadd.f32 %v2912_v6, %v2810_v27 }
 0x3c4   : > { %v2231_v36 = vand.u32 7, %v2177_v40 }
 0x3c5   : > { %v2989_v60 = vadd.f32 %v9754_v50, %v2920_v24  ;;  %v3122_v50 = vsel %vm9863_vm14, %v3108_v51, 0.0 }
 0x3c6   : > { %vm9937_vm2 = vcmp.ge.s32.totalorder %v2231_v36, 1  ;;  %vm9943_vm1 = vcmp.lt.s32.totalorder %v2231_v36, 7 }
 0x3c7   : > { %v3420_v33 = vpop.f32.mrf.mxu3  ;;  %v3130_v62 = vadd.f32 %v3122_v50, %v2989_v60  ;;  %v2570_v24 = vsel %vm9937_vm2, %v9720_v54, 0.0  ;;  %v2805_v60 = vsel %vm9943_vm1, %v9752_v26, 0.0 }
 0x3c8   : > { %v3439_v44 = vsel %vm9790_vm8, %v3420_v33, 0.0  ;;  %v3239_v33 = vadd.f32 %v3231_v31, %v3129_v20  ;;  %v11015_v20 = vmov 0  ;;  %vm10905_vm8 = vcmask 1043456  }
 0x3c9   : > { %v3447_v52 = vadd.f32 %v3439_v44, %v3306_v48  ;;  %v2224_v48 = vand.u32 7, %v2176_v61  ;;  %v2645_v44 = vadd.f32 %v9732_v35, %v2568_v58  ;;  %v11016_v20 = vsel %vm9937_vm2, 4294967295, %v11015_v20 }
 0x3ca   : > { %v3308_v21 = vadd.f32 %v3292_v38, %v3239_v33  ;;  %v3232_v38 = vsel %vm9849_vm13, %v3218_v16, 0.0 }
 0x3cb   : > { %3464 = vrot.lane.b32.xlu0 %v3447_v52, %s10926_s23  ;;  %vm9903_vm4 = vcmp.ge.s32.totalorder %v2224_v48, 1  ;;  %v2811_v56 = vadd.f32 %v2803_v9, %v2645_v44  ;;  %v3110_v35 = vpop.f32.mrf.mxu0  ;;  %vm9917_vm3 = vcmp.lt.s32.totalorder %v2224_v48, 7  ;;  %v3220_v13 = vpop.f32.mrf.mxu1  ;;  %v3240_v19 = vadd.f32 %v3232_v38, %v3130_v62 }
 0x3cc   : > { %v11014_v7 = vsel %vm9917_vm3, 4294967295, %v11013_v7  ;;  %v2569_v39 = vsel %vm9903_vm4, %v9714_v42, 0.0  ;;  %v2914_v34 = vsel %vm9903_vm4, %v9746_v14, 0.0  ;;  %v3297_v42 = vpop.f32.mrf.mxu2  ;;  %v3233_v16 = vsel %vm9884_vm15, %v3220_v13, 0.0 }
 0x3cd   : > { %v2921_v49 = vadd.f32 %v2913_v22, %v2811_v56  ;;  %v3309_v6 = vadd.f32 %v3295_v59, %v3240_v19  ;;  %v2647_v9 = vadd.f32 %v9748_v37, %v2570_v24  ;;  %v8452_v24 = vld [vmem:[%s8610_s29 + $0x1] ss:$0 sm:$0xff]  ;;  %vm11041_vm15 = vsmask.f32 4352 }
 0x3cf   : > { %v3423_v12 = vpop.f32.mrf.mxu3  ;;  %v2990_v51 = vadd.f32 %v9766_v4, %v2921_v49 }
 0x3d0   : > { %v3440_v25 = vsel %vm9814_vm10, %v3423_v12, 0.0  ;;  %v2646_v12 = vadd.f32 %v9740_v23, %v2569_v39 }
 0x3d1   : > { %v3448_v41 = vadd.f32 %v3440_v25, %v3307_v46  ;;  %v2804_v46 = vsel %vm9917_vm3, %v9742_v5, 0.0  ;;  %v3123_v25 = vsel %vm9890_vm0, %v3110_v35, 0.0 }
 0x3d2   : > { %v2812_v4 = vadd.f32 %v2804_v46, %v2646_v12  ;;  %v3131_v5 = vadd.f32 %v3123_v25, %v2990_v51 }
 0x3d3   : > { %3466 = vrot.lane.b32.xlu1 %v3448_v41, %s10926_s23  ;;  %v11017_v41 = vmov 0  ;;  %v3113_v31 = vpop.f32.mrf.mxu0  ;;  %v3223_v33 = vpop.f32.mrf.mxu1 }
 0x3d4   : > { %v11018_v41 = vsel %vm9943_vm1, 4294967295, %v11017_v41  ;;  %v2922_v14 = vadd.f32 %v2914_v34, %v2812_v4  ;;  %v3241_v58 = vadd.f32 %v3233_v16, %v3131_v5  ;;  %v3234_v26 = vsel %vm9903_vm4, %v3223_v33, 0.0  ;;  %v8451_v16 = vld [vmem:[%s8610_s29] ss:$0 sm:$0xff] }
 0x3d6   : > { %v2991_v48 = vadd.f32 %v9783_v29, %v2922_v14  ;;  %v3310_v59 = vadd.f32 %v3297_v42, %v3241_v58  ;;  %v2813_v29 = vadd.f32 %v2805_v60, %v2647_v9 }
 0x3d7   : > { %v3425_v45 = vpop.f32.mrf.mxu3 }
 0x3d8   : > { %v3441_v52 = vsel %vm9839_vm12, %v3425_v45, 0.0  ;;  %v3124_v45 = vsel %vm9917_vm3, %v3113_v31, 0.0 }
 0x3d9   : > { %v3449_v17 = vadd.f32 %v3441_v52, %v3308_v21  ;;  %v2915_v21 = vsel %vm9937_vm2, %v9757_v28, 0.0  ;;  %v3132_v22 = vadd.f32 %v3124_v45, %v2991_v48  ;;  %v3300_v52 = vpop.f32.mrf.mxu2 }
 0x3da   : > { %v2923_v37 = vadd.f32 %v2915_v21, %v2813_v29 }
 0x3db   : > { %3468 = vrot.lane.b32.xlu1 %v3449_v17, %s10926_s23  ;;  %v3115_v56 = vpop.f32.mrf.mxu0  ;;  %v3242_v40 = vadd.f32 %v3234_v26, %v3132_v22  ;;  %v3225_v35 = vpop.f32.mrf.mxu1 }
 0x3dc   : > { %v2992_v28 = vadd.f32 %v9802_v10, %v2923_v37  ;;  %v3125_v38 = vsel %vm9943_vm1, %v3115_v56, 0.0  ;;  %v3235_v36 = vsel %vm9937_vm2, %v3225_v35, 0.0 }
 0x3dd   : > { %v3311_v62 = vadd.f32 %v3300_v52, %v3242_v40 }
 0x3de   : > { %v3133_v13 = vadd.f32 %v3125_v38, %v2992_v28 }
 0x3df   : > { %v3428_v61 = vpop.f32.mrf.mxu3 }
 0x3e0   : > { %v3442_v27 = vsel %vm9863_vm14, %v3428_v61, 0.0  ;;  %v3243_v10 = vadd.f32 %v3235_v36, %v3133_v13  ;;  %v3537_v61 = vld [vmem:[%s10965_s3 + $0x8] sm:$0xf] }
 0x3e1   : > { %v3450_v23 = vadd.f32 %v3442_v27, %v3309_v6  ;;  %v3302_v19 = vpop.f32.mrf.mxu2  ;;  %v3547_v34 = vunpack.c.l.b16 %v3537_v61  ;;  %v8075_v27 = vld [vmem:[%s10965_s3] sm:$0xff]  ;;  %s11164_s3 = sld [smem:[#allocation17_spill]] }
 0x3e2   : > { %v3312_v51 = vadd.f32 %v3302_v19, %v3243_v10 }
 0x3e3   : > { %3470 = vrot.lane.b32.xlu2 %v3450_v23, %s10926_s23  ;;  %v3549_v25 = vpack.c.b16 %v3547_v34, %v3547_v34 }
 0x3e5   : > { %v3566_v42 = vsel %vm10905_vm8, %v3549_v25, 0  ;;  %vm10911_vm8 = vcmask 195584  }
 0x3e6   : > { %3574 = vmatpush.bf16.msrb.mxu0 %v3566_v42 }
 0x3e7   : > { %v3430_v44 = vpop.f32.mrf.mxu3 }
 0x3e8   : > { %v3443_v54 = vsel %vm9890_vm0, %v3430_v44, 0.0 }
 0x3e9   : > { %v3451_v50 = vadd.f32 %v3443_v54, %v3310_v59 }
 0x3ea   : > { %3575 = vmatpush.bf16.msrb.mxu0 %v8075_v27 }
 0x3eb   : > { %3472 = vrot.lane.b32.xlu2 %v3451_v50, %s10926_s23 }
 0x3ef   : > { %v3433_v17 = vpop.f32.mrf.mxu3 }
 0x3f0   : > { %v3444_v49 = vsel %vm9917_vm3, %v3433_v17, 0.0 }
 0x3f1   : > { %v3452_v39 = vadd.f32 %v3444_v49, %v3311_v62 }
 0x3f3   : > { %3474 = vrot.lane.b32.xlu0 %v3452_v39, %s10926_s23 }
 0x3f7   : > { %v3435_v46 = vpop.f32.mrf.mxu3 }
 0x3f8   : > { %v3445_v12 = vsel %vm9943_vm1, %v3435_v46, 0.0 }
 0x3f9   : > { %v3453_v6 = vadd.f32 %v3445_v12, %v3312_v51 }
 0x3fb   : > { %3476 = vrot.lane.b32.xlu1 %v3453_v6, %s10926_s23 }
 0x435   : > { %v3463_v4 = vpop.permute.xlu0 %3462 }
 0x436   : > { %3487 = vst.msk [vmem:[#allocation2] sm:$0xff] %vm10906_vm7, %v3463_v4 }
 0x43d   : > { %v3465_v5 = vpop.permute.xlu0 %3464  ;;  %v3471_v23 = vpop.permute.xlu2 %3470  ;;  %v3495_v14 = vld [vmem:[#allocation2] sm:$0xff] }
 0x43e   : > { %3488 = vst.msk [vmem:[#allocation2 + $0x8] sm:$0xff] %vm10906_vm7, %v3465_v5  ;;  %v3505_v31 = vmul.f32 %v8451_v16, %v3495_v14  ;;  %v8077_v5 = vld [vmem:[%s10962_s14 + $0x8] sm:$0xff]  ;;  %v3633_v14 = vld [vmem:[#allocation3] sm:$0x8] }
 0x43f   : > { %3491 = vst.msk [vmem:[#allocation2 + $0x20] sm:$0xff] %vm10906_vm7, %v3471_v23  ;;  %v8079_v23 = vld [vmem:[%s10962_s14 + $0x18] sm:$0xff]  ;;  %3743 = vmatpush.bf16.msrb.mxu1 %v8077_v5 }
 0x440   : > { %v3515_v9 = vadd.f32 %v8452_v24, %v3505_v31  ;;  %3820 = vmatpush.bf16.msrb.mxu2 %v8079_v23  ;;  %v9999_v31 = vld [vmem:[%s11019_s8] ss:$0 sm:$0xff]  ;;  %s11194_s8 = sld [smem:[#allocation25_spill]] }
 0x442   : > { %v3523_v44 = vmax.f32 %v3515_v9, 0.0  ;;  %v3992_v9 = vld [vmem:[#allocation3 + $0x4] sm:$0x8] }
 0x445   : > { %v3467_v58 = vpop.permute.xlu1 %3466  ;;  %v3473_v48 = vpop.permute.xlu2 %3472  ;;  %v3496_v33 = vld [vmem:[#allocation2 + $0x8] sm:$0xff] }
 0x446   : > { %3489 = vst.msk [vmem:[#allocation2 + $0x10] sm:$0xff] %vm10906_vm7, %v3467_v58  ;;  %v3506_v60 = vmul.f32 %v8451_v16, %v3496_v33  ;;  %v3499_v62 = vld [vmem:[#allocation2 + $0x20] sm:$0xff]  ;;  %v8081_v58 = vld [vmem:[%s10962_s14 + $0x28] sm:$0xff] }
 0x447   : > { %3492 = vst.msk [vmem:[#allocation2 + $0x28] sm:$0xff] %vm10906_vm7, %v3473_v48  ;;  %v3509_v38 = vmul.f32 %v8451_v16, %v3499_v62  ;;  %v3634_v33 = vld [vmem:[#allocation3 + $0x4] sm:$0xf]  ;;  %3953 = vmatpush.bf16.msrb.mxu3 %v8081_v58 }
 0x448   : > { %v3516_v59 = vadd.f32 %v8452_v24, %v3506_v60  ;;  %v3851_v60 = vld [vmem:[#allocation3 + $0x4] sm:$0xf] }
 0x449   : > { %v3519_v39 = vadd.f32 %v8452_v24, %v3509_v38 }
 0x44a   : > { %v3524_v21 = vmax.f32 %v3516_v59, 0.0 }
 0x44b   : > { %v3527_v19 = vmax.f32 %v3519_v39, 0.0 }
 0x44c   : > { %v3531_v45 = vpack.c.bf16 %v3524_v21, %v3523_v44 }
 0x44d   : > { %v3469_v54 = vpop.permute.xlu1 %3468  ;;  %v3497_v29 = vld [vmem:[#allocation2 + $0x10] sm:$0xff] }
 0x44e   : > { %3490 = vst.msk [vmem:[#allocation2 + $0x18] sm:$0xff] %vm10906_vm7, %v3469_v54  ;;  %7463 = vmatmul.msk.bf16.vlgmr.msrb.gmra.mxu0 %vm10911_vm8, %v3531_v45  ;;  %v3507_v22 = vmul.f32 %v8451_v16, %v3497_v29  ;;  %v3500_v35 = vld [vmem:[#allocation2 + $0x28] sm:$0xff]  ;;  %v8083_v45 = vld [vmem:[%s10962_s14 + $0x38] sm:$0xff]  ;;  %v8080_v54 = vld [vmem:[%s10962_s14 + $0x20] sm:$0xff] }
 0x44f   : > { %v3510_v17 = vmul.f32 %v8451_v16, %v3500_v35  ;;  %4063 = vmatpush.bf16.msra.mxu0 %v8083_v45  ;;  %3954 = vmatpush.bf16.msrb.mxu3 %v8080_v54 }
 0x450   : > { %v3517_v52 = vadd.f32 %v8452_v24, %v3507_v22  ;;  %v3656_v22 = vunpack.c.l.b16 %v3634_v33 }
 0x451   : > { %v3520_v49 = vadd.f32 %v8452_v24, %v3510_v17 }
 0x452   : > { %v3525_v56 = vmax.f32 %v3517_v52, 0.0  ;;  %v8082_v52 = vld [vmem:[%s10962_s14 + $0x30] sm:$0xff] }
 0x453   : > { %v3528_v36 = vmax.f32 %v3520_v49, 0.0  ;;  %4064 = vmatpush.bf16.msra.mxu0 %v8082_v52 }
 0x455   : > { %v3498_v50 = vld [vmem:[#allocation2 + $0x18] sm:$0xff]  ;;  %v3533_v10 = vpack.c.bf16 %v3528_v36, %v3527_v19  ;;  %v3873_v19 = vunpack.c.l.b16 %v3851_v60 }
 0x456   : > { %v3508_v26 = vmul.f32 %v8451_v16, %v3498_v50  ;;  %v3655_v50 = vunpack.c.l.b16 %v3633_v14 }
 0x458   : > { %v3518_v37 = vadd.f32 %v8452_v24, %v3508_v26 }
 0x45a   : > { %v3526_v40 = vmax.f32 %v3518_v37, 0.0 }
 0x45c   : > { %v3532_v28 = vpack.c.bf16 %v3526_v40, %v3525_v56  ;;  %v3664_v56 = vpack.c.b16 %v3656_v22, %v3655_v50 }
 0x45e   : > { %7464 = vmatmul.msk.bf16.gmra.mxu0 %vm10911_vm8, %v3532_v28  ;;  %v3670_v35 = vshrl.u32 %v3664_v56, 16  ;;  %v3673_v62 = vshll.u32 %v3664_v56, 16 }
 0x460   : > { %v3672_v49 = vrot.slane %v3670_v35, 3 }
 0x465   : > { %v3475_v13 = vpop.permute.xlu0 %3474 }
 0x466   : > { %3493 = vst.msk [vmem:[#allocation2 + $0x30] sm:$0xff] %vm10906_vm7, %v3475_v13  ;;  %v3675_v13 = vrot.slane %v3673_v62, 4 }
 0x46d   : > { %v3477_v51 = vpop.permute.xlu1 %3476  ;;  %v3501_v46 = vld [vmem:[#allocation2 + $0x30] sm:$0xff] }
 0x46e   : > { %3494 = vst.msk [vmem:[#allocation2 + $0x38] sm:$0xff] %vm10906_vm7, %v3477_v51  ;;  %7465 = vmatmul.msk.bf16.gmra.mxu0 %vm10911_vm8, %v3533_v10  ;;  %v3511_v12 = vmul.f32 %v8451_v16, %v3501_v46  ;;  %vm11020_vm7 = vcmask 257024   ;;  %v4000_v10 = vunpack.c.l.b16 %v3992_v9 }
 0x46f   : > { %4842 = vst.msk [vmem:[#allocation3] sm:$0xf] %vm11020_vm7, %v10918_v15  ;;  %vm11021_vm1 = vmmov %vm11020_vm7 }
 0x470   : > { %v3521_v34 = vadd.f32 %v8452_v24, %v3511_v12  ;;  %5419 = vst.msk [vmem:[#allocation3] sm:$0xf] %vm11021_vm1, %v10918_v15  ;;  %vm11022_vm0 = vmmov %vm11021_vm1 }
 0x471   : > { %6045 = vst.msk [vmem:[#allocation3] sm:$0xf] %vm11022_vm0, %v10918_v15  ;;  %vm11024_vm1 = vmmov %vm11022_vm0 }
 0x472   : > { %v3529_v42 = vmax.f32 %v3521_v34, 0.0  ;;  %4843 = vst.msk [vmem:[#allocation3 + $0x4] sm:$0xf] %vm11024_vm1, %v10918_v15  ;;  %vm11025_vm7 = vmmov %vm11022_vm0  ;;  %v3676_v34 = vor.u32 %v3675_v13, %v3672_v49 }
 0x473   : > { %vm11027_vm1 = vmmov %vm11022_vm0 }
 0x474   : > { %vm11031_vm2 = vmmov %vm11022_vm0 }
 0x475   : > { %v3502_v6 = vld [vmem:[#allocation2 + $0x38] sm:$0xff] }
 0x476   : > { %v3512_v61 = vmul.f32 %v8451_v16, %v3502_v6  ;;  %v8078_v16 = vld [vmem:[%s10962_s14 + $0x10] sm:$0xff] }
 0x477   : > { %3821 = vmatpush.bf16.msrb.mxu2 %v8078_v16 }
 0x478   : > { %v3522_v25 = vadd.f32 %v8452_v24, %v3512_v61  ;;  %v8076_v24 = vld [vmem:[%s10962_s14] sm:$0xff] }
 0x479   : > { %3744 = vmatpush.bf16.msrb.mxu1 %v8076_v24 }
 0x47a   : > { %v3530_v27 = vmax.f32 %v3522_v25, 0.0 }
 0x47c   : > { %v3534_v4 = vpack.c.bf16 %v3530_v27, %v3529_v42 }
 0x47e   : > { %7466 = vmatmul.msk.bf16.gmra.mxu0 %vm10911_vm8, %v3534_v4  ;;  %vm11023_vm8 = vmmov %vm11022_vm0 }
 0x47f   : > { %6474 = vst.msk [vmem:[#allocation3] sm:$0xf] %vm11023_vm8, %v10918_v15  ;;  %vm11026_vm8 = vmmov %vm11022_vm0 }
 0x4cb   : > { %v3577_v48 = vpop.f32.mrf.mxu0 }
 0x4cc   : > { %v3578_v59 = vadd.f32 %v9999_v31, %v3577_v48 }
 0x4ce   : > { %v3597_v44 = vmax.f32 %v3578_v59, 0.0 }
 0x4d0   : > { %v3617_v21 = vpack.c.bf16 %v3597_v44, %v3597_v44 }
 0x4d2   : > { %3625 = vst.msk [vmem:[#allocation3 + $0x8] sm:$0xf] %vm11022_vm0, %v3617_v21 }
 0x4d3   : > { %v3579_v29 = vpop.f32.mrf.mxu0 }
 0x4d4   : > { %v3580_v26 = vadd.f32 %v9999_v31, %v3579_v29 }
 0x4d6   : > { %v3598_v37 = vmax.f32 %v3580_v26, 0.0 }
 0x4d8   : > { %v3618_v40 = vpack.c.bf16 %v3598_v37, %v3598_v37 }
 0x4d9   : > { %v10026_v6 = vld [vmem:[#allocation3 + $0x8] sm:$0x8] }
 0x4da   : > { %3626 = vst.msk [vmem:[#allocation3 + $0xc] sm:$0xf] %vm11025_vm7, %v3618_v40  ;;  %vm11028_vm7 = vcmask 261120  }
 0x4db   : > { %v3582_v28 = vpop.f32.mrf.mxu0 }
 0x4dc   : > { %v3583_v17 = vadd.f32 %v9999_v31, %v3582_v28 }
 0x4de   : > { %v3599_v38 = vmax.f32 %v3583_v17, 0.0 }
 0x4e0   : > { %v3619_v39 = vpack.c.bf16 %v3599_v38, %v3599_v38 }
 0x4e1   : > { %v10020_v36 = vld [vmem:[#allocation3 + $0x8] sm:$0xff]  }
 0x4e2   : > { %3627 = vst.msk [vmem:[#allocation3 + $0x10] sm:$0xf] %vm11026_vm8, %v3619_v39  ;;  %v8221_v51 = vunpack.c.l.b16 %v10020_v36  ;;  %v3678_v46 = vshrl.u32 %v10020_v36, 16  ;;  %v3681_v12 = vshll.u32 %v10020_v36, 16  ;;  %vm11029_vm8 = vsmask.f32 4352 }
 0x4e3   : > { %v3584_v61 = vpop.f32.mrf.mxu0  ;;  %4844 = vst.msk [vmem:[#allocation3 + $0x8] sm:$0xf] %vm11027_vm1, %v10918_v15  ;;  %vm11030_vm1 = vmmov %vm11028_vm7 }
 0x4e4   : > { %v3585_v25 = vadd.f32 %v9999_v31, %v3584_v61  ;;  %v3786_v42 = vpack.c.b16 %v8221_v51, %v3656_v22  ;;  %v3680_v27 = vrot.slane %v3678_v46, 3  ;;  %v3683_v4 = vrot.slane %v3681_v12, 4  ;;  %4845 = vst.msk [vmem:[#allocation3 + $0xc] sm:$0xf] %vm11022_vm0, %v10918_v15 }
 0x4e5   : > { %v3882_v5 = vpack.c.b16 %v8221_v51, %v3873_v19  ;;  %v4002_v23 = vpack.c.b16 %v8221_v51, %v4000_v10  ;;  %vm11032_vm0 = vsmask.f32 7424 }
 0x4e6   : > { %v3600_v14 = vmax.f32 %v3585_v25, 0.0  ;;  %7487 = vmatmul.msk.bf16.vlgmr.msrb.gmra.mxu2 %vm11028_vm7, %v3786_v42  ;;  %v3684_v16 = vor.u32 %v3683_v4, %v3680_v27  ;;  %vm11033_vm7 = vmmov %vm11030_vm1 }
 0x4e7   : > { %v3890_v24 = vshll.u32 %v3882_v5, 16  ;;  %v4005_v58 = vshrl.u32 %v4002_v23, 16  ;;  %v4008_v48 = vshll.u32 %v4002_v23, 16  ;;  %v3888_v44 = vshrl.u32 %v3882_v5, 16 }
 0x4e8   : > { %v3620_v33 = vpack.c.bf16 %v3600_v14, %v3600_v14  ;;  %v3685_v60 = vsel %vm11029_vm8, %v3676_v34, %v3684_v16  ;;  %v10077_v14 = vld [vmem:[#allocation3 + $0x2c] sm:$0x1] }
 0x4e9   : > { %7475 = vmatmul.msk.bf16.vlgmr.msrb.gmra.mxu1 %vm11030_vm1, %v3685_v60  ;;  %v3892_v59 = vrot.slane %v3890_v24, 1  ;;  %v4007_v29 = vrot.slane %v4005_v58, 3  ;;  %v4010_v22 = vrot.slane %v4008_v48, 4 }
 0x4ea   : > { %3628 = vst.msk [vmem:[#allocation3 + $0x14] sm:$0xf] %vm11031_vm2, %v3620_v33  ;;  %vm11034_vm2 = vmmov %vm11029_vm8  ;;  %vm11035_vm8 = vcmask 257024  }
 0x4eb   : > { %v8371_v9 = vld [vmem:[#allocation3 + $0xc] sm:$0xff]   ;;  %v3587_v21 = vpop.f32.mrf.mxu0  ;;  %v3893_v26 = vor.u32 %v3892_v59, %v3888_v44  ;;  %v4011_v35 = vor.u32 %v4010_v22, %v4007_v29 }
 0x4ec   : > { %v3895_v45 = vshll.u32 %v8371_v9, 16  ;;  %v3899_v54 = vshrl.u32 %v8371_v9, 16  ;;  %v3588_v50 = vadd.f32 %v9999_v31, %v3587_v21  ;;  %v8349_v51 = vld [vmem:[#allocation3 + $0xc] sm:$0xff]   ;;  %v8087_v21 = vld [vmem:[%s10962_s14 + $0x58] sm:$0xff] }
 0x4ed   : > { %v10065_v27 = vld [vmem:[#allocation3 + $0xc] sm:$0xff]  ;;  %4273 = vmatpush.bf16.msra.mxu2 %v8087_v21 }
 0x4ee   : > { %v3897_v52 = vrot.slane %v3895_v45, 1  ;;  %v4012_v37 = vrot.slane %v3899_v54, 3  ;;  %v4013_v56 = vrot.slane %v3895_v45, 4  ;;  %v3601_v40 = vmax.f32 %v3588_v50, 0.0  ;;  %v8085_v44 = vld [vmem:[%s10962_s14 + $0x48] sm:$0xff] }
 0x4ef   : > { %4140 = vmatpush.bf16.msra.mxu1 %v8085_v44  ;;  %v8091_v44 = vld [vmem:[%s10962_s14 + $0x78] sm:$0xff] }
 0x4f0   : > { %v3898_v28 = vsel %vm11032_vm0, %v3893_v26, %v3897_v52  ;;  %v4014_v62 = vor.u32 %v4013_v56, %v4012_v37  ;;  %v3621_v17 = vpack.c.bf16 %v3601_v40, %v3601_v40  ;;  %vm11036_vm0 = vmmov %vm11035_vm8  ;;  %4460 = vmatpush.bf16.msrb.mxu0 %v8091_v44 }
 0x4f1   : > { %7499 = vmatmul.msk.bf16.vlgmr.msrb.gmra.mxu3 %vm11033_vm7, %v3898_v28  ;;  %v10045_v49 = vld [vmem:[#allocation3 + $0x10] sm:$0xff]   ;;  %vm11037_vm7 = vmmov %vm11036_vm0 }
 0x4f2   : > { %v4015_v38 = vsel %vm11034_vm2, %v4011_v35, %v4014_v62  ;;  %3629 = vst.msk [vmem:[#allocation3 + $0x18] sm:$0xf] %vm11035_vm8, %v3621_v17  ;;  %v3687_v13 = vshrl.u32 %v10045_v49, 16  ;;  %v3690_v39 = vshll.u32 %v10045_v49, 16  ;;  %vm11038_vm2 = vmmov %vm11036_vm0 }
 0x4f3   : > { %7511 = vmatmul.msk.bf16.vlgmr.msra.gmra.mxu0 %vm11030_vm1, %v4015_v38  ;;  %v3589_v19 = vpop.f32.mrf.mxu0  ;;  %4847 = vst.msk [vmem:[#allocation3 + $0x14] sm:$0xf] %vm11036_vm0, %v10918_v15  ;;  %vm11039_vm8 = vmmov %vm11030_vm1 }
 0x4f4   : > { %v3590_v10 = vadd.f32 %v9999_v31, %v3589_v19  ;;  %v3689_v61 = vrot.slane %v3687_v13, 3  ;;  %v3692_v34 = vrot.slane %v3690_v39, 4  ;;  %5424 = vst.msk [vmem:[#allocation3 + $0x14] sm:$0xf] %vm11037_vm7, %v10918_v15  ;;  %vm11040_vm1 = vmmov %vm11036_vm0 }
 0x4f5   : > { %6050 = vst.msk [vmem:[#allocation3 + $0x14] sm:$0xf] %vm11038_vm2, %v10918_v15  ;;  %vm11042_vm7 = vmmov %vm11039_vm8 }
 0x4f6   : > { %v3602_v25 = vmax.f32 %v3590_v10, 0.0  ;;  %7488 = vmatmul.msk.bf16.gmra.mxu2 %vm11039_vm8, %v8349_v51  ;;  %v10063_v42 = vor.u32 %v3692_v34, %v3689_v61  ;;  %6479 = vst.msk [vmem:[#allocation3 + $0x14] sm:$0xf] %vm11040_vm1, %v10918_v15  ;;  %vm11043_vm2 = vmmov %vm11036_vm0 }
 0x4f7   : > { %4846 = vst.msk [vmem:[#allocation3 + $0x10] sm:$0xf] %vm11036_vm0, %v10918_v15  ;;  %vm11044_vm8 = vmmov %vm11036_vm0 }
 0x4f8   : > { %v3622_v4 = vpack.c.bf16 %v3602_v25, %v3602_v25  ;;  %v3694_v5 = vsel %vm11041_vm15, %v3684_v16, %v10063_v42  ;;  %4853 = vst.msk [vmem:[#allocation3 + $0x2c] sm:$0xf] %vm11044_vm8, %v10918_v15  ;;  %vm11045_vm15 = vmmov %vm11036_vm0  ;;  %v3901_v16 = vor.u32 %v3899_v54, %v3897_v52 }
 0x4f9   : > { %7476 = vmatmul.msk.bf16.gmra.mxu1 %vm11042_vm7, %v3694_v5  ;;  %5430 = vst.msk [vmem:[#allocation3 + $0x2c] sm:$0xf] %vm11045_vm15, %v10918_v15  ;;  %vm11046_vm1 = vmmov %vm11036_vm0  ;;  %vm11047_vm0 = vsmask.f32 7424 }
 0x4fa   : > { %3630 = vst.msk [vmem:[#allocation3 + $0x1c] sm:$0xf] %vm11043_vm2, %v3622_v4  ;;  %vm11048_vm2 = vsmask.f32 4352  ;;  %vm11049_vm8 = vmmov %vm11046_vm1 }
 0x4fb   : > { %v3592_v24 = vpop.f32.mrf.mxu0  ;;  %6056 = vst.msk [vmem:[#allocation3 + $0x2c] sm:$0xf] %vm11046_vm1, %v10918_v15  ;;  %vm11050_vm15 = vmmov %vm11046_vm1 }
 0x4fc   : > { %v3593_v33 = vadd.f32 %v9999_v31, %v3592_v24  ;;  %6485 = vst.msk [vmem:[#allocation3 + $0x2c] sm:$0xf] %vm11049_vm8, %v10918_v15  ;;  %vm11051_vm1 = vmmov %vm11042_vm7  ;;  %v8086_v24 = vld [vmem:[%s10962_s14 + $0x50] sm:$0xff] }
 0x4fd   : > { %v10074_v23 = vld [vmem:[#allocation3 + $0x14] sm:$0xff]   ;;  %4274 = vmatpush.bf16.msra.mxu2 %v8086_v24 }
 0x4fe   : > { %v3903_v58 = vshll.u32 %v10074_v23, 16  ;;  %v3907_v48 = vshrl.u32 %v10074_v23, 16  ;;  %v3603_v45 = vmax.f32 %v3593_v33, 0.0  ;;  %v8093_v52 = vld [vmem:[#allocation3 + $0x14] sm:$0xff] }
 0x4ff   : > { %v8350_v37 = vld [vmem:[#allocation3 + $0x14] sm:$0xff]   ;;  %v4535_v19 = vshll.u32 %v8093_v52, 16 }
 0x500   : > { %v10086_v60 = vrot.slane %v3903_v58, 1  ;;  %v4016_v9 = vrot.slane %v3907_v48, 3  ;;  %v4017_v59 = vrot.slane %v3903_v58, 4  ;;  %v3623_v54 = vpack.c.bf16 %v3603_v45, %v3603_v45  ;;  %v10109_v28 = vld [vmem:[#allocation3 + $0x14] sm:$0xff]  }
 0x501   : > { %v10101_v26 = vld [vmem:[#allocation3 + $0x18] sm:$0xff]   ;;  %v10138_v25 = vrot.slane %v4535_v19, 1  ;;  %v4539_v58 = vshrl.u32 %v8093_v52, 16 }
 0x502   : > { %v3906_v29 = vsel %vm11047_vm0, %v3901_v16, %v10086_v60  ;;  %v10096_v22 = vor.u32 %v4017_v59, %v4016_v9  ;;  %3631 = vst.msk [vmem:[#allocation3 + $0x20] sm:$0xf] %vm11050_vm15, %v3623_v54  ;;  %v3696_v56 = vshrl.u32 %v10101_v26, 16  ;;  %v3699_v40 = vshll.u32 %v10101_v26, 16  ;;  %vm11052_vm0 = vmmov %vm11049_vm8  ;;  %v8084_v9 = vld [vmem:[%s10962_s14 + $0x40] sm:$0xff]  ;;  %v8089_v59 = vld [vmem:[%s10962_s14 + $0x68] sm:$0xff] }
 0x503   : > { %7500 = vmatmul.msk.bf16.gmra.mxu3 %vm11042_vm7, %v3906_v29  ;;  %v3594_v35 = vpop.f32.mrf.mxu0  ;;  %4848 = vst.msk [vmem:[#allocation3 + $0x18] sm:$0xf] %vm11052_vm0, %v10918_v15  ;;  %vm11053_vm7 = vmmov %vm11052_vm0  ;;  %v4541_v21 = vor.u32 %v4539_v58, %v10138_v25  ;;  %4141 = vmatpush.bf16.msra.mxu1 %v8084_v9 }
 0x504   : > { %v4019_v50 = vsel %vm11048_vm2, %v4014_v62, %v10096_v22  ;;  %v3595_v62 = vadd.f32 %v9999_v31, %v3594_v35  ;;  %v3698_v17 = vrot.slane %v3696_v56, 3  ;;  %v3701_v38 = vrot.slane %v3699_v40, 4  ;;  %5425 = vst.msk [vmem:[#allocation3 + $0x18] sm:$0xf] %vm11053_vm7, %v10918_v15  ;;  %vm11054_vm2 = vmmov %vm11052_vm0  ;;  %4383 = vmatpush.bf16.msra.mxu3 %v8089_v59 }
 0x505   : > { %7512 = vmatmul.msk.bf16.gmra.mxu0 %vm11051_vm1, %v4019_v50  ;;  %6051 = vst.msk [vmem:[#allocation3 + $0x18] sm:$0xf] %vm11054_vm2, %v10918_v15  ;;  %vm11055_vm8 = vmmov %vm11051_vm1  ;;  %v8088_v50 = vld [vmem:[%s10962_s14 + $0x60] sm:$0xff] }
 0x506   : > { %v3604_v10 = vmax.f32 %v3595_v62, 0.0  ;;  %7489 = vmatmul.msk.bf16.gmra.mxu2 %vm11055_vm8, %v8350_v37  ;;  %v10123_v51 = vor.u32 %v3701_v38, %v3698_v17  ;;  %vm11056_vm15 = vmmov %vm11052_vm0  ;;  %v8090_v62 = vld [vmem:[%s10962_s14 + $0x70] sm:$0xff] }
 0x507   : > { %6480 = vst.msk [vmem:[#allocation3 + $0x18] sm:$0xf] %vm11056_vm15, %v10918_v15  ;;  %vm11057_vm1 = vmmov %vm11052_vm0  ;;  %vm11058_vm0 = vsmask.f32 4352  ;;  %4461 = vmatpush.bf16.msrb.mxu0 %v8090_v62 }
 0x508   : > { %4849 = vst.msk [vmem:[#allocation3 + $0x1c] sm:$0xf] %vm11057_vm1, %v10918_v15  ;;  %v3624_v31 = vpack.c.bf16 %v3604_v10, %v3604_v10  ;;  %v10132_v61 = vsel %vm11058_vm0, %v10063_v42, %v10123_v51  ;;  %vm11059_vm7 = vmmov %vm11057_vm1  ;;  %vm11063_vm0 = vsmask.f32 7424  ;;  %v4521_v10 = vunpack.c.l.b16 %v10077_v14  ;;  %4384 = vmatpush.bf16.msra.mxu3 %v8088_v50 }
 0x509   : > { %5426 = vst.msk [vmem:[#allocation3 + $0x1c] sm:$0xf] %vm11059_vm7, %v10918_v15  ;;  %vm11060_vm2 = vmmov %vm11055_vm8  ;;  %v3641_v34 = vld [vmem:[#allocation3 + $0x20] sm:$0xf] }
 0x50a   : > { %7477 = vmatmul.msk.bf16.gmra.mxu1 %vm11060_vm2, %v10132_v61  ;;  %vm11061_vm8 = vmmov %vm11057_vm1  ;;  %v3663_v5 = vunpack.c.l.b16 %v3641_v34  ;;  %v4526_v14 = vpack.c.b16 %v4521_v10, %v4521_v10 }
 0x50b   : > { %vm11062_vm15 = vmmov %vm11057_vm1 }
 0x50c   : > { %3632 = vst.msk [vmem:[#allocation3 + $0x24] sm:$0xf] %vm11062_vm15, %v3624_v31  ;;  %v3668_v16 = vpack.c.b16 %v3663_v5, %v3663_v5  ;;  %v8242_v31 = vunpack.c.h.b16 %v10101_v26  ;;  %vm11064_vm7 = vmmov %vm11057_vm1  ;;  %vm11067_vm15 = vcmask 261120  }
 0x50d   : > { %vm11065_vm2 = vmmov %vm11057_vm1 }
 0x50e   : > { %v3705_v29 = vshrl.u32 %v3668_v16, 16  ;;  %v3708_v54 = vshll.u32 %v3668_v16, 16  ;;  %v3789_v58 = vpack.c.b16 %v3663_v5, %v8242_v31  ;;  %v4313_v16 = vld [vmem:[#allocation3 + $0x28] sm:$0xf] }
 0x50f   : > { %v10190_v23 = vunpack.c.l.b16 %v4313_v16 }
 0x510   : > { %v10140_v4 = vld [vmem:[#allocation3 + $0x1c] sm:$0xff]  ;;  %v3707_v37 = vrot.slane %v3705_v29, 3  ;;  %v3710_v35 = vrot.slane %v3708_v54, 4  ;;  %v10180_v29 = vld [vmem:[#allocation3 + $0x28] sm:$0x1] }
 0x511   : > { %6052 = vst.msk [vmem:[#allocation3 + $0x1c] sm:$0xf] %vm11061_vm8, %v10918_v15  ;;  %v4543_v33 = vshll.u32 %v10140_v4, 16  ;;  %vm11066_vm8 = vmmov %vm11057_vm1 }
 0x512   : > { %6481 = vst.msk [vmem:[#allocation3 + $0x1c] sm:$0xf] %vm11057_vm1, %v10918_v15 }
 0x513   : > { %v4545_v45 = vrot.slane %v4543_v33, 1  ;;  %v10158_v17 = vld [vmem:[#allocation3 + $0x20] sm:$0xff]   ;;  %v3711_v33 = vor.u32 %v3710_v35, %v3707_v37 }
 0x514   : > { %v10160_v38 = vld [vmem:[#allocation3 + $0x20] sm:$0xff]   ;;  %v3880_v34 = vunpack.c.l.b16 %v10158_v17  ;;  %v4001_v5 = vunpack.c.h.b16 %v10158_v17 }
 0x515   : > { %v10155_v52 = vsel %vm11063_vm0, %v4541_v21, %v4545_v45  ;;  %v3859_v44 = vld [vmem:[#allocation3 + $0x24] sm:$0x1]  ;;  %v3909_v21 = vor.u32 %v3907_v48, %v10086_v60  ;;  %v8258_v54 = vunpack.c.h.b16 %v10160_v38  ;;  %vm11068_vm0 = vmmov %vm11057_vm1  ;;  %v4559_v48 = vshll.u32 %v4526_v14, 16 }
 0x516   : > { %v3885_v24 = vpack.c.b16 %v3880_v34, %v8242_v31  ;;  %7490 = vmatmul.msk.bf16.gmra.mxu2 %vm11067_vm15, %v3789_v58  ;;  %v8095_v50 = vld [vmem:[#allocation3 + $0x24] sm:$0xff]  ;;  %v3881_v16 = vunpack.c.l.b16 %v3859_v44  ;;  %v4003_v14 = vpack.c.b16 %v4001_v5, %v4001_v5 }
 0x517   : > { %4851 = vst.msk [vmem:[#allocation3 + $0x24] sm:$0xf] %vm11068_vm0, %v10918_v15  ;;  %v10199_v34 = vpack.c.b16 %v10190_v23, %v8258_v54  ;;  %v4551_v58 = vshll.u32 %v8095_v50, 16  ;;  %v4561_v54 = vrot.slane %v4559_v48, 1 }
 0x518   : > { %v3911_v9 = vshll.u32 %v3885_v24, 16  ;;  %v3915_v59 = vshrl.u32 %v3885_v24, 16  ;;  %v4547_v24 = vshrl.u32 %v10140_v4, 16  ;;  %v4555_v4 = vshrl.u32 %v8095_v50, 16 }
 0x519   : > { %v10162_v19 = vld [vmem:[#allocation3 + $0x1c] sm:$0xff]  }
 0x51a   : > { %4850 = vst.msk [vmem:[#allocation3 + $0x20] sm:$0xf] %vm11064_vm7, %v10918_v15  ;;  %v3913_v37 = vrot.slane %v3911_v9, 1  ;;  %v4020_v35 = vrot.slane %v3915_v59, 3  ;;  %v4021_v62 = vrot.slane %v3911_v9, 4  ;;  %v4549_v9 = vor.u32 %v4547_v24, %v4545_v45 }
 0x51b   : > { %5427 = vst.msk [vmem:[#allocation3 + $0x20] sm:$0xf] %vm11065_vm2, %v10918_v15  ;;  %vm11069_vm7 = vsmask.f32 4352  ;;  %vm11070_vm2 = vmmov %vm11068_vm0  ;;  %v4217_v45 = vrot.slane %v3690_v39, 1 }
 0x51c   : > { %6053 = vst.msk [vmem:[#allocation3 + $0x20] sm:$0xf] %vm11066_vm8, %v10918_v15  ;;  %v3712_v10 = vsel %vm11069_vm7, %v10123_v51, %v3711_v33  ;;  %vm11071_vm8 = vmmov %vm11067_vm15  ;;  %v4022_v31 = vor.u32 %v4021_v62, %v4020_v35  ;;  %v3886_v35 = vpack.c.b16 %v3881_v16, %v3881_v16  ;;  %v4025_v62 = vshrl.u32 %v4003_v14, 16 }
 0x51d   : > { %6482 = vst.msk [vmem:[#allocation3 + $0x20] sm:$0xf] %vm11057_vm1, %v10918_v15  ;;  %7478 = vmatmul.msk.bf16.gmra.mxu1 %vm11071_vm8, %v3712_v10  ;;  %vm11072_vm15 = vmmov %vm11068_vm0  ;;  %vm11073_vm1 = vsmask.f32 7424  ;;  %v4028_v10 = vshll.u32 %v4003_v14, 16  ;;  %v8246_v14 = vunpack.c.h.b16 %v10020_v36 }
 0x51e   : > { %4852 = vst.msk [vmem:[#allocation3 + $0x28] sm:$0xf] %vm11070_vm2, %v10918_v15  ;;  %v3914_v60 = vsel %vm11073_vm1, %v3909_v21, %v3913_v37  ;;  %vm11074_vm3 = vmmov %vm11071_vm8  ;;  %vm11076_vm2 = vsmask.f32 4352  ;;  %v4553_v21 = vrot.slane %v4551_v58, 1  ;;  %v3919_v48 = vshll.u32 %v3886_v35, 16 }
 0x51f   : > { %5428 = vst.msk [vmem:[#allocation3 + $0x24] sm:$0xf] %vm11072_vm15, %v10918_v15  ;;  %7501 = vmatmul.msk.bf16.gmra.mxu3 %vm11074_vm3, %v3914_v60  ;;  %vm11075_vm7 = vmmov %vm11068_vm0  ;;  %v4023_v33 = vsel %vm11076_vm2, %v10096_v22, %v4022_v31  ;;  %v4212_v22 = vrot.slane %v3681_v12, 1  ;;  %v4027_v24 = vrot.slane %v4025_v62, 3  ;;  %v4030_v58 = vrot.slane %v4028_v10, 4  ;;  %v8097_v10 = vld [vmem:[%s10962_s14 + $0x88] sm:$0xff] }
 0x520   : > { %5429 = vst.msk [vmem:[#allocation3 + $0x28] sm:$0xf] %vm11068_vm0, %v10918_v15  ;;  %vm11077_vm8 = vmmov %vm11068_vm0  ;;  %v4557_v5 = vor.u32 %v4555_v4, %v4553_v21  ;;  %v3921_v16 = vrot.slane %v3919_v48, 1  ;;  %4593 = vmatpush.bf16.msrb.mxu1 %v8097_v10 }
 0x521   : > { %6054 = vst.msk [vmem:[#allocation3 + $0x24] sm:$0xf] %vm11075_vm7, %v10918_v15  ;;  %vm11078_vm15 = vmmov %vm11074_vm3  ;;  %v4213_v50 = vor.u32 %v4212_v22, %v3678_v46 }
 0x522   : > { %6055 = vst.msk [vmem:[#allocation3 + $0x28] sm:$0xf] %vm11077_vm8, %v10918_v15  ;;  %7513 = vmatmul.msk.bf16.gmra.mxu0 %vm11078_vm15, %v4023_v33  ;;  %vm11079_vm3 = vmmov %vm11068_vm0  ;;  %v3917_v33 = vor.u32 %v3915_v59, %v3913_v37 }
 0x523   : > { %6483 = vst.msk [vmem:[#allocation3 + $0x24] sm:$0xf] %vm11079_vm3, %v10918_v15  ;;  %vm11080_vm1 = vmmov %vm11068_vm0  ;;  %vm11081_vm0 = vsmask.f32 7424 }
 0x524   : > { %6484 = vst.msk [vmem:[#allocation3 + $0x28] sm:$0xf] %vm11080_vm1, %v10918_v15  ;;  %v10216_v44 = vsel %vm11081_vm0, %v4549_v9, %v4553_v21  ;;  %vm11082_vm7 = vmmov %vm11081_vm0  ;;  %v4031_v9 = vor.u32 %v4030_v58, %v4027_v24  ;;  %v4320_v21 = vunpack.c.l.b16 %v10026_v6  ;;  %v8096_v58 = vld [vmem:[%s10962_s14 + $0x80] sm:$0xff] }
 0x525   : > { %v10221_v60 = vsel %vm11082_vm7, %v4557_v5, %v4561_v54  ;;  %vm11083_vm2 = vmmov %vm11081_vm0  ;;  %v4225_v54 = vrot.slane %v3699_v40, 1  ;;  %4594 = vmatpush.bf16.msrb.mxu1 %v8096_v58 }
 0x526   : > { %v4218_v12 = vsel %vm11083_vm2, %v4213_v50, %v4217_v45  ;;  %vm11084_vm8 = vmmov %vm11078_vm15  ;;  %v4322_v4 = vpack.c.b16 %v8246_v14, %v4320_v21 }
 0x527   : > { %7535 = vmatmul.msk.bf16.vlgmr.msra.gmra.mxu2 %vm11084_vm8, %v4218_v12  ;;  %vm11085_vm15 = vmmov %vm11084_vm8  ;;  %v4229_v50 = vor.u32 %v4225_v54, %v3696_v56  ;;  %v4235_v56 = vshrl.u32 %v10160_v38, 16 }
 0x528   : > { %vm11086_vm3 = vmmov %vm11081_vm0  ;;  %vm11088_vm0 = vsmask.f32 4352  ;;  %v4325_v59 = vshrl.u32 %v4322_v4, 16  ;;  %v4328_v37 = vshll.u32 %v4322_v4, 16 }
 0x529   : > { %v3922_v39 = vsel %vm11086_vm3, %v3917_v33, %v3921_v16  ;;  %vm11087_vm1 = vmmov %vm11084_vm8  ;;  %v4032_v46 = vsel %vm11088_vm0, %v4022_v31, %v4031_v9  ;;  %v8249_v31 = vunpack.c.l.b16 %v10045_v49 }
 0x52a   : > { %vm11089_vm7 = vmmov %vm11087_vm1  ;;  %v4327_v22 = vrot.slane %v4325_v59, 3  ;;  %v4330_v5 = vrot.slane %v4328_v37, 4 }
 0x52b   : > { %vm11090_vm8 = vmmov %vm11087_vm1  ;;  %v4426_v40 = vpack.c.b16 %v8249_v31, %v8246_v14 }
 0x52c   : > { %v4331_v35 = vor.u32 %v4330_v5, %v4327_v22  ;;  %vm11092_vm3 = vmmov %vm11088_vm0 }
 0x52d   : > { %7523 = vmatmul.msk.bf16.vlgmr.msra.gmra.mxu1 %vm11085_vm15, %v10020_v36  ;;  %v4221_v36 = vor.u32 %v4217_v45, %v3687_v13  ;;  %vm11091_vm15 = vmmov %vm11087_vm1  ;;  %v4231_v13 = vshll.u32 %v10160_v38, 16 }
 0x52e   : > { %v4335_v62 = vsel %vm11092_vm3, %v4331_v35, %v10063_v42  ;;  %vm11093_vm0 = vmmov %vm11087_vm1 }
 0x52f   : > { %7502 = vmatmul.msk.bf16.gmra.mxu3 %vm11087_vm1, %v3922_v39  ;;  %v4226_v6 = vsel %vm11083_vm2, %v4221_v36, %v4225_v54  ;;  %v4233_v45 = vrot.slane %v4231_v13, 1  ;;  %vm11098_vm3 = vmmov %vm11093_vm0  ;;  %v4341_v16 = vrot.slane %v4231_v13, 4  ;;  %v4530_v39 = vshll.u32 %v10065_v27, 16 }
 0x531   : > { %v4237_v12 = vor.u32 %v4235_v56, %v4233_v45  ;;  %v4532_v4 = vrot.slane %v4530_v39, 1 }
 0x532   : > { %7514 = vmatmul.msk.bf16.gmra.mxu0 %vm11089_vm7, %v4032_v46  ;;  %vm11094_vm7 = vmmov %vm11083_vm2 }
 0x533   : > { %v4234_v48 = vsel %vm11094_vm7, %v4229_v50, %v4233_v45  ;;  %vm11095_vm2 = vmmov %vm11093_vm0 }
 0x537   : > { %7536 = vmatmul.msk.bf16.gmra.mxu2 %vm11090_vm8, %v4226_v6  ;;  %vm11096_vm8 = vmmov %vm11093_vm0 }
 0x53d   : > { %7524 = vmatmul.msk.bf16.gmra.mxu1 %vm11091_vm15, %v10045_v49  ;;  %v4201_v49 = vunpack.c.l.b16 %v10180_v29  ;;  %vm11097_vm15 = vmmov %vm11093_vm0  ;;  %v4340_v29 = vrot.slane %v4235_v56, 3 }
 0x53f   : > { %7547 = vmatmul.msk.bf16.vlgmr.msra.gmra.mxu3 %vm11087_vm1, %v4335_v62  ;;  %v4206_v42 = vpack.c.b16 %v4201_v49, %v4201_v49  ;;  %vm11099_vm1 = vmmov %vm11094_vm7  ;;  %v4342_v14 = vor.u32 %v4341_v16, %v4340_v29 }
 0x540   : > { %vm11100_vm7 = vmmov %vm11093_vm0 }
 0x541   : > { %v4239_v24 = vshll.u32 %v4206_v42, 16 }
 0x542   : > { %7559 = vmatmul.msk.bf16.vlgmr.msrb.gmra.mxu0 %vm11093_vm0, %v4426_v40 }
 0x543   : > { %v4241_v33 = vrot.slane %v4239_v24, 1 }
 0x545   : > { %v4242_v9 = vsel %vm11099_vm1, %v4237_v12, %v4241_v33 }
 0x547   : > { %7537 = vmatmul.msk.bf16.gmra.mxu2 %vm11095_vm2, %v4234_v48  ;;  %vm11101_vm2 = vsmask.f32 4352 }
 0x54d   : > { %7525 = vmatmul.msk.bf16.gmra.mxu1 %vm11096_vm8, %v10101_v26  ;;  %v4343_v26 = vsel %vm11101_vm2, %v10123_v51, %v4342_v14  ;;  %vm11102_vm8 = vmmov %vm11093_vm0 }
 0x54f   : > { %7548 = vmatmul.msk.bf16.gmra.mxu3 %vm11097_vm15, %v10132_v61  ;;  %vm11103_vm15 = vmmov %vm11093_vm0 }
 0x552   : > { %7560 = vmatmul.msk.bf16.gmra.mxu0 %vm11098_vm3, %v10109_v28  ;;  %v4323_v28 = vpack.c.b16 %v10190_v23, %v10190_v23  ;;  %vm11104_vm3 = vmmov %vm11099_vm1 }
 0x553   : > { %vm11105_vm1 = vmmov %vm11093_vm0 }
 0x554   : > { %v4345_v61 = vshrl.u32 %v4323_v28, 16  ;;  %v4348_v38 = vshll.u32 %v4323_v28, 16 }
 0x556   : > { %v4347_v21 = vrot.slane %v4345_v61, 3  ;;  %v4350_v46 = vrot.slane %v4348_v38, 4 }
 0x557   : > { %7538 = vmatmul.msk.bf16.gmra.mxu2 %vm11093_vm0, %v4242_v9  ;;  %vm11106_vm0 = vmmov %vm11101_vm2 }
 0x558   : > { %v4351_v59 = vor.u32 %v4350_v46, %v4347_v21  ;;  %vm11108_vm2 = vmmov %vm11105_vm1 }
 0x55d   : > { %7526 = vmatmul.msk.bf16.gmra.mxu1 %vm11100_vm7, %v10158_v17  ;;  %v4528_v17 = vshrl.u32 %v10065_v27, 16  ;;  %vm11107_vm7 = vmmov %vm11105_vm1 }
 0x55f   : > { %7549 = vmatmul.msk.bf16.gmra.mxu3 %vm11102_vm8, %v4343_v26  ;;  %v4533_v51 = vor.u32 %v4532_v4, %v4528_v17  ;;  %vm11109_vm8 = vmmov %vm11105_vm1 }
 0x561   : > { %v4538_v23 = vsel %vm11104_vm3, %v4533_v51, %v10138_v25  ;;  %vm11111_vm3 = vmmov %vm11105_vm1 }
 0x562   : > { %7561 = vmatmul.msk.bf16.gmra.mxu0 %vm11103_vm15, %v10162_v19  ;;  %v4352_v19 = vsel %vm11106_vm0, %v4342_v14, %v4351_v59  ;;  %vm11110_vm15 = vmmov %vm11105_vm1  ;;  %vm11131_vm0 = vcmask 130048  }
 0x566   : > { %v3746_v37 = vpop.f32.mrf.mxu1 }
 0x567   : > { %v3766_v54 = vsel %vm9759_vm5, %v3746_v37, 0.0 }
 0x569   : > { %v3823_v36 = vpop.f32.mrf.mxu2 }
 0x56a   : > { %v3843_v22 = vadd.f32 %v3823_v36, %v3766_v54 }
 0x56d   : > { %7587 = vmatmul.msk.bf16.vlgmr.msrb.gmra.mxu1 %vm11105_vm1, %v4538_v23 }
 0x56e   : > { %v10285_v27 = vpop.f32.mrf.mxu1 }
 0x56f   : > { %7550 = vmatmul.msk.bf16.gmra.mxu3 %vm11107_vm7, %v4352_v19  ;;  %vm11133_vm7 = vmmov %vm11131_vm0 }
 0x570   : > { %v4066_v5 = vpop.f32.mrf.mxu0 }
 0x571   : > { %v10287_v6 = vpop.f32.mrf.mxu2  ;;  %v4086_v62 = vsel %vm9759_vm5, %v4066_v5, 0.0 }
 0x572   : > { %7562 = vmatmul.msk.bf16.gmra.mxu0 %vm11108_vm2, %v10199_v34  ;;  %vm11135_vm2 = vmmov %vm11131_vm0 }
 0x574   : > { %v3956_v25 = vpop.f32.mrf.mxu3 }
 0x575   : > { %v3976_v31 = vsel %vm9771_vm6, %v3956_v25, 0.0 }
 0x576   : > { %v3984_v35 = vadd.f32 %v3976_v31, %v3843_v22  ;;  %v3751_v40 = vpop.f32.mrf.mxu1 }
 0x577   : > { %v3768_v10 = vsel %vm9797_vm9, %v3751_v40, 0.0 }
 0x578   : > { %v4094_v13 = vadd.f32 %v4086_v62, %v3984_v35  ;;  %v10295_v45 = vpop.f32.mrf.mxu0 }
 0x579   : > { %v3828_v34 = vpop.f32.mrf.mxu2 }
 0x57a   : > { %v3845_v50 = vadd.f32 %v3828_v34, %v3768_v10 }
 0x57c   : > { %v10299_v48 = vpop.f32.mrf.mxu3 }
 0x57d   : > { %7588 = vmatmul.msk.bf16.gmra.mxu1 %vm11109_vm8, %v10155_v52  ;;  %vm11137_vm8 = vcmask 257024  }
 0x57e   : > { %v10301_v49 = vpop.f32.mrf.mxu1 }
 0x581   : > { %v10303_v42 = vpop.f32.mrf.mxu2 }
 0x582   : > { %v4071_v24 = vpop.f32.mrf.mxu0 }
 0x583   : > { %v4088_v33 = vsel %vm9797_vm9, %v4071_v24, 0.0 }
 0x586   : > { %v3961_v58 = vpop.f32.mrf.mxu3 }
 0x587   : > { %v3978_v56 = vsel %vm9814_vm10, %v3961_v58, 0.0  ;;  %v3756_v29 = vpop.f32.mrf.mxu1 }
 0x588   : > { %v3986_v12 = vadd.f32 %v3978_v56, %v3845_v50 }
 0x589   : > { %v3833_v9 = vpop.f32.mrf.mxu2 }
 0x58a   : > { %v4096_v16 = vadd.f32 %v4088_v33, %v3986_v12  ;;  %v10315_v26 = vpop.f32.mrf.mxu0 }
 0x58d   : > { %7589 = vmatmul.msk.bf16.gmra.mxu1 %vm11110_vm15, %v10216_v44  ;;  %vm11138_vm15 = vmmov %vm11137_vm8 }
 0x58e   : > { %v10317_v28 = vpop.f32.mrf.mxu3 }
 0x58f   : > { %v10311_v52 = vpop.f32.mrf.mxu1 }
 0x591   : > { %v10313_v14 = vpop.f32.mrf.mxu2 }
 0x599   : > { %v10321_v38 = vpop.f32.mrf.mxu2 }
 0x59a   : > { %v10319_v61 = vpop.f32.mrf.mxu1 }
 0x59d   : > { %7590 = vmatmul.msk.bf16.gmra.mxu1 %vm11111_vm3, %v10221_v60  ;;  %vm11139_vm3 = vmmov %vm11137_vm8 }
 0x59f   : > { %v4076_v39 = vpop.f32.mrf.mxu0 }
 0x5a1   : > { %v10327_v44 = vpop.f32.mrf.mxu2 }
 0x5a2   : > { %v3966_v21 = vpop.f32.mrf.mxu3  ;;  %v10325_v46 = vpop.f32.mrf.mxu1 }
 0x5a3   : > { %v3980_v15 = vsel %vm9863_vm14, %v3966_v21, 0.0 }
 0x5a7   : > { %v10329_v4 = vpop.f32.mrf.mxu0 }
 0x5aa   : > { %v10331_v17 = vpop.f32.mrf.mxu3  ;;  %v4143_v59 = vpop.f32.mrf.mxu1 }
 0x5ab   : > { %v4163_v37 = vadd.f32 %v4143_v59, %v4094_v13  ;;  %v4276_v51 = vpop.f32.mrf.mxu2 }
 0x5ac   : > { %v4296_v23 = vsel %vm9771_vm6, %v4276_v51, 0.0 }
 0x5ad   : > { %v4304_v54 = vadd.f32 %v4296_v23, %v4163_v37 }
 0x5af   : > { %v10335_v36 = vpop.f32.mrf.mxu0 }
 0x5b2   : > { %v10337_v60 = vpop.f32.mrf.mxu3  ;;  %v10339_v19 = vpop.f32.mrf.mxu1 }
 0x5b3   : > { %v10351_v58 = vpop.f32.mrf.mxu2 }
 0x5b7   : > { %v10343_v25 = vpop.f32.mrf.mxu0 }
 0x5ba   : > { %v10341_v22 = vpop.f32.mrf.mxu3  ;;  %v4148_v5 = vpop.f32.mrf.mxu1 }
 0x5bb   : > { %v10345_v31 = vadd.f32 %v4148_v5, %v4096_v16  ;;  %v10359_v16 = vpop.f32.mrf.mxu2 }
 0x5bf   : > { %v4463_v10 = vpop.f32.mrf.mxu0 }
 0x5c2   : > { %v4386_v35 = vpop.f32.mrf.mxu3  ;;  %v4150_v62 = vpop.f32.mrf.mxu1 }
 0x5c3   : > { %v4406_v40 = vsel %vm9759_vm5, %v4386_v35, 0.0  ;;  %vm11117_vm5 = vnez %v11014_v7  ;;  %v4298_v7 = vsel %vm9814_vm10, %v10359_v16, 0.0 }
 0x5c4   : > { %v4414_v13 = vadd.f32 %v4406_v40, %v4304_v54  ;;  %v4283_v54 = vpop.f32.mrf.mxu2 }
 0x5c5   : > { %v4299_v3 = vsel %vm9839_vm12, %v4283_v54, 0.0 }
 0x5c6   : > { %v4483_v34 = vadd.f32 %v4463_v10, %v4414_v13  ;;  %v3770_v10 = vsel %vm9849_vm13, %v3756_v29, 0.0  ;;  %v3979_v29 = vsel %vm9839_vm12, %v10317_v28, 0.0  ;;  %v4089_v28 = vsel %vm9822_vm11, %v10315_v26, 0.0 }
 0x5c7   : > { %v10361_v59 = vpop.f32.mrf.mxu0  ;;  %v3847_v57 = vadd.f32 %v3833_v9, %v3770_v10 }
 0x5c8   : > { %11113 = vst [vmem:[#allocation31_spill] sm:$0xff] %v10361_v59 }
 0x5ca   : > { %v4153_v50 = vpop.f32.mrf.mxu1  ;;  %v10355_v12 = vpop.f32.mrf.mxu3 }
 0x5cb   : > { %11112 = vst [vmem:[#allocation34_spill] sm:$0xff] %v10355_v12 }
 0x5cc   : > { %v4286_v13 = vpop.f32.mrf.mxu2 }
 0x5cd   : > { %v4300_v21 = vsel %vm9863_vm14, %v4286_v13, 0.0 }
 0x5cf   : > { %v10369_v5 = vpop.f32.mrf.mxu0 }
 0x5d0   : > { %11115 = vst [vmem:[#allocation36_spill] sm:$0xff] %v10369_v5 }
 0x5d2   : > { %v10349_v24 = vpop.f32.mrf.mxu1  ;;  %v10363_v11 = vpop.f32.mrf.mxu3 }
 0x5d7   : > { %v4470_v63 = vpop.f32.mrf.mxu0 }
 0x5da   : > { %v10353_v56 = vpop.f32.mrf.mxu1  ;;  %v4393_v35 = vpop.f32.mrf.mxu3 }
 0x5db   : > { %v4409_v26 = vsel %vm9822_vm11, %v4393_v35, 0.0 }
 0x5e2   : > { %v10357_v33 = vpop.f32.mrf.mxu1  ;;  %v4396_v59 = vpop.f32.mrf.mxu3 }
 0x5ea   : > { %v4596_v37 = vpop.f32.mrf.mxu1 }
 0x5eb   : > { %v4616_v51 = vsel %vm9771_vm6, %v4596_v37, 0.0  ;;  %v4090_v37 = vsel %vm9849_vm13, %v4076_v39, 0.0  ;;  %v4410_v39 = vsel %vm9849_vm13, %v4396_v59, 0.0  ;;  %vm11118_vm6 = vnez %v11008_v53 }
 0x5ec   : > { %v10367_v23 = vadd.f32 %v4616_v51, %v4483_v34  ;;  %v3988_v34 = vadd.f32 %v3980_v15, %v3847_v57  ;;  %v4473_v57 = vpop.f32.mrf.mxu0  ;;  %v3771_v18 = vsel %vm11118_vm6, %v10311_v52, 0.0  ;;  %vm11120_vm13 = vnez %v11010_v47 }
 0x5ed   : > { %v3848_v52 = vadd.f32 %v10313_v14, %v3771_v18  ;;  %v4091_v1 = vsel %vm11118_vm6, %v10329_v4, 0.0 }
 0x5ee   : > { %11114 = vst [vmem:[#allocation35_spill] sm:$0xff] %v10367_v23  ;;  %v4098_v51 = vadd.f32 %v4090_v37, %v3988_v34  ;;  %v10390_v23 = vpop.f32.mrf.mxu2 }
 0x5f0   : > { %v4167_v10 = vadd.f32 %v4153_v50, %v4098_v51  ;;  %v3982_v50 = vsel %vm11117_vm5, %v10337_v60, 0.0 }
 0x5f2   : > { %v10371_v40 = vpop.f32.mrf.mxu1  ;;  %v4308_v37 = vadd.f32 %v4300_v21, %v4167_v10 }
 0x5f3   : > { %11116 = vst [vmem:[#allocation37_spill] sm:$0xff] %v10371_v40  ;;  %v3769_v40 = vsel %vm9822_vm11, %v10301_v49, 0.0  ;;  %v4398_v49 = vpop.f32.mrf.mxu3  ;;  %vm11119_vm11 = vnez %v11016_v20 }
 0x5f4   : > { %v3846_v9 = vadd.f32 %v10303_v42, %v3769_v40  ;;  %v4418_v12 = vadd.f32 %v4410_v39, %v4308_v37  ;;  %v3772_v42 = vsel %vm9903_vm4, %v10319_v61, 0.0  ;;  %v4475_v39 = vpop.f32.mrf.mxu0  ;;  %v3773_v30 = vsel %vm11119_vm11, %v10325_v46, 0.0 }
 0x5f5   : > { %v3849_v59 = vadd.f32 %v10321_v38, %v3772_v42  ;;  %v4092_v38 = vsel %vm9903_vm4, %v10335_v36, 0.0  ;;  %v3850_v35 = vadd.f32 %v10327_v44, %v3773_v30 }
 0x5f6   : > { %v3987_v34 = vadd.f32 %v3979_v29, %v3846_v9  ;;  %v4487_v13 = vadd.f32 %v4473_v57, %v4418_v12  ;;  %v4291_v9 = vpop.f32.mrf.mxu2  ;;  %v3981_v12 = vsel %vm11120_vm13, %v10331_v17, 0.0 }
 0x5f7   : > { %v3990_v21 = vadd.f32 %v3982_v50, %v3849_v59  ;;  %v4302_v36 = vsel %vm11117_vm5, %v4291_v9, 0.0 }
 0x5f8   : > { %v4097_v5 = vadd.f32 %v4089_v28, %v3987_v34  ;;  %v3989_v28 = vadd.f32 %v3981_v12, %v3848_v52 }
 0x5fa   : > { %v10377_v0 = vpop.f32.mrf.mxu1  ;;  %v4166_v40 = vadd.f32 %v4150_v62, %v4097_v5  ;;  %v4100_v62 = vadd.f32 %v4092_v38, %v3990_v21  ;;  %v4099_v44 = vadd.f32 %v4091_v1, %v3989_v28  ;;  %v8100_v1 = vld [vmem:[%s8635_s24 + $0x8] sm:$0xff] }
 0x5fb   : > { %v4401_v34 = vpop.f32.mrf.mxu3  ;;  %4764 = vmatpush.bf16.msrb.mxu3 %v8100_v1  ;;  %v8114_v1 = vld [vmem:[%s11132_s22 + $0x60] sm:$0xff] }
 0x5fc   : > { %v4307_v61 = vadd.f32 %v4299_v3, %v4166_v40  ;;  %v4169_v46 = vadd.f32 %v10353_v56, %v4100_v62  ;;  %v4412_v17 = vsel %vm9903_vm4, %v4401_v34, 0.0  ;;  %v4478_v14 = vpop.f32.mrf.mxu0  ;;  %vm11122_vm4 = vnez %v10992_v32 }
 0x5fd   : > { %v4306_v62 = vadd.f32 %v4298_v7, %v10345_v31  ;;  %v4087_v47 = vsel %vm11122_vm4, %v10295_v45, 0.0 }
 0x5fe   : > { %v4417_v60 = vadd.f32 %v4409_v26, %v4307_v61  ;;  %v4293_v3 = vpop.f32.mrf.mxu2 }
 0x600   : > { %v4486_v57 = vadd.f32 %v4470_v63, %v4417_v60  ;;  %v4093_v63 = vsel %vm11119_vm11, %v10343_v25, 0.0  ;;  %v4411_v25 = vsel %vm11118_vm6, %v4398_v49, 0.0  ;;  %vm4938_vm6 = vcmask 1045504  }
 0x602   : > { %v4603_v15 = vpop.f32.mrf.mxu1 }
 0x603   : > { %v4619_v5 = vsel %vm9839_vm12, %v4603_v15, 0.0  ;;  %v4403_v56 = vpop.f32.mrf.mxu3  ;;  %v4301_v15 = vsel %vm11120_vm13, %v10390_v23, 0.0  ;;  %vm11123_vm12 = vnez %v10994_v55 }
 0x604   : > { %v4627_v50 = vadd.f32 %v4619_v5, %v4486_v57  ;;  %v3977_v53 = vsel %vm11123_vm12, %v10299_v48, 0.0  ;;  %v4480_v20 = vpop.f32.mrf.mxu0  ;;  %v4297_v2 = vsel %vm11123_vm12, %v10351_v58, 0.0  ;;  %v11127_v58 = vld [vmem:[#allocation37_spill] sm:$0xff] }
 0x605   : > { %v4617_v8 = vsel %vm11123_vm12, %v11127_v58, 0.0  ;;  %vm11145_vm12 = vmmov %vm11105_vm1 }
 0x60a   : > { %v4606_v51 = vpop.f32.mrf.mxu1 }
 0x60b   : > { %v4620_v29 = vsel %vm9863_vm14, %v4606_v51, 0.0  ;;  %vm11121_vm14 = vnez %v11018_v41  ;;  %v4618_v41 = vsel %vm9814_vm10, %v10377_v0, 0.0  ;;  %v11128_v0 = vld [vmem:[#allocation31_spill] sm:$0xff]  ;;  %vm4720_vm10 = vcmask 523264  }
 0x60c   : > { %v4628_v10 = vadd.f32 %v4620_v29, %v4487_v13  ;;  %v3983_v54 = vsel %vm11121_vm14, %v10341_v22, 0.0  ;;  %v4310_v22 = vadd.f32 %v4302_v36, %v4169_v46  ;;  %v4303_v40 = vsel %vm11121_vm14, %v4293_v3, 0.0  ;;  %v11125_v36 = vld [vmem:[#allocation34_spill] sm:$0xff]  ;;  %v11126_v46 = vld [vmem:[#allocation35_spill] sm:$0xff] }
 0x60d   : > { %v3991_v42 = vadd.f32 %v3983_v54, %v3850_v35  ;;  %v4168_v13 = vadd.f32 %v10349_v24, %v4099_v44  ;;  %v4413_v29 = vsel %vm11119_vm11, %v4403_v56, 0.0  ;;  %v3767_v24 = vsel %vm11122_vm4, %v10285_v27, 0.0  ;;  %vm11141_vm11 = vmmov %vm11139_vm3 }
 0x60e   : > { %4648 = vrot.lane.b32.xlu1 %v4628_v10, %s10923_s2  ;;  %v4420_v59 = vadd.f32 %v4412_v17, %v4310_v22  ;;  %v3844_v49 = vadd.f32 %v10287_v6, %v3767_v24  ;;  %v4408_v27 = vsel %vm9797_vm9, %v10363_v11, 0.0  ;;  %v11124_v11 = vld [vmem:[#allocation36_spill] sm:$0xff]  ;;  %v4407_v5 = vsel %vm11122_vm4, %v11125_v36, 0.0  ;;  %vm11144_vm4 = vmmov %vm11105_vm1 }
 0x60f   : > { %v4101_v43 = vadd.f32 %v4093_v63, %v3991_v42  ;;  %v4309_v61 = vadd.f32 %v4301_v15, %v4168_v13  ;;  %v4416_v54 = vadd.f32 %v4408_v27, %v4306_v62  ;;  %vm4664_vm9 = vcmask 261312   ;;  %v8454_v22 = vld [vmem:[%s8630_s19] ss:$0 sm:$0xff] }
 0x610   : > { %v4489_v4 = vadd.f32 %v4478_v14, %v4420_v59  ;;  %v3985_v30 = vadd.f32 %v3977_v53, %v3844_v49  ;;  %v8455_v14 = vld [vmem:[%s8630_s19 + $0x1] ss:$0 sm:$0xff] }
 0x611   : > { %v4170_v51 = vadd.f32 %v10357_v33, %v4101_v43  ;;  %v4419_v10 = vadd.f32 %v4411_v25, %v4309_v61 }
 0x612   : > { %v4608_v37 = vpop.f32.mrf.mxu1  ;;  %v4095_v6 = vadd.f32 %v4087_v47, %v3985_v30 }
 0x613   : > { %v4311_v23 = vadd.f32 %v4303_v40, %v4170_v51  ;;  %v4621_v33 = vsel %vm11120_vm13, %v4608_v37, 0.0  ;;  %v4488_v34 = vadd.f32 %v4475_v39, %v4419_v10  ;;  %v4485_v39 = vadd.f32 %v11124_v11, %v4416_v54  ;;  %vm11142_vm13 = vmmov %vm11139_vm3 }
 0x614   : > { %v4164_v31 = vadd.f32 %v10339_v19, %v4095_v6  ;;  %v8098_v6 = vld [vmem:[%s8640_s30] sm:$0xff] }
 0x615   : > { %v4421_v60 = vadd.f32 %v4413_v29, %v4311_v23  ;;  %v4629_v16 = vadd.f32 %v4621_v33, %v4488_v34  ;;  %v4626_v35 = vadd.f32 %v4618_v41, %v4485_v39  ;;  %v8101_v39 = vld [vmem:[%s11129_s12] sm:$0xff] }
 0x616   : > { %4646 = vrot.lane.b32.xlu1 %v4627_v50, %s10923_s2  ;;  %v4305_v52 = vadd.f32 %v4297_v2, %v4164_v31  ;;  %v8099_v2 = vld [vmem:[%s8635_s24] sm:$0xff] }
 0x617   : > { %v4490_v38 = vadd.f32 %v4480_v20, %v4421_v60  ;;  %4765 = vmatpush.bf16.msrb.mxu3 %v8099_v2 }
 0x618   : > { %v4415_v45 = vadd.f32 %v4407_v5, %v4305_v52  ;;  %v8456_v52 = vld [vmem:[%s11130_s16] ss:$0 sm:$0xff] }
 0x61a   : > { %v4611_v26 = vpop.f32.mrf.mxu1  ;;  %v4484_v19 = vadd.f32 %v11128_v0, %v4415_v45 }
 0x61b   : > { %v4622_v21 = vsel %vm11117_vm5, %v4611_v26, 0.0  ;;  %vm11140_vm5 = vmmov %vm11139_vm3 }
 0x61c   : > { %v4630_v9 = vadd.f32 %v4622_v21, %v4489_v4  ;;  %v4625_v57 = vadd.f32 %v4617_v8, %v4484_v19 }
 0x61e   : > { %4652 = vrot.lane.b32.xlu2 %v4630_v9, %s10923_s2 }
 0x622   : > { %v4613_v18 = vpop.f32.mrf.mxu1 }
 0x623   : > { %v4623_v48 = vsel %vm11121_vm14, %v4613_v18, 0.0  ;;  %vm11143_vm14 = vsmask.f32 7424 }
 0x624   : > { %v4631_v12 = vadd.f32 %v4623_v48, %v4490_v38 }
 0x626   : > { %4650 = vrot.lane.b32.xlu2 %v4629_v16, %s10923_s2  ;;  %4654 = vrot.lane.b32.xlu0 %v4631_v12, %s10923_s2 }
 0x62e   : > { %4640 = vrot.lane.b32.xlu2 %v11126_v46, %s10923_s2  ;;  %4644 = vrot.lane.b32.xlu0 %v4626_v35, %s10923_s2  ;;  %v8457_v46 = vld [vmem:[%s11130_s16 + $0x1] ss:$0 sm:$0xff] }
 0x636   : > { %4642 = vrot.lane.b32.xlu0 %v4625_v57, %s10923_s2  ;;  %s11134_s2 = sld [smem:[#allocation15_spill]] }
 0x678   : > { %v4653_v32 = vpop.permute.xlu2 %4652 }
 0x679   : > { %4671 = vst.msk [vmem:[#allocation2 + $0x30] sm:$0xff] %vm4664_vm9, %v4653_v32 }
 0x680   : > { %v4649_v37 = vpop.permute.xlu1 %4648  ;;  %v4651_v17 = vpop.permute.xlu2 %4650  ;;  %v4679_v50 = vld [vmem:[#allocation2 + $0x30] sm:$0xff] }
 0x681   : > { %4669 = vst.msk [vmem:[#allocation2 + $0x20] sm:$0xff] %vm4664_vm9, %v4649_v37  ;;  %v4689_v63 = vmul.f32 %v8454_v22, %v4679_v50  ;;  %v8112_v50 = vld [vmem:[%s11132_s22 + $0x50] sm:$0xff] }
 0x682   : > { %4670 = vst.msk [vmem:[#allocation2 + $0x28] sm:$0xff] %vm4664_vm9, %v4651_v17  ;;  %v8105_v17 = vld [vmem:[%s11132_s22 + $0x18] sm:$0xff] }
 0x683   : > { %v4699_v13 = vadd.f32 %v8455_v14, %v4689_v63  ;;  %v4930_v63 = vld [vmem:[#allocation3 + $0x4] sm:$0xc] }
 0x685   : > { %v4707_v29 = vmax.f32 %v4699_v13, 0.0  ;;  %v5197_v13 = vld [vmem:[#allocation3 + $0x10] sm:$0x3] }
 0x688   : > { %v4647_v55 = vpop.permute.xlu1 %4646  ;;  %v4641_v28 = vpop.permute.xlu2 %4640  ;;  %v4677_v3 = vld [vmem:[#allocation2 + $0x20] sm:$0xff] }
 0x689   : > { %4668 = vst.msk [vmem:[#allocation2 + $0x18] sm:$0xff] %vm4664_vm9, %v4647_v55  ;;  %v4678_v59 = vld [vmem:[#allocation2 + $0x28] sm:$0xff]  ;;  %v4687_v44 = vmul.f32 %v8454_v22, %v4677_v3  ;;  %v8113_v55 = vld [vmem:[%s11132_s22 + $0x58] sm:$0xff]  ;;  %v8458_v3 = vld [vmem:[%s11134_s2] ss:$0 sm:$0xff]  ;;  %s11163_s2 = sld [smem:[#allocation18_spill]] }
 0x68a   : > { %4665 = vst.msk [vmem:[#allocation2] sm:$0xff] %vm4664_vm9, %v4641_v28  ;;  %v4688_v43 = vmul.f32 %v8454_v22, %v4678_v59  ;;  %v8103_v28 = vld [vmem:[%s11132_s22 + $0x8] sm:$0xff]  ;;  %5184 = vmatpush.bf16.msra.mxu0 %v8113_v55  ;;  %v8102_v59 = vld [vmem:[%s11132_s22] sm:$0xff] }
 0x68b   : > { %v4697_v26 = vadd.f32 %v8455_v14, %v4687_v44  ;;  %4912 = vmatpush.bf16.msra.mxu3 %v8103_v28  ;;  %v5038_v44 = vld [vmem:[#allocation3 + $0x4] sm:$0x8]  ;;  %v8117_v28 = vld [vmem:[%s11132_s22 + $0x78] sm:$0xff] }
 0x68c   : > { %v4698_v25 = vadd.f32 %v8455_v14, %v4688_v43 }
 0x68d   : > { %v4705_v9 = vmax.f32 %v4697_v26, 0.0  ;;  %v8109_v26 = vld [vmem:[%s11132_s22 + $0x38] sm:$0xff] }
 0x68e   : > { %v4706_v10 = vmax.f32 %v4698_v25, 0.0  ;;  %5185 = vmatpush.bf16.msra.mxu0 %v8112_v50  ;;  %v8107_v25 = vld [vmem:[%s11132_s22 + $0x28] sm:$0xff] }
 0x68f   : > { %4913 = vmatpush.bf16.msra.mxu3 %v8102_v59 }
 0x690   : > { %v4676_v51 = vld [vmem:[#allocation2 + $0x18] sm:$0xff]  ;;  %v4713_v33 = vpack.c.bf16 %v4706_v10, %v4705_v9  ;;  %v5205_v10 = vunpack.c.l.b16 %v5197_v13 }
 0x691   : > { %v4686_v61 = vmul.f32 %v8454_v22, %v4676_v51  ;;  %v4673_v20 = vld [vmem:[#allocation2] sm:$0xff]  ;;  %v10529_v51 = vld [vmem:[#allocation3 + $0x10] sm:$0x7] }
 0x692   : > { %v4683_v18 = vmul.f32 %v8454_v22, %v4673_v20  ;;  %v8106_v20 = vld [vmem:[%s11132_s22 + $0x20] sm:$0xff] }
 0x693   : > { %v4696_v7 = vadd.f32 %v8455_v14, %v4686_v61 }
 0x694   : > { %v4693_v62 = vadd.f32 %v8455_v14, %v4683_v18 }
 0x695   : > { %v4704_v38 = vmax.f32 %v4696_v7, 0.0  ;;  %v10537_v7 = vpack.c.b16 %v5205_v10, %v5205_v10 }
 0x696   : > { %v4701_v12 = vmax.f32 %v4693_v62, 0.0 }
 0x698   : > { %v4655_v42 = vpop.permute.xlu0 %4654 }
 0x699   : > { %4672 = vst.msk [vmem:[#allocation2 + $0x38] sm:$0xff] %vm4664_vm9, %v4655_v42  ;;  %v8115_v42 = vld [vmem:[%s11132_s22 + $0x68] sm:$0xff] }
 0x69a   : > { %5246 = vmatpush.bf16.msra.mxu1 %v8115_v42 }
 0x69e   : > { %5247 = vmatpush.bf16.msra.mxu1 %v8114_v1 }
 0x6a0   : > { %v4645_v56 = vpop.permute.xlu0 %4644  ;;  %v4680_v15 = vld [vmem:[#allocation2 + $0x38] sm:$0xff] }
 0x6a1   : > { %4667 = vst.msk [vmem:[#allocation2 + $0x10] sm:$0xff] %vm4664_vm9, %v4645_v56  ;;  %v4690_v40 = vmul.f32 %v8454_v22, %v4680_v15  ;;  %v11136_v56 = vmov 0  }
 0x6a3   : > { %v4700_v4 = vadd.f32 %v8455_v14, %v4690_v40  ;;  %v5138_v40 = vld [vmem:[#allocation3 + $0x10] sm:$0x1] }
 0x6a4   : > { %5423 = vst.msk [vmem:[#allocation3 + $0x10] sm:$0xf] %vm11138_vm15, %v11136_v56  ;;  %v5148_v9 = vunpack.c.l.b16 %v5138_v40 }
 0x6a5   : > { %v4708_v21 = vmax.f32 %v4700_v4, 0.0 }
 0x6a7   : > { %v4714_v23 = vpack.c.bf16 %v4708_v21, %v4707_v29  ;;  %v8108_v21 = vld [vmem:[%s11132_s22 + $0x30] sm:$0xff] }
 0x6a8   : > { %v4643_v60 = vpop.permute.xlu0 %4642  ;;  %v4675_v24 = vld [vmem:[#allocation2 + $0x10] sm:$0xff] }
 0x6a9   : > { %4666 = vst.msk [vmem:[#allocation2 + $0x8] sm:$0xff] %vm4664_vm9, %v4643_v60  ;;  %4728 = vmatpush.bf16.msrb.mxu2 %v4714_v23  ;;  %v4685_v53 = vmul.f32 %v8454_v22, %v4675_v24 }
 0x6ab   : > { %v4695_v49 = vadd.f32 %v8455_v14, %v4685_v53  ;;  %v5150_v53 = vpack.c.b16 %v5148_v9, %v5148_v9 }
 0x6ad   : > { %4729 = vmatpush.bf16.msrb.mxu2 %v4713_v33  ;;  %v4703_v34 = vmax.f32 %v4695_v49, 0.0  ;;  %v5159_v33 = vshll.u32 %v5150_v53, 16  ;;  %v5217_v49 = vshrl.u32 %v10537_v7, 16 }
 0x6af   : > { %v4712_v27 = vpack.c.bf16 %v4704_v38, %v4703_v34  ;;  %v5220_v34 = vshll.u32 %v10537_v7, 16  ;;  %v4936_v38 = vunpack.c.l.b16 %v4930_v63 }
 0x6b0   : > { %v4674_v48 = vld [vmem:[#allocation2 + $0x8] sm:$0xff] }
 0x6b1   : > { %4730 = vmatpush.bf16.msrb.mxu2 %v4712_v27  ;;  %v4684_v30 = vmul.f32 %v8454_v22, %v4674_v48  ;;  %v8104_v22 = vld [vmem:[%s11132_s22 + $0x10] sm:$0xff] }
 0x6b3   : > { %v4694_v16 = vadd.f32 %v8455_v14, %v4684_v30  ;;  %v4858_v14 = vld [vmem:[#allocation3 + $0x4] sm:$0xe] }
 0x6b4   : > { %5420 = vst.msk [vmem:[#allocation3 + $0x4] sm:$0xf] %vm11137_vm8, %v11136_v56  ;;  %v4868_v18 = vunpack.c.l.b16 %v4858_v14  ;;  %vm4981_vm8 = vsmask.f32 5376 }
 0x6b5   : > { %v4702_v54 = vmax.f32 %v4694_v16, 0.0 }
 0x6b7   : > { %v4711_v47 = vpack.c.bf16 %v4702_v54, %v4701_v12  ;;  %v5161_v12 = vrot.slane %v5159_v33, 1  ;;  %v5219_v54 = vrot.slane %v5217_v49, 1  ;;  %v8110_v33 = vld [vmem:[%s11132_s22 + $0x40] sm:$0xff] }
 0x6b9   : > { %4731 = vmatpush.bf16.msrb.mxu2 %v4711_v47  ;;  %v5046_v47 = vunpack.c.l.b16 %v5038_v44 }
 0x6bc   : > { %7595 = vmatmul.msk.bf16.vlgmr.msrb.gmra.mxu2 %vm4720_vm10, %v8098_v6  ;;  %vm4873_vm10 = vsmask.f32 6400 }
 0x6bd   : > { %4833 = vmatpush.bf16.msra.mxu2 %v8101_v39 }
 0x6c1   : > { %4963 = vmatpush.bf16.msrb.mxu2 %v8105_v17 }
 0x6c5   : > { %4964 = vmatpush.bf16.msrb.mxu2 %v8104_v22 }
 0x73f   : > { %v4733_v41 = vpop.f32.mrf.mxu2 }
 0x747   : > { %v4735_v31 = vpop.f32.mrf.mxu2 }
 0x748   : > { %v4738_v11 = vpack.c.bf16 %v4735_v31, %v4733_v41  ;;  %v5222_v31 = vrot.slane %v5220_v34, 2 }
 0x74a   : > { %7604 = vmatmul.msk.bf16.vlgmr.msrb.gmra.mxu3 %vm11105_vm1, %v4738_v11 }
 0x74b   : > { %5020 = vmatpush.bf16.msrb.mxu3 %v8107_v25 }
 0x74f   : > { %5021 = vmatpush.bf16.msrb.mxu3 %v8106_v20 }
 0x7cd   : > { %v4767_v36 = vpop.f32.mrf.mxu3 }
 0x7ce   : > { %4772 = vst.msk [vmem:[#allocation2] sm:$0xff] %vm11131_vm0, %v4767_v36  ;;  %vm11146_vm0 = vmmov %vm11105_vm1 }
 0x7cf   : > { %vm11149_vm15 = vmmov %vm11146_vm0 }
 0x7d5   : > { %v4769_v5 = vpop.f32.mrf.mxu3  ;;  %v4798_v35 = vld [vmem:[#allocation2] sm:$0xff] }
 0x7d6   : > { %4773 = vst.msk [vmem:[#allocation2 + $0x8] sm:$0xff] %vm11133_vm7, %v4769_v5  ;;  %v4802_v45 = vmul.f32 %v8456_v52, %v4798_v35  ;;  %vm11147_vm7 = vsmask.f32 4352 }
 0x7d8   : > { %v4806_v0 = vadd.f32 %v8457_v46, %v4802_v45 }
 0x7da   : > { %v4808_v57 = vmax.f32 %v4806_v0, 0.0 }
 0x7dd   : > { %v4799_v58 = vld [vmem:[#allocation2 + $0x8] sm:$0xff] }
 0x7de   : > { %v4803_v8 = vmul.f32 %v8456_v52, %v4799_v58 }
 0x7e0   : > { %v4807_v19 = vadd.f32 %v8457_v46, %v4803_v8 }
 0x7e2   : > { %v4809_v32 = vmax.f32 %v4807_v19, 0.0 }
 0x7e4   : > { %v4810_v37 = vpack.c.bf16 %v4809_v32, %v4808_v57 }
 0x7e6   : > { %7609 = vmatmul.msk.bf16.vlgmr.msra.gmra.mxu2 %vm11135_vm2, %v4810_v37  ;;  %vm11148_vm2 = vmmov %vm11146_vm0 }
 0x7e7   : > { %5088 = vmatpush.bf16.msra.mxu2 %v8109_v26  ;;  %v8116_v26 = vld [vmem:[%s11132_s22 + $0x70] sm:$0xff] }
 0x7eb   : > { %5089 = vmatpush.bf16.msra.mxu2 %v8108_v21 }
 0x869   : > { %v4835_v43 = vpop.f32.mrf.mxu2 }
 0x86a   : > { %v4836_v15 = vadd.f32 %v8458_v3, %v4835_v43 }
 0x86c   : > { %v4840_v4 = vmax.f32 %v4836_v15, 0.0 }
 0x86e   : > { %v4854_v29 = vpack.c.bf16 %v4840_v4, %v4840_v4  ;;  %v5223_v4 = vor.u32 %v5222_v31, %v5219_v54 }
 0x870   : > { %4856 = vst.msk [vmem:[#allocation3 + $0x8] sm:$0xf] %vm11139_vm3, %v4854_v29  ;;  %vm11150_vm3 = vmmov %vm11146_vm0 }
 0x871   : > { %v4837_v61 = vpop.f32.mrf.mxu2 }
 0x872   : > { %v4838_v23 = vadd.f32 %v8458_v3, %v4837_v61  ;;  %v8111_v61 = vld [vmem:[%s11132_s22 + $0x48] sm:$0xff] }
 0x874   : > { %v4841_v60 = vmax.f32 %v4838_v23, 0.0 }
 0x876   : > { %v4855_v24 = vpack.c.bf16 %v4841_v60, %v4841_v60 }
 0x877   : > { %v5196_v27 = vld [vmem:[#allocation3 + $0x8] sm:$0xe] }
 0x878   : > { %4857 = vst.msk [vmem:[#allocation3 + $0xc] sm:$0xf] %vm11140_vm5, %v4855_v24  ;;  %v10543_v48 = vld [vmem:[#allocation3 + $0x8] sm:$0xc]  ;;  %v5204_v5 = vunpack.c.l.b16 %v5196_v27  ;;  %vm11151_vm5 = vmmov %vm11146_vm0 }
 0x87f   : > { %v10545_v30 = vld [vmem:[#allocation3 + $0x8] sm:$0xff]  }
 0x880   : > { %v4860_v62 = vld [vmem:[#allocation3 + $0xc] sm:$0x3]  ;;  %v4869_v6 = vunpack.c.l.b16 %v10545_v30  ;;  %v5047_v52 = vunpack.c.h.b16 %v10545_v30 }
 0x881   : > { %v10547_v16 = vld [vmem:[#allocation3 + $0x8] sm:$0xff]   ;;  %v4870_v2 = vunpack.c.l.b16 %v4860_v62 }
 0x882   : > { %v5154_v41 = vshll.u32 %v10547_v16, 16  ;;  %v4973_v11 = vld [vmem:[#allocation3 + $0xc] sm:$0x7]  ;;  %5421 = vst.msk [vmem:[#allocation3 + $0x8] sm:$0xf] %vm11141_vm11, %v11136_v56  ;;  %v5152_v39 = vshrl.u32 %v10547_v16, 16  ;;  %v8262_v36 = vunpack.c.h.b16 %v10547_v16  ;;  %v4937_v45 = vpack.c.b16 %v4869_v6, %v4936_v38  ;;  %vm11152_vm11 = vmmov %vm11146_vm0 }
 0x883   : > { %5422 = vst.msk [vmem:[#allocation3 + $0xc] sm:$0xf] %vm11142_vm13, %v11136_v56  ;;  %v4872_v35 = vpack.c.b16 %v4870_v2, %v4870_v2  ;;  %v4871_v58 = vpack.c.b16 %v4869_v6, %v4868_v18  ;;  %v5048_v0 = vpack.c.b16 %v4869_v6, %v5046_v47  ;;  %v5049_v19 = vpack.c.b16 %v5047_v52, %v5047_v52 }
 0x884   : > { %v5156_v46 = vrot.slane %v5154_v41, 1  ;;  %v5206_v8 = vpack.c.b16 %v8262_v36, %v5204_v5  ;;  %v4979_v57 = vunpack.c.l.b16 %v4973_v11  ;;  %v4939_v32 = vrot.slane %v4937_v45, 2 }
 0x885   : > { %v4940_v37 = vrot.slane %v4872_v35, 2  ;;  %v4875_v55 = vshrl.u32 %v4871_v58, 16  ;;  %v4878_v42 = vshll.u32 %v4871_v58, 16  ;;  %v4883_v22 = vshrl.u32 %v4872_v35, 16  ;;  %v8118_v58 = vld [vmem:[%s11132_s22 + $0x80] sm:$0xff] }
 0x886   : > { %v5157_v17 = vor.u32 %v5156_v46, %v5152_v39  ;;  %v4886_v50 = vshll.u32 %v4872_v35, 16  ;;  %v5209_v3 = vshrl.u32 %v5206_v8, 16  ;;  %v5212_v14 = vshll.u32 %v5206_v8, 16  ;;  %v8119_v35 = vld [vmem:[%s11132_s22 + $0x88] sm:$0xff] }
 0x887   : > { %v4941_v59 = vsel %vm4938_vm6, %v4939_v32, %v4940_v37  ;;  %v4877_v63 = vrot.slane %v4875_v55, 1  ;;  %v4880_v44 = vrot.slane %v4878_v42, 2  ;;  %v4885_v43 = vrot.slane %v4883_v22, 1 }
 0x888   : > { %v5162_v1 = vsel %vm11143_vm14, %v5157_v17, %v5161_v12  ;;  %7627 = vmatmul.msk.bf16.vlgmr.msrb.gmra.mxu2 %vm11144_vm4, %v4941_v59  ;;  %v4888_v15 = vrot.slane %v4886_v50, 2  ;;  %v5211_v40 = vrot.slane %v5209_v3, 1  ;;  %v5214_v13 = vrot.slane %v5212_v14, 2 }
 0x889   : > { %7663 = vmatmul.msk.bf16.vlgmr.msra.gmra.mxu0 %vm11145_vm12, %v5162_v1  ;;  %5290 = vmatpush.bf16.msrb.mxu2 %v8117_v28  ;;  %v4881_v25 = vor.u32 %v4880_v44, %v4877_v63  ;;  %v5051_v21 = vshrl.u32 %v5048_v0, 16  ;;  %v5054_v9 = vshll.u32 %v5048_v0, 16  ;;  %v5059_v10 = vshrl.u32 %v5049_v19, 16 }
 0x88a   : > { %v4889_v29 = vor.u32 %v4888_v15, %v4885_v43  ;;  %v5215_v23 = vor.u32 %v5214_v13, %v5211_v40  ;;  %v5062_v60 = vshll.u32 %v5049_v19, 16  ;;  %v4980_v53 = vpack.c.b16 %v4979_v57, %v4979_v57 }
 0x88b   : > { %v5053_v49 = vrot.slane %v5051_v21, 3  ;;  %v5056_v34 = vrot.slane %v5054_v9, 4  ;;  %v5061_v38 = vrot.slane %v5059_v10, 3  ;;  %v4983_v27 = vshrl.u32 %v4937_v45, 16 }
 0x88c   : > { %v4890_v24 = vsel %vm4873_vm10, %v4881_v25, %v4889_v29  ;;  %v5224_v20 = vsel %vm4873_vm10, %v5215_v23, %v5223_v4  ;;  %v5064_v18 = vrot.slane %v5062_v60, 4  ;;  %v4986_v62 = vshll.u32 %v4937_v45, 16  ;;  %v11158_v29 = vld [vmem:[#allocation33_spill] sm:$0xff] }
 0x88d   : > { %7618 = vmatmul.msk.bf16.vlgmr.msra.gmra.mxu3 %vm11105_vm1, %v4890_v24  ;;  %5291 = vmatpush.bf16.msrb.mxu2 %v8116_v26  ;;  %v4991_v12 = vshrl.u32 %v4980_v53, 16  ;;  %v4994_v54 = vshll.u32 %v4980_v53, 16  ;;  %v5057_v47 = vor.u32 %v5056_v34, %v5053_v49  ;;  %v4985_v2 = vrot.slane %v4983_v27, 2 }
 0x88e   : > { %7672 = vmatmul.msk.bf16.vlgmr.msra.gmra.mxu1 %vm11146_vm0, %v5224_v20  ;;  %5126 = vmatpush.bf16.msra.mxu3 %v8111_v61  ;;  %v5065_v6 = vor.u32 %v5064_v18, %v5061_v38  ;;  %v4988_v41 = vrot.slane %v4986_v62, 3  ;;  %v5264_v46 = vunpack.c.l.b16 %v10543_v48  ;;  %v5267_v19 = vrot.slane %v10537_v7, 2 }
 0x88f   : > { %v4993_v31 = vrot.slane %v4991_v12, 2  ;;  %v4996_v11 = vrot.slane %v4994_v54, 3  ;;  %v5306_v32 = vunpack.c.l.b16 %v10529_v51  ;;  %v4785_v21 = vand.u32 3, %v11158_v29  ;;  %v8126_v29 = vld [vmem:[%s11167_s5 + $0x28] sm:$0xff] }
 0x890   : > { %v5066_v39 = vsel %vm11147_vm7, %v5057_v47, %v5065_v6  ;;  %v4989_v5 = vor.u32 %v4988_v41, %v4985_v2  ;;  %v5265_v8 = vpack.c.b16 %v8262_v36, %v5264_v46  ;;  %vm11165_vm1 = vcmask 1043456  }
 0x891   : > { %v4997_v52 = vor.u32 %v4996_v11, %v4993_v31  ;;  %v5307_v37 = vpack.c.b16 %v5306_v32, %v5306_v32  ;;  %vm10603_vm4 = vcmp.ge.s32.totalorder %v4785_v21, 1  ;;  %vm10611_vm12 = vcmp.lt.s32.totalorder %v4785_v21, 3  ;;  %v8128_v21 = vld [vmem:[%s11167_s5 + $0x38] sm:$0xff] }
 0x892   : > { %5127 = vmatpush.bf16.msra.mxu3 %v8110_v33  ;;  %v5266_v0 = vrot.slane %v5265_v8, 2  ;;  %v5309_v48 = vshrl.u32 %v5265_v8, 16  ;;  %v5312_v17 = vshll.u32 %v5265_v8, 16  ;;  %vm11166_vm0 = vcmask 195712  }
 0x893   : > { %v4998_v45 = vsel %vm4981_vm8, %v4989_v5, %v4997_v52  ;;  %v5317_v55 = vshrl.u32 %v5307_v37, 16  ;;  %v5320_v28 = vshll.u32 %v5307_v37, 16  ;;  %vm11168_vm7 = vmmov %vm11166_vm0 }
 0x894   : > { %v5268_v57 = vsel %vm4938_vm6, %v5266_v0, %v5267_v19  ;;  %v5311_v16 = vrot.slane %v5309_v48, 2  ;;  %v5314_v36 = vrot.slane %v5312_v17, 3 }
 0x895   : > { %v5319_v42 = vrot.slane %v5317_v55, 2  ;;  %v5322_v22 = vrot.slane %v5320_v28, 3  ;;  %v5383_v55 = vld [vmem:[%s11163_s2 + $0x8] sm:$0xf] }
 0x896   : > { %v5315_v50 = vor.u32 %v5314_v36, %v5311_v16  ;;  %v5393_v28 = vunpack.c.l.b16 %v5383_v55 }
 0x897   : > { %v5323_v7 = vor.u32 %v5322_v22, %v5319_v42  ;;  %v8120_v42 = vld [vmem:[%s11163_s2] sm:$0xff]  ;;  %s11191_s2 = sld [smem:[#allocation21_spill]] }
 0x898   : > { %7645 = vmatmul.msk.bf16.vlgmr.msra.gmra.mxu2 %vm11148_vm2, %v5066_v39  ;;  %v5395_v16 = vpack.c.b16 %v5393_v28, %v5393_v28  ;;  %vm11170_vm2 = vcmask 195584  }
 0x899   : > { %v5324_v3 = vsel %vm4981_vm8, %v5315_v50, %v5323_v7  ;;  %v8459_v7 = vld [vmem:[%s11164_s3] ss:$0 sm:$0xff] }
 0x89a   : > { %v5401_v36 = vsel %vm11165_vm1, %v5395_v16, 0 }
 0x89b   : > { %5409 = vmatpush.bf16.msrb.mxu0 %v5401_v36 }
 0x89d   : > { %7636 = vmatmul.msk.bf16.vlgmr.msrb.gmra.mxu3 %vm11149_vm15, %v4998_v45  ;;  %vm11171_vm15 = vcmask 257024  }
 0x89e   : > { %5346 = vmatpush.bf16.msrb.mxu3 %v8119_v35 }
 0x89f   : > { %5410 = vmatpush.bf16.msrb.mxu0 %v8120_v42 }
 0x8a2   : > { %5347 = vmatpush.bf16.msrb.mxu3 %v8118_v58 }
 0x8a3   : > { %5650 = vmatpush.bf16.msra.mxu0 %v8128_v21 }
 0x8a8   : > { %7681 = vmatmul.msk.bf16.vlgmr.msrb.gmra.mxu2 %vm11150_vm3, %v5268_v57  ;;  %vm11172_vm3 = vmmov %vm11171_vm15 }
 0x8a9   : > { %vm11175_vm1 = vmmov %vm11172_vm3 }
 0x8ad   : > { %7654 = vmatmul.msk.bf16.vlgmr.msra.gmra.mxu3 %vm11151_vm5, %v10545_v30  ;;  %v11153_v30 = vld [vmem:[#allocation32_spill] sm:$0xff]  ;;  %vm11173_vm5 = vmmov %vm11172_vm3 }
 0x8ae   : > { %v4778_v44 = vand.u32 3, %v11153_v30  ;;  %5588 = vmatpush.bf16.msra.mxu3 %v8126_v29 }
 0x8b0   : > { %vm10590_vm13 = vcmp.ge.s32.totalorder %v4778_v44, 1  ;;  %vm10596_vm14 = vcmp.lt.s32.totalorder %v4778_v44, 3 }
 0x8bd   : > { %7690 = vmatmul.msk.bf16.vlgmr.msrb.gmra.mxu3 %vm11152_vm11, %v5324_v3  ;;  %vm11174_vm11 = vmmov %vm11172_vm3 }
 0x906   : > { %v5187_v24 = vpop.f32.mrf.mxu0 }
 0x907   : > { %v5192_v62 = vsel %vm10596_vm14, %v5187_v24, 0.0  ;;  %v8127_v24 = vld [vmem:[%s11167_s5 + $0x30] sm:$0xff] }
 0x908   : > { %5651 = vmatpush.bf16.msra.mxu0 %v8127_v24 }
 0x90b   : > { %v4966_v51 = vpop.f32.mrf.mxu2  ;;  %v5249_v18 = vpop.f32.mrf.mxu1 }
 0x90c   : > { %v5254_v2 = vsel %vm10590_vm13, %v5249_v18, 0.0  ;;  %v5700_v18 = vld [vmem:[#allocation3 + $0x10] sm:$0x1] }
 0x90e   : > { %v5189_v41 = vpop.f32.mrf.mxu0 }
 0x90f   : > { %v5193_v5 = vsel %vm10611_vm12, %v5189_v41, 0.0 }
 0x910   : > { %v4915_v59 = vpop.f32.mrf.mxu3 }
 0x911   : > { %v4926_v40 = vsel %vm10590_vm13, %v4915_v59, 0.0 }
 0x912   : > { %v4971_v25 = vadd.f32 %v4966_v51, %v4926_v40  ;;  %v8460_v51 = vld [vmem:[%s11164_s3 + $0x1] ss:$0 sm:$0xff]  ;;  %s11192_s3 = smov 24  }
 0x913   : > { %v4968_v63 = vpop.f32.mrf.mxu2  ;;  %v5251_v52 = vpop.f32.mrf.mxu1 }
 0x914   : > { %v5255_v0 = vsel %vm10603_vm4, %v5251_v52, 0.0 }
 0x918   : > { %v4917_v1 = vpop.f32.mrf.mxu3 }
 0x919   : > { %v4927_v10 = vsel %vm10603_vm4, %v4917_v1, 0.0 }
 0x91a   : > { %v4972_v34 = vadd.f32 %v4968_v63, %v4927_v10  ;;  %v8121_v10 = vld [vmem:[%s11167_s5] sm:$0xff] }
 0x91b   : > { %v5091_v13 = vpop.f32.mrf.mxu2 }
 0x91c   : > { %v5096_v60 = vsel %vm10590_vm13, %v5091_v13, 0.0 }
 0x920   : > { %v5023_v14 = vpop.f32.mrf.mxu3 }
 0x921   : > { %v5034_v26 = vsel %vm10596_vm14, %v5023_v14, 0.0 }
 0x922   : > { %v5036_v61 = vadd.f32 %v5034_v26, %v4971_v25  ;;  %v8124_v26 = vld [vmem:[%s11167_s5 + $0x18] sm:$0xff]  ;;  %v8122_v25 = vld [vmem:[%s11167_s5 + $0x8] sm:$0xff] }
 0x923   : > { %v5093_v33 = vpop.f32.mrf.mxu2  ;;  %5532 = vmatpush.bf16.msra.mxu2 %v8124_v26  ;;  %5488 = vmatpush.bf16.msrb.mxu1 %v8122_v25 }
 0x924   : > { %v5098_v20 = vadd.f32 %v5096_v60, %v5036_v61  ;;  %v5097_v47 = vsel %vm10603_vm4, %v5093_v33, 0.0  ;;  %v8123_v61 = vld [vmem:[%s11167_s5 + $0x10] sm:$0xff]  ;;  %v8125_v60 = vld [vmem:[%s11167_s5 + $0x20] sm:$0xff] }
 0x925   : > { %v5500_v33 = vld [vmem:[#allocation3 + $0x4] sm:$0xc]  ;;  %5589 = vmatpush.bf16.msra.mxu3 %v8125_v60 }
 0x927   : > { %5533 = vmatpush.bf16.msra.mxu2 %v8123_v61  ;;  %5489 = vmatpush.bf16.msrb.mxu1 %v8121_v10 }
 0x928   : > { %v5025_v15 = vpop.f32.mrf.mxu3 }
 0x929   : > { %v5035_v49 = vsel %vm10611_vm12, %v5025_v15, 0.0 }
 0x92a   : > { %v5037_v27 = vadd.f32 %v5035_v49, %v4972_v34  ;;  %v5435_v34 = vld [vmem:[#allocation3 + $0x4] sm:$0xe] }
 0x92b   : > { %v5293_v39 = vpop.f32.mrf.mxu2 }
 0x92c   : > { %v5099_v6 = vadd.f32 %v5097_v47, %v5037_v27  ;;  %v10652_v27 = vld [vmem:[#allocation3 + $0x10] sm:$0x3] }
 0x930   : > { %v5129_v9 = vpop.f32.mrf.mxu3 }
 0x931   : > { %v5134_v38 = vadd.f32 %v5129_v9, %v5098_v20 }
 0x933   : > { %v5194_v12 = vadd.f32 %v5192_v62, %v5134_v38  ;;  %v5295_v57 = vpop.f32.mrf.mxu2  ;;  %v5600_v38 = vld [vmem:[#allocation3 + $0x4] sm:$0x8]  ;;  %v10654_v62 = vld [vmem:[#allocation3 + $0x10] sm:$0x7] }
 0x934   : > { %6046 = vst.msk [vmem:[#allocation3 + $0x4] sm:$0xf] %vm11171_vm15, %v11136_v56  ;;  %vm11179_vm15 = vcmask 261120  }
 0x935   : > { %v5256_v31 = vadd.f32 %v5254_v2, %v5194_v12  ;;  %6049 = vst.msk [vmem:[#allocation3 + $0x10] sm:$0xf] %vm11172_vm3, %v11136_v56  ;;  %v8130_v2 = vld [vmem:[%s11167_s5 + $0x48] sm:$0xff]  ;;  %vm11180_vm3 = vmmov %vm11179_vm15 }
 0x936   : > { %6478 = vst.msk [vmem:[#allocation3 + $0x10] sm:$0xf] %vm11173_vm5, %v11136_v56  ;;  %5688 = vmatpush.bf16.msra.mxu1 %v8130_v2  ;;  %v8138_v2 = vld [vmem:[%s11167_s5 + $0x88] sm:$0xff]  ;;  %vm11181_vm5 = vmmov %vm11180_vm3 }
 0x937   : > { %v5298_v45 = vadd.f32 %v5293_v39, %v5256_v31  ;;  %v8134_v31 = vld [vmem:[%s11167_s5 + $0x68] sm:$0xff]  ;;  %v8131_v39 = vld [vmem:[%s11167_s5 + $0x50] sm:$0xff] }
 0x938   : > { %v5131_v54 = vpop.f32.mrf.mxu3  ;;  %5808 = vmatpush.bf16.msrb.mxu3 %v8134_v31 }
 0x939   : > { %v5135_v11 = vadd.f32 %v5131_v54, %v5099_v6  ;;  %v8132_v6 = vld [vmem:[%s11167_s5 + $0x58] sm:$0xff] }
 0x93a   : > { %5746 = vmatpush.bf16.msrb.mxu2 %v8132_v6 }
 0x93b   : > { %v5195_v35 = vadd.f32 %v5193_v5, %v5135_v11  ;;  %v8136_v11 = vld [vmem:[%s11167_s5 + $0x78] sm:$0xff] }
 0x93d   : > { %v5257_v19 = vadd.f32 %v5255_v0, %v5195_v35  ;;  %v8129_v35 = vld [vmem:[%s11167_s5 + $0x40] sm:$0xff]  ;;  %v5445_v0 = vunpack.c.l.b16 %v5435_v34 }
 0x93e   : > { %5747 = vmatpush.bf16.msrb.mxu2 %v8131_v39  ;;  %5689 = vmatpush.bf16.msra.mxu1 %v8129_v35 }
 0x93f   : > { %v5299_v32 = vadd.f32 %v5295_v57, %v5257_v19 }
 0x940   : > { %v5349_v46 = vpop.f32.mrf.mxu3 }
 0x941   : > { %v5354_v58 = vsel %vm10596_vm14, %v5349_v46, 0.0  ;;  %v8135_v46 = vld [vmem:[%s11167_s5 + $0x70] sm:$0xff] }
 0x942   : > { %v5356_v8 = vadd.f32 %v5354_v58, %v5298_v45  ;;  %v8133_v45 = vld [vmem:[%s11167_s5 + $0x60] sm:$0xff]  ;;  %v5710_v58 = vunpack.c.l.b16 %v5700_v18 }
 0x943   : > { %5809 = vmatpush.bf16.msrb.mxu3 %v8133_v45 }
 0x944   : > { %5360 = vrot.lane.b32.xlu1 %v5356_v8, %s10926_s23  ;;  %v5506_v8 = vunpack.c.l.b16 %v5500_v33  ;;  %v10676_v36 = vpack.c.b16 %v5710_v58, %v5710_v58 }
 0x948   : > { %v5351_v37 = vpop.f32.mrf.mxu3 }
 0x949   : > { %v5355_v48 = vsel %vm10611_vm12, %v5351_v37, 0.0  ;;  %v5608_v37 = vunpack.c.l.b16 %v5600_v38 }
 0x94a   : > { %v5357_v17 = vadd.f32 %v5355_v48, %v5299_v32 }
 0x94c   : > { %5362 = vrot.lane.b32.xlu2 %v5357_v17, %s10926_s23  ;;  %s11169_s23 = sld [smem:[#allocation19_spill]] }
 0x952   : > { %v8461_v9 = vld [vmem:[%s11169_s23] ss:$0 sm:$0xff]  ;;  %s11190_s23 = sld [smem:[#allocation22_spill]] }
 0x958   : > { %v8140_v4 = vld [vmem:[%s11190_s23 + $0x8] sm:$0xff] }
 0x9a6   : > { %v5363_v22 = vpop.permute.xlu2 %5362 }
 0x9a7   : > { %5367 = vst.msk [vmem:[#allocation2 + $0x8] sm:$0xff] %vm11166_vm0, %v5363_v22  ;;  %vm11176_vm0 = vmmov %vm11175_vm1 }
 0x9ae   : > { %v5369_v3 = vld [vmem:[#allocation2 + $0x8] sm:$0xff] }
 0x9af   : > { %v5373_v59 = vmul.f32 %v8459_v7, %v5369_v3 }
 0x9b1   : > { %v5377_v14 = vadd.f32 %v8460_v51, %v5373_v59 }
 0x9b3   : > { %v5379_v40 = vmax.f32 %v5377_v14, 0.0  ;;  %v5767_v14 = vunpack.c.l.b16 %v10652_v27 }
 0x9b6   : > { %v5361_v50 = vpop.permute.xlu1 %5360 }
 0x9b7   : > { %5366 = vst.msk [vmem:[#allocation2] sm:$0xff] %vm11168_vm7, %v5361_v50  ;;  %vm11177_vm7 = vmmov %vm11176_vm0 }
 0x9be   : > { %v5368_v1 = vld [vmem:[#allocation2] sm:$0xff] }
 0x9bf   : > { %v5372_v63 = vmul.f32 %v8459_v7, %v5368_v1 }
 0x9c1   : > { %v5376_v44 = vadd.f32 %v8460_v51, %v5372_v63 }
 0x9c3   : > { %v5378_v15 = vmax.f32 %v5376_v44, 0.0 }
 0x9c5   : > { %v5380_v13 = vpack.c.bf16 %v5379_v40, %v5378_v15 }
 0x9c7   : > { %7695 = vmatmul.msk.bf16.vlgmr.msrb.gmra.mxu0 %vm11170_vm2, %v5380_v13  ;;  %vm11178_vm2 = vmmov %vm11176_vm0 }
 0x9c8   : > { %5852 = vmatpush.bf16.msrb.mxu0 %v8136_v11 }
 0x9cc   : > { %5853 = vmatpush.bf16.msrb.mxu0 %v8135_v46 }
 0xa44   : > { %v5412_v20 = vpop.f32.mrf.mxu0 }
 0xa45   : > { %v5413_v49 = vadd.f32 %v8461_v9, %v5412_v20 }
 0xa47   : > { %v5417_v12 = vmax.f32 %v5413_v49, 0.0 }
 0xa49   : > { %v5431_v54 = vpack.c.bf16 %v5417_v12, %v5417_v12 }
 0xa4b   : > { %5433 = vst.msk [vmem:[#allocation3 + $0x8] sm:$0xf] %vm11174_vm11, %v5431_v54  ;;  %vm11182_vm11 = vsmask.f32 4352 }
 0xa4c   : > { %v5414_v47 = vpop.f32.mrf.mxu0 }
 0xa4d   : > { %v5415_v41 = vadd.f32 %v8461_v9, %v5414_v47 }
 0xa4f   : > { %v5418_v5 = vmax.f32 %v5415_v41, 0.0 }
 0xa51   : > { %v5432_v52 = vpack.c.bf16 %v5418_v5, %v5418_v5 }
 0xa52   : > { %v5758_v3 = vld [vmem:[#allocation3 + $0x8] sm:$0xe] }
 0xa53   : > { %5434 = vst.msk [vmem:[#allocation3 + $0xc] sm:$0xf] %vm11175_vm1, %v5432_v52  ;;  %v10682_v59 = vld [vmem:[#allocation3 + $0x8] sm:$0xc]  ;;  %v5766_v58 = vunpack.c.l.b16 %v5758_v3  ;;  %vm11183_vm1 = vmmov %vm11180_vm3 }
 0xa5a   : > { %v10670_v19 = vld [vmem:[#allocation3 + $0x8] sm:$0xff]  }
 0xa5b   : > { %v5437_v57 = vld [vmem:[#allocation3 + $0xc] sm:$0x3]  ;;  %v5446_v48 = vunpack.c.l.b16 %v10670_v19  ;;  %v5609_v28 = vunpack.c.h.b16 %v10670_v19 }
 0xa5c   : > { %v5542_v32 = vld [vmem:[#allocation3 + $0xc] sm:$0x7]  ;;  %v5447_v17 = vunpack.c.l.b16 %v5437_v57  ;;  %v5769_v57 = vpack.c.b16 %v5767_v14, %v5767_v14 }
 0xa5d   : > { %v5548_v55 = vunpack.c.l.b16 %v5542_v32  ;;  %v10674_v16 = vld [vmem:[#allocation3 + $0x8] sm:$0xff]   ;;  %v5507_v22 = vpack.c.b16 %v5446_v48, %v5506_v8  ;;  %v5448_v50 = vpack.c.b16 %v5446_v48, %v5445_v0  ;;  %v5610_v51 = vpack.c.b16 %v5446_v48, %v5608_v37  ;;  %v8137_v32 = vld [vmem:[%s11167_s5 + $0x80] sm:$0xff]  ;;  %s11193_s5 = sld [smem:[#allocation23_spill]] }
 0xa5e   : > { %6048 = vst.msk [vmem:[#allocation3 + $0xc] sm:$0xf] %vm11176_vm0, %v11136_v56  ;;  %v5449_v42 = vpack.c.b16 %v5447_v17, %v5447_v17  ;;  %v5611_v1 = vpack.c.b16 %v5609_v28, %v5609_v28  ;;  %v5716_v63 = vshll.u32 %v10674_v16, 16  ;;  %v8266_v6 = vunpack.c.h.b16 %v10674_v16 }
 0xa5f   : > { %v5549_v7 = vpack.c.b16 %v5548_v55, %v5548_v55  ;;  %6477 = vst.msk [vmem:[#allocation3 + $0xc] sm:$0xf] %vm11177_vm7, %v11136_v56  ;;  %v5508_v44 = vrot.slane %v5507_v22, 2  ;;  %v5451_v40 = vshrl.u32 %v5448_v50, 16  ;;  %v5454_v13 = vshll.u32 %v5448_v50, 16  ;;  %vm11185_vm7 = vmmov %vm11183_vm1 }
 0xa60   : > { %6047 = vst.msk [vmem:[#allocation3 + $0x8] sm:$0xf] %vm11178_vm2, %v11136_v56  ;;  %v5509_v15 = vrot.slane %v5449_v42, 2  ;;  %v5459_v26 = vshrl.u32 %v5449_v42, 16  ;;  %v5462_v25 = vshll.u32 %v5449_v42, 16  ;;  %v5551_v29 = vshrl.u32 %v5507_v22, 16  ;;  %vm11186_vm2 = vmmov %vm11183_vm1 }
 0xa61   : > { %v5554_v21 = vshll.u32 %v5507_v22, 16  ;;  %v5453_v9 = vrot.slane %v5451_v40, 1  ;;  %v5456_v10 = vrot.slane %v5454_v13, 2  ;;  %v5559_v60 = vshrl.u32 %v5549_v7, 16 }
 0xa62   : > { %v5510_v61 = vsel %vm4938_vm6, %v5508_v44, %v5509_v15  ;;  %v5461_v24 = vrot.slane %v5459_v26, 1  ;;  %v5464_v20 = vrot.slane %v5462_v25, 2  ;;  %v5553_v33 = vrot.slane %v5551_v29, 2 }
 0xa63   : > { %7713 = vmatmul.msk.bf16.vlgmr.msra.gmra.mxu2 %vm11179_vm15, %v5510_v61  ;;  %v5556_v49 = vrot.slane %v5554_v21, 3  ;;  %v5457_v34 = vor.u32 %v5456_v10, %v5453_v9  ;;  %v5561_v38 = vrot.slane %v5559_v60, 2  ;;  %v5562_v18 = vshll.u32 %v5549_v7, 16  ;;  %vm11187_vm15 = vmmov %vm11183_vm1 }
 0xa64   : > { %v5613_v27 = vshrl.u32 %v5610_v51, 16  ;;  %v5465_v12 = vor.u32 %v5464_v20, %v5461_v24  ;;  %v5616_v54 = vshll.u32 %v5610_v51, 16  ;;  %v5621_v47 = vshrl.u32 %v5611_v1, 16 }
 0xa65   : > { %v5557_v41 = vor.u32 %v5556_v49, %v5553_v33  ;;  %v5564_v31 = vrot.slane %v5562_v18, 3  ;;  %v5624_v39 = vshll.u32 %v5611_v1, 16  ;;  %v5721_v0 = vshll.u32 %v10676_v36, 16 }
 0xa66   : > { %v5615_v11 = vrot.slane %v5613_v27, 3  ;;  %v5466_v5 = vsel %vm4873_vm10, %v5457_v34, %v5465_v12  ;;  %v5618_v52 = vrot.slane %v5616_v54, 4  ;;  %v5623_v35 = vrot.slane %v5621_v47, 3 }
 0xa67   : > { %7704 = vmatmul.msk.bf16.vlgmr.msrb.gmra.mxu1 %vm11180_vm3, %v5466_v5  ;;  %v5565_v45 = vor.u32 %v5564_v31, %v5561_v38  ;;  %v5626_v46 = vrot.slane %v5624_v39, 4  ;;  %v5718_v17 = vrot.slane %v5716_v63, 1  ;;  %v5768_v55 = vpack.c.b16 %v8266_v6, %v5766_v58  ;;  %vm11188_vm3 = vmmov %vm11183_vm1 }
 0xa68   : > { %v5619_v8 = vor.u32 %v5618_v52, %v5615_v11  ;;  %5908 = vmatpush.bf16.msrb.mxu1 %v8138_v2  ;;  %v5714_v42 = vshrl.u32 %v10674_v16, 16  ;;  %v5779_v22 = vshrl.u32 %v5769_v57, 16  ;;  %v5782_v50 = vshll.u32 %v5769_v57, 16 }
 0xa69   : > { %v5566_v37 = vsel %vm4981_vm8, %v5557_v41, %v5565_v45  ;;  %v5627_v48 = vor.u32 %v5626_v46, %v5623_v35  ;;  %v5723_v7 = vrot.slane %v5721_v0, 1  ;;  %v5771_v3 = vshrl.u32 %v5768_v55, 16 }
 0xa6a   : > { %7722 = vmatmul.msk.bf16.vlgmr.msra.gmra.mxu3 %vm11181_vm5, %v5566_v37  ;;  %v5719_v36 = vor.u32 %v5718_v17, %v5714_v42  ;;  %v5774_v51 = vshll.u32 %v5768_v55, 16  ;;  %v5781_v1 = vrot.slane %v5779_v22, 1  ;;  %v5784_v14 = vrot.slane %v5782_v50, 2  ;;  %vm11189_vm5 = vmmov %vm11183_vm1 }
 0xa6b   : > { %v5628_v28 = vsel %vm11182_vm11, %v5619_v8, %v5627_v48  ;;  %vm11184_vm0 = vsmask.f32 7424  ;;  %v5773_v44 = vrot.slane %v5771_v3, 1  ;;  %v5826_v40 = vunpack.c.l.b16 %v10682_v59  ;;  %5986 = vmatpush.bf16.msra.mxu3 %v8140_v4  ;;  %vm11204_vm11 = vmmov %vm11183_vm1 }
 0xa6c   : > { %7731 = vmatmul.msk.bf16.vlgmr.msra.gmra.mxu0 %vm11183_vm1, %v5628_v28  ;;  %5909 = vmatpush.bf16.msrb.mxu1 %v8137_v32  ;;  %v5724_v63 = vsel %vm11184_vm0, %v5719_v36, %v5723_v7  ;;  %v5776_v15 = vrot.slane %v5774_v51, 2  ;;  %v5868_v16 = vunpack.c.l.b16 %v10654_v62  ;;  %v5785_v25 = vor.u32 %v5784_v14, %v5781_v1  ;;  %vm11205_vm0 = vmmov %vm11183_vm1 }
 0xa6d   : > { %v5827_v13 = vpack.c.b16 %v8266_v6, %v5826_v40  ;;  %v5829_v61 = vrot.slane %v5769_v57, 2 }
 0xa6e   : > { %v5777_v26 = vor.u32 %v5776_v15, %v5773_v44  ;;  %v5869_v29 = vpack.c.b16 %v5868_v16, %v5868_v16 }
 0xa6f   : > { %v5828_v21 = vrot.slane %v5827_v13, 2  ;;  %v5871_v10 = vshrl.u32 %v5827_v13, 16  ;;  %v5874_v60 = vshll.u32 %v5827_v13, 16 }
 0xa70   : > { %v5786_v9 = vsel %vm4873_vm10, %v5777_v26, %v5785_v25  ;;  %v5879_v59 = vshrl.u32 %v5869_v29, 16  ;;  %v5882_v24 = vshll.u32 %v5869_v29, 16  ;;  %vm5993_vm10 = vcmask 125952  }
 0xa71   : > { %v5830_v20 = vsel %vm4938_vm6, %v5828_v21, %v5829_v61  ;;  %v5873_v62 = vrot.slane %v5871_v10, 2  ;;  %v5876_v33 = vrot.slane %v5874_v60, 3  ;;  %v8462_v10 = vld [vmem:[%s11191_s2] ss:$0 sm:$0xff]  ;;  %vm11196_vm6 = vcmask 130048  }
 0xa72   : > { %v5881_v49 = vrot.slane %v5879_v59, 2  ;;  %v5884_v34 = vrot.slane %v5882_v24, 3  ;;  %v8463_v24 = vld [vmem:[%s11191_s2 + $0x1] ss:$0 sm:$0xff]  ;;  %s11198_s2 = sld [smem:[#allocation27_spill]] }
 0xa73   : > { %7749 = vmatmul.msk.bf16.vlgmr.msrb.gmra.mxu2 %vm11185_vm7, %v5724_v63  ;;  %v5877_v38 = vor.u32 %v5876_v33, %v5873_v62  ;;  %vm11206_vm7 = vmmov %vm11205_vm0 }
 0xa77   : > { %7740 = vmatmul.msk.bf16.vlgmr.msra.gmra.mxu1 %vm11186_vm2, %v10670_v19  ;;  %v5885_v19 = vor.u32 %v5884_v34, %v5881_v49  ;;  %vm11207_vm2 = vmmov %vm11205_vm0 }
 0xa79   : > { %v5886_v18 = vsel %vm4981_vm8, %v5877_v38, %v5885_v19  ;;  %v5942_v19 = vld [vmem:[%s11193_s5] sm:$0x3]  ;;  %vm11199_vm8 = vmmov %vm11196_vm6  ;;  %s11200_s5 = sld [smem:[#allocation26_spill]] }
 0xa7a   : > { %7758 = vmatmul.msk.bf16.vlgmr.msrb.gmra.mxu3 %vm11187_vm15, %v5786_v9  ;;  %vm11208_vm15 = vmmov %vm11205_vm0 }
 0xa7c   : > { %7767 = vmatmul.msk.bf16.vlgmr.msrb.gmra.mxu0 %vm11188_vm3, %v5830_v20  ;;  %vm11209_vm3 = vmmov %vm11205_vm0 }
 0xa87   : > { %7776 = vmatmul.msk.bf16.vlgmr.msrb.gmra.mxu1 %vm11189_vm5, %v5886_v18  ;;  %v8139_v18 = vld [vmem:[%s11190_s23] sm:$0xff]  ;;  %vm11210_vm5 = vmmov %vm11205_vm0 }
 0xa88   : > { %5987 = vmatpush.bf16.msra.mxu3 %v8139_v18 }
 0xae4   : > { %v5491_v27 = vpop.f32.mrf.mxu1 }
 0xae5   : > { %v5496_v41 = vsel %vm10590_vm13, %v5491_v27, 0.0 }
 0xae6   : > { %v5535_v12 = vpop.f32.mrf.mxu2 }
 0xae7   : > { %v5540_v11 = vadd.f32 %v5535_v12, %v5496_v41  ;;  %v8465_v41 = vld [vmem:[%s11195_s9 + $0x1] ss:$0 sm:$0xff] }
 0xae9   : > { %v5653_v54 = vpop.f32.mrf.mxu0 }
 0xaea   : > { %v5658_v45 = vsel %vm10590_vm13, %v5653_v54, 0.0 }
 0xaec   : > { %v5493_v47 = vpop.f32.mrf.mxu1 }
 0xaed   : > { %v5591_v6 = vpop.f32.mrf.mxu3  ;;  %v5497_v46 = vsel %vm10603_vm4, %v5493_v47, 0.0  ;;  %v8141_v47 = vld [vmem:[%s11194_s8] sm:$0xff]  ;;  %s11215_s8 = sld [smem:[#allocation29_spill]] }
 0xaee   : > { %v5537_v2 = vpop.f32.mrf.mxu2  ;;  %v5596_v31 = vsel %vm10596_vm14, %v5591_v6, 0.0  ;;  %6038 = vmatpush.bf16.msra.mxu0 %v8141_v47 }
 0xaef   : > { %v5598_v39 = vadd.f32 %v5596_v31, %v5540_v11  ;;  %v5541_v57 = vadd.f32 %v5537_v2, %v5497_v46  ;;  %v8464_v2 = vld [vmem:[%s11195_s9] ss:$0 sm:$0xff]  ;;  %v8145_v46 = vld [vmem:[%s11198_s2 + $0x18] sm:$0xff] }
 0xaf1   : > { %v5655_v58 = vpop.f32.mrf.mxu0  ;;  %v5660_v8 = vadd.f32 %v5658_v45, %v5598_v39  ;;  %v8143_v45 = vld [vmem:[%s11198_s2 + $0x8] sm:$0xff] }
 0xaf2   : > { %v5659_v22 = vsel %vm10603_vm4, %v5655_v58, 0.0  ;;  %v8147_v58 = vld [vmem:[%s11198_s2 + $0x28] sm:$0xff]  ;;  %6100 = vmatpush.bf16.msra.mxu1 %v8143_v45 }
 0xaf3   : > { %6187 = vmatpush.bf16.msrb.mxu3 %v8147_v58 }
 0xaf4   : > { %v5691_v5 = vpop.f32.mrf.mxu1 }
 0xaf5   : > { %v5593_v52 = vpop.f32.mrf.mxu3  ;;  %v5696_v32 = vadd.f32 %v5691_v5, %v5660_v8  ;;  %v8142_v8 = vld [vmem:[%s11198_s2] sm:$0xff] }
 0xaf6   : > { %v5749_v35 = vpop.f32.mrf.mxu2  ;;  %v5597_v0 = vsel %vm10611_vm12, %v5593_v52, 0.0  ;;  %6101 = vmatpush.bf16.msra.mxu1 %v8142_v8 }
 0xaf7   : > { %v5754_v37 = vsel %vm10596_vm14, %v5749_v35, 0.0  ;;  %v5599_v48 = vadd.f32 %v5597_v0, %v5541_v57  ;;  %v6060_v0 = vld [vmem:[#allocation3 + $0x4] sm:$0xc] }
 0xaf8   : > { %v5756_v28 = vadd.f32 %v5754_v37, %v5696_v32  ;;  %v6112_v57 = vld [vmem:[#allocation3 + $0x4] sm:$0x8]  ;;  %v8144_v32 = vld [vmem:[%s11198_s2 + $0x10] sm:$0xff] }
 0xaf9   : > { %v5661_v36 = vadd.f32 %v5659_v22, %v5599_v48  ;;  %v5855_v3 = vpop.f32.mrf.mxu0  ;;  %v8146_v37 = vld [vmem:[%s11198_s2 + $0x20] sm:$0xff]  ;;  %v8149_v48 = vld [vmem:[%s11198_s2 + $0x38] sm:$0xff] }
 0xafa   : > { %6188 = vmatpush.bf16.msrb.mxu3 %v8146_v37  ;;  %6221 = vmatpush.bf16.msrb.mxu0 %v8149_v48  ;;  %v8150_v22 = vld [vmem:[%s11198_s2 + $0x40] sm:$0xff] }
 0xafb   : > { %v8470_v37 = vld [vmem:[%s8740_s27] ss:$0 sm:$0xff] }
 0xafc   : > { %v5693_v17 = vpop.f32.mrf.mxu1 }
 0xafd   : > { %v5811_v55 = vpop.f32.mrf.mxu3  ;;  %v5697_v51 = vadd.f32 %v5693_v17, %v5661_v36  ;;  %v8151_v17 = vld [vmem:[%s11198_s2 + $0x48] sm:$0xff] }
 0xafe   : > { %v5816_v42 = vsel %vm10590_vm13, %v5811_v55, 0.0  ;;  %v5751_v7 = vpop.f32.mrf.mxu2  ;;  %vm11201_vm13 = vcmask 257024   ;;  %v8153_v55 = vld [vmem:[%s11198_s2 + $0x58] sm:$0xff]  ;;  %6255 = vmatpush.bf16.msrb.mxu1 %v8151_v17 }
 0xaff   : > { %v5818_v50 = vadd.f32 %v5816_v42, %v5756_v28  ;;  %v5755_v1 = vsel %vm10611_vm12, %v5751_v7, 0.0  ;;  %6475 = vst.msk [vmem:[#allocation3 + $0x4] sm:$0xf] %vm11201_vm13, %v11136_v56  ;;  %v8155_v28 = vld [vmem:[%s11198_s2 + $0x68] sm:$0xff]  ;;  %v8148_v42 = vld [vmem:[%s11198_s2 + $0x30] sm:$0xff] }
 0xb00   : > { %v5757_v43 = vadd.f32 %v5755_v1, %v5697_v51  ;;  %6222 = vmatpush.bf16.msrb.mxu0 %v8148_v42 }
 0xb01   : > { %v5860_v14 = vadd.f32 %v5855_v3, %v5818_v50  ;;  %v5857_v26 = vpop.f32.mrf.mxu0  ;;  %v8466_v50 = vld [vmem:[%s11200_s5] ss:$0 sm:$0xff]  ;;  %s11216_s5 = sld [smem:[#allocation28_spill]] }
 0xb02   : > { %6256 = vmatpush.bf16.msrb.mxu1 %v8150_v22 }
 0xb04   : > { %v5911_v63 = vpop.f32.mrf.mxu1 }
 0xb05   : > { %v5813_v44 = vpop.f32.mrf.mxu3  ;;  %v5916_v15 = vsel %vm10596_vm14, %v5911_v63, 0.0  ;;  %vm6058_vm14 = vcmask 254976   ;;  %v8154_v63 = vld [vmem:[%s11198_s2 + $0x60] sm:$0xff] }
 0xb06   : > { %v5817_v40 = vsel %vm10603_vm4, %v5813_v44, 0.0  ;;  %v5918_v16 = vadd.f32 %v5916_v15, %v5860_v14  ;;  %v8152_v14 = vld [vmem:[%s11198_s2 + $0x50] sm:$0xff]  ;;  %v8157_v44 = vld [vmem:[%s11198_s2 + $0x78] sm:$0xff]  ;;  %vm11202_vm4 = vmmov %vm11201_vm13  ;;  %vm11219_vm13 = vcmask 195584  }
 0xb07   : > { %v5819_v13 = vadd.f32 %v5817_v40, %v5757_v43  ;;  %v8156_v15 = vld [vmem:[%s11198_s2 + $0x70] sm:$0xff]  ;;  %v6068_v43 = vunpack.c.l.b16 %v6060_v0  ;;  %v6118_v40 = vunpack.c.l.b16 %v6112_v57  ;;  %v5999_v57 = vand.u32 1, %v11153_v30 }
 0xb08   : > { %5922 = vrot.lane.b32.xlu0 %v5918_v16, %s11192_s3 }
 0xb09   : > { %v5861_v25 = vadd.f32 %v5857_v26, %v5819_v13 }
 0xb0c   : > { %v5913_v29 = vpop.f32.mrf.mxu1 }
 0xb0d   : > { %v5917_v21 = vsel %vm10611_vm12, %v5913_v29, 0.0  ;;  %vm11203_vm12 = vmmov %vm11183_vm1 }
 0xb0e   : > { %v5919_v61 = vadd.f32 %v5917_v21, %v5861_v25 }
 0xb10   : > { %5924 = vrot.lane.b32.xlu1 %v5919_v61, %s11192_s3 }
 0xb7a   : > { %v5923_v9 = vpop.permute.xlu0 %5922 }
 0xb7b   : > { %5928 = vst.msk [vmem:[#allocation2] sm:$0xff] %vm4664_vm9, %v5923_v9 }
 0xb82   : > { %v5925_v23 = vpop.permute.xlu1 %5924  ;;  %v5930_v60 = vld [vmem:[#allocation2] sm:$0xff] }
 0xb83   : > { %5929 = vst.msk [vmem:[#allocation2 + $0x8] sm:$0xff] %vm4664_vm9, %v5925_v23  ;;  %v5934_v59 = vmul.f32 %v8462_v10, %v5930_v60  ;;  %vm11197_vm9 = vmmov %vm11183_vm1 }
 0xb85   : > { %v5938_v62 = vadd.f32 %v8463_v24, %v5934_v59 }
 0xb87   : > { %v5940_v49 = vmax.f32 %v5938_v62, 0.0 }
 0xb8a   : > { %v5931_v20 = vld [vmem:[#allocation2 + $0x8] sm:$0xff] }
 0xb8b   : > { %v5935_v53 = vmul.f32 %v8462_v10, %v5931_v20 }
 0xb8d   : > { %v5939_v33 = vadd.f32 %v8463_v24, %v5935_v53 }
 0xb8f   : > { %v5941_v34 = vmax.f32 %v5939_v33, 0.0 }
 0xb91   : > { %v5943_v38 = vpack.c.bf16 %v5941_v34, %v5940_v49 }
 0xb93   : > { %5954 = vmatpush.bf16.msra.mxu2 %v5943_v38 }
 0xb96   : > { %7777 = vmatmul.msk.bf16.vlgmr.msra.gmra.mxu2 %vm11196_vm6, %v5942_v19  ;;  %vm10786_vm6 = vcmp.ge.s32.totalorder %v5999_v57, 1 }
 0xb97   : > { %6142 = vmatpush.bf16.msrb.mxu2 %v8145_v46 }
 0xb9b   : > { %6143 = vmatpush.bf16.msrb.mxu2 %v8144_v32 }
 0xb9f   : > { %6299 = vmatpush.bf16.msra.mxu2 %v8153_v55 }
 0xba3   : > { %6300 = vmatpush.bf16.msra.mxu2 %v8152_v14 }
 0xc19   : > { %v5956_v27 = vpop.f32.mrf.mxu2 }
 0xc1a   : > { %v5960_v12 = vpack.c.bf16 %v5956_v27, %v5956_v27 }
 0xc1c   : > { %7786 = vmatmul.msk.bf16.vlgmr.msra.gmra.mxu3 %vm11197_vm9, %v5960_v12  ;;  %v8158_v12 = vld [vmem:[%s11198_s2 + $0x80] sm:$0xff]  ;;  %vm10790_vm9 = vcmp.lt.s32.totalorder %v5999_v57, 1 }
 0xc1d   : > { %6330 = vmatpush.bf16.msra.mxu3 %v8155_v28  ;;  %v8173_v57 = vld [vmem:[%s8735_s20 + $0x60] sm:$0xff] }
 0xc21   : > { %v5958_v54 = vpop.f32.mrf.mxu2  ;;  %6331 = vmatpush.bf16.msra.mxu3 %v8154_v63 }
 0xc9f   : > { %v5989_v6 = vpop.f32.mrf.mxu3 }
 0xca0   : > { %5994 = vst.msk [vmem:[#allocation2] sm:$0xf] %vm5993_vm10, %v5989_v6  ;;  %vm11218_vm10 = vcmask 1043456  }
 0xca7   : > { %v6007_v31 = vld [vmem:[#allocation2] sm:$0xf]  ;;  %v5991_v11 = vpop.f32.mrf.mxu3 }
 0xca8   : > { %v6010_v39 = vmul.f32 %v8464_v2, %v6007_v31 }
 0xcaa   : > { %v6013_v5 = vadd.f32 %v8465_v41, %v6010_v39 }
 0xcac   : > { %v6014_v52 = vmax.f32 %v6013_v5, 0.0 }
 0xcae   : > { %v6015_v35 = vpack.c.bf16 %v6014_v52, %v6014_v52 }
 0xcb0   : > { %7791 = vmatmul.msk.bf16.vlgmr.msra.gmra.mxu0 %vm11199_vm8, %v6015_v35  ;;  %vm6427_vm8 = vcmask 191616  }
 0xcb1   : > { %6369 = vmatpush.bf16.msra.mxu0 %v8157_v44 }
 0xcb5   : > { %6370 = vmatpush.bf16.msra.mxu0 %v8156_v15 }
 0xd2d   : > { %v6040_v36 = vpop.f32.mrf.mxu0 }
 0xd2e   : > { %v6041_v7 = vadd.f32 %v8466_v50, %v6040_v36 }
 0xd30   : > { %v6044_v3 = vmax.f32 %v6041_v7, 0.0 }
 0xd32   : > { %v6057_v51 = vpack.c.bf16 %v6044_v3, %v6044_v3 }
 0xd34   : > { %6059 = vst.msk [vmem:[#allocation3 + $0x8] sm:$0x3] %vm6058_vm14, %v6057_v51 }
 0xd35   : > { %v6042_v1 = vpop.f32.mrf.mxu0 }
 0xd3b   : > { %v6061_v16 = vld [vmem:[#allocation3 + $0x8] sm:$0x1]  ;;  %v6339_v21 = vld [vmem:[#allocation3 + $0x8] sm:$0x6] }
 0xd3c   : > { %v6150_v13 = vld [vmem:[#allocation3 + $0x8] sm:$0x3]  ;;  %v6069_v26 = vunpack.c.l.b16 %v6061_v16  ;;  %v6345_v47 = vunpack.c.l.b16 %v6339_v21 }
 0xd3d   : > { %v6156_v25 = vunpack.c.l.b16 %v6150_v13  ;;  %v6263_v29 = vld [vmem:[#allocation3 + $0x8] sm:$0x7] }
 0xd3e   : > { %v6377_v61 = vld [vmem:[#allocation3 + $0x8] sm:$0xe]  ;;  %v6070_v4 = vpack.c.b16 %v6069_v26, %v6068_v43  ;;  %v6119_v9 = vpack.c.b16 %v6069_v26, %v6118_v40  ;;  %v6269_v10 = vunpack.c.l.b16 %v6263_v29  ;;  %v6346_v41 = vpack.c.b16 %v6345_v47, %v6345_v47  ;;  %v8163_v47 = vld [vmem:[%s8735_s20 + $0x10] sm:$0xff] }
 0xd3f   : > { %6476 = vst.msk [vmem:[#allocation3 + $0x8] sm:$0xf] %vm11202_vm4, %v11136_v56  ;;  %v6157_v23 = vpack.c.b16 %v6156_v25, %v6118_v40  ;;  %v8159_v56 = vld [vmem:[%s11198_s2 + $0x88] sm:$0xff]  ;;  %v6383_v31 = vunpack.c.l.b16 %v6377_v61  ;;  %s11217_s2 = smov 16   ;;  %vm11222_vm4 = vmmov %vm11205_vm0 }
 0xd40   : > { %v6072_v60 = vshrl.u32 %v6070_v4, 16  ;;  %v6075_v59 = vshll.u32 %v6070_v4, 16  ;;  %v6120_v24 = vrot.slane %v6119_v9, 3  ;;  %v6270_v19 = vpack.c.b16 %v6269_v10, %v6269_v10  ;;  %v6440_v10 = vld [vmem:[%s11215_s8 + $0x8] sm:$0xf] }
 0xd41   : > { %v6159_v20 = vshrl.u32 %v6157_v23, 16  ;;  %v6162_v53 = vshll.u32 %v6157_v23, 16  ;;  %v6347_v11 = vrot.slane %v6346_v41, 1  ;;  %v6384_v39 = vpack.c.b16 %v6383_v31, %v6383_v31  ;;  %v8167_v41 = vld [vmem:[%s8735_s20 + $0x30] sm:$0xff]  ;;  %v8172_v31 = vld [vmem:[%s8735_s20 + $0x58] sm:$0xff] }
 0xd42   : > { %v6074_v62 = vrot.slane %v6072_v60, 2  ;;  %v6077_v33 = vrot.slane %v6075_v59, 3  ;;  %7809 = vmatmul.msk.bf16.vlgmr.msrb.gmra.mxu2 %vm11203_vm12, %v6120_v24  ;;  %v6274_v27 = vshll.u32 %v6270_v19, 16  ;;  %v6272_v6 = vshrl.u32 %v6270_v19, 16  ;;  %vm11223_vm12 = vmmov %vm11205_vm0 }
 0xd43   : > { %v6161_v49 = vrot.slane %v6159_v20, 3  ;;  %v6164_v34 = vrot.slane %v6162_v53, 4  ;;  %v6386_v5 = vshrl.u32 %v6384_v39, 16  ;;  %v6389_v52 = vshll.u32 %v6384_v39, 16  ;;  %v8160_v20 = vld [vmem:[%s11215_s8] sm:$0xff]  ;;  %v8174_v39 = vld [vmem:[%s8735_s20 + $0x68] sm:$0xff] }
 0xd44   : > { %v6078_v38 = vor.u32 %v6077_v33, %v6074_v62  ;;  %v6276_v54 = vrot.slane %v6274_v27, 1  ;;  %v6450_v60 = vunpack.c.l.b16 %v6440_v10  ;;  %v8467_v62 = vld [vmem:[%s11216_s5] ss:$0 sm:$0xff]  ;;  %v8468_v33 = vld [vmem:[%s11216_s5 + $0x1] ss:$0 sm:$0xff]  ;;  %v8162_v27 = vld [vmem:[%s8735_s20 + $0x8] sm:$0xff] }
 0xd45   : > { %v6165_v18 = vor.u32 %v6164_v34, %v6161_v49  ;;  %v6388_v35 = vrot.slane %v6386_v5, 1  ;;  %v6391_v45 = vrot.slane %v6389_v52, 2  ;;  %v8176_v5 = vld [vmem:[%s8735_s20 + $0x78] sm:$0xff]  ;;  %v8171_v52 = vld [vmem:[%s8735_s20 + $0x50] sm:$0xff]  ;;  %v8177_v10 = vld [vmem:[%s8735_s20 + $0x80] sm:$0xff] }
 0xd46   : > { %7800 = vmatmul.msk.bf16.vlgmr.msra.gmra.mxu1 %vm11204_vm11, %v6078_v38  ;;  %v6277_v2 = vor.u32 %v6276_v54, %v6272_v6  ;;  %v6452_v59 = vpack.c.b16 %v6450_v60, %v6450_v60  ;;  %v8168_v54 = vld [vmem:[%s8735_s20 + $0x38] sm:$0xff]  ;;  %v8161_v6 = vld [vmem:[%s8735_s20] sm:$0xff]  ;;  %vm11224_vm11 = vmmov %vm11205_vm0 }
 0xd47   : > { %7818 = vmatmul.msk.bf16.vlgmr.msrb.gmra.mxu3 %vm11183_vm1, %v6165_v18  ;;  %7827 = vmatmul.msk.bf16.vlgmr.msrb.gmra.mxu0 %vm11205_vm0, %v6165_v18  ;;  %v6392_v46 = vor.u32 %v6391_v45, %v6388_v35  ;;  %v8164_v18 = vld [vmem:[%s8735_s20 + $0x18] sm:$0xff]  ;;  %v8469_v35 = vld [vmem:[%s11220_s6] ss:$0 sm:$0xff]  ;;  %vm11225_vm1 = vmmov %vm11205_vm0  ;;  %s7960_s6 = sshll.u32 %s8768_s0, 2 }
 0xd48   : > { %6414 = vmatpush.bf16.msra.mxu1 %v8159_v56  ;;  %v6458_v24 = vsel %vm11218_vm10, %v6452_v59, 0  ;;  %6567 = vmatpush.bf16.msrb.mxu0 %v8164_v18  ;;  %s6871_s8 = scalar_lea.hbm %s8745_s4, %s7960_s6  ;;  %s8492_s6 = scalar_lea.hbm %s8745_s4, 8 }
 0xd49   : > { %6466 = vmatpush.bf16.msrb.mxu2 %v6458_v24  ;;  %6528 = vmatpush.bf16.msrb.mxu3 %v8162_v27  ;;  %s6875_s13 = sshll.u32 %s6871_s8, 4  ;;  %s6876_s13 = int_to_ptr.hbm [resolvable:$true] %s6875_s13 }
 0xd4a   : > { %s8486_s14 = sshra.s32 %s6876_s13, 4  ;;  %s8487_s14 = int_to_ptr.hbm [resolvable:$true] %s8486_s14 }
 0xd4b   : > { %s8488_s0 = scalar_lea.hbm %s8487_s14, 4  ;;  %p8493_p0 = scmp.lt.s32.totalorder %s8487_s14, %s8745_s4 }
 0xd4c   : > { %6415 = vmatpush.bf16.msra.mxu1 %v8158_v12  ;;  %v8166_v12 = vld [vmem:[%s8735_s20 + $0x28] sm:$0xff]  ;;  %6568 = vmatpush.bf16.msrb.mxu0 %v8163_v47  ;;  %p8489_p11 = scmp.ne.s32.totalorder %s8487_s14, %s8488_s0  ;;  %p8494_p1 = scmp.lt.s32.totalorder %s8492_s6, %s8488_s0 }
 0xd4d   : > { %6467 = vmatpush.bf16.msrb.mxu2 %v8160_v20  ;;  %6529 = vmatpush.bf16.msrb.mxu3 %v8161_v6 }
 0xd4e   : > { %p8490_p12 = pnand %p8489_p11, %p8785_p5  ;;  %p8495_p2 = por %p8494_p1, %p8493_p0 }
 0xd50   : > { %p8491_p13 = pneg %p8490_p12 }
 0xd52   : > { %7845 = vmatmul.msk.bf16.vlgmr.msra.gmra.mxu2 %vm11206_vm7, %v6277_v2  ;;  %vm11226_vm7 = vmmov %vm11205_vm0  ;;  %p8496_p3 = pnand %p8495_p2, %p8491_p13 }
 0xd53   : > { %6643 = vmatpush.bf16.msra.mxu2 %v8168_v54 }
 0xd56   : > { %7836 = vmatmul.msk.bf16.vlgmr.msrb.gmra.mxu1 %vm11207_vm2, %v6150_v13  ;;  %vm11227_vm2 = vmmov %vm11205_vm0 }
 0xd57   : > { %7854 = vmatmul.msk.bf16.vlgmr.msra.gmra.mxu3 %vm11208_vm15, %v6277_v2  ;;  %7863 = vmatmul.msk.bf16.vlgmr.msra.gmra.mxu0 %vm11209_vm3, %v6347_v11  ;;  %v8165_v2 = vld [vmem:[%s8735_s20 + $0x20] sm:$0xff]  ;;  %v8170_v11 = vld [vmem:[%s8735_s20 + $0x48] sm:$0xff]  ;;  %vm11228_vm15 = vmmov %vm11205_vm0  ;;  %vm6849_vm3 = vcmask 257216  }
 0xd58   : > { %6612 = vmatpush.bf16.msrb.mxu1 %v8166_v12  ;;  %6644 = vmatpush.bf16.msra.mxu2 %v8167_v41 }
 0xd59   : > { %6721 = vmatpush.bf16.msra.mxu0 %v8172_v31  ;;  %6677 = vmatpush.bf16.msra.mxu3 %v8170_v11 }
 0xd5c   : > { %6613 = vmatpush.bf16.msrb.mxu1 %v8165_v2 }
 0xd5d   : > { %6722 = vmatpush.bf16.msra.mxu0 %v8171_v52 }
 0xd66   : > { %7872 = vmatmul.msk.bf16.vlgmr.msra.gmra.mxu1 %vm11210_vm5, %v6392_v46  ;;  %vm11229_vm5 = vcmask 257024  }
 0xd67   : > { %6752 = vmatpush.bf16.msra.mxu1 %v8174_v39 }
 0xd6b   : > { %6753 = vmatpush.bf16.msra.mxu1 %v8173_v57 }
 0xdc3   : > { %v6103_v58 = vpop.f32.mrf.mxu1 }
 0xdc4   : > { %v6224_v8 = vpop.f32.mrf.mxu0  ;;  %v6110_v42 = vsel %vm10786_vm6, %v6103_v58, 0.0 }
 0xdc5   : > { %v6145_v0 = vpop.f32.mrf.mxu2  ;;  %v6228_v1 = vsel %vm10786_vm6, %v6224_v8, 0.0 }
 0xdc6   : > { %v6149_v50 = vadd.f32 %v6145_v0, %v6110_v42  ;;  %v8169_v0 = vld [vmem:[%s8735_s20 + $0x40] sm:$0xff] }
 0xdc7   : > { %6678 = vmatpush.bf16.msra.mxu3 %v8169_v0 }
 0xdca   : > { %v6190_v32 = vpop.f32.mrf.mxu3 }
 0xdcb   : > { %v6105_v48 = vpop.f32.mrf.mxu1  ;;  %v6197_v22 = vsel %vm10790_vm9, %v6190_v32, 0.0  ;;  %v8175_v32 = vld [vmem:[%s8735_s20 + $0x70] sm:$0xff] }
 0xdcc   : > { %v6226_v17 = vpop.f32.mrf.mxu0  ;;  %v6198_v36 = vadd.f32 %v6197_v22, %v6149_v50 }
 0xdcd   : > { %v6147_v28 = vpop.f32.mrf.mxu2  ;;  %v6537_v17 = vld [vmem:[#allocation3 + $0x4] sm:$0x8] }
 0xdce   : > { %v6229_v14 = vadd.f32 %v6228_v1, %v6198_v36  ;;  %v6488_v28 = vld [vmem:[#allocation3 + $0x4] sm:$0xc]  ;;  %v6543_v42 = vunpack.c.l.b16 %v6537_v17 }
 0xdcf   : > { %v6496_v22 = vunpack.c.l.b16 %v6488_v28 }
 0xdd2   : > { %v6192_v30 = vpop.f32.mrf.mxu3 }
 0xdd3   : > { %v6258_v7 = vpop.f32.mrf.mxu1 }
 0xdd4   : > { %v6372_v3 = vpop.f32.mrf.mxu0  ;;  %v6262_v63 = vadd.f32 %v6258_v7, %v6229_v14 }
 0xdd5   : > { %v6302_v51 = vpop.f32.mrf.mxu2 }
 0xdd6   : > { %v6306_v44 = vsel %vm10790_vm9, %v6302_v51, 0.0 }
 0xdd7   : > { %v6307_v13 = vadd.f32 %v6306_v44, %v6262_v63 }
 0xdda   : > { %v6333_v15 = vpop.f32.mrf.mxu3 }
 0xddb   : > { %v6260_v43 = vpop.f32.mrf.mxu1  ;;  %v6337_v40 = vsel %vm10786_vm6, %v6333_v15, 0.0 }
 0xddc   : > { %v6374_v16 = vpop.f32.mrf.mxu0  ;;  %v6338_v25 = vadd.f32 %v6337_v40, %v6307_v13 }
 0xddd   : > { %v6304_v26 = vpop.f32.mrf.mxu2 }
 0xdde   : > { %v6376_v21 = vadd.f32 %v6372_v3, %v6338_v25 }
 0xde2   : > { %v6335_v29 = vpop.f32.mrf.mxu3 }
 0xde3   : > { %v6417_v61 = vpop.f32.mrf.mxu1 }
 0xde4   : > { %v6421_v4 = vsel %vm10790_vm9, %v6417_v61, 0.0 }
 0xde5   : > { %v6422_v9 = vadd.f32 %v6421_v4, %v6376_v21  ;;  %v8178_v4 = vld [vmem:[%s8735_s20 + $0x88] sm:$0xff] }
 0xde7   : > { %6424 = vrot.lane.b32.xlu2 %v6422_v9, %s11217_s2  ;;  %s1005_s2 = sand.u32 1, %s8526_s10  }
 0xde8   : > { %s6972_s5 = sshll.u32 %s1005_s2, 2 }
 0xde9   : > { %s1007_s9 = scalar_lea.vmem [#allocation4], %s6972_s5 }
 0xdea   : > { %s6873_s12 = sshll.u32 %s1007_s9, 4  ;;  %s6874_s12 = int_to_ptr.vmem [resolvable:$true] %s6873_s12 }
 0xdeb   : > { %v6419_v23 = vpop.f32.mrf.mxu1 }
 0xe41   : > { %v6425_v53 = vpop.permute.xlu2 %6424 }
 0xe42   : > { %6428 = vst.msk [vmem:[#allocation2] sm:$0xf] %vm6427_vm8, %v6425_v53 }
 0xe49   : > { %v6429_v49 = vld [vmem:[#allocation2] sm:$0xf] }
 0xe4a   : > { %v6432_v34 = vmul.f32 %v8467_v62, %v6429_v49 }
 0xe4c   : > { %v6435_v38 = vadd.f32 %v8468_v33, %v6432_v34 }
 0xe4e   : > { %v6436_v19 = vmax.f32 %v6435_v38, 0.0 }
 0xe50   : > { %v6437_v56 = vpack.c.bf16 %v6436_v19, %v6436_v19 }
 0xe52   : > { %7877 = vmatmul.msk.bf16.vlgmr.msrb.gmra.mxu2 %vm11219_vm13, %v6437_v56 }
 0xe53   : > { %6791 = vmatpush.bf16.msrb.mxu2 %v8176_v5 }
 0xe57   : > { %6792 = vmatpush.bf16.msrb.mxu2 %v8175_v32 }
 0xed5   : > { %v6469_v45 = vpop.f32.mrf.mxu2 }
 0xed6   : > { %v6470_v46 = vadd.f32 %v8469_v35, %v6469_v45 }
 0xed8   : > { %v6473_v58 = vmax.f32 %v6470_v46, 0.0 }
 0xeda   : > { %v6486_v8 = vpack.c.bf16 %v6473_v58, %v6473_v58 }
 0xedc   : > { %6487 = vst.msk [vmem:[#allocation3 + $0x8] sm:$0x3] %vm6058_vm14, %v6486_v8  ;;  %vm11221_vm14 = vmmov %vm11205_vm0 }
 0xedd   : > { %v6471_v48 = vpop.f32.mrf.mxu2 }
 0xee3   : > { %v6489_v50 = vld [vmem:[#allocation3 + $0x8] sm:$0x1]  ;;  %v6761_v60 = vld [vmem:[#allocation3 + $0x8] sm:$0x6] }
 0xee4   : > { %v6575_v30 = vld [vmem:[#allocation3 + $0x8] sm:$0x3]  ;;  %v6497_v36 = vunpack.c.l.b16 %v6489_v50  ;;  %v6767_v24 = vunpack.c.l.b16 %v6761_v60 }
 0xee5   : > { %v6581_v7 = vunpack.c.l.b16 %v6575_v30  ;;  %v6685_v3 = vld [vmem:[#allocation3 + $0x8] sm:$0x7] }
 0xee6   : > { %v6544_v51 = vpack.c.b16 %v6497_v36, %v6543_v42  ;;  %v6498_v1 = vpack.c.b16 %v6497_v36, %v6496_v22  ;;  %v6691_v63 = vunpack.c.l.b16 %v6685_v3  ;;  %v6768_v62 = vpack.c.b16 %v6767_v24, %v6767_v24  ;;  %v6799_v33 = vld [vmem:[#allocation3 + $0x8] sm:$0xe] }
 0xee7   : > { %v6582_v14 = vpack.c.b16 %v6581_v7, %v6543_v42  ;;  %v6805_v49 = vunpack.c.l.b16 %v6799_v33 }
 0xee8   : > { %v6545_v44 = vrot.slane %v6544_v51, 3  ;;  %v6500_v15 = vshrl.u32 %v6498_v1, 16  ;;  %v6503_v43 = vshll.u32 %v6498_v1, 16  ;;  %v6692_v61 = vpack.c.b16 %v6691_v63, %v6691_v63 }
 0xee9   : > { %v6584_v40 = vshrl.u32 %v6582_v14, 16  ;;  %v6587_v16 = vshll.u32 %v6582_v14, 16  ;;  %v6769_v34 = vrot.slane %v6768_v62, 1  ;;  %v6806_v38 = vpack.c.b16 %v6805_v49, %v6805_v49 }
 0xeea   : > { %7895 = vmatmul.msk.bf16.vlgmr.msrb.gmra.mxu0 %vm11221_vm14, %v6545_v44  ;;  %v6502_v13 = vrot.slane %v6500_v15, 2  ;;  %v6505_v26 = vrot.slane %v6503_v43, 3  ;;  %v6696_v23 = vshll.u32 %v6692_v61, 16  ;;  %v6694_v20 = vshrl.u32 %v6692_v61, 16  ;;  %v8471_v15 = vld [vmem:[%s8740_s27 + $0x1] ss:$0 sm:$0xff] }
 0xeeb   : > { %v6586_v25 = vrot.slane %v6584_v40, 3  ;;  %v6589_v29 = vrot.slane %v6587_v16, 4  ;;  %v6808_v19 = vshrl.u32 %v6806_v38, 16  ;;  %v6811_v56 = vshll.u32 %v6806_v38, 16 }
 0xeec   : > { %v6506_v21 = vor.u32 %v6505_v26, %v6502_v13  ;;  %v6698_v59 = vrot.slane %v6696_v23, 1 }
 0xeed   : > { %v6590_v9 = vor.u32 %v6589_v29, %v6586_v25  ;;  %v6810_v18 = vrot.slane %v6808_v19, 1  ;;  %v6813_v27 = vrot.slane %v6811_v56, 2 }
 0xeee   : > { %7886 = vmatmul.msk.bf16.vlgmr.msrb.gmra.mxu3 %vm11222_vm4, %v6506_v21  ;;  %v6699_v53 = vor.u32 %v6698_v59, %v6694_v20 }
 0xeef   : > { %7904 = vmatmul.msk.bf16.vlgmr.msrb.gmra.mxu1 %vm11223_vm12, %v6590_v9  ;;  %7913 = vmatmul.msk.bf16.vlgmr.msra.gmra.mxu2 %vm11224_vm11, %v6590_v9  ;;  %v6814_v12 = vor.u32 %v6813_v27, %v6810_v18 }
 0xef0   : > { %6836 = vmatpush.bf16.msrb.mxu3 %v8178_v4 }
 0xef4   : > { %6837 = vmatpush.bf16.msrb.mxu3 %v8177_v10 }
 0xefa   : > { %7931 = vmatmul.msk.bf16.vlgmr.msra.gmra.mxu0 %vm11225_vm1, %v6699_v53 }
 0xefe   : > { %7922 = vmatmul.msk.bf16.vlgmr.msra.gmra.mxu3 %vm11205_vm0, %v6575_v30 }
 0xeff   : > { %7940 = vmatmul.msk.bf16.vlgmr.msra.gmra.mxu1 %vm11226_vm7, %v6699_v53  ;;  %7949 = vmatmul.msk.bf16.vlgmr.msrb.gmra.mxu2 %vm11227_vm2, %v6769_v34 }
 0xf0e   : > { %7958 = vmatmul.msk.bf16.vlgmr.msrb.gmra.mxu3 %vm11228_vm15, %v6814_v12 }
 0xf67   : > { %v6570_v54 = vpop.f32.mrf.mxu0 }
 0xf6c   : > { %v6615_v47 = vpop.f32.mrf.mxu1 }
 0xf6d   : > { %v6619_v46 = vsel %vm10790_vm9, %v6615_v47, 0.0 }
 0xf6f   : > { %v6572_v6 = vpop.f32.mrf.mxu0 }
 0xf71   : > { %v6531_v2 = vpop.f32.mrf.mxu3 }
 0xf72   : > { %v6646_v41 = vpop.f32.mrf.mxu2  ;;  %v6535_v39 = vsel %vm10786_vm6, %v6531_v2, 0.0 }
 0xf73   : > { %v6574_v35 = vadd.f32 %v6570_v54, %v6535_v39  ;;  %v6650_v57 = vsel %vm10786_vm6, %v6646_v41, 0.0 }
 0xf74   : > { %v6617_v31 = vpop.f32.mrf.mxu1 }
 0xf75   : > { %v6620_v58 = vadd.f32 %v6619_v46, %v6574_v35 }
 0xf77   : > { %v6724_v11 = vpop.f32.mrf.mxu0  ;;  %v6651_v48 = vadd.f32 %v6650_v57, %v6620_v58 }
 0xf78   : > { %v6728_v42 = vsel %vm10790_vm9, %v6724_v11, 0.0 }
 0xf79   : > { %v6533_v5 = vpop.f32.mrf.mxu3 }
 0xf7a   : > { %v6648_v52 = vpop.f32.mrf.mxu2 }
 0xf7c   : > { %v6755_v45 = vpop.f32.mrf.mxu1 }
 0xf7d   : > { %v6759_v36 = vsel %vm10786_vm6, %v6755_v45, 0.0 }
 0xf7f   : > { %v6726_v8 = vpop.f32.mrf.mxu0 }
 0xf81   : > { %v6680_v0 = vpop.f32.mrf.mxu3 }
 0xf82   : > { %v6794_v32 = vpop.f32.mrf.mxu2  ;;  %v6684_v28 = vadd.f32 %v6680_v0, %v6651_v48 }
 0xf84   : > { %v6757_v17 = vpop.f32.mrf.mxu1  ;;  %v6729_v22 = vadd.f32 %v6728_v42, %v6684_v28 }
 0xf86   : > { %v6760_v7 = vadd.f32 %v6759_v36, %v6729_v22 }
 0xf88   : > { %v6798_v3 = vadd.f32 %v6794_v32, %v6760_v7 }
 0xf89   : > { %v6682_v50 = vpop.f32.mrf.mxu3 }
 0xf8a   : > { %v6796_v30 = vpop.f32.mrf.mxu2 }
 0xf91   : > { %v6839_v51 = vpop.f32.mrf.mxu3 }
 0xf92   : > { %v6843_v1 = vsel %vm10790_vm9, %v6839_v51, 0.0 }
 0xf93   : > { %v6844_v14 = vadd.f32 %v6843_v1, %v6798_v3 }
 0xf95   : > { %6846 = vrot.lane.b32.xlu0 %v6844_v14, %s11192_s3  ;;  %s6861_s3 = scalar_lea.sflag [#allocation5], %s1005_s2 }
 0xf99   : > { %v6841_v63 = vpop.f32.mrf.mxu3 }
0x1007   : > { %v6847_v44 = vpop.permute.xlu0 %6846 }
0x1008   : > { %6850 = vst.msk [vmem:[#allocation2] sm:$0xf] %vm6849_vm3, %v6847_v44 }
0x100f   : > { %v6851_v43 = vld [vmem:[#allocation2] sm:$0xf] }
0x1010   : > { %v6854_v40 = vmul.f32 %v8470_v37, %v6851_v43 }
0x1012   : > { %v6857_v55 = vadd.f32 %v8471_v15, %v6854_v40 }
0x1014   : > { %v6858_v16 = vmax.f32 %v6857_v55, 0.0 }
0x1016   : > { %6859 = vst.msk [vmem:[%s1007_s9] sm:$0xf] %vm11229_vm5, %v6858_v16 }
0x1017   : > { %8499 = shalt.err (!%p8496_p3)
}
0x1018   : > { %8373 = dma.vmem_to_hbm [thread:$0]  (%p8785_p5), %s6874_s12, 64, %s6876_s13, %s6861_s3  }
0x1019 PF: > { %p8379_p4 = scmp.ge.s32.totalorder %s8534_s15, 2  ;;  %s6887_s9 = sand.u32 1, %s8522_s7  }
0x101a   : > { %s6888_s8 = scalar_lea.sflag [#allocation5], %s6887_s9 }
0x101b   : > { %p8376_p7 = pnand %p8379_p4, %p8789_p6 }
0x101d   : > { %p8377_p8 = pneg %p8376_p7 }
0x101f   : > { %8517 = dma.done.wait (%p8377_p8), %s6888_s8, 64  }
0x1020   : > { %8519 = vsyncadd (%p8377_p8), %s6888_s8, 4294967232  ;;  %p77_p9 = scmp.ge.s32.totalorder %s8772_s18, 4   ;;  %s11230_s7 = smov %s8526_s10 }
0x1021   : > { %s11231_s10 = smov %s8530_s11  ;;  %s11232_s11 = smov %s8783_s26 }
0x1022   : > { %s11233_s15 = smov %s8772_s18  ;;  %79 = sbr.rel (!%p77_p9) target bundleno = 71 (0x47), region = 220 }
0x1027   :  { %6894 = vsyncpa [#allocation5], 1 }
0x1028   :  { %6896 = vsyncpa [#allocation5 + $0x1], 1 }

</bundles_post_ra>
